<compile_context>
chip_gen: v7x
topology: tpu7x:2x2x1
jax: 0.10.0
libtpu: 0.0.40
codegen_flags: <defaults>
</compile_context>

<pallas_src>
import functools

import jax
import jax.numpy as jnp
from jax.experimental import pallas as pl
from jax.experimental.pallas import tpu as pltpu


def _mlp_kernel(x_ref,
                w1_ref, b1_ref,
                w2_ref, b2_ref,
                w3_ref, b3_ref,
                w4_ref, b4_ref,
                o_ref):
    # Input tile is read as f32 from HBM and cast in-kernel (no wrapper pass).
    x = x_ref[...].astype(jnp.bfloat16)
    # linear1 + relu   (bf16 x bf16 -> f32 accumulation on the MXU)
    h = jnp.dot(x, w1_ref[...], preferred_element_type=jnp.float32)
    h = jnp.maximum(h + b1_ref[...], 0.0)
    # linear2 + relu
    h = jnp.dot(h.astype(jnp.bfloat16), w2_ref[...],
                preferred_element_type=jnp.float32)
    h = jnp.maximum(h + b2_ref[...], 0.0)
    # linear3 + clamp(min=0)  (== relu)
    h = jnp.dot(h.astype(jnp.bfloat16), w3_ref[...],
                preferred_element_type=jnp.float32)
    h = jnp.maximum(h + b3_ref[...], 0.0)
    # linear4 (256 -> 1): lane reduction (VPU/XLU) instead of an N=1 MXU matmul.
    v = jnp.sum(h * w4_ref[...], axis=-1, keepdims=True)
    o_ref[...] = (v + b4_ref[...]).astype(o_ref.dtype)


def prepare_params(params):
    """One-time parameter preparation. Cast the big weights to bf16 ONCE and
    keep the result resident across calls (do NOT redo this per step)."""
    (w1, b1), (w2, b2), (w3, b3), (w4, b4) = params
    return (
        w1.astype(jnp.bfloat16), b1.astype(jnp.float32),
        w2.astype(jnp.bfloat16), b2.astype(jnp.float32),
        w3.astype(jnp.bfloat16), b3.astype(jnp.float32),
        # Final layer weight stays f32 (used on the VPU, tiny: 1 KiB).
        w4.reshape(1, -1).astype(jnp.float32), b4.astype(jnp.float32),
    )


_FLOPS_PER_ROW = 2 * (2048 * 1024 + 1024 * 512 + 512 * 256 + 256 * 1)


def value_estimator_forward(state, prepared, *, batch_tile=None):
    """state: (B, 2048) float32.  prepared: output of prepare_params.
    Returns value: (B, 1) float32."""
    B, D_in = state.shape
    assert D_in == 2048
    w1, b1, w2, b2, w3, b3, w4_row, b4 = prepared

    # Adaptive batch tile: fill the 256-wide MXUs (v6e/v7x) and amortize the
    # per-step pipeline overhead at large B; 128 as the small-batch fallback.
    # Do not exceed ~512 rows (keeps the f32 intermediates + double-buffered
    # x tile well inside v7x's 64 MiB physical VMEM / 32 MiB scoped limit).
    if batch_tile is None:
        if B >= 1024:
            batch_tile = 512
        elif B >= 256:
            batch_tile = 256
        else:
            batch_tile = 128

    num_tiles = pl.cdiv(B, batch_tile)  # ragged last block is masked by Pallas

    # Megacore: shard the batch axis across TensorCores only when there are
    # >= 2 grid steps and the batch is large enough to be compute-bound.
    # (For weight-bound small B, splitting would duplicate the ~5.3 MiB weight
    # DMA into both v7x cores.)
    parallel = (num_tiles >= 2) and (B >= 512)
    dim_sem = ("parallel",) if parallel else ("arbitrary",)

    # Grid-invariant blocks (same block index every step): single-buffer them
    # so the ~5.3 MiB of bf16 weights is not double-allocated in VMEM.
    def const_spec(shape):
        return pl.BlockSpec(shape, lambda i: (0, 0),
                            pipeline_mode=pl.Buffered(1))

    flops = B * _FLOPS_PER_ROW
    bytes_accessed = (
        B * 2048 * 4                                         # state (f32, read once)
        + (w1.size + w2.size + w3.size) * 2                  # weights (bf16)
        + w4_row.size * 4                                    # final weight (f32)
        + (b1.size + b2.size + b3.size + b4.size) * 4        # biases (f32)
        + B * 1 * 4                                          # output (f32)
    )

    out = pl.pallas_call(
        _mlp_kernel,
        out_shape=jax.ShapeDtypeStruct((B, 1), jnp.float32),
        grid_spec=pltpu.PrefetchScalarGridSpec(
            num_scalar_prefetch=0,
            grid=(num_tiles,),
            in_specs=[
                pl.BlockSpec((batch_tile, 2048), lambda i: (i, 0)),
                const_spec(w1.shape), const_spec(b1.shape),
                const_spec(w2.shape), const_spec(b2.shape),
                const_spec(w3.shape), const_spec(b3.shape),
                const_spec(w4_row.shape), const_spec(b4.shape),
            ],
            out_specs=pl.BlockSpec((batch_tile, 1), lambda i: (i, 0)),
        ),
        compiler_params=pltpu.CompilerParams(
            dimension_semantics=dim_sem,
            vmem_limit_bytes=32 * 1024 * 1024,
        ),
        cost_estimate=pl.CostEstimate(
            flops=flops, transcendentals=0, bytes_accessed=bytes_accessed),
    )(state, w1, b1, w2, b2, w3, b3, w4_row, b4)
    return out


def init_params(key):
    """torch.nn.Linear-style init (U(-1/sqrt(in), 1/sqrt(in))).
    Weights stored transposed as (in_features, out_features); biases (1, out)."""
    dims = [(2048, 1024), (1024, 512), (512, 256), (256, 1)]
    params = []
    for d_in, d_out in dims:
        key, kw, kb = jax.random.split(key, 3)
        bound = 1.0 / (d_in ** 0.5)
        w = jax.random.uniform(kw, (d_in, d_out), jnp.float32, -bound, bound)
        b = jax.random.uniform(kb, (1, d_out), jnp.float32, -bound, bound)
        params.append((w, b))
    return params


def _reference_forward(state, params):
    (w1, b1), (w2, b2), (w3, b3), (w4, b4) = params
    h = jnp.maximum(state @ w1 + b1, 0.0)
    h = jnp.maximum(h @ w2 + b2, 0.0)
    h = jnp.maximum(h @ w3 + b3, 0.0)   # clamp(min=0)
    return h @ w4 + b4                  # value, no activation


if __name__ == "__main__":
    key = jax.random.PRNGKey(0)
    key, k_small, k_big = jax.random.split(key, 3)

    params = init_params(key)
    prepared = prepare_params(params)   # one-time bf16 cast; reuse every call

    # Small batch (ragged: 4 rows inside a single 128-row tile).
    B = 4
    state = jax.random.normal(k_small, (B, 2048), jnp.float32)
    out = jax.block_until_ready(value_estimator_forward(state, prepared))
    ref = _reference_forward(state, params)
    assert out.shape == (B, 1)
    # bf16 matmul operands with f32 accumulation -> loosened tolerance vs the
    # pure-f32 reference.
    assert jnp.allclose(out, ref, atol=5e-2, rtol=5e-2), (
        "small-batch mismatch vs reference: max abs err "
        f"{float(jnp.max(jnp.abs(out - ref))):.4e}")

    # Multi-tile batch (2 grid steps of 256 with a ragged last block).
    B2 = 260
    state2 = jax.random.normal(k_big, (B2, 2048), jnp.float32)
    out2 = jax.block_until_ready(value_estimator_forward(state2, prepared))
    ref2 = _reference_forward(state2, params)
    assert out2.shape == (B2, 1)
    assert jnp.allclose(out2, ref2, atol=5e-2, rtol=5e-2), (
        "multi-tile mismatch vs reference: max abs err "
        f"{float(jnp.max(jnp.abs(out2 - ref2))):.4e}")

    print("KERNEL_OK")
</pallas_src>

<mosaic_0001>
module attributes {stable_mosaic.version = 11 : i64} {
  func.func @_mlp_kernel(%arg0: i32, %arg1: memref<128x2048xf32, #tpu.memory_space<vmem>>, %arg2: memref<2048x1024xbf16, #tpu.memory_space<vmem>>, %arg3: memref<1x1024xf32, #tpu.memory_space<vmem>>, %arg4: memref<1024x512xbf16, #tpu.memory_space<vmem>>, %arg5: memref<1x512xf32, #tpu.memory_space<vmem>>, %arg6: memref<512x256xbf16, #tpu.memory_space<vmem>>, %arg7: memref<1x256xf32, #tpu.memory_space<vmem>>, %arg8: memref<1x256xf32, #tpu.memory_space<vmem>>, %arg9: memref<1x1xf32, #tpu.memory_space<vmem>>, %arg10: memref<128x1xf32, #tpu.memory_space<vmem>>) attributes {dimension_semantics = [#tpu.dimension_semantics<arbitrary>], iteration_bounds = array<i64: 1>, scalar_prefetch = 0 : i64, scratch_operands = 0 : i64, tpu.core_type = #tpu.core_type<tc>, window_params = [{transform_indices = @transform_0, window_bounds = array<i64: 128, 2048>}, {pipeline_mode = #tpu.pipeline_mode<synchronous>, transform_indices = @transform_1, window_bounds = array<i64: 2048, 1024>}, {pipeline_mode = #tpu.pipeline_mode<synchronous>, transform_indices = @transform_2, window_bounds = array<i64: 1, 1024>}, {pipeline_mode = #tpu.pipeline_mode<synchronous>, transform_indices = @transform_3, window_bounds = array<i64: 1024, 512>}, {pipeline_mode = #tpu.pipeline_mode<synchronous>, transform_indices = @transform_4, window_bounds = array<i64: 1, 512>}, {pipeline_mode = #tpu.pipeline_mode<synchronous>, transform_indices = @transform_5, window_bounds = array<i64: 512, 256>}, {pipeline_mode = #tpu.pipeline_mode<synchronous>, transform_indices = @transform_6, window_bounds = array<i64: 1, 256>}, {pipeline_mode = #tpu.pipeline_mode<synchronous>, transform_indices = @transform_7, window_bounds = array<i64: 1, 256>}, {pipeline_mode = #tpu.pipeline_mode<synchronous>, transform_indices = @transform_8, window_bounds = array<i64: 1, 1>}, {transform_indices = @transform_9, window_bounds = array<i64: 128, 1>}]} {
    %c0 = arith.constant 0 : index
    %c0_0 = arith.constant 0 : index
    %0 = vector.load %arg1[%c0, %c0_0] : memref<128x2048xf32, #tpu.memory_space<vmem>>, vector<128x2048xf32>
    %1 = arith.truncf %0 : vector<128x2048xf32> to vector<128x2048xbf16>
    %c0_1 = arith.constant 0 : index
    %c0_2 = arith.constant 0 : index
    %2 = vector.load %arg2[%c0_1, %c0_2] : memref<2048x1024xbf16, #tpu.memory_space<vmem>>, vector<2048x1024xbf16>
    %cst = arith.constant dense<0.000000e+00> : vector<128x1024xf32>
    %3 = tpu.matmul %1, %2, %cst {dimension_numbers = #tpu.dot_dimension_numbers<[1], [0], [0], [1], [0, 0, 1, 1], [], []>} : vector<128x2048xbf16>, vector<2048x1024xbf16>, vector<128x1024xf32> -> vector<128x1024xf32>
    %c0_3 = arith.constant 0 : index
    %c0_4 = arith.constant 0 : index
    %4 = vector.load %arg3[%c0_3, %c0_4] : memref<1x1024xf32, #tpu.memory_space<vmem>>, vector<1x1024xf32>
    %5 = vector.broadcast %4 : vector<1x1024xf32> to vector<128x1024xf32>
    %6 = arith.addf %3, %5 : vector<128x1024xf32>
    %cst_5 = arith.constant 0.000000e+00 : f32
    %7 = vector.broadcast %cst_5 : f32 to vector<128x1024xf32>
    %8 = arith.maximumf %6, %7 : vector<128x1024xf32>
    %9 = arith.truncf %8 : vector<128x1024xf32> to vector<128x1024xbf16>
    %c0_6 = arith.constant 0 : index
    %c0_7 = arith.constant 0 : index
    %10 = vector.load %arg4[%c0_6, %c0_7] : memref<1024x512xbf16, #tpu.memory_space<vmem>>, vector<1024x512xbf16>
    %cst_8 = arith.constant dense<0.000000e+00> : vector<128x512xf32>
    %11 = tpu.matmul %9, %10, %cst_8 {dimension_numbers = #tpu.dot_dimension_numbers<[1], [0], [0], [1], [0, 0, 1, 1], [], []>} : vector<128x1024xbf16>, vector<1024x512xbf16>, vector<128x512xf32> -> vector<128x512xf32>
    %c0_9 = arith.constant 0 : index
    %c0_10 = arith.constant 0 : index
    %12 = vector.load %arg5[%c0_9, %c0_10] : memref<1x512xf32, #tpu.memory_space<vmem>>, vector<1x512xf32>
    %13 = vector.broadcast %12 : vector<1x512xf32> to vector<128x512xf32>
    %14 = arith.addf %11, %13 : vector<128x512xf32>
    %cst_11 = arith.constant 0.000000e+00 : f32
    %15 = vector.broadcast %cst_11 : f32 to vector<128x512xf32>
    %16 = arith.maximumf %14, %15 : vector<128x512xf32>
    %17 = arith.truncf %16 : vector<128x512xf32> to vector<128x512xbf16>
    %c0_12 = arith.constant 0 : index
    %c0_13 = arith.constant 0 : index
    %18 = vector.load %arg6[%c0_12, %c0_13] : memref<512x256xbf16, #tpu.memory_space<vmem>>, vector<512x256xbf16>
    %cst_14 = arith.constant dense<0.000000e+00> : vector<128x256xf32>
    %19 = tpu.matmul %17, %18, %cst_14 {dimension_numbers = #tpu.dot_dimension_numbers<[1], [0], [0], [1], [0, 0, 1, 1], [], []>} : vector<128x512xbf16>, vector<512x256xbf16>, vector<128x256xf32> -> vector<128x256xf32>
    %c0_15 = arith.constant 0 : index
    %c0_16 = arith.constant 0 : index
    %20 = vector.load %arg7[%c0_15, %c0_16] : memref<1x256xf32, #tpu.memory_space<vmem>>, vector<1x256xf32>
    %21 = vector.broadcast %20 : vector<1x256xf32> to vector<128x256xf32>
    %22 = arith.addf %19, %21 : vector<128x256xf32>
    %cst_17 = arith.constant 0.000000e+00 : f32
    %23 = vector.broadcast %cst_17 : f32 to vector<128x256xf32>
    %24 = arith.maximumf %22, %23 : vector<128x256xf32>
    %c0_18 = arith.constant 0 : index
    %c0_19 = arith.constant 0 : index
    %25 = vector.load %arg8[%c0_18, %c0_19] : memref<1x256xf32, #tpu.memory_space<vmem>>, vector<1x256xf32>
    %26 = vector.broadcast %25 : vector<1x256xf32> to vector<128x256xf32>
    %27 = arith.mulf %24, %26 : vector<128x256xf32>
    %cst_20 = arith.constant dense<0.000000e+00> : vector<128xf32>
    %28 = vector.multi_reduction <add>, %27, %cst_20 [1] : vector<128x256xf32> to vector<128xf32>
    %29 = vector.shape_cast %28 : vector<128xf32> to vector<128x1xf32>
    %c0_21 = arith.constant 0 : index
    %c0_22 = arith.constant 0 : index
    %30 = vector.load %arg9[%c0_21, %c0_22] : memref<1x1xf32, #tpu.memory_space<vmem>>, vector<1x1xf32>
    %31 = vector.broadcast %30 : vector<1x1xf32> to vector<128x1xf32>
    %32 = arith.addf %29, %31 : vector<128x1xf32>
    %c0_23 = arith.constant 0 : index
    %c0_24 = arith.constant 0 : index
    %33 = vector.load %arg10[%c0_23, %c0_24] : memref<128x1xf32, #tpu.memory_space<vmem>>, vector<128x1xf32>
    tpu.vector_store %arg10[%c0_23, %c0_24], %32 {strides = array<i32>} : memref<128x1xf32, #tpu.memory_space<vmem>>, vector<128x1xf32>,
    return
  }
  func.func @transform_0(%arg0: i32) -> (i32, i32) {
    %c0_i32 = arith.constant 0 : i32
    %c0_i32_0 = arith.constant 0 : i32
    return %arg0, %c0_i32 : i32, i32
  }
  func.func @transform_1(%arg0: i32) -> (i32, i32) {
    %c0_i32 = arith.constant 0 : i32
    %c0_i32_0 = arith.constant 0 : i32
    %c0_i32_1 = arith.constant 0 : i32
    return %c0_i32, %c0_i32_0 : i32, i32
  }
  func.func @transform_2(%arg0: i32) -> (i32, i32) {
    %c0_i32 = arith.constant 0 : i32
    %c0_i32_0 = arith.constant 0 : i32
    %c0_i32_1 = arith.constant 0 : i32
    return %c0_i32, %c0_i32_0 : i32, i32
  }
  func.func @transform_3(%arg0: i32) -> (i32, i32) {
    %c0_i32 = arith.constant 0 : i32
    %c0_i32_0 = arith.constant 0 : i32
    %c0_i32_1 = arith.constant 0 : i32
    return %c0_i32, %c0_i32_0 : i32, i32
  }
  func.func @transform_4(%arg0: i32) -> (i32, i32) {
    %c0_i32 = arith.constant 0 : i32
    %c0_i32_0 = arith.constant 0 : i32
    %c0_i32_1 = arith.constant 0 : i32
    return %c0_i32, %c0_i32_0 : i32, i32
  }
  func.func @transform_5(%arg0: i32) -> (i32, i32) {
    %c0_i32 = arith.constant 0 : i32
    %c0_i32_0 = arith.constant 0 : i32
    %c0_i32_1 = arith.constant 0 : i32
    return %c0_i32, %c0_i32_0 : i32, i32
  }
  func.func @transform_6(%arg0: i32) -> (i32, i32) {
    %c0_i32 = arith.constant 0 : i32
    %c0_i32_0 = arith.constant 0 : i32
    %c0_i32_1 = arith.constant 0 : i32
    return %c0_i32, %c0_i32_0 : i32, i32
  }
  func.func @transform_7(%arg0: i32) -> (i32, i32) {
    %c0_i32 = arith.constant 0 : i32
    %c0_i32_0 = arith.constant 0 : i32
    %c0_i32_1 = arith.constant 0 : i32
    return %c0_i32, %c0_i32_0 : i32, i32
  }
  func.func @transform_8(%arg0: i32) -> (i32, i32) {
    %c0_i32 = arith.constant 0 : i32
    %c0_i32_0 = arith.constant 0 : i32
    %c0_i32_1 = arith.constant 0 : i32
    return %c0_i32, %c0_i32_0 : i32, i32
  }
  func.func @transform_9(%arg0: i32) -> (i32, i32) {
    %c0_i32 = arith.constant 0 : i32
    %c0_i32_0 = arith.constant 0 : i32
    return %arg0, %c0_i32 : i32, i32
  }
}

</mosaic_0001>

<bundles_post_ra>
// kernel: tpu_custom_call.1
= control target key start
LH: loop header
LB: loop body
LE: loop exit
PB: predicated region body
PF: predicated region fallthrough
CT: control target
= control target key end

     0   :  { %s20425_s0 = inlined_call_operand.hbm [shape: f32[4,2048], index: 0, kind: input, shape index: {}]   ;;  %s20426_s1 = inlined_call_operand.hbm [shape: bf16[2048,1024], index: 1, kind: input, shape index: {}]   ;;  %s20427_s2 = inlined_call_operand.hbm [shape: f32[1,1024], index: 2, kind: input, shape index: {}]   ;;  %s20428_s3 = inlined_call_operand.hbm [shape: bf16[1024,512], index: 3, kind: input, shape index: {}]   ;;  %s20429_s4 = inlined_call_operand.hbm [shape: f32[1,512], index: 4, kind: input, shape index: {}]   ;;  %s20430_s5 = inlined_call_operand.hbm [shape: bf16[512,256], index: 5, kind: input, shape index: {}]   ;;  %s20431_s6 = inlined_call_operand.hbm [shape: f32[1,256], index: 6, kind: input, shape index: {}]   ;;  %s20432_s7 = inlined_call_operand.hbm [shape: f32[1,256], index: 7, kind: input, shape index: {}]   ;;  %s20433_s8 = inlined_call_operand.<no memory space> [shape: f32[1,1], index: 8, kind: input, shape index: {}]   ;;  %s20434_s9 = inlined_call_operand.vmem [shape: f32[4,1], index: 9, kind: output, shape index: {}]  }
   0x1   :  { %v14_v0 = vstv %s20433_s8 }
   0x2   :  { %15 = vst [vmem:[#allocation2] sm:$0x1] %v14_v0 }
   0x3   :  { %16 = vsyncpa [#allocation4], 0 }
   0x4   :  { %17 = vsyncpa [#allocation6], 0 }
   0x5   :  { %18 = vsyncpa [#allocation9], 0 }
   0x6   :  { %19 = vsyncpa [#allocation12], 0 }
   0x7   :  { %20 = vsyncpa [#allocation15], 0 }
   0x8   :  { %25 = vsyncadd [#allocation4], 31744  ;;  %s18042_s11 = smov [#allocation5]   ;;  %s17856_s15 = scalar_lea.hbm %s20426_s1, 131072 }
   0x9   :  { %s38_s12 = sshll.u32 %s18042_s11, 4  ;;  %p17857_p0 = scmp.ne.s32.totalorder %s20426_s1, %s17856_s15  ;;  %s39_s12 = int_to_ptr.vmem [resolvable:$true] %s38_s12 }
   0xa   :  { %p17860_p1 = scmp.lt.u32.totalorder %s17856_s15, %s20426_s1 }
   0xc   :  { %p17862_p2 = pnand %p17860_p1, %p17857_p0 }
   0xe   :  { %17865 = shalt.err (!%p17862_p2)
}
   0xf   :  { %s17866_s19 = scalar_lea.vmem %s39_s12, 131072  ;;  %p17871_p4 = scmp.lt.s32.totalorder %s39_s12, %s39_s12 }
  0x10   :  { %p17867_p3 = scmp.ne.s32.totalorder %s39_s12, %s17866_s19  ;;  %p17872_p5 = scmp.lt.s32.totalorder %s17866_s19, %s17866_s19 }
  0x12   :  { %p17873_p6 = por %p17872_p5, %p17871_p4 }
  0x14   :  { %p17874_p7 = pnand %p17873_p6, %p17867_p3 }
  0x16   :  { %17877 = shalt.err (!%p17874_p7)
}
  0x17   :  { %s18043_s20 = smov 512   ;;  %s18044_s21 = smov 32  }
  0x18   :  { %44 = dma.hbm_to_vmem [thread:$0]  %s20426_s1, 131072, %s39_s12, [#allocation6], %s18043_s20, %s18043_s20, %s18044_s21  }
  0x19   :  { %s18045_s24 = smov [#allocation8]   ;;  %s17878_s28 = scalar_lea.hbm %s20428_s3, 32768 }
  0x1a   :  { %s60_s25 = sshll.u32 %s18045_s24, 4  ;;  %p17879_p8 = scmp.ne.s32.totalorder %s20428_s3, %s17878_s28  ;;  %s61_s25 = int_to_ptr.vmem [resolvable:$true] %s60_s25 }
  0x1b   :  { %p17882_p9 = scmp.lt.u32.totalorder %s17878_s28, %s20428_s3 }
  0x1d   :  { %p17884_p10 = pnand %p17882_p9, %p17879_p8 }
  0x1f   :  { %17887 = shalt.err (!%p17884_p10)
}
  0x20   :  { %s17888_s13 = scalar_lea.vmem %s61_s25, 32768  ;;  %p17893_p12 = scmp.lt.s32.totalorder %s61_s25, %s61_s25 }
  0x21   :  { %p17889_p11 = scmp.ne.s32.totalorder %s61_s25, %s17888_s13  ;;  %p17894_p13 = scmp.lt.s32.totalorder %s17888_s13, %s17888_s13 }
  0x23   :  { %p17895_p0 = por %p17894_p13, %p17893_p12 }
  0x25   :  { %p17896_p1 = pnand %p17895_p0, %p17889_p11 }
  0x27   :  { %17899 = shalt.err (!%p17896_p1)
}
  0x28   :  { %s18046_s1 = smov 256   ;;  %s18047_s12 = smov 16  }
  0x29   :  { %66 = dma.hbm_to_vmem [thread:$0]  %s20428_s3, 32768, %s61_s25, [#allocation9], %s18046_s1, %s18046_s1, %s18047_s12  }
  0x2a   :  { %s18048_s16 = smov [#allocation11]   ;;  %s17900_s19 = scalar_lea.hbm %s20430_s5, 8192 }
  0x2b   :  { %s82_s17 = sshll.u32 %s18048_s16, 4  ;;  %p17901_p2 = scmp.ne.s32.totalorder %s20430_s5, %s17900_s19  ;;  %s83_s17 = int_to_ptr.vmem [resolvable:$true] %s82_s17 }
  0x2c   :  { %p17904_p3 = scmp.lt.u32.totalorder %s17900_s19, %s20430_s5 }
  0x2e   :  { %p17906_p4 = pnand %p17904_p3, %p17901_p2 }
  0x30   :  { %17909 = shalt.err (!%p17906_p4)
}
  0x31   :  { %s17910_s24 = scalar_lea.vmem %s83_s17, 8192  ;;  %p17915_p6 = scmp.lt.s32.totalorder %s83_s17, %s83_s17 }
  0x32   :  { %p17911_p5 = scmp.ne.s32.totalorder %s83_s17, %s17910_s24  ;;  %p17916_p7 = scmp.lt.s32.totalorder %s17910_s24, %s17910_s24 }
  0x34   :  { %p17917_p8 = por %p17916_p7, %p17915_p6 }
  0x36   :  { %p17918_p9 = pnand %p17917_p8, %p17911_p5 }
  0x38   :  { %17921 = shalt.err (!%p17918_p9)
}
  0x39   :  { %s18049_s3 = smov 128   ;;  %s18050_s25 = smov 8  }
  0x3a   :  { %88 = dma.hbm_to_vmem [thread:$0]  %s20430_s5, 8192, %s83_s17, [#allocation12], %s18049_s3, %s18049_s3, %s18050_s25  }
  0x3b   :  { %s18051_s28 = smov [#allocation3]   ;;  %s17922_s11 = scalar_lea.hbm %s20425_s0, 1024 }
  0x3c   :  { %s26_s29 = sshll.u32 %s18051_s28, 4  ;;  %p17923_p10 = scmp.ne.s32.totalorder %s20425_s0, %s17922_s11  ;;  %s27_s29 = int_to_ptr.vmem [resolvable:$true] %s26_s29 }
  0x3d   :  { %p17926_p11 = scmp.lt.u32.totalorder %s17922_s11, %s20425_s0 }
  0x3f   :  { %p17928_p12 = pnand %p17926_p11, %p17923_p10 }
  0x41   :  { %17931 = shalt.err (!%p17928_p12)
}
  0x42   :  { %s17932_s15 = scalar_lea.vmem %s27_s29, 1024  ;;  %s17936_s5 = scalar_lea.vmem %s27_s29, 32768 }
  0x43   :  { %p17933_p13 = scmp.ne.s32.totalorder %s27_s29, %s17932_s15  ;;  %p17937_p0 = scmp.lt.s32.totalorder %s27_s29, %s27_s29 }
  0x44   :  { %p17938_p1 = scmp.lt.s32.totalorder %s17936_s5, %s17932_s15 }
  0x46   :  { %p17939_p2 = por %p17938_p1, %p17937_p0 }
  0x48   :  { %p17940_p3 = pnand %p17939_p2, %p17933_p13 }
  0x4a   :  { %17943 = shalt.err (!%p17940_p3)
}
  0x4b   :  { %s18052_s16 = smov 1024   ;;  %s18053_s17 = smov 64  }
  0x4c   :  { %32 = dma.hbm_to_vmem [thread:$0]  %s20425_s0, 1024, %s27_s29, [#allocation4], %s18052_s16, %s18052_s16, %s18053_s17  }
  0x4d   :  { %s18054_s19 = smov [#allocation7]   ;;  %s18055_s21 = smov [#allocation10]  }
  0x4e   :  { %s51_s20 = sshll.u32 %s18054_s19, 4  ;;  %s73_s22 = sshll.u32 %s18055_s21, 4  ;;  %s52_s20 = int_to_ptr.vmem [resolvable:$true] %s51_s20  ;;  %s74_s22 = int_to_ptr.vmem [resolvable:$true] %s73_s22 }
  0x4f   :  { %s17944_s3 = scalar_lea.hbm %s20427_s2, 128 }
  0x50   :  { %p17945_p4 = scmp.ne.s32.totalorder %s20427_s2, %s17944_s3  ;;  %p17948_p5 = scmp.lt.u32.totalorder %s17944_s3, %s20427_s2 }
  0x52   :  { %p17950_p6 = pnand %p17948_p5, %p17945_p4 }
  0x54   :  { %17953 = shalt.err (!%p17950_p6)
}
  0x55   :  { %s17954_s0 = scalar_lea.vmem %s52_s20, 128  ;;  %p17959_p8 = scmp.lt.s32.totalorder %s52_s20, %s52_s20 }
  0x56   :  { %p17955_p7 = scmp.ne.s32.totalorder %s52_s20, %s17954_s0  ;;  %p17960_p9 = scmp.lt.s32.totalorder %s17954_s0, %s17954_s0 }
  0x58   :  { %p17961_p10 = por %p17960_p9, %p17959_p8 }
  0x5a   :  { %p17962_p11 = pnand %p17961_p10, %p17955_p7 }
  0x5c   :  { %17965 = shalt.err (!%p17962_p11)
}
  0x5d   :  { %54 = dma.hbm_to_vmem [thread:$0]  %s20427_s2, 128, %s52_s20, [#allocation6]  }
  0x5e   :  { %s17966_s13 = scalar_lea.hbm %s20429_s4, 64 }
  0x5f   :  { %p17967_p12 = scmp.ne.s32.totalorder %s20429_s4, %s17966_s13  ;;  %p17970_p13 = scmp.lt.u32.totalorder %s17966_s13, %s20429_s4 }
  0x61   :  { %p17972_p0 = pnand %p17970_p13, %p17967_p12 }
  0x63   :  { %17975 = shalt.err (!%p17972_p0)
}
  0x64   :  { %s17976_s5 = scalar_lea.vmem %s74_s22, 64  ;;  %p17981_p2 = scmp.lt.s32.totalorder %s74_s22, %s74_s22 }
  0x65   :  { %p17977_p1 = scmp.ne.s32.totalorder %s74_s22, %s17976_s5  ;;  %p17982_p3 = scmp.lt.s32.totalorder %s17976_s5, %s17976_s5 }
  0x67   :  { %p17983_p4 = por %p17982_p3, %p17981_p2 }
  0x69   :  { %p17984_p5 = pnand %p17983_p4, %p17977_p1 }
  0x6b   :  { %17987 = shalt.err (!%p17984_p5)
}
  0x6c   :  { %76 = dma.hbm_to_vmem [thread:$0]  %s20429_s4, 64, %s74_s22, [#allocation9]  }
  0x6d   :  { %s18056_s17 = smov [#allocation13]   ;;  %s18057_s8 = smov [#allocation14]  }
  0x6e   :  { %s95_s18 = sshll.u32 %s18056_s17, 4  ;;  %s105_s19 = sshll.u32 %s18057_s8, 4  ;;  %s96_s18 = int_to_ptr.vmem [resolvable:$true] %s95_s18  ;;  %s106_s19 = int_to_ptr.vmem [resolvable:$true] %s105_s19 }
  0x6f   :  { %s17988_s23 = scalar_lea.hbm %s20431_s6, 32 }
  0x70   :  { %p17989_p6 = scmp.ne.s32.totalorder %s20431_s6, %s17988_s23  ;;  %p17992_p7 = scmp.lt.u32.totalorder %s17988_s23, %s20431_s6 }
  0x72   :  { %p17994_p8 = pnand %p17992_p7, %p17989_p6 }
  0x74   :  { %17997 = shalt.err (!%p17994_p8)
}
  0x75   :  { %s17998_s4 = scalar_lea.vmem %s96_s18, 32  ;;  %p18003_p10 = scmp.lt.s32.totalorder %s96_s18, %s96_s18 }
  0x76   :  { %p17999_p9 = scmp.ne.s32.totalorder %s96_s18, %s17998_s4  ;;  %p18004_p11 = scmp.lt.s32.totalorder %s17998_s4, %s17998_s4 }
  0x78   :  { %p18005_p12 = por %p18004_p11, %p18003_p10 }
  0x7a   :  { %p18006_p13 = pnand %p18005_p12, %p17999_p9 }
  0x7c   :  { %18009 = shalt.err (!%p18006_p13)
}
  0x7d   :  { %98 = dma.hbm_to_vmem [thread:$0]  %s20431_s6, 32, %s96_s18, [#allocation12]  }
  0x7e   :  { %s18010_s29 = scalar_lea.hbm %s20432_s7, 32 }
  0x7f   :  { %p18011_p0 = scmp.ne.s32.totalorder %s20432_s7, %s18010_s29  ;;  %p18014_p1 = scmp.lt.u32.totalorder %s18010_s29, %s20432_s7 }
  0x81   :  { %p18016_p2 = pnand %p18014_p1, %p18011_p0 }
  0x83   :  { %18019 = shalt.err (!%p18016_p2)
}
  0x84   :  { %s18020_s1 = scalar_lea.vmem %s106_s19, 32  ;;  %p18025_p4 = scmp.lt.s32.totalorder %s106_s19, %s106_s19 }
  0x85   :  { %p18021_p3 = scmp.ne.s32.totalorder %s106_s19, %s18020_s1  ;;  %p18026_p5 = scmp.lt.s32.totalorder %s18020_s1, %s18020_s1 }
  0x87   :  { %p18027_p6 = por %p18026_p5, %p18025_p4 }
  0x89   :  { %p18028_p7 = pnand %p18027_p6, %p18021_p3 }
  0x8b   :  { %18031 = shalt.err (!%p18028_p7)
}
  0x8c   :  { %108 = dma.hbm_to_vmem [thread:$0]  %s20432_s7, 32, %s106_s19, [#allocation15]  }
  0x8d   :  { %18032 = dma.done.wait [#allocation4], 32768  }
  0x8e   :  { %18033 = vsyncadd [#allocation4], 4294934528 }
  0x8f   :  { %18034 = dma.done.wait [#allocation6], 131200  }
  0x90   :  { %18035 = vsyncadd [#allocation6], 4294836096 }
  0x91   :  { %18036 = dma.done.wait [#allocation9], 32832  }
  0x92   :  { %18037 = vsyncadd [#allocation9], 4294934464 }
  0x93   :  { %18038 = dma.done.wait [#allocation12], 8224  }
  0x94   :  { %18039 = vsyncadd [#allocation12], 4294959072 }
  0x95   :  { %18040 = dma.done.wait [#allocation15], 32  }
  0x96   :  { %18041 = vsyncadd [#allocation15], 4294967264  ;;  %v1287_v1 = vld [vmem:[#allocation5] sm:$0xff]  ;;  %v18217_v0 = vld [vmem:[#allocation3 + $0x8] sm:$0xff]  ;;  %vm14608_vm0 = vcmask 7168  }
  0x97   :  { %v1291_v2 = vld [vmem:[#allocation5 + $0x20] sm:$0xff] }
  0x98   :  { %v1415_v3 = vld [vmem:[#allocation5 + $0x400] sm:$0xff]  ;;  %v14670_v4 = vcombine.high %v1287_v1, %v1291_v2  ;;  %v14669_v6 = vcombine.low %v1287_v1, %v1291_v2  ;;  %v18221_v2 = vld [vmem:[#allocation3 + $0x48] sm:$0xff] }
  0x99   :  { %v1419_v5 = vld [vmem:[#allocation5 + $0x420] sm:$0xff] }
  0x9a   :  { %v1295_v7 = vld [vmem:[#allocation5 + $0x40] sm:$0xff]  ;;  %v14798_v9 = vcombine.high %v1415_v3, %v1419_v5  ;;  %v14797_v10 = vcombine.low %v1415_v3, %v1419_v5  ;;  %7473 = vmatprep.subr.bf16.mxu1 %v14670_v4  ;;  %v18223_v3 = vld [vmem:[#allocation3 + $0x88] sm:$0xff] }
  0x9b   :  { %v1299_v8 = vld [vmem:[#allocation5 + $0x60] sm:$0xff]  ;;  %7474 = vmatpush1.bf16.msra.mxu1 %v14669_v6  ;;  %v18225_v4 = vld [vmem:[#allocation3 + $0xc8] sm:$0xff]  ;;  %v650_v6 = vcombine.high %v18217_v0, %v18221_v2 }
  0x9c   :  { %v14678_v11 = vcombine.high %v1295_v7, %v1299_v8  ;;  %v1423_v12 = vld [vmem:[#allocation5 + $0x440] sm:$0xff]  ;;  %7586 = vmatprep.subr.bf16.mxu0 %v14798_v9  ;;  %v14677_v19 = vcombine.low %v1295_v7, %v1299_v8  ;;  %v666_v7 = vcombine.high %v18223_v3, %v18225_v4 }
  0x9d   :  { %v1427_v13 = vld [vmem:[#allocation5 + $0x460] sm:$0xff]  ;;  %7587 = vmatpush1.bf16.msra.mxu0 %v14797_v10 }
  0x9e   :  { %v1303_v14 = vld [vmem:[#allocation5 + $0x80] sm:$0xff]  ;;  %v14806_v15 = vcombine.high %v1423_v12, %v1427_v13  ;;  %7475 = vmatprep.subr.bf16.mxu1 %v14678_v11  ;;  %v14805_v20 = vcombine.low %v1423_v12, %v1427_v13 }
  0x9f   :  { %v1307_v16 = vld [vmem:[#allocation5 + $0xa0] sm:$0xff]  ;;  %7476 = vmatpush1.bf16.msra.mxu1 %v14677_v19 }
  0xa0   :  { %v1431_v17 = vld [vmem:[#allocation5 + $0x480] sm:$0xff]  ;;  %v14686_v21 = vcombine.high %v1303_v14, %v1307_v16  ;;  %7588 = vmatprep.subr.bf16.mxu0 %v14806_v15  ;;  %v14685_v27 = vcombine.low %v1303_v14, %v1307_v16  ;;  %v18233_v14 = vpack.c.bf16 %v666_v7, %v650_v6 }
  0xa1   :  { %v1435_v18 = vld [vmem:[#allocation5 + $0x4a0] sm:$0xff]  ;;  %7589 = vmatpush1.bf16.msra.mxu0 %v14805_v20 }
  0xa2   :  { %v14814_v22 = vcombine.high %v1431_v17, %v1435_v18  ;;  %v1311_v23 = vld [vmem:[#allocation5 + $0xc0] sm:$0xff]  ;;  %7477 = vmatprep.subr.bf16.mxu1 %v14686_v21  ;;  %v14813_v28 = vcombine.low %v1431_v17, %v1435_v18  ;;  %20727 = vst [vmem:[#allocation23_spill] sm:$0xff] %v18233_v14  ;;  %7618 = vmatprep.mubr.bf16.mxu0 %v18233_v14 }
  0xa3   :  { %v1315_v24 = vld [vmem:[#allocation5 + $0xe0] sm:$0xff]  ;;  %7478 = vmatpush1.bf16.msra.mxu1 %v14685_v27 }
  0xa4   :  { %v1439_v25 = vld [vmem:[#allocation5 + $0x4c0] sm:$0xff]  ;;  %v14694_v29 = vcombine.high %v1311_v23, %v1315_v24  ;;  %7590 = vmatprep.subr.bf16.mxu0 %v14814_v22  ;;  %v14693_v35 = vcombine.low %v1311_v23, %v1315_v24 }
  0xa5   :  { %v1443_v26 = vld [vmem:[#allocation5 + $0x4e0] sm:$0xff]  ;;  %7591 = vmatpush1.bf16.msra.mxu0 %v14813_v28 }
  0xa6   :  { %v14822_v30 = vcombine.high %v1439_v25, %v1443_v26  ;;  %v1319_v31 = vld [vmem:[#allocation5 + $0x100] sm:$0xff]  ;;  %7479 = vmatprep.subr.bf16.mxu1 %v14694_v29  ;;  %v14821_v36 = vcombine.low %v1439_v25, %v1443_v26 }
  0xa7   :  { %v1323_v32 = vld [vmem:[#allocation5 + $0x120] sm:$0xff]  ;;  %7480 = vmatpush1.bf16.msra.mxu1 %v14693_v35 }
  0xa8   :  { %v1447_v33 = vld [vmem:[#allocation5 + $0x500] sm:$0xff]  ;;  %v14702_v37 = vcombine.high %v1319_v31, %v1323_v32  ;;  %7592 = vmatprep.subr.bf16.mxu0 %v14822_v30  ;;  %v14701_v43 = vcombine.low %v1319_v31, %v1323_v32 }
  0xa9   :  { %v1451_v34 = vld [vmem:[#allocation5 + $0x520] sm:$0xff]  ;;  %7593 = vmatpush1.bf16.msra.mxu0 %v14821_v36 }
  0xaa   :  { %v14830_v38 = vcombine.high %v1447_v33, %v1451_v34  ;;  %v1327_v39 = vld [vmem:[#allocation5 + $0x140] sm:$0xff]  ;;  %7481 = vmatprep.subr.bf16.mxu1 %v14702_v37  ;;  %v14829_v44 = vcombine.low %v1447_v33, %v1451_v34 }
  0xab   :  { %v1331_v40 = vld [vmem:[#allocation5 + $0x160] sm:$0xff]  ;;  %7482 = vmatpush1.bf16.msra.mxu1 %v14701_v43 }
  0xac   :  { %v1455_v41 = vld [vmem:[#allocation5 + $0x540] sm:$0xff]  ;;  %v14710_v45 = vcombine.high %v1327_v39, %v1331_v40  ;;  %7594 = vmatprep.subr.bf16.mxu0 %v14830_v38  ;;  %v14709_v51 = vcombine.low %v1327_v39, %v1331_v40 }
  0xad   :  { %v1459_v42 = vld [vmem:[#allocation5 + $0x560] sm:$0xff]  ;;  %7595 = vmatpush1.bf16.msra.mxu0 %v14829_v44 }
  0xae   :  { %v14838_v46 = vcombine.high %v1455_v41, %v1459_v42  ;;  %v1335_v47 = vld [vmem:[#allocation5 + $0x180] sm:$0xff]  ;;  %7483 = vmatprep.subr.bf16.mxu1 %v14710_v45  ;;  %v14837_v54 = vcombine.low %v1455_v41, %v1459_v42 }
  0xaf   :  { %v1339_v48 = vld [vmem:[#allocation5 + $0x1a0] sm:$0xff]  ;;  %7484 = vmatpush1.bf16.msra.mxu1 %v14709_v51 }
  0xb0   :  { %v1463_v49 = vld [vmem:[#allocation5 + $0x580] sm:$0xff]  ;;  %v14718_v55 = vcombine.high %v1335_v47, %v1339_v48  ;;  %7596 = vmatprep.subr.bf16.mxu0 %v14838_v46  ;;  %v14717_v5 = vcombine.low %v1335_v47, %v1339_v48 }
  0xb1   :  { %v1467_v50 = vld [vmem:[#allocation5 + $0x5a0] sm:$0xff]  ;;  %7597 = vmatpush1.bf16.msra.mxu0 %v14837_v54 }
  0xb2   :  { %v1343_v52 = vld [vmem:[#allocation5 + $0x1c0] sm:$0xff]  ;;  %v14846_v60 = vcombine.high %v1463_v49, %v1467_v50  ;;  %7485 = vmatprep.subr.bf16.mxu1 %v14718_v55  ;;  %v14845_v8 = vcombine.low %v1463_v49, %v1467_v50 }
  0xb3   :  { %v1347_v53 = vld [vmem:[#allocation5 + $0x1e0] sm:$0xff]  ;;  %7486 = vmatpush1.bf16.msra.mxu1 %v14717_v5 }
  0xb4   :  { %v1471_v56 = vld [vmem:[#allocation5 + $0x5c0] sm:$0xff]  ;;  %v14726_v9 = vcombine.high %v1343_v52, %v1347_v53  ;;  %7598 = vmatprep.subr.bf16.mxu0 %v14846_v60  ;;  %v14725_v17 = vcombine.low %v1343_v52, %v1347_v53 }
  0xb5   :  { %v1475_v57 = vld [vmem:[#allocation5 + $0x5e0] sm:$0xff]  ;;  %7599 = vmatpush1.bf16.msra.mxu0 %v14845_v8 }
  0xb6   :  { %v18207_v58 = vld [vmem:[#allocation3] sm:$0xff]  ;;  %v14854_v11 = vcombine.high %v1471_v56, %v1475_v57  ;;  %7487 = vmatprep.subr.bf16.mxu1 %v14726_v9  ;;  %v14853_v18 = vcombine.low %v1471_v56, %v1475_v57 }
  0xb7   :  { %v18209_v59 = vld [vmem:[#allocation3 + $0x40] sm:$0xff]  ;;  %7488 = vmatpush1.bf16.msra.mxu1 %v14725_v17 }
  0xb8   :  { %v18211_v61 = vld [vmem:[#allocation3 + $0x80] sm:$0xff]  ;;  %v648_v63 = vcombine.high %v18207_v58, %v18209_v59  ;;  %7600 = vmatprep.subr.bf16.mxu0 %v14854_v11 }
  0xb9   :  { %v18213_v62 = vld [vmem:[#allocation3 + $0xc0] sm:$0xff]  ;;  %7601 = vmatpush1.bf16.msra.mxu0 %v14853_v18 }
  0xba   :  { %v664_v1 = vcombine.high %v18211_v61, %v18213_v62  ;;  %v1351_v12 = vld [vmem:[#allocation5 + $0x200] sm:$0xff] }
  0xbb   :  { %v1355_v13 = vld [vmem:[#allocation5 + $0x220] sm:$0xff] }
  0xbc   :  { %v18231_v10 = vpack.c.bf16 %v664_v1, %v648_v63  ;;  %v1479_v15 = vld [vmem:[#allocation5 + $0x600] sm:$0xff]  ;;  %v14734_v19 = vcombine.high %v1351_v12, %v1355_v13  ;;  %v14733_v25 = vcombine.low %v1351_v12, %v1355_v13 }
  0xbd   :  { %v1483_v16 = vld [vmem:[#allocation5 + $0x620] sm:$0xff] }
  0xbe   :  { %20726 = vst [vmem:[#allocation22_spill] sm:$0xff] %v18231_v10  ;;  %7505 = vmatprep.mubr.bf16.mxu1 %v18231_v10  ;;  %v14862_v20 = vcombine.high %v1479_v15, %v1483_v16  ;;  %v1359_v21 = vld [vmem:[#allocation5 + $0x240] sm:$0xff]  ;;  %7489 = vmatprep.subr.bf16.mxu1 %v14734_v19  ;;  %v14861_v26 = vcombine.low %v1479_v15, %v1483_v16 }
  0xbf   :  { %v1363_v22 = vld [vmem:[#allocation5 + $0x260] sm:$0xff]  ;;  %7490 = vmatpush1.bf16.msra.mxu1 %v14733_v25 }
  0xc0   :  { %v1487_v23 = vld [vmem:[#allocation5 + $0x640] sm:$0xff]  ;;  %v14742_v27 = vcombine.high %v1359_v21, %v1363_v22  ;;  %7602 = vmatprep.subr.bf16.mxu0 %v14862_v20  ;;  %v14741_v33 = vcombine.low %v1359_v21, %v1363_v22 }
  0xc1   :  { %v1491_v24 = vld [vmem:[#allocation5 + $0x660] sm:$0xff]  ;;  %7603 = vmatpush1.bf16.msra.mxu0 %v14861_v26  ;;  %v1292_v26 = vld [vmem:[#allocation5 + $0x28] sm:$0xff] }
  0xc2   :  { %v14870_v28 = vcombine.high %v1487_v23, %v1491_v24  ;;  %v1367_v29 = vld [vmem:[#allocation5 + $0x280] sm:$0xff]  ;;  %7491 = vmatprep.subr.bf16.mxu1 %v14742_v27  ;;  %v14869_v34 = vcombine.low %v1487_v23, %v1491_v24  ;;  %v1288_v24 = vld [vmem:[#allocation5 + $0x8] sm:$0xff] }
  0xc3   :  { %v1371_v30 = vld [vmem:[#allocation5 + $0x2a0] sm:$0xff]  ;;  %7492 = vmatpush1.bf16.msra.mxu1 %v14741_v33  ;;  %v18253_v33 = vld [vmem:[#allocation3 + $0x108] sm:$0xff] }
  0xc4   :  { %v1495_v31 = vld [vmem:[#allocation5 + $0x680] sm:$0xff]  ;;  %v14750_v35 = vcombine.high %v1367_v29, %v1371_v30  ;;  %7604 = vmatprep.subr.bf16.mxu0 %v14870_v28  ;;  %v14749_v41 = vcombine.low %v1367_v29, %v1371_v30  ;;  %v647_v29 = vcombine.low %v18207_v58, %v18209_v59  ;;  %v663_v30 = vcombine.low %v18211_v61, %v18213_v62  ;;  %v18261_v58 = vld [vmem:[#allocation3 + $0x188] sm:$0xff] }
  0xc5   :  { %v1499_v32 = vld [vmem:[#allocation5 + $0x6a0] sm:$0xff]  ;;  %7605 = vmatpush1.bf16.msra.mxu0 %v14869_v34  ;;  %v18263_v59 = vld [vmem:[#allocation3 + $0x1c8] sm:$0xff]  ;;  %v14672_v62 = vcombine.high %v1288_v24, %v1292_v26 }
  0xc6   :  { %v14878_v36 = vcombine.high %v1495_v31, %v1499_v32  ;;  %v1375_v37 = vld [vmem:[#allocation5 + $0x2c0] sm:$0xff]  ;;  %7493 = vmatprep.subr.bf16.mxu1 %v14750_v35  ;;  %v14877_v42 = vcombine.low %v1495_v31, %v1499_v32  ;;  %v649_v35 = vcombine.low %v18217_v0, %v18221_v2 }
  0xc7   :  { %v1379_v38 = vld [vmem:[#allocation5 + $0x2e0] sm:$0xff]  ;;  %7494 = vmatpush1.bf16.msra.mxu1 %v14749_v41 }
  0xc8   :  { %v1503_v39 = vld [vmem:[#allocation5 + $0x6c0] sm:$0xff]  ;;  %v14758_v43 = vcombine.high %v1375_v37, %v1379_v38  ;;  %7606 = vmatprep.subr.bf16.mxu0 %v14878_v36  ;;  %v14757_v49 = vcombine.low %v1375_v37, %v1379_v38  ;;  %v665_v36 = vcombine.low %v18223_v3, %v18225_v4  ;;  %v18259_v37 = vld [vmem:[#allocation3 + $0x148] sm:$0xff]  ;;  %v18271_v3 = vpack.c.bf16 %v663_v30, %v647_v29 }
  0xc9   :  { %v1507_v40 = vld [vmem:[#allocation5 + $0x6e0] sm:$0xff]  ;;  %7607 = vmatpush1.bf16.msra.mxu0 %v14877_v42  ;;  %v682_v42 = vcombine.high %v18253_v33, %v18259_v37 }
  0xca   :  { %v14886_v44 = vcombine.high %v1503_v39, %v1507_v40  ;;  %v1383_v45 = vld [vmem:[#allocation5 + $0x300] sm:$0xff]  ;;  %7495 = vmatprep.subr.bf16.mxu1 %v14758_v43  ;;  %v14885_v50 = vcombine.low %v1503_v39, %v1507_v40  ;;  %v1296_v39 = vld [vmem:[#allocation5 + $0x48] sm:$0xff]  ;;  %20728 = vst [vmem:[#allocation24_spill] sm:$0xff] %v18271_v3  ;;  %v698_v43 = vcombine.high %v18261_v58, %v18263_v59 }
  0xcb   :  { %v1387_v46 = vld [vmem:[#allocation5 + $0x320] sm:$0xff]  ;;  %7496 = vmatpush1.bf16.msra.mxu1 %v14757_v49  ;;  %v1300_v40 = vld [vmem:[#allocation5 + $0x68] sm:$0xff] }
  0xcc   :  { %v1511_v47 = vld [vmem:[#allocation5 + $0x700] sm:$0xff]  ;;  %v14766_v51 = vcombine.high %v1383_v45, %v1387_v46  ;;  %7608 = vmatprep.subr.bf16.mxu0 %v14886_v44  ;;  %v14765_v57 = vcombine.low %v1383_v45, %v1387_v46  ;;  %v18277_v44 = vpack.c.bf16 %v665_v36, %v649_v35  ;;  %v14671_v45 = vcombine.low %v1288_v24, %v1292_v26  ;;  %v1324_v35 = vld [vmem:[#allocation5 + $0x128] sm:$0xff] }
  0xcd   :  { %v1515_v48 = vld [vmem:[#allocation5 + $0x720] sm:$0xff]  ;;  %7609 = vmatpush1.bf16.msra.mxu0 %v14885_v50  ;;  %v18285_v50 = vld [vmem:[#allocation5 + $0x88] sm:$0xff] }
  0xce   :  { %v14894_v52 = vcombine.high %v1511_v47, %v1515_v48  ;;  %v1391_v53 = vld [vmem:[#allocation5 + $0x340] sm:$0xff]  ;;  %7497 = vmatprep.subr.bf16.mxu1 %v14766_v51  ;;  %v14893_v60 = vcombine.low %v1511_v47, %v1515_v48  ;;  %20729 = vst [vmem:[#allocation25_spill] sm:$0xff] %v18277_v44  ;;  %v14680_v47 = vcombine.high %v1296_v39, %v1300_v40 }
  0xcf   :  { %v1395_v54 = vld [vmem:[#allocation5 + $0x360] sm:$0xff]  ;;  %7498 = vmatpush1.bf16.msra.mxu1 %v14765_v57 }
  0xd0   :  { %v1519_v55 = vld [vmem:[#allocation5 + $0x740] sm:$0xff]  ;;  %v14774_v63 = vcombine.high %v1391_v53, %v1395_v54  ;;  %7610 = vmatprep.subr.bf16.mxu0 %v14894_v52  ;;  %v14773_v9 = vcombine.low %v1391_v53, %v1395_v54  ;;  %v1308_v53 = vld [vmem:[#allocation5 + $0xa8] sm:$0xff] }
  0xd1   :  { %v1523_v56 = vld [vmem:[#allocation5 + $0x760] sm:$0xff]  ;;  %7611 = vmatpush1.bf16.msra.mxu0 %v14893_v60 }
  0xd2   :  { %v14902_v1 = vcombine.high %v1519_v55, %v1523_v56  ;;  %v1399_v5 = vld [vmem:[#allocation5 + $0x380] sm:$0xff]  ;;  %7499 = vmatprep.subr.bf16.mxu1 %v14774_v63  ;;  %v14901_v11 = vcombine.low %v1519_v55, %v1523_v56  ;;  %v18294_v56 = vpack.c.bf16 %v698_v43, %v682_v42  ;;  %v18371_v42 = vld [vmem:[#allocation3 + $0x3c8] sm:$0xff] }
  0xd3   :  { %v1403_v6 = vld [vmem:[#allocation5 + $0x3a0] sm:$0xff]  ;;  %7500 = vmatpush1.bf16.msra.mxu1 %v14773_v9  ;;  %v18311_v9 = vld [vmem:[#allocation3 + $0x248] sm:$0xff] }
  0xd4   :  { %v1527_v7 = vld [vmem:[#allocation5 + $0x780] sm:$0xff]  ;;  %v14782_v12 = vcombine.high %v1399_v5, %v1403_v6  ;;  %7612 = vmatprep.subr.bf16.mxu0 %v14902_v1  ;;  %v14781_v19 = vcombine.low %v1399_v5, %v1403_v6  ;;  %20731 = vst [vmem:[#allocation27_spill] sm:$0xff] %v18294_v56  ;;  %v18304_v5 = vld [vmem:[#allocation3 + $0x208] sm:$0xff]  ;;  %v14679_v6 = vcombine.low %v1296_v39, %v1300_v40 }
  0xd5   :  { %v1531_v8 = vld [vmem:[#allocation5 + $0x7a0] sm:$0xff]  ;;  %7613 = vmatpush1.bf16.msra.mxu0 %v14901_v11  ;;  %v18313_v11 = vld [vmem:[#allocation3 + $0x288] sm:$0xff]  ;;  %v714_v24 = vcombine.high %v18304_v5, %v18311_v9 }
  0xd6   :  { %v14910_v13 = vcombine.high %v1527_v7, %v1531_v8  ;;  %v1407_v15 = vld [vmem:[#allocation5 + $0x3c0] sm:$0xff]  ;;  %7501 = vmatprep.subr.bf16.mxu1 %v14782_v12  ;;  %v14909_v20 = vcombine.low %v1527_v7, %v1531_v8  ;;  %v681_v7 = vcombine.low %v18253_v33, %v18259_v37  ;;  %v697_v8 = vcombine.low %v18261_v58, %v18263_v59  ;;  %v18315_v12 = vld [vmem:[#allocation3 + $0x2c8] sm:$0xff] }
  0xd7   :  { %v1411_v16 = vld [vmem:[#allocation5 + $0x3e0] sm:$0xff]  ;;  %7502 = vmatpush1.bf16.msra.mxu1 %v14781_v19  ;;  %v18360_v39 = vld [vmem:[#allocation3 + $0x308] sm:$0xff] }
  0xd8   :  { %v1535_v17 = vld [vmem:[#allocation5 + $0x7c0] sm:$0xff]  ;;  %v14790_v21 = vcombine.high %v1407_v15, %v1411_v16  ;;  %7614 = vmatprep.subr.bf16.mxu0 %v14910_v13  ;;  %v14789_v34 = vcombine.low %v1407_v15, %v1411_v16  ;;  %v14688_v15 = vcombine.high %v18285_v50, %v1308_v53  ;;  %v18332_v26 = vpack.c.bf16 %v697_v8, %v681_v7  ;;  %v18397_v8 = vld [vmem:[#allocation5 + $0x188] sm:$0xff] }
  0xd9   :  { %v1539_v18 = vld [vmem:[#allocation5 + $0x7e0] sm:$0xff]  ;;  %7615 = vmatpush1.bf16.msra.mxu0 %v14909_v20 }
  0xda   :  { %v18237_v22 = vld [vmem:[#allocation5 + $0x800] sm:$0xff]  ;;  %v14918_v25 = vcombine.high %v1535_v17, %v1539_v18  ;;  %7503 = vmatprep.subr.bf16.mxu1 %v14790_v21  ;;  %v14917_v61 = vcombine.low %v1535_v17, %v1539_v18  ;;  %v1312_v17 = vld [vmem:[#allocation5 + $0xc8] sm:$0xff]  ;;  %20733 = vst [vmem:[#allocation29_spill] sm:$0xff] %v18332_v26 }
  0xdb   :  { %v18239_v23 = vld [vmem:[#allocation5 + $0x820] sm:$0xff]  ;;  %7504 = vmatpush1.bf16.msra.mxu1 %v14789_v34  ;;  %v1316_v18 = vld [vmem:[#allocation5 + $0xe8] sm:$0xff] }
  0xdc   :  { %v18241_v27 = vld [vmem:[#allocation3 + $0x100] sm:$0xff]  ;;  %7616 = vmatprep.subr.bf16.mxu0 %v14918_v25  ;;  %v14926_v38 = vcombine.high %v18237_v22, %v18239_v23  ;;  %v14925_v46 = vcombine.low %v18237_v22, %v18239_v23  ;;  %8377 = vmatprep.subr.bf16.mxu1 %v14672_v62  ;;  %v730_v25 = vcombine.high %v18313_v11, %v18315_v12 }
  0xdd   :  { %v18243_v28 = vld [vmem:[#allocation3 + $0x140] sm:$0xff]  ;;  %7617 = vmatpush1.bf16.msra.mxu0 %v14917_v61  ;;  %v14696_v29 = vcombine.high %v1312_v17, %v1316_v18  ;;  %v14695_v40 = vcombine.low %v1312_v17, %v1316_v18 }
  0xde   :  { %v18249_v31 = vld [vmem:[#allocation3 + $0x180] sm:$0xff]  ;;  %v680_v0 = vcombine.high %v18241_v27, %v18243_v28  ;;  %7699 = vmatprep.subr.bf16.mxu0 %v14926_v38  ;;  %7506 = vmatmul.mubr.bf16.vlgmr.msra.gmra.mrb[0].mxu1 %v18271_v3  ;;  %v679_v57 = vcombine.low %v18241_v27, %v18243_v28  ;;  %v14687_v27 = vcombine.low %v18285_v50, %v1308_v53 }
  0xdf   :  { %v18251_v32 = vld [vmem:[#allocation3 + $0x1c0] sm:$0xff]  ;;  %8378 = vmatpush1.bf16.msra.mxu1 %v14671_v45  ;;  %v18350_v58 = vpack.c.bf16 %v730_v25, %v714_v24 }
  0xe0   :  { %v696_v2 = vcombine.high %v18249_v31, %v18251_v32  ;;  %v1551_v4 = vld [vmem:[#allocation5 + $0x840] sm:$0xff]  ;;  %v695_v60 = vcombine.low %v18249_v31, %v18251_v32  ;;  %7619 = vmatmul.mubr.bf16.vlgmr.msra.gmra.mrb[0].mxu0 %v18277_v44  ;;  %8379 = vmatprep.subr.bf16.mxu1 %v14680_v47  ;;  %v18341_v32 = vld [vmem:[#allocation5 + $0x108] sm:$0xff] }
  0xe1   :  { %v1555_v41 = vld [vmem:[#allocation5 + $0x860] sm:$0xff]  ;;  %7700 = vmatpush1.bf16.msra.mxu0 %v14925_v46  ;;  %7628 = vmatprep.mubr.bf16.mxu0 %v18294_v56  ;;  %20735 = vst [vmem:[#allocation31_spill] sm:$0xff] %v18350_v58  ;;  %v14704_v45 = vcombine.high %v18341_v32, %v1324_v35  ;;  %v1328_v47 = vld [vmem:[#allocation5 + $0x148] sm:$0xff] }
  0xe2   :  { %v18281_v48 = vld [vmem:[#allocation5 + $0x880] sm:$0xff]  ;;  %v14934_v51 = vcombine.high %v1551_v4, %v1555_v41  ;;  %v18287_v52 = vpack.c.bf16 %v696_v2, %v680_v0  ;;  %v14933_v13 = vcombine.low %v1551_v4, %v1555_v41  ;;  %v18326_v21 = vpack.c.bf16 %v695_v60, %v679_v57  ;;  %v18367_v4 = vld [vmem:[#allocation3 + $0x348] sm:$0xff] }
  0xe3   :  { %v18283_v49 = vld [vmem:[#allocation5 + $0x8a0] sm:$0xff]  ;;  %8380 = vmatpush1.bf16.msra.mxu1 %v14679_v6  ;;  %v713_v0 = vcombine.low %v18304_v5, %v18311_v9  ;;  %v729_v2 = vcombine.low %v18313_v11, %v18315_v12  ;;  %v18369_v41 = vld [vmem:[#allocation3 + $0x388] sm:$0xff]  ;;  %v745_v24 = vcombine.low %v18360_v39, %v18367_v4 }
  0xe4   :  { %20730 = vst [vmem:[#allocation26_spill] sm:$0xff] %v18287_v52  ;;  %v18289_v54 = vld [vmem:[#allocation3 + $0x200] sm:$0xff]  ;;  %7701 = vmatprep.subr.bf16.mxu0 %v14934_v51  ;;  %7515 = vmatprep.mubr.bf16.mxu1 %v18287_v52  ;;  %v14942_v16 = vcombine.high %v18281_v48, %v18283_v49  ;;  %20732 = vst [vmem:[#allocation28_spill] sm:$0xff] %v18326_v21  ;;  %v14941_v28 = vcombine.low %v18281_v48, %v18283_v49  ;;  %v1332_v48 = vld [vmem:[#allocation5 + $0x168] sm:$0xff] }
  0xe5   :  { %v18291_v55 = vld [vmem:[#allocation3 + $0x240] sm:$0xff]  ;;  %7702 = vmatpush1.bf16.msra.mxu0 %v14933_v13  ;;  %8381 = vmatprep.subr.bf16.mxu1 %v14688_v15  ;;  %v762_v57 = vcombine.high %v18369_v41, %v18371_v42  ;;  %v18388_v60 = vpack.c.bf16 %v729_v2, %v713_v0  ;;  %v14712_v5 = vcombine.high %v1328_v47, %v1332_v48  ;;  %v1340_v12 = vld [vmem:[#allocation5 + $0x1a8] sm:$0xff] }
  0xe6   :  { %v18300_v63 = vld [vmem:[#allocation3 + $0x280] sm:$0xff]  ;;  %v712_v19 = vcombine.high %v18289_v54, %v18291_v55  ;;  %7703 = vmatprep.subr.bf16.mxu0 %v14942_v16  ;;  %7516 = vmatmul.mubr.bf16.gmra.mrb[4].mxu1 %v18326_v21  ;;  %v711_v59 = vcombine.low %v18289_v54, %v18291_v55  ;;  %v746_v55 = vcombine.high %v18360_v39, %v18367_v4 }
  0xe7   :  { %v18302_v1 = vld [vmem:[#allocation3 + $0x2c0] sm:$0xff]  ;;  %8382 = vmatpush1.bf16.msra.mxu1 %v14687_v27  ;;  %20737 = vst [vmem:[#allocation33_spill] sm:$0xff] %v18388_v60  ;;  %v761_v25 = vcombine.low %v18369_v41, %v18371_v42  ;;  %v18423_v27 = vld [vmem:[#allocation3 + $0x448] sm:$0xff]  ;;  %v14719_v0 = vcombine.low %v18397_v8, %v1340_v12 }
  0xe8   :  { %v728_v20 = vcombine.high %v18300_v63, %v18302_v1  ;;  %v1567_v22 = vld [vmem:[#allocation5 + $0x8c0] sm:$0xff]  ;;  %v727_v61 = vcombine.low %v18300_v63, %v18302_v1  ;;  %7629 = vmatmul.mubr.bf16.gmra.mrb[4].mxu0 %v18332_v26  ;;  %8383 = vmatprep.subr.bf16.mxu1 %v14696_v29  ;;  %v14703_v63 = vcombine.low %v18341_v32, %v1324_v35  ;;  %v18427_v29 = vld [vmem:[#allocation3 + $0x4c8] sm:$0xff] }
  0xe9   :  { %v1571_v23 = vld [vmem:[#allocation5 + $0x8e0] sm:$0xff]  ;;  %7704 = vmatpush1.bf16.msra.mxu0 %v14941_v28  ;;  %7638 = vmatprep.mubr.bf16.mxu0 %v18350_v58  ;;  %v18406_v16 = vpack.c.bf16 %v762_v57, %v746_v55  ;;  %v18425_v28 = vld [vmem:[#allocation3 + $0x488] sm:$0xff] }
  0xea   :  { %v18337_v30 = vld [vmem:[#allocation5 + $0x900] sm:$0xff]  ;;  %v14950_v33 = vcombine.high %v1567_v22, %v1571_v23  ;;  %v18343_v34 = vpack.c.bf16 %v728_v20, %v712_v19  ;;  %v14949_v43 = vcombine.low %v1567_v22, %v1571_v23  ;;  %v18382_v51 = vpack.c.bf16 %v727_v61, %v711_v59  ;;  %v18416_v22 = vld [vmem:[#allocation3 + $0x408] sm:$0xff] }
  0xeb   :  { %v18339_v31 = vld [vmem:[#allocation5 + $0x920] sm:$0xff]  ;;  %8384 = vmatpush1.bf16.msra.mxu1 %v14695_v40  ;;  %20739 = vst [vmem:[#allocation35_spill] sm:$0xff] %v18406_v16  ;;  %v14711_v23 = vcombine.low %v1328_v47, %v1332_v48  ;;  %v1348_v35 = vld [vmem:[#allocation5 + $0x1e8] sm:$0xff]  ;;  %v794_v39 = vcombine.high %v18425_v28, %v18427_v29  ;;  %v18444_v40 = vpack.c.bf16 %v761_v25, %v745_v24 }
  0xec   :  { %20734 = vst [vmem:[#allocation30_spill] sm:$0xff] %v18343_v34  ;;  %v18345_v36 = vld [vmem:[#allocation3 + $0x300] sm:$0xff]  ;;  %7705 = vmatprep.subr.bf16.mxu0 %v14950_v33  ;;  %7525 = vmatprep.mubr.bf16.mxu1 %v18343_v34  ;;  %v14958_v46 = vcombine.high %v18337_v30, %v18339_v31  ;;  %20736 = vst [vmem:[#allocation32_spill] sm:$0xff] %v18382_v51  ;;  %v14957_v1 = vcombine.low %v18337_v30, %v18339_v31  ;;  %v1344_v33 = vld [vmem:[#allocation5 + $0x1c8] sm:$0xff] }
  0xed   :  { %v18347_v37 = vld [vmem:[#allocation3 + $0x340] sm:$0xff]  ;;  %7706 = vmatpush1.bf16.msra.mxu0 %v14949_v43  ;;  %8385 = vmatprep.subr.bf16.mxu1 %v14704_v45  ;;  %v14720_v31 = vcombine.high %v18397_v8, %v1340_v12  ;;  %20741 = vst [vmem:[#allocation37_spill] sm:$0xff] %v18444_v40  ;;  %v14728_v4 = vcombine.high %v1344_v33, %v1348_v35  ;;  %v18453_v43 = vld [vmem:[#allocation5 + $0x208] sm:$0xff] }
  0xee   :  { %v18356_v62 = vld [vmem:[#allocation3 + $0x380] sm:$0xff]  ;;  %v744_v49 = vcombine.high %v18345_v36, %v18347_v37  ;;  %7707 = vmatprep.subr.bf16.mxu0 %v14958_v46  ;;  %7526 = vmatmul.mubr.bf16.gmra.mrb[8].mxu1 %v18382_v51  ;;  %v743_v17 = vcombine.low %v18345_v36, %v18347_v37  ;;  %v1356_v47 = vld [vmem:[#allocation5 + $0x228] sm:$0xff] }
  0xef   :  { %v18358_v38 = vld [vmem:[#allocation3 + $0x3c0] sm:$0xff]  ;;  %8386 = vmatpush1.bf16.msra.mxu1 %v14703_v63  ;;  %v18472_v63 = vld [vmem:[#allocation3 + $0x508] sm:$0xff] }
  0xf0   :  { %v760_v50 = vcombine.high %v18356_v62, %v18358_v38  ;;  %v1583_v53 = vld [vmem:[#allocation5 + $0x940] sm:$0xff]  ;;  %v759_v18 = vcombine.low %v18356_v62, %v18358_v38  ;;  %7639 = vmatmul.mubr.bf16.gmra.mrb[8].mxu0 %v18388_v60  ;;  %8387 = vmatprep.subr.bf16.mxu1 %v14712_v5  ;;  %v778_v38 = vcombine.high %v18416_v22, %v18423_v27  ;;  %v18481_v8 = vld [vmem:[#allocation3 + $0x588] sm:$0xff] }
  0xf1   :  { %v1587_v54 = vld [vmem:[#allocation5 + $0x960] sm:$0xff]  ;;  %7708 = vmatpush1.bf16.msra.mxu0 %v14957_v1  ;;  %7648 = vmatprep.mubr.bf16.mxu0 %v18406_v16  ;;  %v14727_v1 = vcombine.low %v1344_v33, %v1348_v35  ;;  %v777_v5 = vcombine.low %v18416_v22, %v18423_v27  ;;  %v18509_v35 = vld [vmem:[#allocation5 + $0x288] sm:$0xff] }
  0xf2   :  { %v18393_v6 = vld [vmem:[#allocation5 + $0x980] sm:$0xff]  ;;  %v14966_v9 = vcombine.high %v1583_v53, %v1587_v54  ;;  %v18399_v11 = vpack.c.bf16 %v760_v50, %v744_v49  ;;  %v14965_v30 = vcombine.low %v1583_v53, %v1587_v54  ;;  %v18438_v59 = vpack.c.bf16 %v759_v18, %v743_v17  ;;  %v1360_v17 = vld [vmem:[#allocation5 + $0x248] sm:$0xff] }
  0xf3   :  { %v18395_v7 = vld [vmem:[#allocation5 + $0x9a0] sm:$0xff]  ;;  %8388 = vmatpush1.bf16.msra.mxu1 %v14711_v23  ;;  %v18462_v50 = vpack.c.bf16 %v794_v39, %v778_v38  ;;  %v1364_v18 = vld [vmem:[#allocation5 + $0x268] sm:$0xff] }
  0xf4   :  { %20738 = vst [vmem:[#allocation34_spill] sm:$0xff] %v18399_v11  ;;  %v18401_v13 = vld [vmem:[#allocation3 + $0x400] sm:$0xff]  ;;  %7709 = vmatprep.subr.bf16.mxu0 %v14966_v9  ;;  %7535 = vmatprep.mubr.bf16.mxu1 %v18399_v11  ;;  %v14974_v32 = vcombine.high %v18393_v6, %v18395_v7  ;;  %20740 = vst [vmem:[#allocation36_spill] sm:$0xff] %v18438_v59  ;;  %v14973_v2 = vcombine.low %v18393_v6, %v18395_v7  ;;  %v18479_v7 = vld [vmem:[#allocation3 + $0x548] sm:$0xff] }
  0xf5   :  { %v18403_v15 = vld [vmem:[#allocation3 + $0x440] sm:$0xff]  ;;  %7710 = vmatpush1.bf16.msra.mxu0 %v14965_v30  ;;  %8389 = vmatprep.subr.bf16.mxu1 %v14720_v31  ;;  %20743 = vst [vmem:[#allocation39_spill] sm:$0xff] %v18462_v50  ;;  %v793_v6 = vcombine.low %v18425_v28, %v18427_v29  ;;  %v18483_v9 = vld [vmem:[#allocation3 + $0x5c8] sm:$0xff]  ;;  %v810_v25 = vcombine.high %v18472_v63, %v18479_v7 }
  0xf6   :  { %v18412_v19 = vld [vmem:[#allocation3 + $0x480] sm:$0xff]  ;;  %v776_v36 = vcombine.high %v18401_v13, %v18403_v15  ;;  %7711 = vmatprep.subr.bf16.mxu0 %v14974_v32  ;;  %7536 = vmatmul.mubr.bf16.gmra.mrb[12].mxu1 %v18438_v59  ;;  %v775_v53 = vcombine.low %v18401_v13, %v18403_v15  ;;  %v14736_v13 = vcombine.high %v18453_v43, %v1356_v47 }
  0xf7   :  { %v18414_v20 = vld [vmem:[#allocation3 + $0x4c0] sm:$0xff]  ;;  %8390 = vmatpush1.bf16.msra.mxu1 %v14719_v0  ;;  %v826_v27 = vcombine.high %v18481_v8, %v18483_v9  ;;  %v18500_v28 = vpack.c.bf16 %v793_v6, %v777_v5  ;;  %v14735_v29 = vcombine.low %v18453_v43, %v1356_v47  ;;  %v14744_v31 = vcombine.high %v1360_v17, %v1364_v18 }
  0xf8   :  { %v792_v37 = vcombine.high %v18412_v19, %v18414_v20  ;;  %v1599_v61 = vld [vmem:[#allocation5 + $0x9c0] sm:$0xff]  ;;  %v791_v54 = vcombine.low %v18412_v19, %v18414_v20  ;;  %7649 = vmatmul.mubr.bf16.gmra.mrb[12].mxu0 %v18444_v40  ;;  %8391 = vmatprep.subr.bf16.mxu1 %v14728_v4  ;;  %v14743_v43 = vcombine.low %v1360_v17, %v1364_v18 }
  0xf9   :  { %v1603_v62 = vld [vmem:[#allocation5 + $0x9e0] sm:$0xff]  ;;  %7712 = vmatpush1.bf16.msra.mxu0 %v14973_v2  ;;  %7658 = vmatprep.mubr.bf16.mxu0 %v18462_v50  ;;  %20745 = vst [vmem:[#allocation41_spill] sm:$0xff] %v18500_v28  ;;  %v18518_v39 = vpack.c.bf16 %v826_v27, %v810_v25  ;;  %v825_v47 = vcombine.low %v18481_v8, %v18483_v9 }
  0xfa   :  { %v18449_v41 = vld [vmem:[#allocation5 + $0xa00] sm:$0xff]  ;;  %v14982_v45 = vcombine.high %v1599_v61, %v1603_v62  ;;  %v18455_v46 = vpack.c.bf16 %v792_v37, %v776_v36  ;;  %v14981_v12 = vcombine.low %v1599_v61, %v1603_v62  ;;  %v18494_v22 = vpack.c.bf16 %v791_v54, %v775_v53  ;;  %v1372_v61 = vld [vmem:[#allocation5 + $0x2a8] sm:$0xff] }
  0xfb   :  { %v18451_v42 = vld [vmem:[#allocation5 + $0xa20] sm:$0xff]  ;;  %8392 = vmatpush1.bf16.msra.mxu1 %v14727_v1  ;;  %20747 = vst [vmem:[#allocation43_spill] sm:$0xff] %v18518_v39  ;;  %v18539_v53 = vld [vmem:[#allocation3 + $0x6c8] sm:$0xff]  ;;  %v14751_v17 = vcombine.low %v18509_v35, %v1372_v61 }
  0xfc   :  { %20742 = vst [vmem:[#allocation38_spill] sm:$0xff] %v18455_v46  ;;  %v18457_v48 = vld [vmem:[#allocation3 + $0x500] sm:$0xff]  ;;  %7713 = vmatprep.subr.bf16.mxu0 %v14982_v45  ;;  %7545 = vmatprep.mubr.bf16.mxu1 %v18455_v46  ;;  %v14990_v15 = vcombine.high %v18449_v41, %v18451_v42  ;;  %20744 = vst [vmem:[#allocation40_spill] sm:$0xff] %v18494_v22  ;;  %v14989_v30 = vcombine.low %v18449_v41, %v18451_v42  ;;  %v18528_v42 = vld [vmem:[#allocation3 + $0x608] sm:$0xff] }
  0xfd   :  { %v18459_v49 = vld [vmem:[#allocation3 + $0x540] sm:$0xff]  ;;  %7714 = vmatpush1.bf16.msra.mxu0 %v14981_v12  ;;  %8393 = vmatprep.subr.bf16.mxu1 %v14736_v13  ;;  %v809_v45 = vcombine.low %v18472_v63, %v18479_v7  ;;  %v1376_v63 = vld [vmem:[#allocation5 + $0x2c8] sm:$0xff] }
  0xfe   :  { %v18468_v55 = vld [vmem:[#allocation3 + $0x580] sm:$0xff]  ;;  %v808_v19 = vcombine.high %v18457_v48, %v18459_v49  ;;  %7715 = vmatprep.subr.bf16.mxu0 %v14990_v15  ;;  %7546 = vmatmul.mubr.bf16.gmra.mrb[16].mxu1 %v18494_v22  ;;  %v807_v0 = vcombine.low %v18457_v48, %v18459_v49  ;;  %v18535_v48 = vld [vmem:[#allocation3 + $0x648] sm:$0xff] }
  0xff   :  { %v18470_v57 = vld [vmem:[#allocation3 + $0x5c0] sm:$0xff]  ;;  %8394 = vmatpush1.bf16.msra.mxu1 %v14735_v29  ;;  %v18537_v49 = vld [vmem:[#allocation3 + $0x688] sm:$0xff]  ;;  %v842_v12 = vcombine.high %v18528_v42, %v18535_v48  ;;  %v18556_v15 = vpack.c.bf16 %v825_v47, %v809_v45 }
 0x100   :  { %v824_v20 = vcombine.high %v18468_v55, %v18470_v57  ;;  %v1615_v23 = vld [vmem:[#allocation5 + $0xa40] sm:$0xff]  ;;  %v823_v2 = vcombine.low %v18468_v55, %v18470_v57  ;;  %7659 = vmatmul.mubr.bf16.gmra.mrb[16].mxu0 %v18500_v28  ;;  %8395 = vmatprep.subr.bf16.mxu1 %v14744_v31  ;;  %v14752_v55 = vcombine.high %v18509_v35, %v1372_v61  ;;  %v1380_v1 = vld [vmem:[#allocation5 + $0x2e8] sm:$0xff] }
 0x101   :  { %v1619_v24 = vld [vmem:[#allocation5 + $0xa60] sm:$0xff]  ;;  %7716 = vmatpush1.bf16.msra.mxu0 %v14989_v30  ;;  %7668 = vmatprep.mubr.bf16.mxu0 %v18518_v39  ;;  %v858_v13 = vcombine.high %v18537_v49, %v18539_v53  ;;  %20749 = vst [vmem:[#allocation45_spill] sm:$0xff] %v18556_v15  ;;  %v1388_v29 = vld [vmem:[#allocation5 + $0x328] sm:$0xff]  ;;  %v857_v45 = vcombine.low %v18537_v49, %v18539_v53 }
 0x102   :  { %v18505_v32 = vld [vmem:[#allocation5 + $0xa80] sm:$0xff]  ;;  %v14998_v36 = vcombine.high %v1615_v23, %v1619_v24  ;;  %v18511_v37 = vpack.c.bf16 %v824_v20, %v808_v19  ;;  %v14997_v54 = vcombine.low %v1615_v23, %v1619_v24  ;;  %v18550_v7 = vpack.c.bf16 %v823_v2, %v807_v0  ;;  %v1384_v24 = vld [vmem:[#allocation5 + $0x308] sm:$0xff] }
 0x103   :  { %v18507_v33 = vld [vmem:[#allocation5 + $0xaa0] sm:$0xff]  ;;  %8396 = vmatpush1.bf16.msra.mxu1 %v14743_v43  ;;  %v14760_v19 = vcombine.high %v1376_v63, %v1380_v1  ;;  %v18572_v35 = vpack.c.bf16 %v858_v13, %v842_v12  ;;  %v18582_v0 = vld [vmem:[#allocation3 + $0x708] sm:$0xff]  ;;  %v14759_v2 = vcombine.low %v1376_v63, %v1380_v1  ;;  %v841_v43 = vcombine.low %v18528_v42, %v18535_v48 }
 0x104   :  { %20746 = vst [vmem:[#allocation42_spill] sm:$0xff] %v18511_v37  ;;  %v18513_v62 = vld [vmem:[#allocation3 + $0x600] sm:$0xff]  ;;  %7717 = vmatprep.subr.bf16.mxu0 %v14998_v36  ;;  %7555 = vmatprep.mubr.bf16.mxu1 %v18511_v37  ;;  %v15006_v57 = vcombine.high %v18505_v32, %v18507_v33  ;;  %20748 = vst [vmem:[#allocation44_spill] sm:$0xff] %v18550_v7  ;;  %v15005_v18 = vcombine.low %v18505_v32, %v18507_v33  ;;  %v1396_v42 = vld [vmem:[#allocation5 + $0x368] sm:$0xff] }
 0x105   :  { %v18515_v38 = vld [vmem:[#allocation3 + $0x640] sm:$0xff]  ;;  %7718 = vmatpush1.bf16.msra.mxu0 %v14997_v54  ;;  %8397 = vmatprep.subr.bf16.mxu1 %v14752_v55  ;;  %20751 = vst [vmem:[#allocation47_spill] sm:$0xff] %v18572_v35  ;;  %v14768_v47 = vcombine.high %v1384_v24, %v1388_v29  ;;  %v1392_v55 = vld [vmem:[#allocation5 + $0x348] sm:$0xff] }
 0x106   :  { %v18524_v4 = vld [vmem:[#allocation3 + $0x680] sm:$0xff]  ;;  %v840_v5 = vcombine.high %v18513_v62, %v18515_v38  ;;  %7719 = vmatprep.subr.bf16.mxu0 %v15006_v57  ;;  %7556 = vmatmul.mubr.bf16.gmra.mrb[20].mxu1 %v18550_v7  ;;  %v839_v32 = vcombine.low %v18513_v62, %v18515_v38  ;;  %v18589_v62 = vld [vmem:[#allocation3 + $0x748] sm:$0xff]  ;;  %v14776_v12 = vcombine.high %v1392_v55, %v1396_v42 }
 0x107   :  { %v18526_v41 = vld [vmem:[#allocation3 + $0x6c0] sm:$0xff]  ;;  %8398 = vmatpush1.bf16.msra.mxu1 %v14751_v17  ;;  %v18591_v38 = vld [vmem:[#allocation3 + $0x788] sm:$0xff]  ;;  %v874_v1 = vcombine.high %v18582_v0, %v18589_v62 }
 0x108   :  { %v856_v6 = vcombine.high %v18524_v4, %v18526_v41  ;;  %v1631_v8 = vld [vmem:[#allocation5 + $0xac0] sm:$0xff]  ;;  %v855_v33 = vcombine.low %v18524_v4, %v18526_v41  ;;  %7669 = vmatmul.mubr.bf16.gmra.mrb[20].mxu0 %v18556_v15  ;;  %v384_v4 = vld [vmem:[#allocation3 + $0x7c8] sm:$0xff]  ;;  %8399 = vmatprep.subr.bf16.mxu1 %v14760_v19 }
 0x109   :  { %v1635_v9 = vld [vmem:[#allocation5 + $0xae0] sm:$0xff]  ;;  %7720 = vmatpush1.bf16.msra.mxu0 %v15005_v18  ;;  %7678 = vmatprep.mubr.bf16.mxu0 %v18572_v35 }
 0x10a   :  { %v18561_v20 = vld [vmem:[#allocation5 + $0xb00] sm:$0xff]  ;;  %v15014_v25 = vcombine.high %v1631_v8, %v1635_v9  ;;  %v18565_v27 = vpack.c.bf16 %v856_v6, %v840_v5  ;;  %v15013_v41 = vcombine.low %v1631_v8, %v1635_v9  ;;  %v18601_v53 = vpack.c.bf16 %v855_v33, %v839_v32  ;;  %v1404_v32 = vld [vmem:[#allocation5 + $0x3a8] sm:$0xff]  ;;  %v18612_v33 = vld [vmem:[#allocation3 + $0x10] sm:$0xff] }
 0x10b   :  { %v18563_v23 = vld [vmem:[#allocation5 + $0xb20] sm:$0xff]  ;;  %v890_v5 = vcombine.high %v18591_v38, %v384_v4  ;;  %8400 = vmatpush1.bf16.msra.mxu1 %v14759_v2  ;;  %v18606_v6 = vpack.c.bf16 %v857_v45, %v841_v43  ;;  %v14767_v8 = vcombine.low %v1384_v24, %v1388_v29  ;;  %v153_v29 = vld [vmem:[#allocation3 + $0x90] sm:$0xff]  ;;  %v14775_v45 = vcombine.low %v1392_v55, %v1396_v42 }
 0x10c   :  { %20750 = vst [vmem:[#allocation46_spill] sm:$0xff] %v18565_v27  ;;  %v18567_v30 = vld [vmem:[#allocation3 + $0x700] sm:$0xff]  ;;  %7721 = vmatprep.subr.bf16.mxu0 %v15014_v25  ;;  %7565 = vmatprep.mubr.bf16.mxu1 %v18565_v27  ;;  %v15022_v54 = vcombine.high %v18561_v20, %v18563_v23  ;;  %20752 = vst [vmem:[#allocation48_spill] sm:$0xff] %v18601_v53  ;;  %v15021_v9 = vcombine.low %v18561_v20, %v18563_v23  ;;  %v1400_v25 = vld [vmem:[#allocation5 + $0x388] sm:$0xff] }
 0x10d   :  { %v18569_v31 = vld [vmem:[#allocation3 + $0x740] sm:$0xff]  ;;  %20753 = vst [vmem:[#allocation49_spill] sm:$0xff] %v18606_v6  ;;  %7722 = vmatpush1.bf16.msra.mxu0 %v15013_v41  ;;  %8401 = vmatprep.subr.bf16.mxu1 %v14768_v47  ;;  %v18615_v2 = vpack.c.bf16 %v890_v5, %v874_v1  ;;  %v18621_v23 = vld [vmem:[#allocation3 + $0x50] sm:$0xff]  ;;  %v873_v41 = vcombine.low %v18582_v0, %v18589_v62 }
 0x10e   :  { %v18578_v36 = vld [vmem:[#allocation3 + $0x780] sm:$0xff]  ;;  %v872_v48 = vcombine.high %v18567_v30, %v18569_v31  ;;  %7723 = vmatprep.subr.bf16.mxu0 %v15022_v54  ;;  %7566 = vmatmul.mubr.bf16.gmra.mrb[24].mxu1 %v18601_v53  ;;  %v871_v24 = vcombine.low %v18567_v30, %v18569_v31  ;;  %v161_v43 = vld [vmem:[#allocation3 + $0xd0] sm:$0xff]  ;;  %v889_v47 = vcombine.low %v18591_v38, %v384_v4 }
 0x10f   :  { %v18580_v61 = vld [vmem:[#allocation3 + $0x7c0] sm:$0xff]  ;;  %20755 = vst [vmem:[#allocation51_spill] sm:$0xff] %v18615_v2  ;;  %8402 = vmatpush1.bf16.msra.mxu1 %v14767_v8  ;;  %v14784_v30 = vcombine.high %v1400_v25, %v1404_v32  ;;  %v14783_v4 = vcombine.low %v1400_v25, %v1404_v32  ;;  %v667_v25 = vcombine.low %v153_v29, %v161_v43 }
 0x110   :  { %v888_v49 = vcombine.high %v18578_v36, %v18580_v61  ;;  %v1647_v57 = vld [vmem:[#allocation5 + $0xb40] sm:$0xff]  ;;  %v887_v20 = vcombine.low %v18578_v36, %v18580_v61  ;;  %7679 = vmatmul.mubr.bf16.gmra.mrb[24].mxu0 %v18606_v6  ;;  %8403 = vmatprep.subr.bf16.mxu1 %v14776_v12  ;;  %v1408_v36 = vld [vmem:[#allocation5 + $0x3c8] sm:$0xff]  ;;  %v18633_v38 = vpack.c.bf16 %v889_v47, %v873_v41 }
 0x111   :  { %v1651_v63 = vld [vmem:[#allocation5 + $0xb60] sm:$0xff]  ;;  %7724 = vmatpush1.bf16.msra.mxu0 %v15021_v9  ;;  %v1412_v61 = vld [vmem:[#allocation5 + $0x3e8] sm:$0xff]  ;;  %7688 = vmatprep.mubr.bf16.mxu0 %v18615_v2 }
 0x112   :  { %v1655_v13 = vld [vmem:[#allocation5 + $0xb80] sm:$0xff]  ;;  %v15030_v18 = vcombine.high %v1647_v57, %v1651_v63  ;;  %v18610_v19 = vpack.c.bf16 %v888_v49, %v872_v48  ;;  %v15029_v54 = vcombine.low %v1647_v57, %v1651_v63  ;;  %v652_v48 = vcombine.high %v18612_v33, %v18621_v23  ;;  %20757 = vst [vmem:[#allocation53_spill] sm:$0xff] %v18633_v38  ;;  %v1416_v9 = vld [vmem:[#allocation5 + $0x408] sm:$0xff] }
 0x113   :  { %v1659_v17 = vld [vmem:[#allocation5 + $0xba0] sm:$0xff]  ;;  %v668_v49 = vcombine.high %v153_v29, %v161_v43  ;;  %v18631_v55 = vpack.c.bf16 %v887_v20, %v871_v24  ;;  %8404 = vmatpush1.bf16.msra.mxu1 %v14775_v45  ;;  %v14792_v57 = vcombine.high %v1408_v36, %v1412_v61  ;;  %v1420_v12 = vld [vmem:[#allocation5 + $0x428] sm:$0xff]  ;;  %v177_v24 = vld [vmem:[#allocation3 + $0x150] sm:$0xff] }
 0x114   :  { %20754 = vst [vmem:[#allocation50_spill] sm:$0xff] %v18610_v19  ;;  %7725 = vmatprep.subr.bf16.mxu0 %v15030_v18  ;;  %7575 = vmatprep.mubr.bf16.mxu1 %v18610_v19  ;;  %v15038_v31 = vcombine.high %v1655_v13, %v1659_v17  ;;  %v1663_v0 = vld [vmem:[#allocation5 + $0xbc0] sm:$0xff]  ;;  %v15037_v42 = vcombine.low %v1655_v13, %v1659_v17  ;;  %v18637_v18 = vld [vmem:[#allocation3 + $0x110] sm:$0xff]  ;;  %v1432_v29 = vld [vmem:[#allocation5 + $0x488] sm:$0xff] }
 0x115   :  { %20756 = vst [vmem:[#allocation52_spill] sm:$0xff] %v18631_v55  ;;  %v1667_v62 = vld [vmem:[#allocation5 + $0xbe0] sm:$0xff]  ;;  %7726 = vmatpush1.bf16.msra.mxu0 %v15029_v54  ;;  %8405 = vmatprep.subr.bf16.mxu1 %v14784_v30  ;;  %v18635_v8 = vpack.c.bf16 %v668_v49, %v652_v48  ;;  %v185_v20 = vld [vmem:[#allocation3 + $0x190] sm:$0xff]  ;;  %v14791_v13 = vcombine.low %v1408_v36, %v1412_v61  ;;  %v1424_v54 = vld [vmem:[#allocation5 + $0x448] sm:$0xff] }
 0x116   :  { %v1671_v63 = vld [vmem:[#allocation5 + $0xc00] sm:$0xff]  ;;  %7727 = vmatprep.subr.bf16.mxu0 %v15038_v31  ;;  %v15046_v5 = vcombine.high %v1663_v0, %v1667_v62  ;;  %7576 = vmatmul.mubr.bf16.gmra.mrb[28].mxu1 %v18631_v55  ;;  %v193_v45 = vld [vmem:[#allocation3 + $0x1d0] sm:$0xff]  ;;  %v651_v17 = vcombine.low %v18612_v33, %v18621_v23  ;;  %v15045_v32 = vcombine.low %v1663_v0, %v1667_v62  ;;  %v1428_v30 = vld [vmem:[#allocation5 + $0x468] sm:$0xff] }
 0x117   :  { %v1675_v1 = vld [vmem:[#allocation5 + $0xc20] sm:$0xff]  ;;  %20758 = vst [vmem:[#allocation54_spill] sm:$0xff] %v18635_v8  ;;  %8406 = vmatpush1.bf16.msra.mxu1 %v14783_v4  ;;  %v14800_v41 = vcombine.high %v1416_v9, %v1420_v12  ;;  %v684_v31 = vcombine.high %v18637_v18, %v177_v24  ;;  %v700_v48 = vcombine.high %v185_v20, %v193_v45  ;;  %v1436_v4 = vld [vmem:[#allocation5 + $0x4a8] sm:$0xff] }
 0x118   :  { %7689 = vmatmul.mubr.bf16.gmra.mrb[28].mxu0 %v18633_v38  ;;  %8407 = vmatprep.subr.bf16.mxu1 %v14792_v57  ;;  %v15054_v47 = vcombine.high %v1671_v63, %v1675_v1  ;;  %v1679_v36 = vld [vmem:[#allocation5 + $0xc40] sm:$0xff]  ;;  %v18646_v33 = vpack.c.bf16 %v667_v25, %v651_v17  ;;  %v14799_v23 = vcombine.low %v1416_v9, %v1420_v12  ;;  %v18650_v57 = vld [vmem:[#allocation3 + $0x250] sm:$0xff] }
 0x119   :  { %7728 = vmatpush1.bf16.msra.mxu0 %v15037_v42  ;;  %7731 = vmatprep.mubr.bf16.mxu0 %v18635_v8  ;;  %v1683_v61 = vld [vmem:[#allocation5 + $0xc60] sm:$0xff]  ;;  %v15053_v43 = vcombine.low %v1671_v63, %v1675_v1  ;;  %v14808_v49 = vcombine.high %v1424_v54, %v1428_v30  ;;  %v18648_v42 = vld [vmem:[#allocation3 + $0x210] sm:$0xff]  ;;  %v14807_v63 = vcombine.low %v1424_v54, %v1428_v30 }
 0x11a   :  { %7729 = vmatprep.subr.bf16.mxu0 %v15046_v5  ;;  %8409 = vmatprep.mubr.bf16.mxu1 %v18231_v10  ;;  %20759 = vst [vmem:[#allocation55_spill] sm:$0xff] %v18646_v33  ;;  %v1687_v0 = vld [vmem:[#allocation5 + $0xc80] sm:$0xff]  ;;  %v15062_v5 = vcombine.high %v1679_v36, %v1683_v61  ;;  %v18652_v10 = vpack.c.bf16 %v700_v48, %v684_v31  ;;  %v225_v17 = vld [vmem:[#allocation3 + $0x2d0] sm:$0xff] }
 0x11b   :  { %8408 = vmatpush1.bf16.msra.mxu1 %v14791_v13  ;;  %v1691_v62 = vld [vmem:[#allocation5 + $0xca0] sm:$0xff]  ;;  %v217_v13 = vld [vmem:[#allocation3 + $0x290] sm:$0xff]  ;;  %v683_v1 = vcombine.low %v18637_v18, %v177_v24  ;;  %v699_v9 = vcombine.low %v185_v20, %v193_v45  ;;  %v15061_v12 = vcombine.low %v1679_v36, %v1683_v61  ;;  %v14816_v25 = vcombine.high %v1432_v29, %v1436_v4  ;;  %v1448_v20 = vld [vmem:[#allocation5 + $0x508] sm:$0xff] }
 0x11c   :  { %8490 = vmatprep.subr.bf16.mxu1 %v14800_v41  ;;  %20760 = vst [vmem:[#allocation56_spill] sm:$0xff] %v18652_v10  ;;  %v1440_v41 = vld [vmem:[#allocation5 + $0x4c8] sm:$0xff]  ;;  %v716_v31 = vcombine.high %v18648_v42, %v18650_v57  ;;  %v732_v48 = vcombine.high %v217_v13, %v225_v17  ;;  %v1695_v54 = vld [vmem:[#allocation5 + $0xcc0] sm:$0xff]  ;;  %v14815_v24 = vcombine.low %v1432_v29, %v1436_v4 }
 0x11d   :  { %7730 = vmatpush1.bf16.msra.mxu0 %v15045_v32  ;;  %v15070_v32 = vcombine.high %v1687_v0, %v1691_v62  ;;  %v1699_v30 = vld [vmem:[#allocation5 + $0xce0] sm:$0xff]  ;;  %v18661_v18 = vpack.c.bf16 %v699_v9, %v683_v1  ;;  %v1452_v45 = vld [vmem:[#allocation5 + $0x528] sm:$0xff]  ;;  %v15069_v36 = vcombine.low %v1687_v0, %v1691_v62  ;;  %v257_v1 = vld [vmem:[#allocation3 + $0x3d0] sm:$0xff]  ;;  %v715_v0 = vcombine.low %v18648_v42, %v18650_v57 }
 0x11e   :  { %7812 = vmatprep.subr.bf16.mxu0 %v15054_v47  ;;  %8410 = vmatmul.mubr.bf16.vlgmr.msra.gmra.mrb[32].mxu1 %v18271_v3  ;;  %v1444_v47 = vld [vmem:[#allocation5 + $0x4e8] sm:$0xff]  ;;  %v18667_v3 = vld [vmem:[#allocation3 + $0x390] sm:$0xff]  ;;  %v731_v62 = vcombine.low %v217_v13, %v225_v17  ;;  %v15077_v4 = vcombine.low %v1695_v54, %v1699_v30  ;;  %v14832_v9 = vcombine.high %v1448_v20, %v1452_v45  ;;  %v1715_v42 = vld [vmem:[#allocation5 + $0xd60] sm:$0xff] }
 0x11f   :  { %8491 = vmatpush1.bf16.msra.mxu1 %v14799_v23  ;;  %8419 = vmatprep.mubr.bf16.mxu1 %v18287_v52  ;;  %20761 = vst [vmem:[#allocation57_spill] sm:$0xff] %v18661_v18  ;;  %v14824_v61 = vcombine.high %v1440_v41, %v1444_v47  ;;  %v1703_v23 = vld [vmem:[#allocation5 + $0xd00] sm:$0xff]  ;;  %v15078_v52 = vcombine.high %v1695_v54, %v1699_v30  ;;  %v1464_v17 = vld [vmem:[#allocation5 + $0x588] sm:$0xff] }
 0x120   :  { %7732 = vmatmul.mubr.bf16.vlgmr.msra.gmra.mrb[0].mxu0 %v18646_v33  ;;  %8492 = vmatprep.subr.bf16.mxu1 %v14808_v49  ;;  %v18663_v49 = vld [vmem:[#allocation3 + $0x310] sm:$0xff]  ;;  %v14823_v29 = vcombine.low %v1440_v41, %v1444_v47  ;;  %v1711_v41 = vld [vmem:[#allocation5 + $0xd40] sm:$0xff]  ;;  %v18680_v57 = vpack.c.bf16 %v731_v62, %v715_v0  ;;  %v14831_v13 = vcombine.low %v1448_v20, %v1452_v45 }
 0x121   :  { %7813 = vmatpush1.bf16.msra.mxu0 %v15053_v43  ;;  %7741 = vmatprep.mubr.bf16.mxu0 %v18652_v10  ;;  %v1707_v43 = vld [vmem:[#allocation5 + $0xd20] sm:$0xff]  ;;  %v289_v0 = vld [vmem:[#allocation3 + $0x4d0] sm:$0xff] }
 0x122   :  { %7814 = vmatprep.subr.bf16.mxu0 %v15062_v5  ;;  %v18665_v5 = vld [vmem:[#allocation3 + $0x350] sm:$0xff]  ;;  %20763 = vst [vmem:[#allocation59_spill] sm:$0xff] %v18680_v57  ;;  %v15085_v47 = vcombine.low %v1703_v23, %v1707_v43  ;;  %v1719_v30 = vld [vmem:[#allocation5 + $0xd80] sm:$0xff] }
 0x123   :  { %8493 = vmatpush1.bf16.msra.mxu1 %v14807_v63  ;;  %v18669_v63 = vpack.c.bf16 %v732_v48, %v716_v31  ;;  %v748_v31 = vcombine.high %v18663_v49, %v18665_v5  ;;  %v764_v48 = vcombine.high %v18667_v3, %v257_v1  ;;  %v747_v45 = vcombine.low %v18663_v49, %v18665_v5  ;;  %v1727_v49 = vld [vmem:[#allocation5 + $0xdc0] sm:$0xff] }
 0x124   :  { %8494 = vmatprep.subr.bf16.mxu1 %v14816_v25  ;;  %v1456_v25 = vld [vmem:[#allocation5 + $0x548] sm:$0xff]  ;;  %v1731_v5 = vld [vmem:[#allocation5 + $0xde0] sm:$0xff] }
 0x125   :  { %7815 = vmatpush1.bf16.msra.mxu0 %v15061_v12  ;;  %20762 = vst [vmem:[#allocation58_spill] sm:$0xff] %v18669_v63  ;;  %v15086_v12 = vcombine.high %v1703_v23, %v1707_v43  ;;  %v763_v23 = vcombine.low %v18667_v3, %v257_v1  ;;  %v15093_v43 = vcombine.low %v1711_v41, %v1715_v42 }
 0x126   :  { %7816 = vmatprep.subr.bf16.mxu0 %v15070_v32  ;;  %8420 = vmatmul.mubr.bf16.gmra.mrb[36].mxu1 %v18326_v21  ;;  %v1460_v32 = vld [vmem:[#allocation5 + $0x568] sm:$0xff]  ;;  %v18686_v21 = vld [vmem:[#allocation3 + $0x490] sm:$0xff] }
 0x127   :  { %8495 = vmatpush1.bf16.msra.mxu1 %v14815_v24  ;;  %8429 = vmatprep.mubr.bf16.mxu1 %v18343_v34  ;;  %v14840_v54 = vcombine.high %v1456_v25, %v1460_v32  ;;  %v1723_v24 = vld [vmem:[#allocation5 + $0xda0] sm:$0xff]  ;;  %v15094_v34 = vcombine.high %v1711_v41, %v1715_v42  ;;  %v14839_v20 = vcombine.low %v1456_v25, %v1460_v32  ;;  %v1480_v32 = vld [vmem:[#allocation5 + $0x608] sm:$0xff] }
 0x128   :  { %7742 = vmatmul.mubr.bf16.gmra.mrb[4].mxu0 %v18661_v18  ;;  %8496 = vmatprep.subr.bf16.mxu1 %v14824_v61  ;;  %v18684_v61 = vld [vmem:[#allocation3 + $0x450] sm:$0xff]  ;;  %v796_v25 = vcombine.high %v18686_v21, %v289_v0  ;;  %v18700_v3 = vpack.c.bf16 %v763_v23, %v747_v45  ;;  %v1735_v42 = vld [vmem:[#allocation5 + $0xe00] sm:$0xff] }
 0x129   :  { %7817 = vmatpush1.bf16.msra.mxu0 %v15069_v36  ;;  %7751 = vmatprep.mubr.bf16.mxu0 %v18669_v63  ;;  %v18682_v36 = vld [vmem:[#allocation3 + $0x410] sm:$0xff] }
 0x12a   :  { %7818 = vmatprep.subr.bf16.mxu0 %v15078_v52  ;;  %v1468_v52 = vld [vmem:[#allocation5 + $0x5a8] sm:$0xff]  ;;  %20765 = vst [vmem:[#allocation61_spill] sm:$0xff] %v18700_v3  ;;  %v321_v45 = vld [vmem:[#allocation3 + $0x5d0] sm:$0xff] }
 0x12b   :  { %8497 = vmatpush1.bf16.msra.mxu1 %v14823_v29  ;;  %v18688_v29 = vpack.c.bf16 %v764_v48, %v748_v31  ;;  %v14848_v62 = vcombine.high %v1464_v17, %v1468_v52  ;;  %v780_v31 = vcombine.high %v18682_v36, %v18684_v61  ;;  %v14847_v1 = vcombine.low %v1464_v17, %v1468_v52 }
 0x12c   :  { %8498 = vmatprep.subr.bf16.mxu1 %v14832_v9  ;;  %v1472_v9 = vld [vmem:[#allocation5 + $0x5c8] sm:$0xff]  ;;  %v15101_v48 = vcombine.low %v1719_v30, %v1723_v24  ;;  %v779_v52 = vcombine.low %v18682_v36, %v18684_v61  ;;  %v1743_v36 = vld [vmem:[#allocation5 + $0xe40] sm:$0xff] }
 0x12d   :  { %7819 = vmatpush1.bf16.msra.mxu0 %v15077_v4  ;;  %20764 = vst [vmem:[#allocation60_spill] sm:$0xff] %v18688_v29  ;;  %v15102_v4 = vcombine.high %v1719_v30, %v1723_v24  ;;  %v795_v30 = vcombine.low %v18686_v21, %v289_v0  ;;  %v15109_v24 = vcombine.low %v1727_v49, %v1731_v5  ;;  %v1747_v61 = vld [vmem:[#allocation5 + $0xe60] sm:$0xff] }
 0x12e   :  { %7820 = vmatprep.subr.bf16.mxu0 %v15086_v12  ;;  %8430 = vmatmul.mubr.bf16.gmra.mrb[40].mxu1 %v18382_v51  ;;  %v1476_v12 = vld [vmem:[#allocation5 + $0x5e8] sm:$0xff]  ;;  %v18706_v51 = vld [vmem:[#allocation3 + $0x590] sm:$0xff] }
 0x12f   :  { %8499 = vmatpush1.bf16.msra.mxu1 %v14831_v13  ;;  %8439 = vmatprep.mubr.bf16.mxu1 %v18399_v11  ;;  %v14856_v41 = vcombine.high %v1472_v9, %v1476_v12  ;;  %v1739_v13 = vld [vmem:[#allocation5 + $0xe20] sm:$0xff]  ;;  %v15110_v11 = vcombine.high %v1727_v49, %v1731_v5  ;;  %v14855_v17 = vcombine.low %v1472_v9, %v1476_v12  ;;  %v1496_v12 = vld [vmem:[#allocation5 + $0x688] sm:$0xff] }
 0x130   :  { %7752 = vmatmul.mubr.bf16.gmra.mrb[8].mxu0 %v18680_v57  ;;  %8500 = vmatprep.subr.bf16.mxu1 %v14840_v54  ;;  %v18704_v54 = vld [vmem:[#allocation3 + $0x550] sm:$0xff]  ;;  %v828_v9 = vcombine.high %v18706_v51, %v321_v45  ;;  %v18720_v21 = vpack.c.bf16 %v795_v30, %v779_v52  ;;  %v1751_v5 = vld [vmem:[#allocation5 + $0xe80] sm:$0xff] }
 0x131   :  { %7821 = vmatpush1.bf16.msra.mxu0 %v15085_v47  ;;  %7761 = vmatprep.mubr.bf16.mxu0 %v18688_v29  ;;  %v18702_v47 = vld [vmem:[#allocation3 + $0x510] sm:$0xff] }
 0x132   :  { %7822 = vmatprep.subr.bf16.mxu0 %v15094_v34  ;;  %v1484_v34 = vld [vmem:[#allocation5 + $0x628] sm:$0xff]  ;;  %20767 = vst [vmem:[#allocation63_spill] sm:$0xff] %v18720_v21  ;;  %v353_v52 = vld [vmem:[#allocation3 + $0x6d0] sm:$0xff] }
 0x133   :  { %8501 = vmatpush1.bf16.msra.mxu1 %v14839_v20  ;;  %v18708_v20 = vpack.c.bf16 %v796_v25, %v780_v31  ;;  %v14864_v23 = vcombine.high %v1480_v32, %v1484_v34  ;;  %v812_v31 = vcombine.high %v18702_v47, %v18704_v54  ;;  %v14863_v0 = vcombine.low %v1480_v32, %v1484_v34 }
 0x134   :  { %8502 = vmatprep.subr.bf16.mxu1 %v14848_v62  ;;  %v1488_v62 = vld [vmem:[#allocation5 + $0x648] sm:$0xff]  ;;  %v15117_v25 = vcombine.low %v1735_v42, %v1739_v13  ;;  %v811_v34 = vcombine.low %v18702_v47, %v18704_v54  ;;  %v1759_v47 = vld [vmem:[#allocation5 + $0xec0] sm:$0xff] }
 0x135   :  { %7823 = vmatpush1.bf16.msra.mxu0 %v15093_v43  ;;  %20766 = vst [vmem:[#allocation62_spill] sm:$0xff] %v18708_v20  ;;  %v15118_v43 = vcombine.high %v1735_v42, %v1739_v13  ;;  %v827_v42 = vcombine.low %v18706_v51, %v321_v45  ;;  %v15125_v13 = vcombine.low %v1743_v36, %v1747_v61  ;;  %v1763_v54 = vld [vmem:[#allocation5 + $0xee0] sm:$0xff] }
 0x136   :  { %7824 = vmatprep.subr.bf16.mxu0 %v15102_v4  ;;  %8440 = vmatmul.mubr.bf16.gmra.mrb[44].mxu1 %v18438_v59  ;;  %v1492_v4 = vld [vmem:[#allocation5 + $0x668] sm:$0xff]  ;;  %v18726_v59 = vld [vmem:[#allocation3 + $0x690] sm:$0xff] }
 0x137   :  { %8503 = vmatpush1.bf16.msra.mxu1 %v14847_v1  ;;  %8449 = vmatprep.mubr.bf16.mxu1 %v18455_v46  ;;  %v14872_v49 = vcombine.high %v1488_v62, %v1492_v4  ;;  %v1755_v1 = vld [vmem:[#allocation5 + $0xea0] sm:$0xff]  ;;  %v15126_v46 = vcombine.high %v1743_v36, %v1747_v61  ;;  %v14871_v32 = vcombine.low %v1488_v62, %v1492_v4  ;;  %v1512_v4 = vld [vmem:[#allocation5 + $0x708] sm:$0xff] }
 0x138   :  { %7762 = vmatmul.mubr.bf16.gmra.mrb[12].mxu0 %v18700_v3  ;;  %8504 = vmatprep.subr.bf16.mxu1 %v14856_v41  ;;  %v18724_v41 = vld [vmem:[#allocation3 + $0x650] sm:$0xff]  ;;  %v860_v62 = vcombine.high %v18726_v59, %v353_v52  ;;  %v18740_v51 = vpack.c.bf16 %v827_v42, %v811_v34  ;;  %v1767_v61 = vld [vmem:[#allocation5 + $0xf00] sm:$0xff] }
 0x139   :  { %7825 = vmatpush1.bf16.msra.mxu0 %v15101_v48  ;;  %7771 = vmatprep.mubr.bf16.mxu0 %v18708_v20  ;;  %v18722_v48 = vld [vmem:[#allocation3 + $0x610] sm:$0xff] }
 0x13a   :  { %7826 = vmatprep.subr.bf16.mxu0 %v15110_v11  ;;  %v1500_v11 = vld [vmem:[#allocation5 + $0x6a8] sm:$0xff]  ;;  %20769 = vst [vmem:[#allocation65_spill] sm:$0xff] %v18740_v51  ;;  %v385_v34 = vld [vmem:[#allocation3 + $0x7d0] sm:$0xff] }
 0x13b   :  { %8505 = vmatpush1.bf16.msra.mxu1 %v14855_v17  ;;  %v18728_v17 = vpack.c.bf16 %v828_v9, %v812_v31  ;;  %v14880_v30 = vcombine.high %v1496_v12, %v1500_v11  ;;  %v844_v31 = vcombine.high %v18722_v48, %v18724_v41  ;;  %v14879_v45 = vcombine.low %v1496_v12, %v1500_v11 }
 0x13c   :  { %8506 = vmatprep.subr.bf16.mxu1 %v14864_v23  ;;  %v1504_v23 = vld [vmem:[#allocation5 + $0x6c8] sm:$0xff]  ;;  %v15133_v9 = vcombine.low %v1751_v5, %v1755_v1  ;;  %v843_v11 = vcombine.low %v18722_v48, %v18724_v41  ;;  %v1775_v48 = vld [vmem:[#allocation5 + $0xf40] sm:$0xff] }
 0x13d   :  { %7827 = vmatpush1.bf16.msra.mxu0 %v15109_v24  ;;  %20768 = vst [vmem:[#allocation64_spill] sm:$0xff] %v18728_v17  ;;  %v15134_v24 = vcombine.high %v1751_v5, %v1755_v1  ;;  %v859_v5 = vcombine.low %v18726_v59, %v353_v52  ;;  %v15141_v1 = vcombine.low %v1759_v47, %v1763_v54  ;;  %v1779_v41 = vld [vmem:[#allocation5 + $0xf60] sm:$0xff] }
 0x13e   :  { %7828 = vmatprep.subr.bf16.mxu0 %v15118_v43  ;;  %8450 = vmatmul.mubr.bf16.gmra.mrb[48].mxu1 %v18494_v22  ;;  %v1508_v43 = vld [vmem:[#allocation5 + $0x6e8] sm:$0xff]  ;;  %v18746_v22 = vld [vmem:[#allocation3 + $0x790] sm:$0xff] }
 0x13f   :  { %8507 = vmatpush1.bf16.msra.mxu1 %v14863_v0  ;;  %8459 = vmatprep.mubr.bf16.mxu1 %v18511_v37  ;;  %v14888_v36 = vcombine.high %v1504_v23, %v1508_v43  ;;  %v1771_v0 = vld [vmem:[#allocation5 + $0xf20] sm:$0xff]  ;;  %v15142_v37 = vcombine.high %v1759_v47, %v1763_v54  ;;  %v14887_v12 = vcombine.low %v1504_v23, %v1508_v43  ;;  %v1528_v43 = vld [vmem:[#allocation5 + $0x788] sm:$0xff] }
 0x140   :  { %7772 = vmatmul.mubr.bf16.gmra.mrb[16].mxu0 %v18720_v21  ;;  %8508 = vmatprep.subr.bf16.mxu1 %v14872_v49  ;;  %v18744_v49 = vld [vmem:[#allocation3 + $0x750] sm:$0xff]  ;;  %v892_v23 = vcombine.high %v18746_v22, %v385_v34  ;;  %v18760_v59 = vpack.c.bf16 %v859_v5, %v843_v11  ;;  %v1783_v54 = vld [vmem:[#allocation5 + $0xf80] sm:$0xff]  ;;  %v162_v11 = vld [vmem:[#allocation3 + $0xd8] sm:$0xff] }
 0x141   :  { %7829 = vmatpush1.bf16.msra.mxu0 %v15117_v25  ;;  %7781 = vmatprep.mubr.bf16.mxu0 %v18728_v17  ;;  %v18742_v25 = vld [vmem:[#allocation3 + $0x710] sm:$0xff] }
 0x142   :  { %7830 = vmatprep.subr.bf16.mxu0 %v15126_v46  ;;  %v1516_v46 = vld [vmem:[#allocation5 + $0x728] sm:$0xff]  ;;  %20771 = vst [vmem:[#allocation67_spill] sm:$0xff] %v18760_v59 }
 0x143   :  { %8509 = vmatpush1.bf16.msra.mxu1 %v14871_v32  ;;  %v18748_v32 = vpack.c.bf16 %v860_v62, %v844_v31  ;;  %v14896_v42 = vcombine.high %v1512_v4, %v1516_v46  ;;  %v876_v31 = vcombine.high %v18742_v25, %v18744_v49  ;;  %v14895_v52 = vcombine.low %v1512_v4, %v1516_v46 }
 0x144   :  { %8510 = vmatprep.subr.bf16.mxu1 %v14880_v30  ;;  %v1520_v30 = vld [vmem:[#allocation5 + $0x748] sm:$0xff]  ;;  %v15149_v62 = vcombine.low %v1767_v61, %v1771_v0  ;;  %v875_v46 = vcombine.low %v18742_v25, %v18744_v49  ;;  %v1791_v25 = vld [vmem:[#allocation5 + $0xfc0] sm:$0xff] }
 0x145   :  { %7831 = vmatpush1.bf16.msra.mxu0 %v15125_v13  ;;  %20770 = vst [vmem:[#allocation66_spill] sm:$0xff] %v18748_v32  ;;  %v15150_v13 = vcombine.high %v1767_v61, %v1771_v0  ;;  %v891_v61 = vcombine.low %v18746_v22, %v385_v34  ;;  %v15157_v0 = vcombine.low %v1775_v48, %v1779_v41  ;;  %v1795_v49 = vld [vmem:[#allocation5 + $0xfe0] sm:$0xff] }
 0x146   :  { %7832 = vmatprep.subr.bf16.mxu0 %v15134_v24  ;;  %8460 = vmatmul.mubr.bf16.gmra.mrb[52].mxu1 %v18550_v7  ;;  %v1524_v24 = vld [vmem:[#allocation5 + $0x768] sm:$0xff]  ;;  %v18766_v7 = vld [vmem:[#allocation3 + $0x98] sm:$0xff] }
 0x147   :  { %8511 = vmatpush1.bf16.msra.mxu1 %v14879_v45  ;;  %8469 = vmatprep.mubr.bf16.mxu1 %v18565_v27  ;;  %v14904_v47 = vcombine.high %v1520_v30, %v1524_v24  ;;  %v1787_v45 = vld [vmem:[#allocation5 + $0xfa0] sm:$0xff]  ;;  %v15158_v27 = vcombine.high %v1775_v48, %v1779_v41  ;;  %v14903_v4 = vcombine.low %v1520_v30, %v1524_v24  ;;  %v1544_v24 = vld [vmem:[#allocation5 + $0x808] sm:$0xff] }
 0x148   :  { %7782 = vmatmul.mubr.bf16.gmra.mrb[20].mxu0 %v18740_v51  ;;  %8512 = vmatprep.subr.bf16.mxu1 %v14888_v36  ;;  %v18764_v36 = vld [vmem:[#allocation3 + $0x58] sm:$0xff]  ;;  %v670_v30 = vcombine.high %v18766_v7, %v162_v11  ;;  %v18780_v22 = vpack.c.bf16 %v891_v61, %v875_v46  ;;  %v1799_v41 = vld [vmem:[#allocation5 + $0x1000] sm:$0xff] }
 0x149   :  { %7833 = vmatpush1.bf16.msra.mxu0 %v15133_v9  ;;  %7791 = vmatprep.mubr.bf16.mxu0 %v18748_v32  ;;  %v18762_v9 = vld [vmem:[#allocation3 + $0x18] sm:$0xff] }
 0x14a   :  { %7834 = vmatprep.subr.bf16.mxu0 %v15142_v37  ;;  %v1532_v37 = vld [vmem:[#allocation5 + $0x7a8] sm:$0xff]  ;;  %20773 = vst [vmem:[#allocation69_spill] sm:$0xff] %v18780_v22  ;;  %v194_v46 = vld [vmem:[#allocation3 + $0x1d8] sm:$0xff] }
 0x14b   :  { %8513 = vmatpush1.bf16.msra.mxu1 %v14887_v12  ;;  %v18768_v12 = vpack.c.bf16 %v892_v23, %v876_v31  ;;  %v14912_v5 = vcombine.high %v1528_v43, %v1532_v37  ;;  %v654_v31 = vcombine.high %v18762_v9, %v18764_v36  ;;  %v14911_v34 = vcombine.low %v1528_v43, %v1532_v37 }
 0x14c   :  { %8514 = vmatprep.subr.bf16.mxu1 %v14896_v42  ;;  %v1536_v42 = vld [vmem:[#allocation5 + $0x7c8] sm:$0xff]  ;;  %v15165_v23 = vcombine.low %v1783_v54, %v1787_v45  ;;  %v653_v37 = vcombine.low %v18762_v9, %v18764_v36  ;;  %v1807_v9 = vld [vmem:[#allocation5 + $0x1040] sm:$0xff] }
 0x14d   :  { %7835 = vmatpush1.bf16.msra.mxu0 %v15141_v1  ;;  %20772 = vst [vmem:[#allocation68_spill] sm:$0xff] %v18768_v12  ;;  %v15166_v1 = vcombine.high %v1783_v54, %v1787_v45  ;;  %v669_v54 = vcombine.low %v18766_v7, %v162_v11  ;;  %v15173_v45 = vcombine.low %v1791_v25, %v1795_v49  ;;  %v1811_v36 = vld [vmem:[#allocation5 + $0x1060] sm:$0xff] }
 0x14e   :  { %7836 = vmatprep.subr.bf16.mxu0 %v15150_v13  ;;  %8470 = vmatmul.mubr.bf16.gmra.mrb[56].mxu1 %v18601_v53  ;;  %v1540_v13 = vld [vmem:[#allocation5 + $0x7e8] sm:$0xff]  ;;  %v18786_v53 = vld [vmem:[#allocation3 + $0x198] sm:$0xff] }
 0x14f   :  { %8515 = vmatpush1.bf16.msra.mxu1 %v14895_v52  ;;  %8479 = vmatprep.mubr.bf16.mxu1 %v18610_v19  ;;  %v14920_v48 = vcombine.high %v1536_v42, %v1540_v13  ;;  %v1803_v52 = vld [vmem:[#allocation5 + $0x1020] sm:$0xff]  ;;  %v15174_v19 = vcombine.high %v1791_v25, %v1795_v49  ;;  %v14919_v43 = vcombine.low %v1536_v42, %v1540_v13  ;;  %v1560_v13 = vld [vmem:[#allocation5 + $0x888] sm:$0xff] }
 0x150   :  { %7792 = vmatmul.mubr.bf16.gmra.mrb[24].mxu0 %v18760_v59  ;;  %8516 = vmatprep.subr.bf16.mxu1 %v14904_v47  ;;  %v18784_v47 = vld [vmem:[#allocation3 + $0x158] sm:$0xff]  ;;  %v702_v42 = vcombine.high %v18786_v53, %v194_v46  ;;  %v18800_v7 = vpack.c.bf16 %v669_v54, %v653_v37  ;;  %v1815_v49 = vld [vmem:[#allocation5 + $0x1080] sm:$0xff] }
 0x151   :  { %7837 = vmatpush1.bf16.msra.mxu0 %v15149_v62  ;;  %7801 = vmatprep.mubr.bf16.mxu0 %v18768_v12  ;;  %v18782_v62 = vld [vmem:[#allocation3 + $0x118] sm:$0xff] }
 0x152   :  { %7838 = vmatprep.subr.bf16.mxu0 %v15158_v27  ;;  %v1548_v27 = vld [vmem:[#allocation5 + $0x828] sm:$0xff]  ;;  %20775 = vst [vmem:[#allocation71_spill] sm:$0xff] %v18800_v7  ;;  %v226_v37 = vld [vmem:[#allocation3 + $0x2d8] sm:$0xff] }
 0x153   :  { %8517 = vmatpush1.bf16.msra.mxu1 %v14903_v4  ;;  %v18788_v4 = vpack.c.bf16 %v670_v30, %v654_v31  ;;  %v14928_v61 = vcombine.high %v1544_v24, %v1548_v27  ;;  %v686_v31 = vcombine.high %v18782_v62, %v18784_v47  ;;  %v14927_v11 = vcombine.low %v1544_v24, %v1548_v27 }
 0x154   :  { %8518 = vmatprep.subr.bf16.mxu1 %v14912_v5  ;;  %v1552_v5 = vld [vmem:[#allocation5 + $0x848] sm:$0xff]  ;;  %v15181_v30 = vcombine.low %v1799_v41, %v1803_v52  ;;  %v685_v27 = vcombine.low %v18782_v62, %v18784_v47  ;;  %v1823_v62 = vld [vmem:[#allocation5 + $0x10c0] sm:$0xff] }
 0x155   :  { %7839 = vmatpush1.bf16.msra.mxu0 %v15157_v0  ;;  %20774 = vst [vmem:[#allocation70_spill] sm:$0xff] %v18788_v4  ;;  %v15182_v0 = vcombine.high %v1799_v41, %v1803_v52  ;;  %v701_v41 = vcombine.low %v18786_v53, %v194_v46  ;;  %v15189_v52 = vcombine.low %v1807_v9, %v1811_v36  ;;  %v1827_v47 = vld [vmem:[#allocation5 + $0x10e0] sm:$0xff] }
 0x156   :  { %7840 = vmatprep.subr.bf16.mxu0 %v15166_v1  ;;  %8480 = vmatmul.mubr.bf16.gmra.mrb[60].mxu1 %v18631_v55  ;;  %v1556_v1 = vld [vmem:[#allocation5 + $0x868] sm:$0xff]  ;;  %v18806_v55 = vld [vmem:[#allocation3 + $0x298] sm:$0xff] }
 0x157   :  { %8519 = vmatpush1.bf16.msra.mxu1 %v14911_v34  ;;  %8522 = vmatprep.mubr.bf16.mxu1 %v18233_v14  ;;  %v14936_v25 = vcombine.high %v1552_v5, %v1556_v1  ;;  %v1819_v34 = vld [vmem:[#allocation5 + $0x10a0] sm:$0xff]  ;;  %v15190_v14 = vcombine.high %v1807_v9, %v1811_v36  ;;  %v14935_v24 = vcombine.low %v1552_v5, %v1556_v1  ;;  %v1576_v1 = vld [vmem:[#allocation5 + $0x908] sm:$0xff] }
 0x158   :  { %7802 = vmatmul.mubr.bf16.gmra.mrb[28].mxu0 %v18780_v22  ;;  %8520 = vmatprep.subr.bf16.mxu1 %v14920_v48  ;;  %v18804_v48 = vld [vmem:[#allocation3 + $0x258] sm:$0xff]  ;;  %v734_v5 = vcombine.high %v18806_v55, %v226_v37  ;;  %v18820_v53 = vpack.c.bf16 %v701_v41, %v685_v27  ;;  %v1831_v36 = vld [vmem:[#allocation5 + $0x1100] sm:$0xff] }
 0x159   :  { %7841 = vmatpush1.bf16.msra.mxu0 %v15165_v23  ;;  %7844 = vmatprep.mubr.bf16.mxu0 %v18788_v4  ;;  %v18802_v23 = vld [vmem:[#allocation3 + $0x218] sm:$0xff] }
 0x15a   :  { %7842 = vmatprep.subr.bf16.mxu0 %v15174_v19  ;;  %v1564_v19 = vld [vmem:[#allocation5 + $0x8a8] sm:$0xff]  ;;  %20777 = vst [vmem:[#allocation73_spill] sm:$0xff] %v18820_v53  ;;  %v258_v27 = vld [vmem:[#allocation3 + $0x3d8] sm:$0xff] }
 0x15b   :  { %8521 = vmatpush1.bf16.msra.mxu1 %v14919_v43  ;;  %v18808_v43 = vpack.c.bf16 %v702_v42, %v686_v31  ;;  %v14944_v54 = vcombine.high %v1560_v13, %v1564_v19  ;;  %v718_v31 = vcombine.high %v18802_v23, %v18804_v48  ;;  %v14943_v46 = vcombine.low %v1560_v13, %v1564_v19 }
 0x15c   :  { %8603 = vmatprep.subr.bf16.mxu1 %v14928_v61  ;;  %v1568_v61 = vld [vmem:[#allocation5 + $0x8c8] sm:$0xff]  ;;  %v15197_v42 = vcombine.low %v1815_v49, %v1819_v34  ;;  %v717_v19 = vcombine.low %v18802_v23, %v18804_v48  ;;  %v1839_v23 = vld [vmem:[#allocation5 + $0x1140] sm:$0xff] }
 0x15d   :  { %7843 = vmatpush1.bf16.msra.mxu0 %v15173_v45  ;;  %20776 = vst [vmem:[#allocation72_spill] sm:$0xff] %v18808_v43  ;;  %v15198_v45 = vcombine.high %v1815_v49, %v1819_v34  ;;  %v733_v49 = vcombine.low %v18806_v55, %v226_v37  ;;  %v15205_v34 = vcombine.low %v1823_v62, %v1827_v47  ;;  %v1843_v48 = vld [vmem:[#allocation5 + $0x1160] sm:$0xff] }
 0x15e   :  { %7925 = vmatprep.subr.bf16.mxu0 %v15182_v0  ;;  %8523 = vmatmul.mubr.bf16.vlgmr.msra.gmra.mrb[32].mxu1 %v18277_v44  ;;  %v1572_v0 = vld [vmem:[#allocation5 + $0x8e8] sm:$0xff]  ;;  %v18826_v44 = vld [vmem:[#allocation3 + $0x398] sm:$0xff] }
 0x15f   :  { %8604 = vmatpush1.bf16.msra.mxu1 %v14927_v11  ;;  %8532 = vmatprep.mubr.bf16.mxu1 %v18294_v56  ;;  %v14952_v9 = vcombine.high %v1568_v61, %v1572_v0  ;;  %v1835_v11 = vld [vmem:[#allocation5 + $0x1120] sm:$0xff]  ;;  %v15206_v56 = vcombine.high %v1823_v62, %v1827_v47  ;;  %v14951_v13 = vcombine.low %v1568_v61, %v1572_v0  ;;  %v1592_v0 = vld [vmem:[#allocation5 + $0x988] sm:$0xff] }
 0x160   :  { %7845 = vmatmul.mubr.bf16.vlgmr.msra.gmra.mrb[0].mxu0 %v18800_v7  ;;  %8605 = vmatprep.subr.bf16.mxu1 %v14936_v25  ;;  %v18824_v25 = vld [vmem:[#allocation3 + $0x358] sm:$0xff]  ;;  %v766_v61 = vcombine.high %v18826_v44, %v258_v27  ;;  %v18840_v55 = vpack.c.bf16 %v733_v49, %v717_v19  ;;  %v1847_v47 = vld [vmem:[#allocation5 + $0x1180] sm:$0xff] }
 0x161   :  { %7926 = vmatpush1.bf16.msra.mxu0 %v15181_v30  ;;  %7854 = vmatprep.mubr.bf16.mxu0 %v18808_v43  ;;  %v18822_v30 = vld [vmem:[#allocation3 + $0x318] sm:$0xff] }
 0x162   :  { %7927 = vmatprep.subr.bf16.mxu0 %v15190_v14  ;;  %v1580_v14 = vld [vmem:[#allocation5 + $0x928] sm:$0xff]  ;;  %20779 = vst [vmem:[#allocation75_spill] sm:$0xff] %v18840_v55  ;;  %v290_v19 = vld [vmem:[#allocation3 + $0x4d8] sm:$0xff] }
 0x163   :  { %8606 = vmatpush1.bf16.msra.mxu1 %v14935_v24  ;;  %v18828_v24 = vpack.c.bf16 %v734_v5, %v718_v31  ;;  %v14960_v41 = vcombine.high %v1576_v1, %v1580_v14  ;;  %v750_v31 = vcombine.high %v18822_v30, %v18824_v25  ;;  %v14959_v37 = vcombine.low %v1576_v1, %v1580_v14 }
 0x164   :  { %8607 = vmatprep.subr.bf16.mxu1 %v14944_v54  ;;  %v1584_v54 = vld [vmem:[#allocation5 + $0x948] sm:$0xff]  ;;  %v15213_v5 = vcombine.low %v1831_v36, %v1835_v11  ;;  %v749_v14 = vcombine.low %v18822_v30, %v18824_v25  ;;  %v1855_v30 = vld [vmem:[#allocation5 + $0x11c0] sm:$0xff] }
 0x165   :  { %7928 = vmatpush1.bf16.msra.mxu0 %v15189_v52  ;;  %20778 = vst [vmem:[#allocation74_spill] sm:$0xff] %v18828_v24  ;;  %v15214_v52 = vcombine.high %v1831_v36, %v1835_v11  ;;  %v765_v36 = vcombine.low %v18826_v44, %v258_v27  ;;  %v15221_v11 = vcombine.low %v1839_v23, %v1843_v48  ;;  %v1859_v25 = vld [vmem:[#allocation5 + $0x11e0] sm:$0xff] }
 0x166   :  { %7929 = vmatprep.subr.bf16.mxu0 %v15198_v45  ;;  %8533 = vmatmul.mubr.bf16.gmra.mrb[36].mxu1 %v18332_v26  ;;  %v1588_v45 = vld [vmem:[#allocation5 + $0x968] sm:$0xff]  ;;  %v18846_v26 = vld [vmem:[#allocation3 + $0x498] sm:$0xff] }
 0x167   :  { %8608 = vmatpush1.bf16.msra.mxu1 %v14943_v46  ;;  %8542 = vmatprep.mubr.bf16.mxu1 %v18350_v58  ;;  %v14968_v62 = vcombine.high %v1584_v54, %v1588_v45  ;;  %v1851_v46 = vld [vmem:[#allocation5 + $0x11a0] sm:$0xff]  ;;  %v15222_v58 = vcombine.high %v1839_v23, %v1843_v48  ;;  %v14967_v1 = vcombine.low %v1584_v54, %v1588_v45  ;;  %v1608_v45 = vld [vmem:[#allocation5 + $0xa08] sm:$0xff] }
 0x168   :  { %7855 = vmatmul.mubr.bf16.gmra.mrb[4].mxu0 %v18820_v53  ;;  %8609 = vmatprep.subr.bf16.mxu1 %v14952_v9  ;;  %v18844_v9 = vld [vmem:[#allocation3 + $0x458] sm:$0xff]  ;;  %v798_v54 = vcombine.high %v18846_v26, %v290_v19  ;;  %v18860_v44 = vpack.c.bf16 %v765_v36, %v749_v14  ;;  %v1863_v48 = vld [vmem:[#allocation5 + $0x1200] sm:$0xff] }
 0x169   :  { %7930 = vmatpush1.bf16.msra.mxu0 %v15197_v42  ;;  %7864 = vmatprep.mubr.bf16.mxu0 %v18828_v24  ;;  %v18842_v42 = vld [vmem:[#allocation3 + $0x418] sm:$0xff] }
 0x16a   :  { %7931 = vmatprep.subr.bf16.mxu0 %v15206_v56  ;;  %v1596_v56 = vld [vmem:[#allocation5 + $0x9a8] sm:$0xff]  ;;  %20781 = vst [vmem:[#allocation77_spill] sm:$0xff] %v18860_v44  ;;  %v322_v14 = vld [vmem:[#allocation3 + $0x5d8] sm:$0xff] }
 0x16b   :  { %8610 = vmatpush1.bf16.msra.mxu1 %v14951_v13  ;;  %v18848_v13 = vpack.c.bf16 %v766_v61, %v750_v31  ;;  %v14976_v49 = vcombine.high %v1592_v0, %v1596_v56  ;;  %v782_v31 = vcombine.high %v18842_v42, %v18844_v9  ;;  %v14975_v27 = vcombine.low %v1592_v0, %v1596_v56 }
 0x16c   :  { %8611 = vmatprep.subr.bf16.mxu1 %v14960_v41  ;;  %v1600_v41 = vld [vmem:[#allocation5 + $0x9c8] sm:$0xff]  ;;  %v15229_v61 = vcombine.low %v1847_v47, %v1851_v46  ;;  %v781_v56 = vcombine.low %v18842_v42, %v18844_v9  ;;  %v1871_v42 = vld [vmem:[#allocation5 + $0x1240] sm:$0xff] }
 0x16d   :  { %7932 = vmatpush1.bf16.msra.mxu0 %v15205_v34  ;;  %20780 = vst [vmem:[#allocation76_spill] sm:$0xff] %v18848_v13  ;;  %v15230_v34 = vcombine.high %v1847_v47, %v1851_v46  ;;  %v797_v47 = vcombine.low %v18846_v26, %v290_v19  ;;  %v15237_v46 = vcombine.low %v1855_v30, %v1859_v25  ;;  %v1875_v9 = vld [vmem:[#allocation5 + $0x1260] sm:$0xff] }
 0x16e   :  { %7933 = vmatprep.subr.bf16.mxu0 %v15214_v52  ;;  %8543 = vmatmul.mubr.bf16.gmra.mrb[40].mxu1 %v18388_v60  ;;  %v1604_v52 = vld [vmem:[#allocation5 + $0x9e8] sm:$0xff]  ;;  %v18866_v60 = vld [vmem:[#allocation3 + $0x598] sm:$0xff] }
 0x16f   :  { %8612 = vmatpush1.bf16.msra.mxu1 %v14959_v37  ;;  %8552 = vmatprep.mubr.bf16.mxu1 %v18406_v16  ;;  %v14984_v23 = vcombine.high %v1600_v41, %v1604_v52  ;;  %v1867_v37 = vld [vmem:[#allocation5 + $0x1220] sm:$0xff]  ;;  %v15238_v16 = vcombine.high %v1855_v30, %v1859_v25  ;;  %v14983_v0 = vcombine.low %v1600_v41, %v1604_v52  ;;  %v1624_v52 = vld [vmem:[#allocation5 + $0xa88] sm:$0xff] }
 0x170   :  { %7865 = vmatmul.mubr.bf16.gmra.mrb[8].mxu0 %v18840_v55  ;;  %8613 = vmatprep.subr.bf16.mxu1 %v14968_v62  ;;  %v18864_v62 = vld [vmem:[#allocation3 + $0x558] sm:$0xff]  ;;  %v830_v41 = vcombine.high %v18866_v60, %v322_v14  ;;  %v18880_v26 = vpack.c.bf16 %v797_v47, %v781_v56  ;;  %v1879_v25 = vld [vmem:[#allocation5 + $0x1280] sm:$0xff] }
 0x171   :  { %7934 = vmatpush1.bf16.msra.mxu0 %v15213_v5  ;;  %7874 = vmatprep.mubr.bf16.mxu0 %v18848_v13  ;;  %v18862_v5 = vld [vmem:[#allocation3 + $0x518] sm:$0xff] }
 0x172   :  { %7935 = vmatprep.subr.bf16.mxu0 %v15222_v58  ;;  %v1612_v58 = vld [vmem:[#allocation5 + $0xa28] sm:$0xff]  ;;  %20783 = vst [vmem:[#allocation79_spill] sm:$0xff] %v18880_v26  ;;  %v354_v56 = vld [vmem:[#allocation3 + $0x6d8] sm:$0xff] }
 0x173   :  { %8614 = vmatpush1.bf16.msra.mxu1 %v14967_v1  ;;  %v18868_v1 = vpack.c.bf16 %v798_v54, %v782_v31  ;;  %v14992_v36 = vcombine.high %v1608_v45, %v1612_v58  ;;  %v814_v31 = vcombine.high %v18862_v5, %v18864_v62  ;;  %v14991_v19 = vcombine.low %v1608_v45, %v1612_v58 }
 0x174   :  { %8615 = vmatprep.subr.bf16.mxu1 %v14976_v49  ;;  %v1616_v49 = vld [vmem:[#allocation5 + $0xa48] sm:$0xff]  ;;  %v15245_v54 = vcombine.low %v1863_v48, %v1867_v37  ;;  %v813_v58 = vcombine.low %v18862_v5, %v18864_v62  ;;  %v1887_v5 = vld [vmem:[#allocation5 + $0x12c0] sm:$0xff] }
 0x175   :  { %7936 = vmatpush1.bf16.msra.mxu0 %v15221_v11  ;;  %20782 = vst [vmem:[#allocation78_spill] sm:$0xff] %v18868_v1  ;;  %v15246_v11 = vcombine.high %v1863_v48, %v1867_v37  ;;  %v829_v48 = vcombine.low %v18866_v60, %v322_v14  ;;  %v15253_v37 = vcombine.low %v1871_v42, %v1875_v9  ;;  %v1891_v62 = vld [vmem:[#allocation5 + $0x12e0] sm:$0xff] }
 0x176   :  { %7937 = vmatprep.subr.bf16.mxu0 %v15230_v34  ;;  %8553 = vmatmul.mubr.bf16.gmra.mrb[44].mxu1 %v18444_v40  ;;  %v1620_v34 = vld [vmem:[#allocation5 + $0xa68] sm:$0xff]  ;;  %v18886_v40 = vld [vmem:[#allocation3 + $0x698] sm:$0xff] }
 0x177   :  { %8616 = vmatpush1.bf16.msra.mxu1 %v14975_v27  ;;  %8562 = vmatprep.mubr.bf16.mxu1 %v18462_v50  ;;  %v15000_v30 = vcombine.high %v1616_v49, %v1620_v34  ;;  %v1883_v27 = vld [vmem:[#allocation5 + $0x12a0] sm:$0xff]  ;;  %v15254_v50 = vcombine.high %v1871_v42, %v1875_v9  ;;  %v14999_v45 = vcombine.low %v1616_v49, %v1620_v34  ;;  %v1640_v34 = vld [vmem:[#allocation5 + $0xb08] sm:$0xff] }
 0x178   :  { %7875 = vmatmul.mubr.bf16.gmra.mrb[12].mxu0 %v18860_v44  ;;  %8617 = vmatprep.subr.bf16.mxu1 %v14984_v23  ;;  %v18884_v23 = vld [vmem:[#allocation3 + $0x658] sm:$0xff]  ;;  %v862_v49 = vcombine.high %v18886_v40, %v354_v56  ;;  %v18900_v60 = vpack.c.bf16 %v829_v48, %v813_v58  ;;  %v1895_v9 = vld [vmem:[#allocation5 + $0x1300] sm:$0xff] }
 0x179   :  { %7938 = vmatpush1.bf16.msra.mxu0 %v15229_v61  ;;  %7884 = vmatprep.mubr.bf16.mxu0 %v18868_v1  ;;  %v18882_v61 = vld [vmem:[#allocation3 + $0x618] sm:$0xff] }
 0x17a   :  { %7939 = vmatprep.subr.bf16.mxu0 %v15238_v16  ;;  %v1628_v16 = vld [vmem:[#allocation5 + $0xaa8] sm:$0xff]  ;;  %20785 = vst [vmem:[#allocation81_spill] sm:$0xff] %v18900_v60  ;;  %v386_v58 = vld [vmem:[#allocation3 + $0x7d8] sm:$0xff] }
 0x17b   :  { %8618 = vmatpush1.bf16.msra.mxu1 %v14983_v0  ;;  %v18888_v0 = vpack.c.bf16 %v830_v41, %v814_v31  ;;  %v15008_v47 = vcombine.high %v1624_v52, %v1628_v16  ;;  %v846_v31 = vcombine.high %v18882_v61, %v18884_v23  ;;  %v15007_v14 = vcombine.low %v1624_v52, %v1628_v16 }
 0x17c   :  { %8619 = vmatprep.subr.bf16.mxu1 %v14992_v36  ;;  %v1632_v36 = vld [vmem:[#allocation5 + $0xac8] sm:$0xff]  ;;  %v15261_v41 = vcombine.low %v1879_v25, %v1883_v27  ;;  %v845_v16 = vcombine.low %v18882_v61, %v18884_v23  ;;  %v1903_v61 = vld [vmem:[#allocation5 + $0x1340] sm:$0xff] }
 0x17d   :  { %7940 = vmatpush1.bf16.msra.mxu0 %v15237_v46  ;;  %20784 = vst [vmem:[#allocation80_spill] sm:$0xff] %v18888_v0  ;;  %v15262_v46 = vcombine.high %v1879_v25, %v1883_v27  ;;  %v861_v25 = vcombine.low %v18886_v40, %v354_v56  ;;  %v15269_v27 = vcombine.low %v1887_v5, %v1891_v62  ;;  %v1907_v23 = vld [vmem:[#allocation5 + $0x1360] sm:$0xff] }
 0x17e   :  { %7941 = vmatprep.subr.bf16.mxu0 %v15246_v11  ;;  %8563 = vmatmul.mubr.bf16.gmra.mrb[48].mxu1 %v18500_v28  ;;  %v1636_v11 = vld [vmem:[#allocation5 + $0xae8] sm:$0xff]  ;;  %v18906_v28 = vld [vmem:[#allocation3 + $0x798] sm:$0xff] }
 0x17f   :  { %8620 = vmatpush1.bf16.msra.mxu1 %v14991_v19  ;;  %8572 = vmatprep.mubr.bf16.mxu1 %v18518_v39  ;;  %v15016_v42 = vcombine.high %v1632_v36, %v1636_v11  ;;  %v1899_v19 = vld [vmem:[#allocation5 + $0x1320] sm:$0xff]  ;;  %v15270_v39 = vcombine.high %v1887_v5, %v1891_v62  ;;  %v15015_v52 = vcombine.low %v1632_v36, %v1636_v11  ;;  %v1656_v11 = vld [vmem:[#allocation5 + $0xb88] sm:$0xff] }
 0x180   :  { %7885 = vmatmul.mubr.bf16.gmra.mrb[16].mxu0 %v18880_v26  ;;  %8621 = vmatprep.subr.bf16.mxu1 %v15000_v30  ;;  %v18904_v30 = vld [vmem:[#allocation3 + $0x758] sm:$0xff]  ;;  %v894_v36 = vcombine.high %v18906_v28, %v386_v58  ;;  %v18920_v40 = vpack.c.bf16 %v861_v25, %v845_v16  ;;  %v1911_v62 = vld [vmem:[#allocation5 + $0x1380] sm:$0xff] }
 0x181   :  { %7942 = vmatpush1.bf16.msra.mxu0 %v15245_v54  ;;  %7894 = vmatprep.mubr.bf16.mxu0 %v18888_v0  ;;  %v18902_v54 = vld [vmem:[#allocation3 + $0x718] sm:$0xff]  ;;  %v163_v16 = vld [vmem:[#allocation3 + $0xe0] sm:$0xff] }
 0x182   :  { %7943 = vmatprep.subr.bf16.mxu0 %v15254_v50  ;;  %v1644_v50 = vld [vmem:[#allocation5 + $0xb28] sm:$0xff]  ;;  %20787 = vst [vmem:[#allocation83_spill] sm:$0xff] %v18920_v40 }
 0x183   :  { %8622 = vmatpush1.bf16.msra.mxu1 %v14999_v45  ;;  %v18908_v45 = vpack.c.bf16 %v862_v49, %v846_v31  ;;  %v15024_v48 = vcombine.high %v1640_v34, %v1644_v50  ;;  %v878_v31 = vcombine.high %v18902_v54, %v18904_v30  ;;  %v15023_v56 = vcombine.low %v1640_v34, %v1644_v50 }
 0x184   :  { %8623 = vmatprep.subr.bf16.mxu1 %v15008_v47  ;;  %v1648_v47 = vld [vmem:[#allocation5 + $0xb48] sm:$0xff]  ;;  %v15277_v49 = vcombine.low %v1895_v9, %v1899_v19  ;;  %v877_v50 = vcombine.low %v18902_v54, %v18904_v30  ;;  %v1919_v54 = vld [vmem:[#allocation5 + $0x13c0] sm:$0xff] }
 0x185   :  { %7944 = vmatpush1.bf16.msra.mxu0 %v15253_v37  ;;  %20786 = vst [vmem:[#allocation82_spill] sm:$0xff] %v18908_v45  ;;  %v15278_v37 = vcombine.high %v1895_v9, %v1899_v19  ;;  %v893_v9 = vcombine.low %v18906_v28, %v386_v58  ;;  %v15285_v19 = vcombine.low %v1903_v61, %v1907_v23  ;;  %v1923_v30 = vld [vmem:[#allocation5 + $0x13e0] sm:$0xff] }
 0x186   :  { %7945 = vmatprep.subr.bf16.mxu0 %v15262_v46  ;;  %8573 = vmatmul.mubr.bf16.gmra.mrb[52].mxu1 %v18556_v15  ;;  %v1652_v46 = vld [vmem:[#allocation5 + $0xb68] sm:$0xff]  ;;  %v18926_v15 = vld [vmem:[#allocation3 + $0xa0] sm:$0xff] }
 0x187   :  { %8624 = vmatpush1.bf16.msra.mxu1 %v15007_v14  ;;  %8582 = vmatprep.mubr.bf16.mxu1 %v18572_v35  ;;  %v15032_v5 = vcombine.high %v1648_v47, %v1652_v46  ;;  %v1915_v14 = vld [vmem:[#allocation5 + $0x13a0] sm:$0xff]  ;;  %v15286_v35 = vcombine.high %v1903_v61, %v1907_v23  ;;  %v15031_v34 = vcombine.low %v1648_v47, %v1652_v46  ;;  %v1672_v46 = vld [vmem:[#allocation5 + $0xc08] sm:$0xff] }
 0x188   :  { %7895 = vmatmul.mubr.bf16.gmra.mrb[20].mxu0 %v18900_v60  ;;  %8625 = vmatprep.subr.bf16.mxu1 %v15016_v42  ;;  %v18924_v42 = vld [vmem:[#allocation3 + $0x60] sm:$0xff]  ;;  %v672_v47 = vcombine.high %v18926_v15, %v163_v16  ;;  %v18940_v28 = vpack.c.bf16 %v893_v9, %v877_v50 }
 0x189   :  { %7946 = vmatpush1.bf16.msra.mxu0 %v15261_v41  ;;  %7904 = vmatprep.mubr.bf16.mxu0 %v18908_v45  ;;  %v18922_v41 = vld [vmem:[#allocation3 + $0x20] sm:$0xff] }
 0x18a   :  { %7947 = vmatprep.subr.bf16.mxu0 %v15270_v39  ;;  %v1660_v39 = vld [vmem:[#allocation5 + $0xba8] sm:$0xff]  ;;  %20789 = vst [vmem:[#allocation85_spill] sm:$0xff] %v18940_v28  ;;  %v1927_v23 = vld [vmem:[#allocation5 + $0x1400] sm:$0xff] }
 0x18b   :  { %8626 = vmatpush1.bf16.msra.mxu1 %v15015_v52  ;;  %v18928_v52 = vpack.c.bf16 %v894_v36, %v878_v31  ;;  %v15040_v25 = vcombine.high %v1656_v11, %v1660_v39  ;;  %v656_v31 = vcombine.high %v18922_v41, %v18924_v42  ;;  %v15039_v58 = vcombine.low %v1656_v11, %v1660_v39  ;;  %v195_v50 = vld [vmem:[#allocation3 + $0x1e0] sm:$0xff] }
 0x18c   :  { %8627 = vmatprep.subr.bf16.mxu1 %v15024_v48  ;;  %v1664_v48 = vld [vmem:[#allocation5 + $0xbc8] sm:$0xff]  ;;  %v15293_v36 = vcombine.low %v1911_v62, %v1915_v14  ;;  %v655_v39 = vcombine.low %v18922_v41, %v18924_v42  ;;  %v1935_v41 = vld [vmem:[#allocation5 + $0x1440] sm:$0xff] }
 0x18d   :  { %7948 = vmatpush1.bf16.msra.mxu0 %v15269_v27  ;;  %20788 = vst [vmem:[#allocation84_spill] sm:$0xff] %v18928_v52  ;;  %v15294_v27 = vcombine.high %v1911_v62, %v1915_v14  ;;  %v671_v62 = vcombine.low %v18926_v15, %v163_v16  ;;  %v15301_v14 = vcombine.low %v1919_v54, %v1923_v30  ;;  %v1939_v42 = vld [vmem:[#allocation5 + $0x1460] sm:$0xff] }
 0x18e   :  { %7949 = vmatprep.subr.bf16.mxu0 %v15278_v37  ;;  %8583 = vmatmul.mubr.bf16.gmra.mrb[56].mxu1 %v18606_v6  ;;  %v1668_v37 = vld [vmem:[#allocation5 + $0xbe8] sm:$0xff]  ;;  %v18946_v6 = vld [vmem:[#allocation3 + $0x1a0] sm:$0xff] }
 0x18f   :  { %8628 = vmatpush1.bf16.msra.mxu1 %v15023_v56  ;;  %8592 = vmatprep.mubr.bf16.mxu1 %v18615_v2  ;;  %v15048_v61 = vcombine.high %v1664_v48, %v1668_v37  ;;  %v1931_v56 = vld [vmem:[#allocation5 + $0x1420] sm:$0xff]  ;;  %v15302_v2 = vcombine.high %v1919_v54, %v1923_v30  ;;  %v15047_v11 = vcombine.low %v1664_v48, %v1668_v37  ;;  %v1688_v37 = vld [vmem:[#allocation5 + $0xc88] sm:$0xff] }
 0x190   :  { %7905 = vmatmul.mubr.bf16.gmra.mrb[24].mxu0 %v18920_v40  ;;  %8629 = vmatprep.subr.bf16.mxu1 %v15032_v5  ;;  %v18944_v5 = vld [vmem:[#allocation3 + $0x160] sm:$0xff]  ;;  %v704_v48 = vcombine.high %v18946_v6, %v195_v50  ;;  %v18960_v15 = vpack.c.bf16 %v671_v62, %v655_v39 }
 0x191   :  { %7950 = vmatpush1.bf16.msra.mxu0 %v15277_v49  ;;  %7914 = vmatprep.mubr.bf16.mxu0 %v18928_v52  ;;  %v18942_v49 = vld [vmem:[#allocation3 + $0x120] sm:$0xff] }
 0x192   :  { %7951 = vmatprep.subr.bf16.mxu0 %v15286_v35  ;;  %v1676_v35 = vld [vmem:[#allocation5 + $0xc28] sm:$0xff]  ;;  %20791 = vst [vmem:[#allocation87_spill] sm:$0xff] %v18960_v15  ;;  %v1943_v30 = vld [vmem:[#allocation5 + $0x1480] sm:$0xff] }
 0x193   :  { %8630 = vmatpush1.bf16.msra.mxu1 %v15031_v34  ;;  %v18948_v34 = vpack.c.bf16 %v672_v47, %v656_v31  ;;  %v15056_v9 = vcombine.high %v1672_v46, %v1676_v35  ;;  %v688_v31 = vcombine.high %v18942_v49, %v18944_v5  ;;  %v15055_v16 = vcombine.low %v1672_v46, %v1676_v35  ;;  %v227_v39 = vld [vmem:[#allocation3 + $0x2e0] sm:$0xff] }
 0x194   :  { %8631 = vmatprep.subr.bf16.mxu1 %v15040_v25  ;;  %v1680_v25 = vld [vmem:[#allocation5 + $0xc48] sm:$0xff]  ;;  %v15309_v47 = vcombine.low %v1927_v23, %v1931_v56  ;;  %v687_v35 = vcombine.low %v18942_v49, %v18944_v5  ;;  %v1951_v49 = vld [vmem:[#allocation5 + $0x14c0] sm:$0xff] }
 0x195   :  { %7952 = vmatpush1.bf16.msra.mxu0 %v15285_v19  ;;  %20790 = vst [vmem:[#allocation86_spill] sm:$0xff] %v18948_v34  ;;  %v15310_v19 = vcombine.high %v1927_v23, %v1931_v56  ;;  %v703_v23 = vcombine.low %v18946_v6, %v195_v50  ;;  %v15317_v56 = vcombine.low %v1935_v41, %v1939_v42  ;;  %v1955_v5 = vld [vmem:[#allocation5 + $0x14e0] sm:$0xff] }
 0x196   :  { %7953 = vmatprep.subr.bf16.mxu0 %v15294_v27  ;;  %8593 = vmatmul.mubr.bf16.gmra.mrb[60].mxu1 %v18633_v38  ;;  %v1684_v27 = vld [vmem:[#allocation5 + $0xc68] sm:$0xff]  ;;  %v18966_v38 = vld [vmem:[#allocation3 + $0x2a0] sm:$0xff] }
 0x197   :  { %8632 = vmatpush1.bf16.msra.mxu1 %v15039_v58  ;;  %8635 = vmatprep.mubr.bf16.mxu1 %v18635_v8  ;;  %v15064_v54 = vcombine.high %v1680_v25, %v1684_v27  ;;  %v1947_v58 = vld [vmem:[#allocation5 + $0x14a0] sm:$0xff]  ;;  %v15318_v8 = vcombine.high %v1935_v41, %v1939_v42  ;;  %v15063_v46 = vcombine.low %v1680_v25, %v1684_v27  ;;  %v1704_v27 = vld [vmem:[#allocation5 + $0xd08] sm:$0xff] }
 0x198   :  { %7915 = vmatmul.mubr.bf16.gmra.mrb[28].mxu0 %v18940_v28  ;;  %8633 = vmatprep.subr.bf16.mxu1 %v15048_v61  ;;  %v18964_v61 = vld [vmem:[#allocation3 + $0x260] sm:$0xff]  ;;  %v736_v25 = vcombine.high %v18966_v38, %v227_v39  ;;  %v18980_v6 = vpack.c.bf16 %v703_v23, %v687_v35 }
 0x199   :  { %7954 = vmatpush1.bf16.msra.mxu0 %v15293_v36  ;;  %7957 = vmatprep.mubr.bf16.mxu0 %v18948_v34  ;;  %v18962_v36 = vld [vmem:[#allocation3 + $0x220] sm:$0xff] }
 0x19a   :  { %7955 = vmatprep.subr.bf16.mxu0 %v15302_v2  ;;  %v1692_v2 = vld [vmem:[#allocation5 + $0xca8] sm:$0xff]  ;;  %20793 = vst [vmem:[#allocation89_spill] sm:$0xff] %v18980_v6  ;;  %v1959_v42 = vld [vmem:[#allocation5 + $0x1500] sm:$0xff] }
 0x19b   :  { %8634 = vmatpush1.bf16.msra.mxu1 %v15047_v11  ;;  %v18968_v11 = vpack.c.bf16 %v704_v48, %v688_v31  ;;  %v15072_v62 = vcombine.high %v1688_v37, %v1692_v2  ;;  %v720_v31 = vcombine.high %v18962_v36, %v18964_v61  ;;  %v15071_v50 = vcombine.low %v1688_v37, %v1692_v2  ;;  %v18990_v35 = vld [vmem:[#allocation3 + $0x3e0] sm:$0xff] }
 0x19c   :  { %8716 = vmatprep.subr.bf16.mxu1 %v15056_v9  ;;  %v1696_v9 = vld [vmem:[#allocation5 + $0xcc8] sm:$0xff]  ;;  %v15325_v48 = vcombine.low %v1943_v30, %v1947_v58  ;;  %v719_v2 = vcombine.low %v18962_v36, %v18964_v61  ;;  %v1967_v36 = vld [vmem:[#allocation5 + $0x1540] sm:$0xff] }
 0x19d   :  { %7956 = vmatpush1.bf16.msra.mxu0 %v15301_v14  ;;  %20792 = vst [vmem:[#allocation88_spill] sm:$0xff] %v18968_v11  ;;  %v15326_v14 = vcombine.high %v1943_v30, %v1947_v58  ;;  %v735_v30 = vcombine.low %v18966_v38, %v227_v39  ;;  %v15333_v58 = vcombine.low %v1951_v49, %v1955_v5  ;;  %v1971_v38 = vld [vmem:[#allocation5 + $0x1560] sm:$0xff] }
 0x19e   :  { %8038 = vmatprep.subr.bf16.mxu0 %v15310_v19  ;;  %8636 = vmatmul.mubr.bf16.vlgmr.msra.gmra.mrb[32].mxu1 %v18646_v33  ;;  %v1700_v19 = vld [vmem:[#allocation5 + $0xce8] sm:$0xff]  ;;  %v18986_v33 = vld [vmem:[#allocation3 + $0x3a0] sm:$0xff] }
 0x19f   :  { %8717 = vmatpush1.bf16.msra.mxu1 %v15055_v16  ;;  %8645 = vmatprep.mubr.bf16.mxu1 %v18652_v10  ;;  %v15080_v41 = vcombine.high %v1696_v9, %v1700_v19  ;;  %v1963_v16 = vld [vmem:[#allocation5 + $0x1520] sm:$0xff]  ;;  %v15334_v10 = vcombine.high %v1951_v49, %v1955_v5  ;;  %v15079_v37 = vcombine.low %v1696_v9, %v1700_v19  ;;  %v1724_v19 = vld [vmem:[#allocation5 + $0xda8] sm:$0xff] }
 0x1a0   :  { %7958 = vmatmul.mubr.bf16.vlgmr.msra.gmra.mrb[0].mxu0 %v18960_v15  ;;  %8718 = vmatprep.subr.bf16.mxu1 %v15064_v54  ;;  %v18984_v54 = vld [vmem:[#allocation3 + $0x360] sm:$0xff]  ;;  %v768_v9 = vcombine.high %v18986_v33, %v18990_v35  ;;  %v19003_v61 = vpack.c.bf16 %v735_v30, %v719_v2 }
 0x1a1   :  { %8039 = vmatpush1.bf16.msra.mxu0 %v15309_v47  ;;  %7967 = vmatprep.mubr.bf16.mxu0 %v18968_v11  ;;  %v18982_v47 = vld [vmem:[#allocation3 + $0x320] sm:$0xff] }
 0x1a2   :  { %8040 = vmatprep.subr.bf16.mxu0 %v15318_v8  ;;  %v1708_v8 = vld [vmem:[#allocation5 + $0xd28] sm:$0xff]  ;;  %20795 = vst [vmem:[#allocation91_spill] sm:$0xff] %v19003_v61  ;;  %v1975_v5 = vld [vmem:[#allocation5 + $0x1580] sm:$0xff] }
 0x1a3   :  { %8719 = vmatpush1.bf16.msra.mxu1 %v15063_v46  ;;  %v18988_v46 = vpack.c.bf16 %v736_v25, %v720_v31  ;;  %v15088_v23 = vcombine.high %v1704_v27, %v1708_v8  ;;  %v752_v31 = vcombine.high %v18982_v47, %v18984_v54  ;;  %v15087_v39 = vcombine.low %v1704_v27, %v1708_v8  ;;  %v19013_v2 = vld [vmem:[#allocation3 + $0x4e0] sm:$0xff] }
 0x1a4   :  { %8720 = vmatprep.subr.bf16.mxu1 %v15072_v62  ;;  %v1712_v62 = vld [vmem:[#allocation5 + $0xd48] sm:$0xff]  ;;  %v15341_v25 = vcombine.low %v1959_v42, %v1963_v16  ;;  %v751_v8 = vcombine.low %v18982_v47, %v18984_v54 }
 0x1a5   :  { %8041 = vmatpush1.bf16.msra.mxu0 %v15317_v56  ;;  %20794 = vst [vmem:[#allocation90_spill] sm:$0xff] %v18988_v46  ;;  %v15342_v56 = vcombine.high %v1959_v42, %v1963_v16  ;;  %v767_v42 = vcombine.low %v18986_v33, %v18990_v35  ;;  %v15349_v16 = vcombine.low %v1967_v36, %v1971_v38  ;;  %v1983_v33 = vld [vmem:[#allocation5 + $0x15c0] sm:$0xff] }
 0x1a6   :  { %8042 = vmatprep.subr.bf16.mxu0 %v15326_v14  ;;  %8646 = vmatmul.mubr.bf16.gmra.mrb[36].mxu1 %v18661_v18  ;;  %v1716_v14 = vld [vmem:[#allocation5 + $0xd68] sm:$0xff]  ;;  %v19009_v18 = vld [vmem:[#allocation3 + $0x4a0] sm:$0xff] }
 0x1a7   :  { %8721 = vmatpush1.bf16.msra.mxu1 %v15071_v50  ;;  %8655 = vmatprep.mubr.bf16.mxu1 %v18669_v63  ;;  %v15096_v49 = vcombine.high %v1712_v62, %v1716_v14  ;;  %v1979_v50 = vld [vmem:[#allocation5 + $0x15a0] sm:$0xff]  ;;  %v15350_v63 = vcombine.high %v1967_v36, %v1971_v38  ;;  %v15095_v27 = vcombine.low %v1712_v62, %v1716_v14  ;;  %v1736_v36 = vld [vmem:[#allocation5 + $0xe08] sm:$0xff] }
 0x1a8   :  { %7968 = vmatmul.mubr.bf16.gmra.mrb[4].mxu0 %v18980_v6  ;;  %8722 = vmatprep.subr.bf16.mxu1 %v15080_v41  ;;  %v19007_v41 = vld [vmem:[#allocation3 + $0x460] sm:$0xff]  ;;  %v800_v47 = vcombine.high %v19009_v18, %v19013_v2  ;;  %v1740_v38 = vld [vmem:[#allocation5 + $0xe28] sm:$0xff] }
 0x1a9   :  { %8043 = vmatpush1.bf16.msra.mxu0 %v15325_v48  ;;  %7977 = vmatprep.mubr.bf16.mxu0 %v18988_v46  ;;  %v19005_v48 = vld [vmem:[#allocation3 + $0x420] sm:$0xff] }
 0x1aa   :  { %8044 = vmatprep.subr.bf16.mxu0 %v15334_v10  ;;  %v1720_v10 = vld [vmem:[#allocation5 + $0xd88] sm:$0xff]  ;;  %v784_v62 = vcombine.high %v19005_v48, %v19007_v41  ;;  %v1987_v35 = vld [vmem:[#allocation5 + $0x15e0] sm:$0xff] }
 0x1ab   :  { %8723 = vmatpush1.bf16.msra.mxu1 %v15079_v37  ;;  %v19011_v37 = vpack.c.bf16 %v768_v9, %v752_v31  ;;  %v15104_v30 = vcombine.high %v1720_v10, %v1724_v19  ;;  %v1732_v31 = vld [vmem:[#allocation5 + $0xde8] sm:$0xff]  ;;  %v15103_v9 = vcombine.low %v1720_v10, %v1724_v19  ;;  %v19045_v10 = vld [vmem:[#allocation3 + $0x5e0] sm:$0xff] }
 0x1ac   :  { %8724 = vmatprep.subr.bf16.mxu1 %v15088_v23  ;;  %v15358_v23 = vcombine.high %v1975_v5, %v1979_v50 }
 0x1ad   :  { %8045 = vmatpush1.bf16.msra.mxu0 %v15333_v58  ;;  %20796 = vst [vmem:[#allocation92_spill] sm:$0xff] %v19011_v37 }
 0x1ae   :  { %8046 = vmatprep.subr.bf16.mxu0 %v15342_v56  ;;  %8656 = vmatmul.mubr.bf16.gmra.mrb[40].mxu1 %v18680_v57  ;;  %v1728_v56 = vld [vmem:[#allocation5 + $0xdc8] sm:$0xff]  ;;  %v19037_v57 = vld [vmem:[#allocation3 + $0x520] sm:$0xff] }
 0x1af   :  { %8725 = vmatpush1.bf16.msra.mxu1 %v15087_v39  ;;  %8665 = vmatprep.mubr.bf16.mxu1 %v18688_v29  ;;  %v19039_v29 = vld [vmem:[#allocation3 + $0x560] sm:$0xff]  ;;  %v15111_v19 = vcombine.low %v1728_v56, %v1732_v31 }
 0x1b0   :  { %7978 = vmatmul.mubr.bf16.gmra.mrb[8].mxu0 %v19003_v61  ;;  %8726 = vmatprep.subr.bf16.mxu1 %v15096_v49  ;;  %v15112_v49 = vcombine.high %v1728_v56, %v1732_v31  ;;  %v816_v56 = vcombine.high %v19037_v57, %v19039_v29 }
 0x1b1   :  { %8047 = vmatpush1.bf16.msra.mxu0 %v15341_v25  ;;  %v19021_v58 = vpop.f32.mrb[0].mxu1  ;;  %7987 = vmatprep.mubr.bf16.mxu0 %v19011_v37  ;;  %v15357_v25 = vcombine.low %v1975_v5, %v1979_v50  ;;  %v19041_v37 = vld [vmem:[#allocation3 + $0x5a0] sm:$0xff]  ;;  %v783_v5 = vcombine.low %v19005_v48, %v19007_v41  ;;  %v799_v50 = vcombine.low %v19009_v18, %v19013_v2 }
 0x1b2   :  { %20797 = vst [vmem:[#allocation93_spill] sm:$0xff] %v19021_v58  ;;  %8048 = vmatprep.subr.bf16.mxu0 %v15350_v63  ;;  %v19028_v54 = vpop.f32.mrb[1].mxu1  ;;  %v19033_v63 = vpack.c.bf16 %v767_v42, %v751_v8  ;;  %v1991_v58 = vld [vmem:[#allocation5 + $0x1600] sm:$0xff]  ;;  %v19043_v8 = vpack.c.bf16 %v800_v47, %v784_v62  ;;  %v15365_v42 = vcombine.low %v1983_v33, %v1987_v35  ;;  %v1744_v62 = vld [vmem:[#allocation5 + $0xe48] sm:$0xff] }
 0x1b3   :  { %20798 = vst [vmem:[#allocation94_spill] sm:$0xff] %v19028_v54  ;;  %v19031_v14 = vpop.f32.mrb[2].mxu1  ;;  %8727 = vmatpush1.bf16.msra.mxu1 %v15095_v27  ;;  %v1995_v54 = vld [vmem:[#allocation5 + $0x1620] sm:$0xff]  ;;  %v15366_v27 = vcombine.high %v1983_v33, %v1987_v35  ;;  %v1748_v47 = vld [vmem:[#allocation5 + $0xe68] sm:$0xff]  ;;  %v832_v48 = vcombine.high %v19041_v37, %v19045_v10  ;;  %v19065_v33 = vpack.c.bf16 %v799_v50, %v783_v5 }
 0x1b4   :  { %20799 = vst [vmem:[#allocation95_spill] sm:$0xff] %v19031_v14  ;;  %20800 = vst [vmem:[#allocation96_spill] sm:$0xff] %v19033_v63  ;;  %v19035_v39 = vpop.f32.mrb[3].mxu1  ;;  %8728 = vmatprep.subr.bf16.mxu1 %v15104_v30  ;;  %v1999_v18 = vld [vmem:[#allocation5 + $0x1640] sm:$0xff]  ;;  %v15119_v35 = vcombine.low %v1736_v36, %v1740_v38 }
 0x1b5   :  { %8049 = vmatpush1.bf16.msra.mxu0 %v15349_v16  ;;  %20801 = vst [vmem:[#allocation97_spill] sm:$0xff] %v19035_v39  ;;  %20802 = vst [vmem:[#allocation98_spill] sm:$0xff] %v19043_v8  ;;  %v15120_v16 = vcombine.high %v1736_v36, %v1740_v38  ;;  %v2003_v2 = vld [vmem:[#allocation5 + $0x1660] sm:$0xff]  ;;  %v19075_v5 = vpack.c.bf16 %v832_v48, %v816_v56  ;;  %v831_v38 = vcombine.low %v19041_v37, %v19045_v10  ;;  %v1760_v56 = vld [vmem:[#allocation5 + $0xec8] sm:$0xff] }
 0x1b6   :  { %8050 = vmatprep.subr.bf16.mxu0 %v15358_v23  ;;  %8666 = vmatmul.mubr.bf16.gmra.mrb[44].mxu1 %v18700_v3  ;;  %v15374_v23 = vcombine.high %v1991_v58, %v1995_v54  ;;  %20806 = vst [vmem:[#allocation102_spill] sm:$0xff] %v19065_v33  ;;  %v2007_v3 = vld [vmem:[#allocation5 + $0x1680] sm:$0xff]  ;;  %v15381_v50 = vcombine.low %v1999_v18, %v2003_v2  ;;  %v1764_v48 = vld [vmem:[#allocation5 + $0xee8] sm:$0xff] }
 0x1b7   :  { %8729 = vmatpush1.bf16.msra.mxu1 %v15103_v9  ;;  %8675 = vmatprep.mubr.bf16.mxu1 %v18708_v20  ;;  %v1752_v9 = vld [vmem:[#allocation5 + $0xe88] sm:$0xff]  ;;  %v19069_v39 = vld [vmem:[#allocation3 + $0x620] sm:$0xff]  ;;  %20808 = vst [vmem:[#allocation104_spill] sm:$0xff] %v19075_v5 }
 0x1b8   :  { %7988 = vmatmul.mubr.bf16.gmra.mrb[12].mxu0 %v19033_v63  ;;  %8730 = vmatprep.subr.bf16.mxu1 %v15112_v49  ;;  %v19071_v20 = vld [vmem:[#allocation3 + $0x660] sm:$0xff] }
 0x1b9   :  { %8051 = vmatpush1.bf16.msra.mxu0 %v15357_v25  ;;  %v19053_v30 = vpop.f32.mrb[4].mxu1  ;;  %7997 = vmatprep.mubr.bf16.mxu0 %v19043_v8  ;;  %v1756_v25 = vld [vmem:[#allocation5 + $0xea8] sm:$0xff]  ;;  %v19073_v14 = vld [vmem:[#allocation3 + $0x6a0] sm:$0xff] }
 0x1ba   :  { %20803 = vst [vmem:[#allocation99_spill] sm:$0xff] %v19053_v30  ;;  %8052 = vmatprep.subr.bf16.mxu0 %v15366_v27  ;;  %v19060_v41 = vpop.f32.mrb[5].mxu1  ;;  %v15373_v27 = vcombine.low %v1991_v58, %v1995_v54  ;;  %v15128_v30 = vcombine.high %v1744_v62, %v1748_v47  ;;  %v19077_v36 = vld [vmem:[#allocation3 + $0x6e0] sm:$0xff]  ;;  %v15127_v58 = vcombine.low %v1744_v62, %v1748_v47 }
 0x1bb   :  { %20804 = vst [vmem:[#allocation100_spill] sm:$0xff] %v19060_v41  ;;  %v19063_v31 = vpop.f32.mrb[6].mxu1  ;;  %8731 = vmatpush1.bf16.msra.mxu1 %v15111_v19  ;;  %v2011_v41 = vld [vmem:[#allocation5 + $0x16a0] sm:$0xff]  ;;  %v15382_v19 = vcombine.high %v1999_v18, %v2003_v2  ;;  %v815_v54 = vcombine.low %v19037_v57, %v19039_v29  ;;  %v848_v62 = vcombine.high %v19069_v39, %v19071_v20  ;;  %v1768_v2 = vld [vmem:[#allocation5 + $0xf08] sm:$0xff] }
 0x1bc   :  { %20805 = vst [vmem:[#allocation101_spill] sm:$0xff] %v19063_v31  ;;  %v19067_v49 = vpop.f32.mrb[7].mxu1  ;;  %8732 = vmatprep.subr.bf16.mxu1 %v15120_v16  ;;  %v864_v57 = vcombine.high %v19073_v14, %v19077_v36  ;;  %v2015_v37 = vld [vmem:[#allocation5 + $0x16c0] sm:$0xff]  ;;  %v15135_v18 = vcombine.low %v1752_v9, %v1756_v25 }
 0x1bd   :  { %8053 = vmatpush1.bf16.msra.mxu0 %v15365_v42  ;;  %20807 = vst [vmem:[#allocation103_spill] sm:$0xff] %v19067_v49  ;;  %v15136_v42 = vcombine.high %v1752_v9, %v1756_v25  ;;  %v2019_v10 = vld [vmem:[#allocation5 + $0x16e0] sm:$0xff]  ;;  %v19097_v47 = vpack.c.bf16 %v831_v38, %v815_v54  ;;  %v863_v25 = vcombine.low %v19073_v14, %v19077_v36 }
 0x1be   :  { %8054 = vmatprep.subr.bf16.mxu0 %v15374_v23  ;;  %8676 = vmatmul.mubr.bf16.gmra.mrb[48].mxu1 %v18720_v21  ;;  %v15390_v23 = vcombine.high %v2007_v3, %v2011_v41  ;;  %v2023_v21 = vld [vmem:[#allocation5 + $0x1700] sm:$0xff]  ;;  %v19107_v54 = vpack.c.bf16 %v864_v57, %v848_v62  ;;  %v15397_v38 = vcombine.low %v2015_v37, %v2019_v10  ;;  %v1776_v62 = vld [vmem:[#allocation5 + $0xf48] sm:$0xff] }
 0x1bf   :  { %8733 = vmatpush1.bf16.msra.mxu1 %v15119_v35  ;;  %8685 = vmatprep.mubr.bf16.mxu1 %v18728_v17  ;;  %20812 = vst [vmem:[#allocation108_spill] sm:$0xff] %v19097_v47  ;;  %v1772_v35 = vld [vmem:[#allocation5 + $0xf28] sm:$0xff]  ;;  %v19101_v49 = vld [vmem:[#allocation3 + $0x720] sm:$0xff] }
 0x1c0   :  { %7998 = vmatmul.mubr.bf16.gmra.mrb[16].mxu0 %v19065_v33  ;;  %8734 = vmatprep.subr.bf16.mxu1 %v15128_v30  ;;  %v19103_v17 = vld [vmem:[#allocation3 + $0x760] sm:$0xff]  ;;  %20814 = vst [vmem:[#allocation110_spill] sm:$0xff] %v19107_v54  ;;  %v1780_v57 = vld [vmem:[#allocation5 + $0xf68] sm:$0xff] }
 0x1c1   :  { %8055 = vmatpush1.bf16.msra.mxu0 %v15373_v27  ;;  %v19085_v16 = vpop.f32.mrb[8].mxu1  ;;  %8007 = vmatprep.mubr.bf16.mxu0 %v19075_v5  ;;  %v19105_v31 = vld [vmem:[#allocation3 + $0x7a0] sm:$0xff] }
 0x1c2   :  { %20809 = vst [vmem:[#allocation105_spill] sm:$0xff] %v19085_v16  ;;  %8056 = vmatprep.subr.bf16.mxu0 %v15382_v19  ;;  %v19092_v29 = vpop.f32.mrb[9].mxu1  ;;  %v15389_v19 = vcombine.low %v2007_v3, %v2011_v41  ;;  %v15144_v16 = vcombine.high %v1760_v56, %v1764_v48  ;;  %v19109_v9 = vld [vmem:[#allocation3 + $0x7e0] sm:$0xff]  ;;  %v15143_v3 = vcombine.low %v1760_v56, %v1764_v48 }
 0x1c3   :  { %20810 = vst [vmem:[#allocation106_spill] sm:$0xff] %v19092_v29  ;;  %v19095_v30 = vpop.f32.mrb[10].mxu1  ;;  %8735 = vmatpush1.bf16.msra.mxu1 %v15127_v58  ;;  %v2027_v29 = vld [vmem:[#allocation5 + $0x1720] sm:$0xff]  ;;  %v15398_v58 = vcombine.high %v2015_v37, %v2019_v10  ;;  %v847_v41 = vcombine.low %v19069_v39, %v19071_v20  ;;  %v880_v56 = vcombine.high %v19101_v49, %v19103_v17  ;;  %v1784_v10 = vld [vmem:[#allocation5 + $0xf88] sm:$0xff] }
 0x1c4   :  { %20811 = vst [vmem:[#allocation107_spill] sm:$0xff] %v19095_v30  ;;  %v19099_v27 = vpop.f32.mrb[11].mxu1  ;;  %8736 = vmatprep.subr.bf16.mxu1 %v15136_v42  ;;  %v896_v20 = vcombine.high %v19105_v31, %v19109_v9  ;;  %v2031_v14 = vld [vmem:[#allocation5 + $0x1740] sm:$0xff]  ;;  %v15151_v37 = vcombine.low %v1768_v2, %v1772_v35  ;;  %v19137_v30 = vld [vmem:[#allocation3 + $0xa8] sm:$0xff] }
 0x1c5   :  { %8057 = vmatpush1.bf16.msra.mxu0 %v15381_v50  ;;  %20813 = vst [vmem:[#allocation109_spill] sm:$0xff] %v19099_v27  ;;  %v15152_v50 = vcombine.high %v1768_v2, %v1772_v35  ;;  %v2035_v36 = vld [vmem:[#allocation5 + $0x1760] sm:$0xff]  ;;  %v19129_v48 = vpack.c.bf16 %v863_v25, %v847_v41  ;;  %v19133_v27 = vld [vmem:[#allocation3 + $0x28] sm:$0xff]  ;;  %v895_v35 = vcombine.low %v19105_v31, %v19109_v9 }
 0x1c6   :  { %8058 = vmatprep.subr.bf16.mxu0 %v15390_v23  ;;  %8686 = vmatmul.mubr.bf16.gmra.mrb[52].mxu1 %v18740_v51  ;;  %v15406_v23 = vcombine.high %v2023_v21, %v2027_v29  ;;  %v2039_v51 = vld [vmem:[#allocation5 + $0x1780] sm:$0xff]  ;;  %v19139_v41 = vpack.c.bf16 %v896_v20, %v880_v56  ;;  %v19141_v2 = vld [vmem:[#allocation3 + $0xe8] sm:$0xff]  ;;  %v15413_v25 = vcombine.low %v2031_v14, %v2035_v36 }
 0x1c7   :  { %8737 = vmatpush1.bf16.msra.mxu1 %v15135_v18  ;;  %8695 = vmatprep.mubr.bf16.mxu1 %v18748_v32  ;;  %20818 = vst [vmem:[#allocation114_spill] sm:$0xff] %v19129_v48  ;;  %v1788_v18 = vld [vmem:[#allocation5 + $0xfa8] sm:$0xff]  ;;  %v2047_v31 = vld [vmem:[#allocation5 + $0x17c0] sm:$0xff] }
 0x1c8   :  { %8008 = vmatmul.mubr.bf16.gmra.mrb[20].mxu0 %v19097_v47  ;;  %8738 = vmatprep.subr.bf16.mxu1 %v15144_v16  ;;  %v19135_v32 = vld [vmem:[#allocation3 + $0x68] sm:$0xff]  ;;  %20820 = vst [vmem:[#allocation116_spill] sm:$0xff] %v19139_v41  ;;  %v2051_v9 = vld [vmem:[#allocation5 + $0x17e0] sm:$0xff] }
 0x1c9   :  { %8059 = vmatpush1.bf16.msra.mxu0 %v15389_v19  ;;  %v19117_v42 = vpop.f32.mrb[12].mxu1  ;;  %8017 = vmatprep.mubr.bf16.mxu0 %v19107_v54  ;;  %v1792_v56 = vld [vmem:[#allocation5 + $0xfc8] sm:$0xff] }
 0x1ca   :  { %20815 = vst [vmem:[#allocation111_spill] sm:$0xff] %v19117_v42  ;;  %8060 = vmatprep.subr.bf16.mxu0 %v15398_v58  ;;  %v19124_v39 = vpop.f32.mrb[13].mxu1  ;;  %v15405_v58 = vcombine.low %v2023_v21, %v2027_v29  ;;  %v15160_v42 = vcombine.high %v1776_v62, %v1780_v57  ;;  %v15159_v21 = vcombine.low %v1776_v62, %v1780_v57  ;;  %v1796_v20 = vld [vmem:[#allocation5 + $0xfe8] sm:$0xff] }
 0x1cb   :  { %20816 = vst [vmem:[#allocation112_spill] sm:$0xff] %v19124_v39  ;;  %v19127_v16 = vpop.f32.mrb[14].mxu1  ;;  %8739 = vmatpush1.bf16.msra.mxu1 %v15143_v3  ;;  %v2043_v39 = vld [vmem:[#allocation5 + $0x17a0] sm:$0xff]  ;;  %v15414_v3 = vcombine.high %v2031_v14, %v2035_v36  ;;  %v879_v29 = vcombine.low %v19101_v49, %v19103_v17  ;;  %v658_v62 = vcombine.high %v19133_v27, %v19135_v32  ;;  %v1800_v36 = vld [vmem:[#allocation5 + $0x1008] sm:$0xff] }
 0x1cc   :  { %20817 = vst [vmem:[#allocation113_spill] sm:$0xff] %v19127_v16  ;;  %v19131_v19 = vpop.f32.mrb[15].mxu1  ;;  %8740 = vmatprep.subr.bf16.mxu1 %v15152_v50  ;;  %v674_v17 = vcombine.high %v19137_v30, %v19141_v2  ;;  %v15167_v14 = vcombine.low %v1784_v10, %v1788_v18  ;;  %v19169_v16 = vld [vmem:[#allocation3 + $0x1a8] sm:$0xff] }
 0x1cd   :  { %8061 = vmatpush1.bf16.msra.mxu0 %v15397_v38  ;;  %20819 = vst [vmem:[#allocation115_spill] sm:$0xff] %v19131_v19  ;;  %v15168_v38 = vcombine.high %v1784_v10, %v1788_v18  ;;  %v19161_v57 = vpack.c.bf16 %v895_v35, %v879_v29  ;;  %v19165_v19 = vld [vmem:[#allocation3 + $0x128] sm:$0xff]  ;;  %v673_v18 = vcombine.low %v19137_v30, %v19141_v2  ;;  %v2063_v30 = vld [vmem:[#allocation5 + $0x1840] sm:$0xff] }
 0x1ce   :  { %8062 = vmatprep.subr.bf16.mxu0 %v15406_v23  ;;  %8696 = vmatmul.mubr.bf16.gmra.mrb[56].mxu1 %v18760_v59  ;;  %v15422_v23 = vcombine.high %v2039_v51, %v2043_v39  ;;  %v2055_v59 = vld [vmem:[#allocation5 + $0x1800] sm:$0xff]  ;;  %v19171_v29 = vpack.c.bf16 %v674_v17, %v658_v62  ;;  %v19173_v10 = vld [vmem:[#allocation3 + $0x1e8] sm:$0xff]  ;;  %v15429_v35 = vcombine.low %v2047_v31, %v2051_v9 }
 0x1cf   :  { %8741 = vmatpush1.bf16.msra.mxu1 %v15151_v37  ;;  %8705 = vmatprep.mubr.bf16.mxu1 %v18768_v12  ;;  %20824 = vst [vmem:[#allocation120_spill] sm:$0xff] %v19161_v57  ;;  %v1804_v37 = vld [vmem:[#allocation5 + $0x1028] sm:$0xff]  ;;  %v2067_v2 = vld [vmem:[#allocation5 + $0x1860] sm:$0xff] }
 0x1d0   :  { %8018 = vmatmul.mubr.bf16.gmra.mrb[24].mxu0 %v19129_v48  ;;  %8742 = vmatprep.subr.bf16.mxu1 %v15160_v42  ;;  %v19167_v12 = vld [vmem:[#allocation3 + $0x168] sm:$0xff]  ;;  %20826 = vst [vmem:[#allocation122_spill] sm:$0xff] %v19171_v29 }
 0x1d1   :  { %8063 = vmatpush1.bf16.msra.mxu0 %v15405_v58  ;;  %v19149_v50 = vpop.f32.mrb[16].mxu1  ;;  %8027 = vmatprep.mubr.bf16.mxu0 %v19139_v41  ;;  %v1808_v62 = vld [vmem:[#allocation5 + $0x1048] sm:$0xff] }
 0x1d2   :  { %20821 = vst [vmem:[#allocation117_spill] sm:$0xff] %v19149_v50  ;;  %8064 = vmatprep.subr.bf16.mxu0 %v15414_v3  ;;  %v19156_v49 = vpop.f32.mrb[17].mxu1  ;;  %v15421_v3 = vcombine.low %v2039_v51, %v2043_v39  ;;  %v15176_v50 = vcombine.high %v1792_v56, %v1796_v20  ;;  %v15175_v51 = vcombine.low %v1792_v56, %v1796_v20  ;;  %v1812_v17 = vld [vmem:[#allocation5 + $0x1068] sm:$0xff] }
 0x1d3   :  { %20822 = vst [vmem:[#allocation118_spill] sm:$0xff] %v19156_v49  ;;  %v19159_v42 = vpop.f32.mrb[18].mxu1  ;;  %8743 = vmatpush1.bf16.msra.mxu1 %v15159_v21  ;;  %v2059_v49 = vld [vmem:[#allocation5 + $0x1820] sm:$0xff]  ;;  %v15430_v21 = vcombine.high %v2047_v31, %v2051_v9  ;;  %v657_v39 = vcombine.low %v19133_v27, %v19135_v32  ;;  %v690_v56 = vcombine.high %v19165_v19, %v19167_v12  ;;  %v1816_v9 = vld [vmem:[#allocation5 + $0x1088] sm:$0xff] }
 0x1d4   :  { %20823 = vst [vmem:[#allocation119_spill] sm:$0xff] %v19159_v42  ;;  %v19163_v58 = vpop.f32.mrb[19].mxu1  ;;  %8744 = vmatprep.subr.bf16.mxu1 %v15168_v38  ;;  %v706_v32 = vcombine.high %v19169_v16, %v19173_v10  ;;  %v15183_v31 = vcombine.low %v1800_v36, %v1804_v37  ;;  %v19201_v42 = vld [vmem:[#allocation3 + $0x2a8] sm:$0xff] }
 0x1d5   :  { %8065 = vmatpush1.bf16.msra.mxu0 %v15413_v25  ;;  %20825 = vst [vmem:[#allocation121_spill] sm:$0xff] %v19163_v58  ;;  %v15184_v25 = vcombine.high %v1800_v36, %v1804_v37  ;;  %v19193_v20 = vpack.c.bf16 %v673_v18, %v657_v39  ;;  %v19197_v58 = vld [vmem:[#allocation3 + $0x228] sm:$0xff]  ;;  %v705_v37 = vcombine.low %v19169_v16, %v19173_v10  ;;  %v2079_v16 = vld [vmem:[#allocation5 + $0x18c0] sm:$0xff] }
 0x1d6   :  { %8066 = vmatprep.subr.bf16.mxu0 %v15422_v23  ;;  %8706 = vmatmul.mubr.bf16.gmra.mrb[60].mxu1 %v18780_v22  ;;  %v15438_v23 = vcombine.high %v2055_v59, %v2059_v49  ;;  %v2071_v22 = vld [vmem:[#allocation5 + $0x1880] sm:$0xff]  ;;  %v19203_v39 = vpack.c.bf16 %v706_v32, %v690_v56  ;;  %v19205_v36 = vld [vmem:[#allocation3 + $0x2e8] sm:$0xff]  ;;  %v15445_v18 = vcombine.low %v2063_v30, %v2067_v2 }
 0x1d7   :  { %8745 = vmatpush1.bf16.msra.mxu1 %v15167_v14  ;;  %8748 = vmatprep.mubr.bf16.mxu1 %v18788_v4  ;;  %20830 = vst [vmem:[#allocation126_spill] sm:$0xff] %v19193_v20  ;;  %v1820_v14 = vld [vmem:[#allocation5 + $0x10a8] sm:$0xff]  ;;  %v2083_v10 = vld [vmem:[#allocation5 + $0x18e0] sm:$0xff] }
 0x1d8   :  { %8028 = vmatmul.mubr.bf16.gmra.mrb[28].mxu0 %v19161_v57  ;;  %8746 = vmatprep.subr.bf16.mxu1 %v15176_v50  ;;  %v19199_v4 = vld [vmem:[#allocation3 + $0x268] sm:$0xff]  ;;  %20832 = vst [vmem:[#allocation128_spill] sm:$0xff] %v19203_v39 }
 0x1d9   :  { %8067 = vmatpush1.bf16.msra.mxu0 %v15421_v3  ;;  %v19181_v38 = vpop.f32.mrb[20].mxu1  ;;  %8070 = vmatprep.mubr.bf16.mxu0 %v19171_v29  ;;  %v1824_v56 = vld [vmem:[#allocation5 + $0x10c8] sm:$0xff] }
 0x1da   :  { %20827 = vst [vmem:[#allocation123_spill] sm:$0xff] %v19181_v38  ;;  %8068 = vmatprep.subr.bf16.mxu0 %v15430_v21  ;;  %v19188_v27 = vpop.f32.mrb[21].mxu1  ;;  %v15437_v21 = vcombine.low %v2055_v59, %v2059_v49  ;;  %v15192_v38 = vcombine.high %v1808_v62, %v1812_v17  ;;  %v15191_v59 = vcombine.low %v1808_v62, %v1812_v17  ;;  %v1828_v32 = vld [vmem:[#allocation5 + $0x10e8] sm:$0xff] }
 0x1db   :  { %20828 = vst [vmem:[#allocation124_spill] sm:$0xff] %v19188_v27  ;;  %v19191_v50 = vpop.f32.mrb[22].mxu1  ;;  %8747 = vmatpush1.bf16.msra.mxu1 %v15175_v51  ;;  %v2075_v27 = vld [vmem:[#allocation5 + $0x18a0] sm:$0xff]  ;;  %v15446_v51 = vcombine.high %v2063_v30, %v2067_v2  ;;  %v689_v49 = vcombine.low %v19165_v19, %v19167_v12  ;;  %v722_v62 = vcombine.high %v19197_v58, %v19199_v4  ;;  %v1832_v2 = vld [vmem:[#allocation5 + $0x1108] sm:$0xff] }
 0x1dc   :  { %20829 = vst [vmem:[#allocation125_spill] sm:$0xff] %v19191_v50  ;;  %v19195_v3 = vpop.f32.mrb[23].mxu1  ;;  %8829 = vmatprep.subr.bf16.mxu1 %v15184_v25  ;;  %v738_v12 = vcombine.high %v19201_v42, %v19205_v36  ;;  %v15199_v30 = vcombine.low %v1816_v9, %v1820_v14  ;;  %v19233_v50 = vld [vmem:[#allocation3 + $0x3a8] sm:$0xff] }
 0x1dd   :  { %8069 = vmatpush1.bf16.msra.mxu0 %v15429_v35  ;;  %20831 = vst [vmem:[#allocation127_spill] sm:$0xff] %v19195_v3  ;;  %v15200_v35 = vcombine.high %v1816_v9, %v1820_v14  ;;  %v19225_v17 = vpack.c.bf16 %v705_v37, %v689_v49  ;;  %v19229_v3 = vld [vmem:[#allocation3 + $0x328] sm:$0xff]  ;;  %v737_v14 = vcombine.low %v19201_v42, %v19205_v36  ;;  %v2095_v42 = vld [vmem:[#allocation5 + $0x1940] sm:$0xff] }
 0x1de   :  { %8151 = vmatprep.subr.bf16.mxu0 %v15438_v23  ;;  %8749 = vmatmul.mubr.bf16.vlgmr.msra.gmra.mrb[32].mxu1 %v18800_v7  ;;  %v15454_v23 = vcombine.high %v2071_v22, %v2075_v27  ;;  %v2087_v7 = vld [vmem:[#allocation5 + $0x1900] sm:$0xff]  ;;  %v19235_v49 = vpack.c.bf16 %v738_v12, %v722_v62  ;;  %v19237_v9 = vld [vmem:[#allocation3 + $0x3e8] sm:$0xff]  ;;  %v15461_v37 = vcombine.low %v2079_v16, %v2083_v10 }
 0x1df   :  { %8830 = vmatpush1.bf16.msra.mxu1 %v15183_v31  ;;  %8758 = vmatprep.mubr.bf16.mxu1 %v18808_v43  ;;  %20836 = vst [vmem:[#allocation132_spill] sm:$0xff] %v19225_v17  ;;  %v1836_v31 = vld [vmem:[#allocation5 + $0x1128] sm:$0xff]  ;;  %v2099_v36 = vld [vmem:[#allocation5 + $0x1960] sm:$0xff] }
 0x1e0   :  { %8071 = vmatmul.mubr.bf16.vlgmr.msra.gmra.mrb[0].mxu0 %v19193_v20  ;;  %8831 = vmatprep.subr.bf16.mxu1 %v15192_v38  ;;  %v19231_v43 = vld [vmem:[#allocation3 + $0x368] sm:$0xff]  ;;  %20838 = vst [vmem:[#allocation134_spill] sm:$0xff] %v19235_v49 }
 0x1e1   :  { %8152 = vmatpush1.bf16.msra.mxu0 %v15437_v21  ;;  %v19213_v25 = vpop.f32.mrb[24].mxu1  ;;  %8080 = vmatprep.mubr.bf16.mxu0 %v19203_v39  ;;  %v1840_v62 = vld [vmem:[#allocation5 + $0x1148] sm:$0xff] }
 0x1e2   :  { %20833 = vst [vmem:[#allocation129_spill] sm:$0xff] %v19213_v25  ;;  %8153 = vmatprep.subr.bf16.mxu0 %v15446_v51  ;;  %v19220_v19 = vpop.f32.mrb[25].mxu1  ;;  %v15453_v51 = vcombine.low %v2071_v22, %v2075_v27  ;;  %v15208_v25 = vcombine.high %v1824_v56, %v1828_v32  ;;  %v15207_v22 = vcombine.low %v1824_v56, %v1828_v32  ;;  %v1844_v12 = vld [vmem:[#allocation5 + $0x1168] sm:$0xff] }
 0x1e3   :  { %20834 = vst [vmem:[#allocation130_spill] sm:$0xff] %v19220_v19  ;;  %v19223_v38 = vpop.f32.mrb[26].mxu1  ;;  %8832 = vmatpush1.bf16.msra.mxu1 %v15191_v59  ;;  %v2091_v19 = vld [vmem:[#allocation5 + $0x1920] sm:$0xff]  ;;  %v15462_v59 = vcombine.high %v2079_v16, %v2083_v10  ;;  %v721_v27 = vcombine.low %v19197_v58, %v19199_v4  ;;  %v754_v56 = vcombine.high %v19229_v3, %v19231_v43  ;;  %v1848_v10 = vld [vmem:[#allocation5 + $0x1188] sm:$0xff] }
 0x1e4   :  { %20835 = vst [vmem:[#allocation131_spill] sm:$0xff] %v19223_v38  ;;  %v19227_v21 = vpop.f32.mrb[27].mxu1  ;;  %8833 = vmatprep.subr.bf16.mxu1 %v15200_v35  ;;  %v770_v4 = vcombine.high %v19233_v50, %v19237_v9  ;;  %v15215_v16 = vcombine.low %v1832_v2, %v1836_v31  ;;  %v19265_v38 = vld [vmem:[#allocation3 + $0x4a8] sm:$0xff] }
 0x1e5   :  { %8154 = vmatpush1.bf16.msra.mxu0 %v15445_v18  ;;  %20837 = vst [vmem:[#allocation133_spill] sm:$0xff] %v19227_v21  ;;  %v15216_v18 = vcombine.high %v1832_v2, %v1836_v31  ;;  %v19257_v32 = vpack.c.bf16 %v737_v14, %v721_v27  ;;  %v19261_v21 = vld [vmem:[#allocation3 + $0x428] sm:$0xff]  ;;  %v769_v31 = vcombine.low %v19233_v50, %v19237_v9 }
 0x1e6   :  { %8155 = vmatprep.subr.bf16.mxu0 %v15454_v23  ;;  %8759 = vmatmul.mubr.bf16.gmra.mrb[36].mxu1 %v18820_v53  ;;  %v15470_v23 = vcombine.high %v2087_v7, %v2091_v19  ;;  %v2103_v53 = vld [vmem:[#allocation5 + $0x1980] sm:$0xff]  ;;  %v19267_v27 = vpack.c.bf16 %v770_v4, %v754_v56  ;;  %v292_v2 = vld [vmem:[#allocation3 + $0x4e8] sm:$0xff]  ;;  %v15477_v14 = vcombine.low %v2095_v42, %v2099_v36 }
 0x1e7   :  { %8834 = vmatpush1.bf16.msra.mxu1 %v15199_v30  ;;  %8768 = vmatprep.mubr.bf16.mxu1 %v18828_v24  ;;  %20842 = vst [vmem:[#allocation138_spill] sm:$0xff] %v19257_v32  ;;  %v1852_v30 = vld [vmem:[#allocation5 + $0x11a8] sm:$0xff] }
 0x1e8   :  { %8081 = vmatmul.mubr.bf16.gmra.mrb[4].mxu0 %v19225_v17  ;;  %8835 = vmatprep.subr.bf16.mxu1 %v15208_v25  ;;  %v19263_v24 = vld [vmem:[#allocation3 + $0x468] sm:$0xff]  ;;  %20844 = vst [vmem:[#allocation140_spill] sm:$0xff] %v19267_v27  ;;  %v15231_v9 = vcombine.low %v1848_v10, %v1852_v30 }
 0x1e9   :  { %8156 = vmatpush1.bf16.msra.mxu0 %v15453_v51  ;;  %v19245_v35 = vpop.f32.mrb[28].mxu1  ;;  %8090 = vmatprep.mubr.bf16.mxu0 %v19235_v49  ;;  %v1860_v56 = vld [vmem:[#allocation5 + $0x11e8] sm:$0xff]  ;;  %v786_v4 = vcombine.high %v19261_v21, %v19263_v24 }
 0x1ea   :  { %20839 = vst [vmem:[#allocation135_spill] sm:$0xff] %v19245_v35  ;;  %8157 = vmatprep.subr.bf16.mxu0 %v15462_v59  ;;  %v19252_v58 = vpop.f32.mrb[29].mxu1  ;;  %v15469_v59 = vcombine.low %v2087_v7, %v2091_v19  ;;  %v15224_v35 = vcombine.high %v1840_v62, %v1844_v12  ;;  %v15223_v7 = vcombine.low %v1840_v62, %v1844_v12 }
 0x1eb   :  { %20840 = vst [vmem:[#allocation136_spill] sm:$0xff] %v19252_v58  ;;  %v19255_v25 = vpop.f32.mrb[30].mxu1  ;;  %8836 = vmatpush1.bf16.msra.mxu1 %v15207_v22  ;;  %v2107_v58 = vld [vmem:[#allocation5 + $0x19a0] sm:$0xff]  ;;  %v15478_v22 = vcombine.high %v2095_v42, %v2099_v36  ;;  %v753_v19 = vcombine.low %v19229_v3, %v19231_v43  ;;  %v802_v62 = vcombine.high %v19265_v38, %v292_v2 }
 0x1ec   :  { %20841 = vst [vmem:[#allocation137_spill] sm:$0xff] %v19255_v25  ;;  %v19259_v51 = vpop.f32.mrb[31].mxu1  ;;  %8837 = vmatprep.subr.bf16.mxu1 %v15216_v18  ;;  %v15486_v18 = vcombine.high %v2103_v53, %v2107_v58  ;;  %v2111_v43 = vld [vmem:[#allocation5 + $0x19c0] sm:$0xff]  ;;  %v19382_v25 = vld [vmem:[#allocation3 + $0x530] sm:$0xff] }
 0x1ed   :  { %8158 = vmatpush1.bf16.msra.mxu0 %v15461_v37  ;;  %20843 = vst [vmem:[#allocation139_spill] sm:$0xff] %v19259_v51  ;;  %v15232_v37 = vcombine.high %v1848_v10, %v1852_v30  ;;  %v2115_v3 = vld [vmem:[#allocation5 + $0x19e0] sm:$0xff]  ;;  %v19280_v50 = vpack.c.bf16 %v769_v31, %v753_v19  ;;  %v19284_v51 = vld [vmem:[#allocation3 + $0x528] sm:$0xff]  ;;  %v801_v10 = vcombine.low %v19265_v38, %v292_v2 }
 0x1ee   :  { %8159 = vmatprep.subr.bf16.mxu0 %v15470_v23  ;;  %8769 = vmatmul.mubr.bf16.gmra.mrb[40].mxu1 %v18840_v55  ;;  %v1856_v23 = vld [vmem:[#allocation5 + $0x11c8] sm:$0xff]  ;;  %v2119_v42 = vld [vmem:[#allocation5 + $0x1a00] sm:$0xff]  ;;  %v15493_v30 = vcombine.low %v2111_v43, %v2115_v3 }
 0x1ef   :  { %8838 = vmatpush1.bf16.msra.mxu1 %v15215_v16  ;;  %8778 = vmatprep.mubr.bf16.mxu1 %v18848_v13  ;;  %20845 = vst [vmem:[#allocation141_spill] sm:$0xff] %v19280_v50  ;;  %v15240_v12 = vcombine.high %v1856_v23, %v1860_v56  ;;  %v2123_v36 = vld [vmem:[#allocation5 + $0x1a20] sm:$0xff]  ;;  %v15494_v16 = vcombine.high %v2111_v43, %v2115_v3  ;;  %v1868_v55 = vld [vmem:[#allocation5 + $0x1228] sm:$0xff] }
 0x1f0   :  { %8091 = vmatmul.mubr.bf16.gmra.mrb[8].mxu0 %v19257_v32  ;;  %8839 = vmatprep.subr.bf16.mxu1 %v15224_v35  ;;  %v15485_v35 = vcombine.low %v2103_v53, %v2107_v58  ;;  %v316_v19 = vld [vmem:[#allocation3 + $0x5a8] sm:$0xff]  ;;  %v15239_v53 = vcombine.low %v1856_v23, %v1860_v56  ;;  %v785_v58 = vcombine.low %v19261_v21, %v19263_v24  ;;  %v2127_v23 = vld [vmem:[#allocation5 + $0x1a40] sm:$0xff] }
 0x1f1   :  { %8160 = vmatpush1.bf16.msra.mxu0 %v15469_v59  ;;  %8100 = vmatprep.mubr.bf16.mxu0 %v19267_v27  ;;  %v19282_v59 = vpack.c.bf16 %v802_v62, %v786_v4  ;;  %v324_v31 = vld [vmem:[#allocation3 + $0x5e8] sm:$0xff]  ;;  %v2131_v56 = vld [vmem:[#allocation5 + $0x1a60] sm:$0xff]  ;;  %v15501_v21 = vcombine.low %v2119_v42, %v2123_v36 }
 0x1f2   :  { %8161 = vmatprep.subr.bf16.mxu0 %v15478_v22  ;;  %v1864_v22 = vld [vmem:[#allocation5 + $0x1208] sm:$0xff]  ;;  %v19294_v24 = vpack.c.bf16 %v801_v10, %v785_v58  ;;  %v2135_v43 = vld [vmem:[#allocation5 + $0x1a80] sm:$0xff] }
 0x1f3   :  { %8840 = vmatpush1.bf16.msra.mxu1 %v15223_v7  ;;  %20846 = vst [vmem:[#allocation142_spill] sm:$0xff] %v19282_v59  ;;  %v308_v7 = vld [vmem:[#allocation3 + $0x568] sm:$0xff]  ;;  %v15247_v38 = vcombine.low %v1864_v22, %v1868_v55  ;;  %v2139_v3 = vld [vmem:[#allocation5 + $0x1aa0] sm:$0xff] }
 0x1f4   :  { %8841 = vmatprep.subr.bf16.mxu1 %v15232_v37  ;;  %v15502_v37 = vcombine.high %v2119_v42, %v2123_v36  ;;  %v1876_v4 = vld [vmem:[#allocation5 + $0x1268] sm:$0xff]  ;;  %v818_v62 = vcombine.high %v19284_v51, %v308_v7  ;;  %20847 = vst [vmem:[#allocation143_spill] sm:$0xff] %v19294_v24  ;;  %v817_v42 = vcombine.low %v19284_v51, %v308_v7 }
 0x1f5   :  { %8162 = vmatpush1.bf16.msra.mxu0 %v15477_v14  ;;  %v15248_v14 = vcombine.high %v1864_v22, %v1868_v55  ;;  %v19298_v13 = vld [vmem:[#allocation3 + $0x628] sm:$0xff]  ;;  %v833_v36 = vcombine.low %v316_v19, %v324_v31  ;;  %v15509_v22 = vcombine.low %v2127_v23, %v2131_v56 }
 0x1f6   :  { %8163 = vmatprep.subr.bf16.mxu0 %v15486_v18  ;;  %8779 = vmatmul.mubr.bf16.gmra.mrb[44].mxu1 %v18860_v44  ;;  %v1872_v18 = vld [vmem:[#allocation5 + $0x1248] sm:$0xff]  ;;  %v834_v44 = vcombine.high %v316_v19, %v324_v31  ;;  %v15517_v19 = vcombine.low %v2135_v43, %v2139_v3 }
 0x1f7   :  { %8842 = vmatpush1.bf16.msra.mxu1 %v15231_v9  ;;  %8788 = vmatprep.mubr.bf16.mxu1 %v18868_v1  ;;  %v15256_v2 = vcombine.high %v1872_v18, %v1876_v4  ;;  %v15510_v9 = vcombine.high %v2127_v23, %v2131_v56  ;;  %v348_v58 = vld [vmem:[#allocation3 + $0x6a8] sm:$0xff]  ;;  %v15255_v55 = vcombine.low %v1872_v18, %v1876_v4  ;;  %v2147_v18 = vld [vmem:[#allocation5 + $0x1ae0] sm:$0xff] }
 0x1f8   :  { %8101 = vmatmul.mubr.bf16.gmra.mrb[12].mxu0 %v19280_v50  ;;  %8843 = vmatprep.subr.bf16.mxu1 %v15240_v12  ;;  %v1880_v12 = vld [vmem:[#allocation5 + $0x1288] sm:$0xff]  ;;  %v19306_v51 = vpack.c.bf16 %v833_v36, %v817_v42  ;;  %v2151_v4 = vld [vmem:[#allocation5 + $0x1b00] sm:$0xff] }
 0x1f9   :  { %8164 = vmatpush1.bf16.msra.mxu0 %v15485_v35  ;;  %8110 = vmatprep.mubr.bf16.mxu0 %v19282_v59  ;;  %v19296_v35 = vpack.c.bf16 %v834_v44, %v818_v62  ;;  %v356_v10 = vld [vmem:[#allocation3 + $0x6e8] sm:$0xff]  ;;  %v2155_v23 = vld [vmem:[#allocation5 + $0x1b20] sm:$0xff] }
 0x1fa   :  { %8165 = vmatprep.subr.bf16.mxu0 %v15494_v16  ;;  %v1884_v16 = vld [vmem:[#allocation5 + $0x12a8] sm:$0xff]  ;;  %20849 = vst [vmem:[#allocation145_spill] sm:$0xff] %v19306_v51 }
 0x1fb   :  { %8844 = vmatpush1.bf16.msra.mxu1 %v15239_v53  ;;  %20848 = vst [vmem:[#allocation144_spill] sm:$0xff] %v19296_v35  ;;  %v340_v53 = vld [vmem:[#allocation3 + $0x668] sm:$0xff]  ;;  %v15264_v44 = vcombine.high %v1880_v12, %v1884_v16  ;;  %v15263_v7 = vcombine.low %v1880_v12, %v1884_v16  ;;  %v865_v12 = vcombine.low %v348_v58, %v356_v10 }
 0x1fc   :  { %8845 = vmatprep.subr.bf16.mxu1 %v15248_v14  ;;  %v1888_v14 = vld [vmem:[#allocation5 + $0x12c8] sm:$0xff]  ;;  %v850_v62 = vcombine.high %v19298_v13, %v340_v53 }
 0x1fd   :  { %8166 = vmatpush1.bf16.msra.mxu0 %v15493_v30  ;;  %v15518_v30 = vcombine.high %v2135_v43, %v2139_v3  ;;  %v19310_v1 = vld [vmem:[#allocation3 + $0x728] sm:$0xff]  ;;  %v849_v3 = vcombine.low %v19298_v13, %v340_v53 }
 0x1fe   :  { %8167 = vmatprep.subr.bf16.mxu0 %v15502_v37  ;;  %8789 = vmatmul.mubr.bf16.gmra.mrb[48].mxu1 %v18880_v26  ;;  %v1892_v37 = vld [vmem:[#allocation5 + $0x12e8] sm:$0xff]  ;;  %v866_v26 = vcombine.high %v348_v58, %v356_v10  ;;  %v15533_v58 = vcombine.low %v2151_v4, %v2155_v23 }
 0x1ff   :  { %8846 = vmatpush1.bf16.msra.mxu1 %v15247_v38  ;;  %8798 = vmatprep.mubr.bf16.mxu1 %v18888_v0  ;;  %v2143_v38 = vld [vmem:[#allocation5 + $0x1ac0] sm:$0xff]  ;;  %v15272_v31 = vcombine.high %v1888_v14, %v1892_v37  ;;  %v380_v42 = vld [vmem:[#allocation3 + $0x7a8] sm:$0xff]  ;;  %v15271_v43 = vcombine.low %v1888_v14, %v1892_v37  ;;  %v19318_v13 = vpack.c.bf16 %v865_v12, %v849_v3  ;;  %v19322_v0 = vld [vmem:[#allocation3 + $0x30] sm:$0xff] }
 0x200   :  { %8111 = vmatmul.mubr.bf16.gmra.mrb[16].mxu0 %v19294_v24  ;;  %8847 = vmatprep.subr.bf16.mxu1 %v15256_v2  ;;  %v15526_v56 = vcombine.high %v2143_v38, %v2147_v18  ;;  %v1896_v2 = vld [vmem:[#allocation5 + $0x1308] sm:$0xff]  ;;  %v15525_v16 = vcombine.low %v2143_v38, %v2147_v18  ;;  %v2163_v14 = vld [vmem:[#allocation5 + $0x1b60] sm:$0xff]  ;;  %v157_v3 = vld [vmem:[#allocation3 + $0xb0] sm:$0xff] }
 0x201   :  { %8168 = vmatpush1.bf16.msra.mxu0 %v15501_v21  ;;  %8120 = vmatprep.mubr.bf16.mxu0 %v19296_v35  ;;  %v19308_v21 = vpack.c.bf16 %v866_v26, %v850_v62  ;;  %v388_v36 = vld [vmem:[#allocation3 + $0x7e8] sm:$0xff]  ;;  %20851 = vst [vmem:[#allocation147_spill] sm:$0xff] %v19318_v13  ;;  %v2167_v37 = vld [vmem:[#allocation5 + $0x1b80] sm:$0xff]  ;;  %v165_v12 = vld [vmem:[#allocation3 + $0xf0] sm:$0xff] }
 0x202   :  { %8169 = vmatprep.subr.bf16.mxu0 %v15510_v9  ;;  %v1900_v9 = vld [vmem:[#allocation5 + $0x1328] sm:$0xff]  ;;  %v2171_v38 = vld [vmem:[#allocation5 + $0x1ba0] sm:$0xff] }
 0x203   :  { %8848 = vmatpush1.bf16.msra.mxu1 %v15255_v55  ;;  %20850 = vst [vmem:[#allocation146_spill] sm:$0xff] %v19308_v21  ;;  %v372_v55 = vld [vmem:[#allocation3 + $0x768] sm:$0xff]  ;;  %v15280_v26 = vcombine.high %v1896_v2, %v1900_v9  ;;  %v15279_v53 = vcombine.low %v1896_v2, %v1900_v9  ;;  %v897_v2 = vcombine.low %v380_v42, %v388_v36 }
 0x204   :  { %8849 = vmatprep.subr.bf16.mxu1 %v15264_v44  ;;  %v1904_v44 = vld [vmem:[#allocation5 + $0x1348] sm:$0xff]  ;;  %v882_v62 = vcombine.high %v19310_v1, %v372_v55 }
 0x205   :  { %8170 = vmatpush1.bf16.msra.mxu0 %v15509_v22  ;;  %v15534_v22 = vcombine.high %v2151_v4, %v2155_v23  ;;  %v881_v23 = vcombine.low %v19310_v1, %v372_v55 }
 0x206   :  { %8171 = vmatprep.subr.bf16.mxu0 %v15518_v30  ;;  %8799 = vmatmul.mubr.bf16.gmra.mrb[52].mxu1 %v18900_v60  ;;  %v1908_v30 = vld [vmem:[#allocation5 + $0x1368] sm:$0xff]  ;;  %v898_v60 = vcombine.high %v380_v42, %v388_v36  ;;  %v15549_v42 = vcombine.low %v2167_v37, %v2171_v38 }
 0x207   :  { %8850 = vmatpush1.bf16.msra.mxu1 %v15263_v7  ;;  %8808 = vmatprep.mubr.bf16.mxu1 %v18908_v45  ;;  %v2159_v7 = vld [vmem:[#allocation5 + $0x1b40] sm:$0xff]  ;;  %v15288_v10 = vcombine.high %v1904_v44, %v1908_v30  ;;  %v15287_v4 = vcombine.low %v1904_v44, %v1908_v30  ;;  %v19330_v1 = vpack.c.bf16 %v897_v2, %v881_v23  ;;  %v19334_v45 = vld [vmem:[#allocation3 + $0x130] sm:$0xff] }
 0x208   :  { %8121 = vmatmul.mubr.bf16.gmra.mrb[20].mxu0 %v19306_v51  ;;  %8851 = vmatprep.subr.bf16.mxu1 %v15272_v31  ;;  %v15542_v18 = vcombine.high %v2159_v7, %v2163_v14  ;;  %v1912_v31 = vld [vmem:[#allocation5 + $0x1388] sm:$0xff]  ;;  %v15541_v9 = vcombine.low %v2159_v7, %v2163_v14  ;;  %v2179_v44 = vld [vmem:[#allocation5 + $0x1be0] sm:$0xff]  ;;  %v189_v23 = vld [vmem:[#allocation3 + $0x1b0] sm:$0xff] }
 0x209   :  { %8172 = vmatpush1.bf16.msra.mxu0 %v15517_v19  ;;  %8130 = vmatprep.mubr.bf16.mxu0 %v19308_v21  ;;  %v19320_v19 = vpack.c.bf16 %v898_v60, %v882_v62  ;;  %20853 = vst [vmem:[#allocation149_spill] sm:$0xff] %v19330_v1  ;;  %v2183_v30 = vld [vmem:[#allocation5 + $0x1c00] sm:$0xff]  ;;  %v197_v2 = vld [vmem:[#allocation3 + $0x1f0] sm:$0xff] }
 0x20a   :  { %8173 = vmatprep.subr.bf16.mxu0 %v15526_v56  ;;  %v1916_v56 = vld [vmem:[#allocation5 + $0x13a8] sm:$0xff]  ;;  %v2187_v7 = vld [vmem:[#allocation5 + $0x1c20] sm:$0xff] }
 0x20b   :  { %8852 = vmatpush1.bf16.msra.mxu1 %v15271_v43  ;;  %20852 = vst [vmem:[#allocation148_spill] sm:$0xff] %v19320_v19  ;;  %v149_v43 = vld [vmem:[#allocation3 + $0x70] sm:$0xff]  ;;  %v15296_v60 = vcombine.high %v1912_v31, %v1916_v56  ;;  %v15295_v55 = vcombine.low %v1912_v31, %v1916_v56  ;;  %v675_v31 = vcombine.low %v157_v3, %v165_v12 }
 0x20c   :  { %8853 = vmatprep.subr.bf16.mxu1 %v15280_v26  ;;  %v1920_v26 = vld [vmem:[#allocation5 + $0x13c8] sm:$0xff]  ;;  %v660_v62 = vcombine.high %v19322_v0, %v149_v43 }
 0x20d   :  { %8174 = vmatpush1.bf16.msra.mxu0 %v15525_v16  ;;  %v15550_v16 = vcombine.high %v2167_v37, %v2171_v38  ;;  %v659_v38 = vcombine.low %v19322_v0, %v149_v43 }
 0x20e   :  { %8175 = vmatprep.subr.bf16.mxu0 %v15534_v22  ;;  %8809 = vmatmul.mubr.bf16.gmra.mrb[56].mxu1 %v18920_v40  ;;  %v1924_v22 = vld [vmem:[#allocation5 + $0x13e8] sm:$0xff]  ;;  %v676_v40 = vcombine.high %v157_v3, %v165_v12  ;;  %v15565_v3 = vcombine.low %v2183_v30, %v2187_v7 }
 0x20f   :  { %8854 = vmatpush1.bf16.msra.mxu1 %v15279_v53  ;;  %8818 = vmatprep.mubr.bf16.mxu1 %v18928_v52  ;;  %v2175_v53 = vld [vmem:[#allocation5 + $0x1bc0] sm:$0xff]  ;;  %v15304_v36 = vcombine.high %v1920_v26, %v1924_v22  ;;  %v15303_v37 = vcombine.low %v1920_v26, %v1924_v22  ;;  %v19342_v0 = vpack.c.bf16 %v675_v31, %v659_v38  ;;  %v19346_v52 = vld [vmem:[#allocation3 + $0x230] sm:$0xff] }
 0x210   :  { %8131 = vmatmul.mubr.bf16.gmra.mrb[24].mxu0 %v19318_v13  ;;  %8855 = vmatprep.subr.bf16.mxu1 %v15288_v10  ;;  %v15558_v14 = vcombine.high %v2175_v53, %v2179_v44  ;;  %v1928_v10 = vld [vmem:[#allocation5 + $0x1408] sm:$0xff]  ;;  %v15557_v56 = vcombine.low %v2175_v53, %v2179_v44  ;;  %v2195_v26 = vld [vmem:[#allocation5 + $0x1c60] sm:$0xff]  ;;  %v221_v38 = vld [vmem:[#allocation3 + $0x2b0] sm:$0xff] }
 0x211   :  { %8176 = vmatpush1.bf16.msra.mxu0 %v15533_v58  ;;  %8140 = vmatprep.mubr.bf16.mxu0 %v19320_v19  ;;  %v19332_v58 = vpack.c.bf16 %v676_v40, %v660_v62  ;;  %20855 = vst [vmem:[#allocation151_spill] sm:$0xff] %v19342_v0  ;;  %v2199_v22 = vld [vmem:[#allocation5 + $0x1c80] sm:$0xff]  ;;  %v229_v31 = vld [vmem:[#allocation3 + $0x2f0] sm:$0xff] }
 0x212   :  { %8177 = vmatprep.subr.bf16.mxu0 %v15542_v18  ;;  %v1932_v18 = vld [vmem:[#allocation5 + $0x1428] sm:$0xff]  ;;  %v2203_v53 = vld [vmem:[#allocation5 + $0x1ca0] sm:$0xff] }
 0x213   :  { %8856 = vmatpush1.bf16.msra.mxu1 %v15287_v4  ;;  %20854 = vst [vmem:[#allocation150_spill] sm:$0xff] %v19332_v58  ;;  %v181_v4 = vld [vmem:[#allocation3 + $0x170] sm:$0xff]  ;;  %v15312_v40 = vcombine.high %v1928_v10, %v1932_v18  ;;  %v15311_v43 = vcombine.low %v1928_v10, %v1932_v18  ;;  %v707_v10 = vcombine.low %v189_v23, %v197_v2 }
 0x214   :  { %8857 = vmatprep.subr.bf16.mxu1 %v15296_v60  ;;  %v1936_v60 = vld [vmem:[#allocation5 + $0x1448] sm:$0xff]  ;;  %v692_v62 = vcombine.high %v19334_v45, %v181_v4 }
 0x215   :  { %8178 = vmatpush1.bf16.msra.mxu0 %v15541_v9  ;;  %v15566_v9 = vcombine.high %v2183_v30, %v2187_v7  ;;  %v691_v7 = vcombine.low %v19334_v45, %v181_v4 }
 0x216   :  { %8179 = vmatprep.subr.bf16.mxu0 %v15550_v16  ;;  %8819 = vmatmul.mubr.bf16.gmra.mrb[60].mxu1 %v18940_v28  ;;  %v1940_v16 = vld [vmem:[#allocation5 + $0x1468] sm:$0xff]  ;;  %v708_v28 = vcombine.high %v189_v23, %v197_v2  ;;  %v15581_v23 = vcombine.low %v2199_v22, %v2203_v53 }
 0x217   :  { %8858 = vmatpush1.bf16.msra.mxu1 %v15295_v55  ;;  %8861 = vmatprep.mubr.bf16.mxu1 %v18948_v34  ;;  %v2191_v55 = vld [vmem:[#allocation5 + $0x1c40] sm:$0xff]  ;;  %v15320_v12 = vcombine.high %v1936_v60, %v1940_v16  ;;  %v15319_v30 = vcombine.low %v1936_v60, %v1940_v16  ;;  %v19354_v45 = vpack.c.bf16 %v707_v10, %v691_v7  ;;  %v19358_v34 = vld [vmem:[#allocation3 + $0x330] sm:$0xff] }
 0x218   :  { %8141 = vmatmul.mubr.bf16.gmra.mrb[28].mxu0 %v19330_v1  ;;  %8859 = vmatprep.subr.bf16.mxu1 %v15304_v36  ;;  %v15574_v44 = vcombine.high %v2191_v55, %v2195_v26  ;;  %v1944_v36 = vld [vmem:[#allocation5 + $0x1488] sm:$0xff]  ;;  %v15573_v18 = vcombine.low %v2191_v55, %v2195_v26  ;;  %v2211_v60 = vld [vmem:[#allocation5 + $0x1ce0] sm:$0xff]  ;;  %v253_v7 = vld [vmem:[#allocation3 + $0x3b0] sm:$0xff] }
 0x219   :  { %8180 = vmatpush1.bf16.msra.mxu0 %v15549_v42  ;;  %8183 = vmatprep.mubr.bf16.mxu0 %v19332_v58  ;;  %v19344_v42 = vpack.c.bf16 %v708_v28, %v692_v62  ;;  %20857 = vst [vmem:[#allocation153_spill] sm:$0xff] %v19354_v45  ;;  %v2215_v16 = vld [vmem:[#allocation5 + $0x1d00] sm:$0xff]  ;;  %v261_v10 = vld [vmem:[#allocation3 + $0x3f0] sm:$0xff] }
 0x21a   :  { %8181 = vmatprep.subr.bf16.mxu0 %v15558_v14  ;;  %v1948_v14 = vld [vmem:[#allocation5 + $0x14a8] sm:$0xff]  ;;  %v2219_v55 = vld [vmem:[#allocation5 + $0x1d20] sm:$0xff] }
 0x21b   :  { %8860 = vmatpush1.bf16.msra.mxu1 %v15303_v37  ;;  %20856 = vst [vmem:[#allocation152_spill] sm:$0xff] %v19344_v42  ;;  %v213_v37 = vld [vmem:[#allocation3 + $0x270] sm:$0xff]  ;;  %v15328_v28 = vcombine.high %v1944_v36, %v1948_v14  ;;  %v15327_v4 = vcombine.low %v1944_v36, %v1948_v14  ;;  %v739_v36 = vcombine.low %v221_v38, %v229_v31 }
 0x21c   :  { %8942 = vmatprep.subr.bf16.mxu1 %v15312_v40  ;;  %v1952_v40 = vld [vmem:[#allocation5 + $0x14c8] sm:$0xff]  ;;  %v724_v62 = vcombine.high %v19346_v52, %v213_v37 }
 0x21d   :  { %8182 = vmatpush1.bf16.msra.mxu0 %v15557_v56  ;;  %v15582_v56 = vcombine.high %v2199_v22, %v2203_v53  ;;  %v723_v53 = vcombine.low %v19346_v52, %v213_v37 }
 0x21e   :  { %8264 = vmatprep.subr.bf16.mxu0 %v15566_v9  ;;  %8862 = vmatmul.mubr.bf16.vlgmr.msra.gmra.mrb[32].mxu1 %v18960_v15  ;;  %v1956_v9 = vld [vmem:[#allocation5 + $0x14e8] sm:$0xff]  ;;  %v740_v15 = vcombine.high %v221_v38, %v229_v31  ;;  %v15597_v38 = vcombine.low %v2215_v16, %v2219_v55 }
 0x21f   :  { %8943 = vmatpush1.bf16.msra.mxu1 %v15311_v43  ;;  %8871 = vmatprep.mubr.bf16.mxu1 %v18968_v11  ;;  %v2207_v43 = vld [vmem:[#allocation5 + $0x1cc0] sm:$0xff]  ;;  %v15336_v2 = vcombine.high %v1952_v40, %v1956_v9  ;;  %v15335_v22 = vcombine.low %v1952_v40, %v1956_v9  ;;  %v19366_v52 = vpack.c.bf16 %v739_v36, %v723_v53  ;;  %v19370_v11 = vld [vmem:[#allocation3 + $0x430] sm:$0xff] }
 0x220   :  { %8184 = vmatmul.mubr.bf16.vlgmr.msra.gmra.mrb[0].mxu0 %v19342_v0  ;;  %8944 = vmatprep.subr.bf16.mxu1 %v15320_v12  ;;  %v15590_v26 = vcombine.high %v2207_v43, %v2211_v60  ;;  %v1960_v12 = vld [vmem:[#allocation5 + $0x1508] sm:$0xff]  ;;  %v15589_v14 = vcombine.low %v2207_v43, %v2211_v60  ;;  %v2227_v40 = vld [vmem:[#allocation5 + $0x1d60] sm:$0xff]  ;;  %v285_v53 = vld [vmem:[#allocation3 + $0x4b0] sm:$0xff] }
 0x221   :  { %8265 = vmatpush1.bf16.msra.mxu0 %v15565_v3  ;;  %8193 = vmatprep.mubr.bf16.mxu0 %v19344_v42  ;;  %v19356_v3 = vpack.c.bf16 %v740_v15, %v724_v62  ;;  %20859 = vst [vmem:[#allocation155_spill] sm:$0xff] %v19366_v52  ;;  %v2231_v9 = vld [vmem:[#allocation5 + $0x1d80] sm:$0xff]  ;;  %v293_v36 = vld [vmem:[#allocation3 + $0x4f0] sm:$0xff] }
 0x222   :  { %8266 = vmatprep.subr.bf16.mxu0 %v15574_v44  ;;  %v1964_v44 = vld [vmem:[#allocation5 + $0x1528] sm:$0xff]  ;;  %v2235_v43 = vld [vmem:[#allocation5 + $0x1da0] sm:$0xff] }
 0x223   :  { %8945 = vmatpush1.bf16.msra.mxu1 %v15319_v30  ;;  %20858 = vst [vmem:[#allocation154_spill] sm:$0xff] %v19356_v3  ;;  %v245_v30 = vld [vmem:[#allocation3 + $0x370] sm:$0xff]  ;;  %v15344_v15 = vcombine.high %v1960_v12, %v1964_v44  ;;  %v15343_v37 = vcombine.low %v1960_v12, %v1964_v44  ;;  %v771_v12 = vcombine.low %v253_v7, %v261_v10 }
 0x224   :  { %8946 = vmatprep.subr.bf16.mxu1 %v15328_v28  ;;  %v1968_v28 = vld [vmem:[#allocation5 + $0x1548] sm:$0xff]  ;;  %v756_v62 = vcombine.high %v19358_v34, %v245_v30 }
 0x225   :  { %8267 = vmatpush1.bf16.msra.mxu0 %v15573_v18  ;;  %v15598_v18 = vcombine.high %v2215_v16, %v2219_v55  ;;  %v755_v55 = vcombine.low %v19358_v34, %v245_v30 }
 0x226   :  { %8268 = vmatprep.subr.bf16.mxu0 %v15582_v56  ;;  %8872 = vmatmul.mubr.bf16.gmra.mrb[36].mxu1 %v18980_v6  ;;  %v1972_v56 = vld [vmem:[#allocation5 + $0x1568] sm:$0xff]  ;;  %v772_v6 = vcombine.high %v253_v7, %v261_v10  ;;  %v15613_v7 = vcombine.low %v2231_v9, %v2235_v43 }
 0x227   :  { %8947 = vmatpush1.bf16.msra.mxu1 %v15327_v4  ;;  %8881 = vmatprep.mubr.bf16.mxu1 %v18988_v46  ;;  %v2223_v4 = vld [vmem:[#allocation5 + $0x1d40] sm:$0xff]  ;;  %v15352_v31 = vcombine.high %v1968_v28, %v1972_v56  ;;  %v15351_v16 = vcombine.low %v1968_v28, %v1972_v56  ;;  %v19378_v34 = vpack.c.bf16 %v771_v12, %v755_v55  ;;  %v317_v55 = vld [vmem:[#allocation3 + $0x5b0] sm:$0xff] }
 0x228   :  { %8194 = vmatmul.mubr.bf16.gmra.mrb[4].mxu0 %v19354_v45  ;;  %8948 = vmatprep.subr.bf16.mxu1 %v15336_v2  ;;  %v15606_v60 = vcombine.high %v2223_v4, %v2227_v40  ;;  %v1976_v2 = vld [vmem:[#allocation5 + $0x1588] sm:$0xff]  ;;  %v15605_v44 = vcombine.low %v2223_v4, %v2227_v40  ;;  %v20861_v46 = vld [vmem:[#allocation92_spill] sm:$0xff]  ;;  %v325_v12 = vld [vmem:[#allocation3 + $0x5f0] sm:$0xff] }
 0x229   :  { %8269 = vmatpush1.bf16.msra.mxu0 %v15581_v23  ;;  %8203 = vmatprep.mubr.bf16.mxu0 %v19356_v3  ;;  %v19368_v23 = vpack.c.bf16 %v772_v6, %v756_v62  ;;  %v2243_v28 = vld [vmem:[#allocation5 + $0x1de0] sm:$0xff]  ;;  %20862 = vst [vmem:[#allocation157_spill] sm:$0xff] %v19378_v34 }
 0x22a   :  { %8270 = vmatprep.subr.bf16.mxu0 %v15590_v26  ;;  %v1980_v26 = vld [vmem:[#allocation5 + $0x15a8] sm:$0xff]  ;;  %v2247_v56 = vld [vmem:[#allocation5 + $0x1e00] sm:$0xff] }
 0x22b   :  { %8949 = vmatpush1.bf16.msra.mxu1 %v15335_v22  ;;  %20860 = vst [vmem:[#allocation156_spill] sm:$0xff] %v19368_v23  ;;  %v277_v22 = vld [vmem:[#allocation3 + $0x470] sm:$0xff]  ;;  %v15360_v6 = vcombine.high %v1976_v2, %v1980_v26  ;;  %v15359_v30 = vcombine.low %v1976_v2, %v1980_v26  ;;  %v2251_v4 = vld [vmem:[#allocation5 + $0x1e20] sm:$0xff]  ;;  %v803_v2 = vcombine.low %v285_v53, %v293_v36 }
 0x22c   :  { %8950 = vmatprep.subr.bf16.mxu1 %v15344_v15  ;;  %v1984_v15 = vld [vmem:[#allocation5 + $0x15c8] sm:$0xff]  ;;  %v788_v62 = vcombine.high %v19370_v11, %v277_v22 }
 0x22d   :  { %8271 = vmatpush1.bf16.msra.mxu0 %v15589_v14  ;;  %v15614_v14 = vcombine.high %v2231_v9, %v2235_v43  ;;  %v787_v43 = vcombine.low %v19370_v11, %v277_v22 }
 0x22e   :  { %8272 = vmatprep.subr.bf16.mxu0 %v15598_v18  ;;  %8882 = vmatmul.mubr.bf16.gmra.mrb[40].mxu1 %v19003_v61  ;;  %v1988_v18 = vld [vmem:[#allocation5 + $0x15e8] sm:$0xff]  ;;  %v804_v61 = vcombine.high %v285_v53, %v293_v36  ;;  %v15629_v53 = vcombine.low %v2247_v56, %v2251_v4 }
 0x22f   :  { %8951 = vmatpush1.bf16.msra.mxu1 %v15343_v37  ;;  %8891 = vmatprep.mubr.bf16.mxu1 %v20861_v46  ;;  %v2239_v37 = vld [vmem:[#allocation5 + $0x1dc0] sm:$0xff]  ;;  %v15368_v10 = vcombine.high %v1984_v15, %v1988_v18  ;;  %v15367_v9 = vcombine.low %v1984_v15, %v1988_v18  ;;  %v19390_v11 = vpack.c.bf16 %v803_v2, %v787_v43  ;;  %v19394_v46 = vld [vmem:[#allocation3 + $0x630] sm:$0xff] }
 0x230   :  { %8204 = vmatmul.mubr.bf16.gmra.mrb[8].mxu0 %v19366_v52  ;;  %8952 = vmatprep.subr.bf16.mxu1 %v15352_v31  ;;  %v15622_v40 = vcombine.high %v2239_v37, %v2243_v28  ;;  %v1992_v31 = vld [vmem:[#allocation5 + $0x1608] sm:$0xff]  ;;  %v15621_v26 = vcombine.low %v2239_v37, %v2243_v28  ;;  %v2259_v15 = vld [vmem:[#allocation5 + $0x1e60] sm:$0xff]  ;;  %v349_v43 = vld [vmem:[#allocation3 + $0x6b0] sm:$0xff] }
 0x231   :  { %8273 = vmatpush1.bf16.msra.mxu0 %v15597_v38  ;;  %8213 = vmatprep.mubr.bf16.mxu0 %v19368_v23  ;;  %v19380_v38 = vpack.c.bf16 %v804_v61, %v788_v62  ;;  %20864 = vst [vmem:[#allocation159_spill] sm:$0xff] %v19390_v11  ;;  %v2263_v18 = vld [vmem:[#allocation5 + $0x1e80] sm:$0xff]  ;;  %v357_v2 = vld [vmem:[#allocation3 + $0x6f0] sm:$0xff] }
 0x232   :  { %8274 = vmatprep.subr.bf16.mxu0 %v15606_v60  ;;  %v1996_v60 = vld [vmem:[#allocation5 + $0x1628] sm:$0xff]  ;;  %v2267_v37 = vld [vmem:[#allocation5 + $0x1ea0] sm:$0xff] }
 0x233   :  { %8953 = vmatpush1.bf16.msra.mxu1 %v15351_v16  ;;  %20863 = vst [vmem:[#allocation158_spill] sm:$0xff] %v19380_v38  ;;  %v309_v16 = vld [vmem:[#allocation3 + $0x570] sm:$0xff]  ;;  %v15376_v61 = vcombine.high %v1992_v31, %v1996_v60  ;;  %v15375_v22 = vcombine.low %v1992_v31, %v1996_v60  ;;  %v835_v31 = vcombine.low %v317_v55, %v325_v12 }
 0x234   :  { %8954 = vmatprep.subr.bf16.mxu1 %v15360_v6  ;;  %v2000_v6 = vld [vmem:[#allocation5 + $0x1648] sm:$0xff]  ;;  %v820_v62 = vcombine.high %v19382_v25, %v309_v16 }
 0x235   :  { %8275 = vmatpush1.bf16.msra.mxu0 %v15605_v44  ;;  %v15630_v44 = vcombine.high %v2247_v56, %v2251_v4  ;;  %v819_v4 = vcombine.low %v19382_v25, %v309_v16 }
 0x236   :  { %8276 = vmatprep.subr.bf16.mxu0 %v15614_v14  ;;  %8892 = vmatmul.mubr.bf16.gmra.mrb[44].mxu1 %v19033_v63  ;;  %v2004_v14 = vld [vmem:[#allocation5 + $0x1668] sm:$0xff]  ;;  %v836_v63 = vcombine.high %v317_v55, %v325_v12  ;;  %v15645_v55 = vcombine.low %v2263_v18, %v2267_v37 }
 0x237   :  { %8955 = vmatpush1.bf16.msra.mxu1 %v15359_v30  ;;  %8901 = vmatprep.mubr.bf16.mxu1 %v19043_v8  ;;  %v2255_v30 = vld [vmem:[#allocation5 + $0x1e40] sm:$0xff]  ;;  %v15384_v36 = vcombine.high %v2000_v6, %v2004_v14  ;;  %v15383_v56 = vcombine.low %v2000_v6, %v2004_v14  ;;  %v19402_v25 = vpack.c.bf16 %v835_v31, %v819_v4  ;;  %v19406_v8 = vld [vmem:[#allocation3 + $0x730] sm:$0xff] }
 0x238   :  { %8214 = vmatmul.mubr.bf16.gmra.mrb[12].mxu0 %v19378_v34  ;;  %8956 = vmatprep.subr.bf16.mxu1 %v15368_v10  ;;  %v15638_v28 = vcombine.high %v2255_v30, %v2259_v15  ;;  %v2008_v10 = vld [vmem:[#allocation5 + $0x1688] sm:$0xff]  ;;  %v15637_v60 = vcombine.low %v2255_v30, %v2259_v15  ;;  %v2275_v6 = vld [vmem:[#allocation5 + $0x1ee0] sm:$0xff]  ;;  %v381_v4 = vld [vmem:[#allocation3 + $0x7b0] sm:$0xff] }
 0x239   :  { %8277 = vmatpush1.bf16.msra.mxu0 %v15613_v7  ;;  %8223 = vmatprep.mubr.bf16.mxu0 %v19380_v38  ;;  %v19392_v7 = vpack.c.bf16 %v836_v63, %v820_v62  ;;  %20866 = vst [vmem:[#allocation161_spill] sm:$0xff] %v19402_v25  ;;  %v2279_v14 = vld [vmem:[#allocation5 + $0x1f00] sm:$0xff]  ;;  %v389_v31 = vld [vmem:[#allocation3 + $0x7f0] sm:$0xff] }
 0x23a   :  { %8278 = vmatprep.subr.bf16.mxu0 %v15622_v40  ;;  %v2012_v40 = vld [vmem:[#allocation5 + $0x16a8] sm:$0xff]  ;;  %v2283_v30 = vld [vmem:[#allocation5 + $0x1f20] sm:$0xff] }
 0x23b   :  { %8957 = vmatpush1.bf16.msra.mxu1 %v15367_v9  ;;  %20865 = vst [vmem:[#allocation160_spill] sm:$0xff] %v19392_v7  ;;  %v341_v9 = vld [vmem:[#allocation3 + $0x670] sm:$0xff]  ;;  %v15392_v63 = vcombine.high %v2008_v10, %v2012_v40  ;;  %v15391_v16 = vcombine.low %v2008_v10, %v2012_v40  ;;  %v867_v10 = vcombine.low %v349_v43, %v357_v2 }
 0x23c   :  { %8958 = vmatprep.subr.bf16.mxu1 %v15376_v61  ;;  %v2016_v61 = vld [vmem:[#allocation5 + $0x16c8] sm:$0xff]  ;;  %v852_v62 = vcombine.high %v19394_v46, %v341_v9 }
 0x23d   :  { %8279 = vmatpush1.bf16.msra.mxu0 %v15621_v26  ;;  %v15646_v26 = vcombine.high %v2263_v18, %v2267_v37  ;;  %v851_v37 = vcombine.low %v19394_v46, %v341_v9 }
 0x23e   :  { %8280 = vmatprep.subr.bf16.mxu0 %v15630_v44  ;;  %8902 = vmatmul.mubr.bf16.gmra.mrb[48].mxu1 %v19065_v33  ;;  %v2020_v44 = vld [vmem:[#allocation5 + $0x16e8] sm:$0xff]  ;;  %v868_v33 = vcombine.high %v349_v43, %v357_v2  ;;  %v15661_v43 = vcombine.low %v2279_v14, %v2283_v30 }
 0x23f   :  { %8959 = vmatpush1.bf16.msra.mxu1 %v15375_v22  ;;  %8911 = vmatprep.mubr.bf16.mxu1 %v19075_v5  ;;  %v2271_v22 = vld [vmem:[#allocation5 + $0x1ec0] sm:$0xff]  ;;  %v15400_v12 = vcombine.high %v2016_v61, %v2020_v44  ;;  %v15399_v18 = vcombine.low %v2016_v61, %v2020_v44  ;;  %v19414_v46 = vpack.c.bf16 %v867_v10, %v851_v37  ;;  %v19418_v5 = vld [vmem:[#allocation3 + $0x38] sm:$0xff] }
 0x240   :  { %8224 = vmatmul.mubr.bf16.gmra.mrb[16].mxu0 %v19390_v11  ;;  %8960 = vmatprep.subr.bf16.mxu1 %v15384_v36  ;;  %v15654_v15 = vcombine.high %v2271_v22, %v2275_v6  ;;  %v2024_v36 = vld [vmem:[#allocation5 + $0x1708] sm:$0xff]  ;;  %v15653_v40 = vcombine.low %v2271_v22, %v2275_v6  ;;  %v2291_v61 = vld [vmem:[#allocation5 + $0x1f60] sm:$0xff]  ;;  %v158_v37 = vld [vmem:[#allocation3 + $0xb8] sm:$0xff] }
 0x241   :  { %8281 = vmatpush1.bf16.msra.mxu0 %v15629_v53  ;;  %8233 = vmatprep.mubr.bf16.mxu0 %v19392_v7  ;;  %v19404_v53 = vpack.c.bf16 %v868_v33, %v852_v62  ;;  %20868 = vst [vmem:[#allocation163_spill] sm:$0xff] %v19414_v46  ;;  %v2295_v44 = vld [vmem:[#allocation5 + $0x1f80] sm:$0xff]  ;;  %v166_v10 = vld [vmem:[#allocation3 + $0xf8] sm:$0xff] }
 0x242   :  { %8282 = vmatprep.subr.bf16.mxu0 %v15638_v28  ;;  %v2028_v28 = vld [vmem:[#allocation5 + $0x1728] sm:$0xff]  ;;  %v2299_v22 = vld [vmem:[#allocation5 + $0x1fa0] sm:$0xff] }
 0x243   :  { %8961 = vmatpush1.bf16.msra.mxu1 %v15383_v56  ;;  %20867 = vst [vmem:[#allocation162_spill] sm:$0xff] %v19404_v53  ;;  %v373_v56 = vld [vmem:[#allocation3 + $0x770] sm:$0xff]  ;;  %v15408_v33 = vcombine.high %v2024_v36, %v2028_v28  ;;  %v15407_v9 = vcombine.low %v2024_v36, %v2028_v28  ;;  %v899_v36 = vcombine.low %v381_v4, %v389_v31 }
 0x244   :  { %8962 = vmatprep.subr.bf16.mxu1 %v15392_v63  ;;  %v2032_v63 = vld [vmem:[#allocation5 + $0x1748] sm:$0xff]  ;;  %v884_v62 = vcombine.high %v19406_v8, %v373_v56 }
 0x245   :  { %8283 = vmatpush1.bf16.msra.mxu0 %v15637_v60  ;;  %v15662_v60 = vcombine.high %v2279_v14, %v2283_v30  ;;  %v883_v30 = vcombine.low %v19406_v8, %v373_v56 }
 0x246   :  { %8284 = vmatprep.subr.bf16.mxu0 %v15646_v26  ;;  %8912 = vmatmul.mubr.bf16.gmra.mrb[52].mxu1 %v19097_v47  ;;  %v2036_v26 = vld [vmem:[#allocation5 + $0x1768] sm:$0xff]  ;;  %v900_v47 = vcombine.high %v381_v4, %v389_v31  ;;  %v15677_v4 = vcombine.low %v2295_v44, %v2299_v22 }
 0x247   :  { %8963 = vmatpush1.bf16.msra.mxu1 %v15391_v16  ;;  %8921 = vmatprep.mubr.bf16.mxu1 %v19107_v54  ;;  %v2287_v16 = vld [vmem:[#allocation5 + $0x1f40] sm:$0xff]  ;;  %v15416_v2 = vcombine.high %v2032_v63, %v2036_v26  ;;  %v15415_v14 = vcombine.low %v2032_v63, %v2036_v26  ;;  %v19426_v8 = vpack.c.bf16 %v899_v36, %v883_v30  ;;  %v2056_v26 = vld [vmem:[#allocation5 + $0x1808] sm:$0xff]  ;;  %v19430_v54 = vld [vmem:[#allocation3 + $0x138] sm:$0xff] }
 0x248   :  { %8234 = vmatmul.mubr.bf16.gmra.mrb[20].mxu0 %v19402_v25  ;;  %8964 = vmatprep.subr.bf16.mxu1 %v15400_v12  ;;  %v15670_v6 = vcombine.high %v2287_v16, %v2291_v61  ;;  %v2040_v12 = vld [vmem:[#allocation5 + $0x1788] sm:$0xff]  ;;  %v15669_v28 = vcombine.low %v2287_v16, %v2291_v61  ;;  %v2307_v63 = vld [vmem:[#allocation5 + $0x1fe0] sm:$0xff]  ;;  %v190_v30 = vld [vmem:[#allocation3 + $0x1b8] sm:$0xff] }
 0x249   :  { %8285 = vmatpush1.bf16.msra.mxu0 %v15645_v55  ;;  %8243 = vmatprep.mubr.bf16.mxu0 %v19404_v53  ;;  %v19416_v55 = vpack.c.bf16 %v900_v47, %v884_v62  ;;  %20870 = vst [vmem:[#allocation165_spill] sm:$0xff] %v19426_v8  ;;  %v2060_v16 = vld [vmem:[#allocation5 + $0x1828] sm:$0xff]  ;;  %v198_v36 = vld [vmem:[#allocation3 + $0x1f8] sm:$0xff] }
 0x24a   :  { %8286 = vmatprep.subr.bf16.mxu0 %v15654_v15  ;;  %v2044_v15 = vld [vmem:[#allocation5 + $0x17a8] sm:$0xff] }
 0x24b   :  { %8965 = vmatpush1.bf16.msra.mxu1 %v15399_v18  ;;  %20869 = vst [vmem:[#allocation164_spill] sm:$0xff] %v19416_v55  ;;  %v150_v18 = vld [vmem:[#allocation3 + $0x78] sm:$0xff]  ;;  %v15424_v47 = vcombine.high %v2040_v12, %v2044_v15  ;;  %v15423_v56 = vcombine.low %v2040_v12, %v2044_v15  ;;  %v677_v12 = vcombine.low %v158_v37, %v166_v10 }
 0x24c   :  { %8966 = vmatprep.subr.bf16.mxu1 %v15408_v33  ;;  %v2048_v33 = vld [vmem:[#allocation5 + $0x17c8] sm:$0xff]  ;;  %v662_v62 = vcombine.high %v19418_v5, %v150_v18 }
 0x24d   :  { %8287 = vmatpush1.bf16.msra.mxu0 %v15653_v40  ;;  %v15678_v40 = vcombine.high %v2295_v44, %v2299_v22  ;;  %v661_v22 = vcombine.low %v19418_v5, %v150_v18  ;;  %v15439_v18 = vcombine.low %v2056_v26, %v2060_v16 }
 0x24e   :  { %8288 = vmatprep.subr.bf16.mxu0 %v15662_v60  ;;  %8922 = vmatmul.mubr.bf16.gmra.mrb[56].mxu1 %v19129_v48  ;;  %v2052_v60 = vld [vmem:[#allocation5 + $0x17e8] sm:$0xff]  ;;  %v678_v48 = vcombine.high %v158_v37, %v166_v10 }
 0x24f   :  { %8967 = vmatpush1.bf16.msra.mxu1 %v15407_v9  ;;  %8931 = vmatprep.mubr.bf16.mxu1 %v19139_v41  ;;  %v2303_v9 = vld [vmem:[#allocation5 + $0x1fc0] sm:$0xff]  ;;  %v15432_v31 = vcombine.high %v2048_v33, %v2052_v60  ;;  %v15431_v44 = vcombine.low %v2048_v33, %v2052_v60  ;;  %v1301_v33 = vld [vmem:[#allocation5 + $0x70] sm:$0xff]  ;;  %v19438_v5 = vpack.c.bf16 %v677_v12, %v661_v22  ;;  %v2072_v60 = vld [vmem:[#allocation5 + $0x1888] sm:$0xff] }
 0x250   :  { %8244 = vmatmul.mubr.bf16.gmra.mrb[24].mxu0 %v19414_v46  ;;  %8968 = vmatprep.subr.bf16.mxu1 %v15416_v2  ;;  %v15686_v61 = vcombine.high %v2303_v9, %v2307_v63  ;;  %v1289_v2 = vld [vmem:[#allocation5 + $0x10] sm:$0xff]  ;;  %v15685_v15 = vcombine.low %v2303_v9, %v2307_v63  ;;  %v2076_v9 = vld [vmem:[#allocation5 + $0x18a8] sm:$0xff]  ;;  %v19442_v41 = vld [vmem:[#allocation3 + $0x238] sm:$0xff] }
 0x251   :  { %8289 = vmatpush1.bf16.msra.mxu0 %v15661_v43  ;;  %8253 = vmatprep.mubr.bf16.mxu0 %v19416_v55  ;;  %v19428_v43 = vpack.c.bf16 %v678_v48, %v662_v62  ;;  %v15440_v48 = vcombine.high %v2056_v26, %v2060_v16  ;;  %20872 = vst [vmem:[#allocation167_spill] sm:$0xff] %v19438_v5  ;;  %v222_v22 = vld [vmem:[#allocation3 + $0x2b8] sm:$0xff] }
 0x252   :  { %8290 = vmatprep.subr.bf16.mxu0 %v15670_v6  ;;  %v1293_v6 = vld [vmem:[#allocation5 + $0x30] sm:$0xff]  ;;  %v230_v12 = vld [vmem:[#allocation3 + $0x2f8] sm:$0xff] }
 0x253   :  { %8969 = vmatpush1.bf16.msra.mxu1 %v15415_v14  ;;  %20871 = vst [vmem:[#allocation166_spill] sm:$0xff] %v19428_v43  ;;  %v182_v14 = vld [vmem:[#allocation3 + $0x178] sm:$0xff]  ;;  %v14673_v37 = vcombine.low %v1289_v2, %v1293_v6 }
 0x254   :  { %8970 = vmatprep.subr.bf16.mxu1 %v15424_v47  ;;  %v2064_v47 = vld [vmem:[#allocation5 + $0x1848] sm:$0xff]  ;;  %v694_v62 = vcombine.high %v19430_v54, %v182_v14  ;;  %v693_v16 = vcombine.low %v19430_v54, %v182_v14  ;;  %v15455_v14 = vcombine.low %v2072_v60, %v2076_v9 }
 0x255   :  { %8291 = vmatpush1.bf16.msra.mxu0 %v15669_v28  ;;  %v14674_v28 = vcombine.high %v1289_v2, %v1293_v6  ;;  %v709_v2 = vcombine.low %v190_v30, %v198_v36  ;;  %v15456_v6 = vcombine.high %v2072_v60, %v2076_v9 }
 0x256   :  { %8292 = vmatprep.subr.bf16.mxu0 %v15678_v40  ;;  %8932 = vmatmul.mubr.bf16.gmra.mrb[60].mxu1 %v19161_v57  ;;  %v2068_v40 = vld [vmem:[#allocation5 + $0x1868] sm:$0xff]  ;;  %v710_v57 = vcombine.high %v190_v30, %v198_v36 }
 0x257   :  { %8971 = vmatpush1.bf16.msra.mxu1 %v15423_v56  ;;  %8974 = vmatprep.mubr.bf16.mxu1 %v19171_v29  ;;  %v1297_v56 = vld [vmem:[#allocation5 + $0x50] sm:$0xff]  ;;  %v15448_v10 = vcombine.high %v2064_v47, %v2068_v40  ;;  %v15447_v26 = vcombine.low %v2064_v47, %v2068_v40  ;;  %v19450_v54 = vpack.c.bf16 %v709_v2, %v693_v16  ;;  %v2088_v40 = vld [vmem:[#allocation5 + $0x1908] sm:$0xff]  ;;  %v19454_v29 = vld [vmem:[#allocation3 + $0x338] sm:$0xff] }
 0x258   :  { %8254 = vmatmul.mubr.bf16.gmra.mrb[28].mxu0 %v19426_v8  ;;  %8972 = vmatprep.subr.bf16.mxu1 %v15432_v31  ;;  %v14682_v63 = vcombine.high %v1297_v56, %v1301_v33  ;;  %v1305_v31 = vld [vmem:[#allocation5 + $0x90] sm:$0xff]  ;;  %v254_v16 = vld [vmem:[#allocation3 + $0x3b8] sm:$0xff] }
 0x259   :  { %8293 = vmatpush1.bf16.msra.mxu0 %v15677_v4  ;;  %8296 = vmatprep.mubr.bf16.mxu0 %v19428_v43  ;;  %v19440_v4 = vpack.c.bf16 %v710_v57, %v694_v62  ;;  %v14681_v57 = vcombine.low %v1297_v56, %v1301_v33  ;;  %v1317_v47 = vld [vmem:[#allocation5 + $0xf0] sm:$0xff]  ;;  %20874 = vst [vmem:[#allocation169_spill] sm:$0xff] %v19450_v54  ;;  %v2092_v56 = vld [vmem:[#allocation5 + $0x1928] sm:$0xff]  ;;  %v262_v2 = vld [vmem:[#allocation3 + $0x3f8] sm:$0xff] }
 0x25a   :  { %8294 = vmatprep.subr.bf16.mxu0 %v15686_v61  ;;  %v1309_v61 = vld [vmem:[#allocation5 + $0xb0] sm:$0xff] }
 0x25b   :  { %8973 = vmatpush1.bf16.msra.mxu1 %v15431_v44  ;;  %20873 = vst [vmem:[#allocation168_spill] sm:$0xff] %v19440_v4  ;;  %v214_v44 = vld [vmem:[#allocation3 + $0x278] sm:$0xff]  ;;  %v14689_v30 = vcombine.low %v1305_v31, %v1309_v61 }
 0x25c   :  { %9055 = vmatprep.subr.bf16.mxu1 %v15440_v48  ;;  %v2080_v48 = vld [vmem:[#allocation5 + $0x18c8] sm:$0xff]  ;;  %v726_v62 = vcombine.high %v19442_v41, %v214_v44  ;;  %v725_v9 = vcombine.low %v19442_v41, %v214_v44  ;;  %v15471_v44 = vcombine.low %v2088_v40, %v2092_v56 }
 0x25d   :  { %8295 = vmatpush1.bf16.msra.mxu0 %v15685_v15  ;;  %v14690_v15 = vcombine.high %v1305_v31, %v1309_v61  ;;  %v741_v31 = vcombine.low %v222_v22, %v230_v12  ;;  %v15472_v61 = vcombine.high %v2088_v40, %v2092_v56 }
 0x25e   :  { %9281 = vmatprep.subr.bf16.mxu0 %v14674_v28  ;;  %8975 = vmatmul.mubr.bf16.vlgmr.msra.gmra.mrb[32].mxu1 %v19193_v20  ;;  %v2084_v28 = vld [vmem:[#allocation5 + $0x18e8] sm:$0xff]  ;;  %v742_v20 = vcombine.high %v222_v22, %v230_v12 }
 0x25f   :  { %9056 = vmatpush1.bf16.msra.mxu1 %v15439_v18  ;;  %8984 = vmatprep.mubr.bf16.mxu1 %v19203_v39  ;;  %v1313_v18 = vld [vmem:[#allocation5 + $0xd0] sm:$0xff]  ;;  %v15464_v36 = vcombine.high %v2080_v48, %v2084_v28  ;;  %v15463_v60 = vcombine.low %v2080_v48, %v2084_v28  ;;  %v19462_v41 = vpack.c.bf16 %v741_v31, %v725_v9  ;;  %v2104_v28 = vld [vmem:[#allocation5 + $0x1988] sm:$0xff]  ;;  %v19466_v39 = vld [vmem:[#allocation3 + $0x438] sm:$0xff] }
 0x260   :  { %8297 = vmatmul.mubr.bf16.vlgmr.msra.gmra.mrb[0].mxu0 %v19438_v5  ;;  %9057 = vmatprep.subr.bf16.mxu1 %v15448_v10  ;;  %v14698_v33 = vcombine.high %v1313_v18, %v1317_v47  ;;  %v1321_v10 = vld [vmem:[#allocation5 + $0x110] sm:$0xff]  ;;  %v286_v9 = vld [vmem:[#allocation3 + $0x4b8] sm:$0xff] }
 0x261   :  { %9282 = vmatpush1.bf16.msra.mxu0 %v14673_v37  ;;  %8306 = vmatprep.mubr.bf16.mxu0 %v19440_v4  ;;  %v19452_v37 = vpack.c.bf16 %v742_v20, %v726_v62  ;;  %v14697_v20 = vcombine.low %v1313_v18, %v1317_v47  ;;  %v1333_v48 = vld [vmem:[#allocation5 + $0x170] sm:$0xff]  ;;  %20876 = vst [vmem:[#allocation171_spill] sm:$0xff] %v19462_v41  ;;  %v2108_v18 = vld [vmem:[#allocation5 + $0x19a8] sm:$0xff]  ;;  %v294_v31 = vld [vmem:[#allocation3 + $0x4f8] sm:$0xff] }
 0x262   :  { %9283 = vmatprep.subr.bf16.mxu0 %v14682_v63  ;;  %v1325_v63 = vld [vmem:[#allocation5 + $0x130] sm:$0xff] }
 0x263   :  { %9058 = vmatpush1.bf16.msra.mxu1 %v15447_v26  ;;  %20875 = vst [vmem:[#allocation170_spill] sm:$0xff] %v19452_v37  ;;  %v246_v26 = vld [vmem:[#allocation3 + $0x378] sm:$0xff]  ;;  %v14705_v22 = vcombine.low %v1321_v10, %v1325_v63 }
 0x264   :  { %9059 = vmatprep.subr.bf16.mxu1 %v15456_v6  ;;  %v2096_v6 = vld [vmem:[#allocation5 + $0x1948] sm:$0xff]  ;;  %v758_v62 = vcombine.high %v19454_v29, %v246_v26  ;;  %v757_v56 = vcombine.low %v19454_v29, %v246_v26  ;;  %v15487_v26 = vcombine.low %v2104_v28, %v2108_v18 }
 0x265   :  { %9284 = vmatpush1.bf16.msra.mxu0 %v14681_v57  ;;  %v14706_v57 = vcombine.high %v1321_v10, %v1325_v63  ;;  %v773_v10 = vcombine.low %v254_v16, %v262_v2  ;;  %v15488_v63 = vcombine.high %v2104_v28, %v2108_v18 }
 0x266   :  { %9285 = vmatprep.subr.bf16.mxu0 %v14690_v15  ;;  %8985 = vmatmul.mubr.bf16.gmra.mrb[36].mxu1 %v19225_v17  ;;  %v2100_v15 = vld [vmem:[#allocation5 + $0x1968] sm:$0xff]  ;;  %v774_v17 = vcombine.high %v254_v16, %v262_v2 }
 0x267   :  { %9060 = vmatpush1.bf16.msra.mxu1 %v15455_v14  ;;  %8994 = vmatprep.mubr.bf16.mxu1 %v19235_v49  ;;  %v1329_v14 = vld [vmem:[#allocation5 + $0x150] sm:$0xff]  ;;  %v15480_v12 = vcombine.high %v2096_v6, %v2100_v15  ;;  %v15479_v40 = vcombine.low %v2096_v6, %v2100_v15  ;;  %v19474_v29 = vpack.c.bf16 %v773_v10, %v757_v56  ;;  %v2120_v15 = vld [vmem:[#allocation5 + $0x1a08] sm:$0xff]  ;;  %v19478_v49 = vld [vmem:[#allocation3 + $0x538] sm:$0xff] }
 0x268   :  { %8307 = vmatmul.mubr.bf16.gmra.mrb[4].mxu0 %v19450_v54  ;;  %9061 = vmatprep.subr.bf16.mxu1 %v15464_v36  ;;  %v14714_v47 = vcombine.high %v1329_v14, %v1333_v48  ;;  %v1337_v36 = vld [vmem:[#allocation5 + $0x190] sm:$0xff]  ;;  %v318_v56 = vld [vmem:[#allocation3 + $0x5b8] sm:$0xff] }
 0x269   :  { %9286 = vmatpush1.bf16.msra.mxu0 %v14689_v30  ;;  %8316 = vmatprep.mubr.bf16.mxu0 %v19452_v37  ;;  %v19464_v30 = vpack.c.bf16 %v774_v17, %v758_v62  ;;  %v14713_v17 = vcombine.low %v1329_v14, %v1333_v48  ;;  %v1349_v6 = vld [vmem:[#allocation5 + $0x1f0] sm:$0xff]  ;;  %20878 = vst [vmem:[#allocation173_spill] sm:$0xff] %v19474_v29  ;;  %v2124_v14 = vld [vmem:[#allocation5 + $0x1a28] sm:$0xff]  ;;  %v326_v10 = vld [vmem:[#allocation3 + $0x5f8] sm:$0xff] }
 0x26a   :  { %9287 = vmatprep.subr.bf16.mxu0 %v14698_v33  ;;  %v1341_v33 = vld [vmem:[#allocation5 + $0x1b0] sm:$0xff] }
 0x26b   :  { %9062 = vmatpush1.bf16.msra.mxu1 %v15463_v60  ;;  %20877 = vst [vmem:[#allocation172_spill] sm:$0xff] %v19464_v30  ;;  %v278_v60 = vld [vmem:[#allocation3 + $0x478] sm:$0xff]  ;;  %v14721_v16 = vcombine.low %v1337_v36, %v1341_v33 }
 0x26c   :  { %9063 = vmatprep.subr.bf16.mxu1 %v15472_v61  ;;  %v2112_v61 = vld [vmem:[#allocation5 + $0x19c8] sm:$0xff]  ;;  %v790_v62 = vcombine.high %v19466_v39, %v278_v60  ;;  %v789_v18 = vcombine.low %v19466_v39, %v278_v60  ;;  %v15503_v60 = vcombine.low %v2120_v15, %v2124_v14 }
 0x26d   :  { %9288 = vmatpush1.bf16.msra.mxu0 %v14697_v20  ;;  %v14722_v20 = vcombine.high %v1337_v36, %v1341_v33  ;;  %v805_v36 = vcombine.low %v286_v9, %v294_v31  ;;  %v15504_v33 = vcombine.high %v2120_v15, %v2124_v14 }
 0x26e   :  { %9289 = vmatprep.subr.bf16.mxu0 %v14706_v57  ;;  %8995 = vmatmul.mubr.bf16.gmra.mrb[40].mxu1 %v19257_v32  ;;  %v2116_v57 = vld [vmem:[#allocation5 + $0x19e8] sm:$0xff]  ;;  %v806_v32 = vcombine.high %v286_v9, %v294_v31 }
 0x26f   :  { %9064 = vmatpush1.bf16.msra.mxu1 %v15471_v44  ;;  %9004 = vmatprep.mubr.bf16.mxu1 %v19267_v27  ;;  %v1345_v44 = vld [vmem:[#allocation5 + $0x1d0] sm:$0xff]  ;;  %v15496_v2 = vcombine.high %v2112_v61, %v2116_v57  ;;  %v15495_v28 = vcombine.low %v2112_v61, %v2116_v57  ;;  %v19486_v39 = vpack.c.bf16 %v805_v36, %v789_v18  ;;  %v2136_v57 = vld [vmem:[#allocation5 + $0x1a88] sm:$0xff]  ;;  %v19490_v27 = vld [vmem:[#allocation3 + $0x638] sm:$0xff] }
 0x270   :  { %8317 = vmatmul.mubr.bf16.gmra.mrb[8].mxu0 %v19462_v41  ;;  %9065 = vmatprep.subr.bf16.mxu1 %v15480_v12  ;;  %v14730_v48 = vcombine.high %v1345_v44, %v1349_v6  ;;  %v1353_v12 = vld [vmem:[#allocation5 + $0x210] sm:$0xff]  ;;  %v350_v18 = vld [vmem:[#allocation3 + $0x6b8] sm:$0xff] }
 0x271   :  { %9290 = vmatpush1.bf16.msra.mxu0 %v14705_v22  ;;  %8326 = vmatprep.mubr.bf16.mxu0 %v19464_v30  ;;  %v19476_v22 = vpack.c.bf16 %v806_v32, %v790_v62  ;;  %v14729_v32 = vcombine.low %v1345_v44, %v1349_v6  ;;  %v1365_v61 = vld [vmem:[#allocation5 + $0x270] sm:$0xff]  ;;  %20880 = vst [vmem:[#allocation175_spill] sm:$0xff] %v19486_v39  ;;  %v2140_v44 = vld [vmem:[#allocation5 + $0x1aa8] sm:$0xff]  ;;  %v358_v36 = vld [vmem:[#allocation3 + $0x6f8] sm:$0xff] }
 0x272   :  { %9291 = vmatprep.subr.bf16.mxu0 %v14714_v47  ;;  %v1357_v47 = vld [vmem:[#allocation5 + $0x230] sm:$0xff] }
 0x273   :  { %9066 = vmatpush1.bf16.msra.mxu1 %v15479_v40  ;;  %20879 = vst [vmem:[#allocation174_spill] sm:$0xff] %v19476_v22  ;;  %v310_v40 = vld [vmem:[#allocation3 + $0x578] sm:$0xff]  ;;  %v14737_v9 = vcombine.low %v1353_v12, %v1357_v47 }
 0x274   :  { %9067 = vmatprep.subr.bf16.mxu1 %v15488_v63  ;;  %v2128_v63 = vld [vmem:[#allocation5 + $0x1a48] sm:$0xff]  ;;  %v822_v62 = vcombine.high %v19478_v49, %v310_v40  ;;  %v821_v14 = vcombine.low %v19478_v49, %v310_v40  ;;  %v15519_v40 = vcombine.low %v2136_v57, %v2140_v44 }
 0x275   :  { %9292 = vmatpush1.bf16.msra.mxu0 %v14713_v17  ;;  %v14738_v17 = vcombine.high %v1353_v12, %v1357_v47  ;;  %v837_v12 = vcombine.low %v318_v56, %v326_v10  ;;  %v15520_v47 = vcombine.high %v2136_v57, %v2140_v44 }
 0x276   :  { %9293 = vmatprep.subr.bf16.mxu0 %v14722_v20  ;;  %9005 = vmatmul.mubr.bf16.gmra.mrb[44].mxu1 %v19280_v50  ;;  %v2132_v20 = vld [vmem:[#allocation5 + $0x1a68] sm:$0xff]  ;;  %v838_v50 = vcombine.high %v318_v56, %v326_v10 }
 0x277   :  { %9068 = vmatpush1.bf16.msra.mxu1 %v15487_v26  ;;  %9014 = vmatprep.mubr.bf16.mxu1 %v19282_v59  ;;  %v1361_v26 = vld [vmem:[#allocation5 + $0x250] sm:$0xff]  ;;  %v15512_v31 = vcombine.high %v2128_v63, %v2132_v20  ;;  %v15511_v15 = vcombine.low %v2128_v63, %v2132_v20  ;;  %v19498_v49 = vpack.c.bf16 %v837_v12, %v821_v14  ;;  %v2152_v20 = vld [vmem:[#allocation5 + $0x1b08] sm:$0xff]  ;;  %v366_v59 = vld [vmem:[#allocation3 + $0x738] sm:$0xff] }
 0x278   :  { %8327 = vmatmul.mubr.bf16.gmra.mrb[12].mxu0 %v19474_v29  ;;  %9069 = vmatprep.subr.bf16.mxu1 %v15496_v2  ;;  %v14746_v6 = vcombine.high %v1361_v26, %v1365_v61  ;;  %v1369_v2 = vld [vmem:[#allocation5 + $0x290] sm:$0xff]  ;;  %v390_v14 = vld [vmem:[#allocation3 + $0x7f8] sm:$0xff] }
 0x279   :  { %9294 = vmatpush1.bf16.msra.mxu0 %v14721_v16  ;;  %8336 = vmatprep.mubr.bf16.mxu0 %v19476_v22  ;;  %v19488_v16 = vpack.c.bf16 %v838_v50, %v822_v62  ;;  %v14745_v50 = vcombine.low %v1361_v26, %v1365_v61  ;;  %v1381_v63 = vld [vmem:[#allocation5 + $0x2f0] sm:$0xff]  ;;  %20882 = vst [vmem:[#allocation177_spill] sm:$0xff] %v19498_v49  ;;  %v2156_v26 = vld [vmem:[#allocation5 + $0x1b28] sm:$0xff] }
 0x27a   :  { %9295 = vmatprep.subr.bf16.mxu0 %v14730_v48  ;;  %v1373_v48 = vld [vmem:[#allocation5 + $0x2b0] sm:$0xff] }
 0x27b   :  { %9070 = vmatpush1.bf16.msra.mxu1 %v15495_v28  ;;  %20881 = vst [vmem:[#allocation176_spill] sm:$0xff] %v19488_v16  ;;  %v342_v28 = vld [vmem:[#allocation3 + $0x678] sm:$0xff]  ;;  %v14753_v56 = vcombine.low %v1369_v2, %v1373_v48 }
 0x27c   :  { %9071 = vmatprep.subr.bf16.mxu1 %v15504_v33  ;;  %v2144_v33 = vld [vmem:[#allocation5 + $0x1ac8] sm:$0xff]  ;;  %v854_v62 = vcombine.high %v19490_v27, %v342_v28  ;;  %v853_v44 = vcombine.low %v19490_v27, %v342_v28  ;;  %v15535_v27 = vcombine.low %v2152_v20, %v2156_v26 }
 0x27d   :  { %9296 = vmatpush1.bf16.msra.mxu0 %v14729_v32  ;;  %v14754_v32 = vcombine.high %v1369_v2, %v1373_v48  ;;  %v869_v2 = vcombine.low %v350_v18, %v358_v36 }
 0x27e   :  { %9297 = vmatprep.subr.bf16.mxu0 %v14738_v17  ;;  %9015 = vmatmul.mubr.bf16.gmra.mrb[48].mxu1 %v19294_v24  ;;  %v2148_v17 = vld [vmem:[#allocation5 + $0x1ae8] sm:$0xff]  ;;  %v870_v24 = vcombine.high %v350_v18, %v358_v36 }
 0x27f   :  { %9072 = vmatpush1.bf16.msra.mxu1 %v15503_v60  ;;  %9024 = vmatprep.mubr.bf16.mxu1 %v19296_v35  ;;  %v1377_v60 = vld [vmem:[#allocation5 + $0x2d0] sm:$0xff]  ;;  %v15528_v10 = vcombine.high %v2144_v33, %v2148_v17  ;;  %v374_v35 = vld [vmem:[#allocation3 + $0x778] sm:$0xff]  ;;  %v15527_v57 = vcombine.low %v2144_v33, %v2148_v17  ;;  %v19507_v33 = vpack.c.bf16 %v869_v2, %v853_v44  ;;  %v2176_v44 = vld [vmem:[#allocation5 + $0x1bc8] sm:$0xff] }
 0x280   :  { %8337 = vmatmul.mubr.bf16.gmra.mrb[16].mxu0 %v19486_v39  ;;  %9073 = vmatprep.subr.bf16.mxu1 %v15512_v31  ;;  %v14762_v61 = vcombine.high %v1377_v60, %v1381_v63  ;;  %v1385_v31 = vld [vmem:[#allocation5 + $0x310] sm:$0xff]  ;;  %v14761_v48 = vcombine.low %v1377_v60, %v1381_v63  ;;  %v2168_v60 = vld [vmem:[#allocation5 + $0x1b88] sm:$0xff] }
 0x281   :  { %9298 = vmatpush1.bf16.msra.mxu0 %v14737_v9  ;;  %8346 = vmatprep.mubr.bf16.mxu0 %v19488_v16  ;;  %v19500_v9 = vpack.c.bf16 %v870_v24, %v854_v62  ;;  %v15536_v24 = vcombine.high %v2152_v20, %v2156_v26  ;;  %20884 = vst [vmem:[#allocation179_spill] sm:$0xff] %v19507_v33  ;;  %v2172_v63 = vld [vmem:[#allocation5 + $0x1ba8] sm:$0xff] }
 0x282   :  { %9299 = vmatprep.subr.bf16.mxu0 %v14746_v6  ;;  %v1389_v6 = vld [vmem:[#allocation5 + $0x330] sm:$0xff]  ;;  %v2180_v2 = vld [vmem:[#allocation5 + $0x1be8] sm:$0xff] }
 0x283   :  { %9074 = vmatpush1.bf16.msra.mxu1 %v15511_v15  ;;  %20883 = vst [vmem:[#allocation178_spill] sm:$0xff] %v19500_v9  ;;  %v382_v15 = vld [vmem:[#allocation3 + $0x7b8] sm:$0xff]  ;;  %v14770_v12 = vcombine.high %v1385_v31, %v1389_v6  ;;  %v14769_v28 = vcombine.low %v1385_v31, %v1389_v6  ;;  %v15552_v31 = vcombine.high %v2168_v60, %v2172_v63 }
 0x284   :  { %9075 = vmatprep.subr.bf16.mxu1 %v15520_v47  ;;  %v2164_v47 = vld [vmem:[#allocation5 + $0x1b68] sm:$0xff]  ;;  %v902_v62 = vcombine.high %v382_v15, %v390_v14  ;;  %v901_v20 = vcombine.low %v382_v15, %v390_v14 }
 0x285   :  { %9300 = vmatpush1.bf16.msra.mxu0 %v14745_v50  ;;  %v2160_v50 = vld [vmem:[#allocation5 + $0x1b48] sm:$0xff] }
 0x286   :  { %9301 = vmatprep.subr.bf16.mxu0 %v14754_v32  ;;  %9025 = vmatmul.mubr.bf16.gmra.mrb[52].mxu1 %v19306_v51  ;;  %v886_v32 = vcombine.high %v366_v59, %v374_v35  ;;  %v1393_v51 = vld [vmem:[#allocation5 + $0x350] sm:$0xff]  ;;  %v15544_v18 = vcombine.high %v2160_v50, %v2164_v47  ;;  %v2184_v15 = vld [vmem:[#allocation5 + $0x1c08] sm:$0xff] }
 0x287   :  { %9076 = vmatpush1.bf16.msra.mxu1 %v15519_v40  ;;  %9034 = vmatprep.mubr.bf16.mxu1 %v19308_v21  ;;  %v1397_v40 = vld [vmem:[#allocation5 + $0x370] sm:$0xff]  ;;  %v2188_v14 = vld [vmem:[#allocation5 + $0x1c28] sm:$0xff] }
 0x288   :  { %8347 = vmatmul.mubr.bf16.gmra.mrb[20].mxu0 %v19498_v49  ;;  %9077 = vmatprep.subr.bf16.mxu1 %v15528_v10  ;;  %v14778_v36 = vcombine.high %v1393_v51, %v1397_v40  ;;  %v19509_v17 = vpack.c.bf16 %v902_v62, %v886_v32  ;;  %v1405_v10 = vld [vmem:[#allocation5 + $0x3b0] sm:$0xff]  ;;  %v14777_v26 = vcombine.low %v1393_v51, %v1397_v40 }
 0x289   :  { %9302 = vmatpush1.bf16.msra.mxu0 %v14753_v56  ;;  %8356 = vmatprep.mubr.bf16.mxu0 %v19500_v9  ;;  %v1401_v56 = vld [vmem:[#allocation5 + $0x390] sm:$0xff]  ;;  %v15559_v62 = vcombine.low %v2176_v44, %v2180_v2 }
 0x28a   :  { %9303 = vmatprep.subr.bf16.mxu0 %v14762_v61  ;;  %20885 = vst [vmem:[#allocation180_spill] sm:$0xff] %v19509_v17  ;;  %v15543_v61 = vcombine.low %v2160_v50, %v2164_v47  ;;  %v14786_v6 = vcombine.high %v1401_v56, %v1405_v10  ;;  %v15551_v50 = vcombine.low %v2168_v60, %v2172_v63  ;;  %v1417_v47 = vld [vmem:[#allocation5 + $0x410] sm:$0xff] }
 0x28b   :  { %9078 = vmatpush1.bf16.msra.mxu1 %v15527_v57  ;;  %v885_v57 = vcombine.low %v366_v59, %v374_v35  ;;  %v14785_v59 = vcombine.low %v1401_v56, %v1405_v10  ;;  %v15560_v35 = vcombine.high %v2176_v44, %v2180_v2  ;;  %v1421_v32 = vld [vmem:[#allocation5 + $0x430] sm:$0xff]  ;;  %v15567_v10 = vcombine.low %v2184_v15, %v2188_v14  ;;  %v20888_v2 = vld [vmem:[#allocation24_spill] sm:$0xff] }
 0x28c   :  { %9079 = vmatprep.subr.bf16.mxu1 %v15536_v24  ;;  %v1413_v24 = vld [vmem:[#allocation5 + $0x3f0] sm:$0xff] }
 0x28d   :  { %9304 = vmatpush1.bf16.msra.mxu0 %v14761_v48  ;;  %v1409_v48 = vld [vmem:[#allocation5 + $0x3d0] sm:$0xff] }
 0x28e   :  { %9305 = vmatprep.subr.bf16.mxu0 %v14770_v12  ;;  %9035 = vmatmul.mubr.bf16.gmra.mrb[56].mxu1 %v19318_v13  ;;  %v19515_v12 = vpack.c.bf16 %v901_v20, %v885_v57  ;;  %v14794_v51 = vcombine.high %v1409_v48, %v1413_v24  ;;  %v14793_v40 = vcombine.low %v1409_v48, %v1413_v24  ;;  %v20887_v60 = vld [vmem:[#allocation22_spill] sm:$0xff] }
 0x28f   :  { %9080 = vmatpush1.bf16.msra.mxu1 %v15535_v27  ;;  %9044 = vmatprep.mubr.bf16.mxu1 %v19320_v19  ;;  %v15568_v27 = vcombine.high %v2184_v15, %v2188_v14  ;;  %v1425_v63 = vld [vmem:[#allocation5 + $0x450] sm:$0xff] }
 0x290   :  { %8357 = vmatmul.mubr.bf16.gmra.mrb[24].mxu0 %v19507_v33  ;;  %9081 = vmatprep.subr.bf16.mxu1 %v15544_v18  ;;  %20886 = vst [vmem:[#allocation181_spill] sm:$0xff] %v19515_v12  ;;  %v2192_v18 = vld [vmem:[#allocation5 + $0x1c48] sm:$0xff]  ;;  %v1429_v56 = vld [vmem:[#allocation5 + $0x470] sm:$0xff] }
 0x291   :  { %9306 = vmatpush1.bf16.msra.mxu0 %v14769_v28  ;;  %8366 = vmatprep.mubr.bf16.mxu0 %v19509_v17  ;;  %v14802_v28 = vcombine.high %v1417_v47, %v1421_v32  ;;  %v14810_v20 = vcombine.high %v1425_v63, %v1429_v56  ;;  %v1437_v44 = vld [vmem:[#allocation5 + $0x4b0] sm:$0xff]  ;;  %v14809_v24 = vcombine.low %v1425_v63, %v1429_v56  ;;  %v20890_v56 = vld [vmem:[#allocation28_spill] sm:$0xff] }
 0x292   :  { %9307 = vmatprep.subr.bf16.mxu0 %v14778_v36  ;;  %v2196_v36 = vld [vmem:[#allocation5 + $0x1c68] sm:$0xff]  ;;  %v20889_v15 = vld [vmem:[#allocation26_spill] sm:$0xff] }
 0x293   :  { %9082 = vmatpush1.bf16.msra.mxu1 %v15543_v61  ;;  %v14801_v61 = vcombine.low %v1417_v47, %v1421_v32  ;;  %v15576_v57 = vcombine.high %v2192_v18, %v2196_v36  ;;  %v15575_v48 = vcombine.low %v2192_v18, %v2196_v36  ;;  %v1441_v14 = vld [vmem:[#allocation5 + $0x4d0] sm:$0xff]  ;;  %v2220_v18 = vld [vmem:[#allocation5 + $0x1d28] sm:$0xff] }
 0x294   :  { %9083 = vmatprep.subr.bf16.mxu1 %v15552_v31  ;;  %v2204_v31 = vld [vmem:[#allocation5 + $0x1ca8] sm:$0xff]  ;;  %v1445_v47 = vld [vmem:[#allocation5 + $0x4f0] sm:$0xff] }
 0x295   :  { %9308 = vmatpush1.bf16.msra.mxu0 %v14777_v26  ;;  %v2200_v26 = vld [vmem:[#allocation5 + $0x1c88] sm:$0xff]  ;;  %v1449_v36 = vld [vmem:[#allocation5 + $0x510] sm:$0xff] }
 0x296   :  { %9309 = vmatprep.subr.bf16.mxu0 %v14786_v6  ;;  %9045 = vmatmul.mubr.bf16.gmra.mrb[60].mxu1 %v19330_v1  ;;  %v1433_v6 = vld [vmem:[#allocation5 + $0x490] sm:$0xff]  ;;  %v15583_v32 = vcombine.low %v2200_v26, %v2204_v31 }
 0x297   :  { %9084 = vmatpush1.bf16.msra.mxu1 %v15551_v50  ;;  %9087 = vmatprep.mubr.bf16.mxu1 %v19332_v58  ;;  %v15584_v50 = vcombine.high %v2200_v26, %v2204_v31  ;;  %v1453_v63 = vld [vmem:[#allocation5 + $0x530] sm:$0xff]  ;;  %v2224_v26 = vld [vmem:[#allocation5 + $0x1d48] sm:$0xff] }
 0x298   :  { %8367 = vmatmul.mubr.bf16.gmra.mrb[28].mxu0 %v19515_v12  ;;  %9085 = vmatprep.subr.bf16.mxu1 %v15560_v35  ;;  %v2208_v35 = vld [vmem:[#allocation5 + $0x1cc8] sm:$0xff] }
 0x299   :  { %9310 = vmatpush1.bf16.msra.mxu0 %v14785_v59  ;;  %9313 = vmatprep.mubr.bf16.mxu0 %v20887_v60  ;;  %v14818_v59 = vcombine.high %v1433_v6, %v1437_v44  ;;  %v2228_v31 = vld [vmem:[#allocation5 + $0x1d68] sm:$0xff] }
 0x29a   :  { %9311 = vmatprep.subr.bf16.mxu0 %v14794_v51  ;;  %v2212_v51 = vld [vmem:[#allocation5 + $0x1ce8] sm:$0xff] }
 0x29b   :  { %9086 = vmatpush1.bf16.msra.mxu1 %v15559_v62  ;;  %v14817_v62 = vcombine.low %v1433_v6, %v1437_v44  ;;  %v20891_v6 = vld [vmem:[#allocation30_spill] sm:$0xff] }
 0x29c   :  { %9168 = vmatprep.subr.bf16.mxu1 %v15568_v27  ;;  %v14826_v27 = vcombine.high %v1441_v14, %v1445_v47  ;;  %v1457_v44 = vld [vmem:[#allocation5 + $0x550] sm:$0xff] }
 0x29d   :  { %9312 = vmatpush1.bf16.msra.mxu0 %v14793_v40  ;;  %v15592_v40 = vcombine.high %v2208_v35, %v2212_v51 }
 0x29e   :  { %9394 = vmatprep.subr.bf16.mxu0 %v14802_v28  ;;  %9088 = vmatmul.mubr.bf16.vlgmr.msra.gmra.mrb[32].mxu1 %v19342_v0  ;;  %v2216_v28 = vld [vmem:[#allocation5 + $0x1d08] sm:$0xff] }
 0x29f   :  { %9169 = vmatpush1.bf16.msra.mxu1 %v15567_v10  ;;  %9097 = vmatprep.mubr.bf16.mxu1 %v19344_v42  ;;  %v15591_v10 = vcombine.low %v2208_v35, %v2212_v51  ;;  %v2232_v51 = vld [vmem:[#allocation5 + $0x1d88] sm:$0xff]  ;;  %v1725_v42 = vld [vmem:[#allocation5 + $0xdb0] sm:$0xff] }
 0x2a0   :  { %9314 = vmatmul.mubr.bf16.vlgmr.msra.gmra.mrb[32].mxu0 %v20888_v2  ;;  %9170 = vmatprep.subr.bf16.mxu1 %v15576_v57  ;;  %v15600_v57 = vcombine.high %v2216_v28, %v2220_v18 }
 0x2a1   :  { %9395 = vmatpush1.bf16.msra.mxu0 %v14801_v61  ;;  %9323 = vmatprep.mubr.bf16.mxu0 %v20889_v15  ;;  %v14825_v61 = vcombine.low %v1441_v14, %v1445_v47  ;;  %v2236_v14 = vld [vmem:[#allocation5 + $0x1da8] sm:$0xff]  ;;  %v1465_v47 = vld [vmem:[#allocation5 + $0x590] sm:$0xff] }
 0x2a2   :  { %9396 = vmatprep.subr.bf16.mxu0 %v14810_v20  ;;  %v14834_v20 = vcombine.high %v1449_v36, %v1453_v63 }
 0x2a3   :  { %9171 = vmatpush1.bf16.msra.mxu1 %v15575_v48  ;;  %v1461_v48 = vld [vmem:[#allocation5 + $0x570] sm:$0xff] }
 0x2a4   :  { %9172 = vmatprep.subr.bf16.mxu1 %v15584_v50  ;;  %v14833_v50 = vcombine.low %v1449_v36, %v1453_v63  ;;  %v14842_v35 = vcombine.high %v1457_v44, %v1461_v48  ;;  %v2240_v36 = vld [vmem:[#allocation5 + $0x1dc8] sm:$0xff] }
 0x2a5   :  { %9397 = vmatpush1.bf16.msra.mxu0 %v14809_v24  ;;  %v15599_v24 = vcombine.low %v2216_v28, %v2220_v18  ;;  %v15616_v28 = vcombine.high %v2232_v51, %v2236_v14  ;;  %v2244_v63 = vld [vmem:[#allocation5 + $0x1de8] sm:$0xff] }
 0x2a6   :  { %9398 = vmatprep.subr.bf16.mxu0 %v14818_v59  ;;  %9098 = vmatmul.mubr.bf16.gmra.mrb[36].mxu1 %v19354_v45  ;;  %v15608_v59 = vcombine.high %v2224_v26, %v2228_v31 }
 0x2a7   :  { %9173 = vmatpush1.bf16.msra.mxu1 %v15583_v32  ;;  %9107 = vmatprep.mubr.bf16.mxu1 %v19356_v3  ;;  %v1469_v32 = vld [vmem:[#allocation5 + $0x5b0] sm:$0xff]  ;;  %v20923_v3 = vld [vmem:[#allocation57_spill] sm:$0xff] }
 0x2a8   :  { %9324 = vmatmul.mubr.bf16.gmra.mrb[36].mxu0 %v20890_v56  ;;  %9174 = vmatprep.subr.bf16.mxu1 %v15592_v40  ;;  %v15607_v40 = vcombine.low %v2224_v26, %v2228_v31  ;;  %v14850_v18 = vcombine.high %v1465_v47, %v1469_v32  ;;  %v15624_v26 = vcombine.high %v2240_v36, %v2244_v63 }
 0x2a9   :  { %9399 = vmatpush1.bf16.msra.mxu0 %v14817_v62  ;;  %9333 = vmatprep.mubr.bf16.mxu0 %v20891_v6  ;;  %v20892_v62 = vld [vmem:[#allocation32_spill] sm:$0xff] }
 0x2aa   :  { %9400 = vmatprep.subr.bf16.mxu0 %v14826_v27  ;;  %v14841_v27 = vcombine.low %v1457_v44, %v1461_v48  ;;  %v2248_v44 = vld [vmem:[#allocation5 + $0x1e08] sm:$0xff] }
 0x2ab   :  { %9175 = vmatpush1.bf16.msra.mxu1 %v15591_v10  ;;  %v20893_v10 = vld [vmem:[#allocation34_spill] sm:$0xff]  ;;  %v2252_v48 = vld [vmem:[#allocation5 + $0x1e28] sm:$0xff] }
 0x2ac   :  { %9176 = vmatprep.subr.bf16.mxu1 %v15600_v57  ;;  %v1477_v57 = vld [vmem:[#allocation5 + $0x5f0] sm:$0xff] }
 0x2ad   :  { %9401 = vmatpush1.bf16.msra.mxu0 %v14825_v61  ;;  %v1473_v61 = vld [vmem:[#allocation5 + $0x5d0] sm:$0xff] }
 0x2ae   :  { %9402 = vmatprep.subr.bf16.mxu0 %v14834_v20  ;;  %9108 = vmatmul.mubr.bf16.gmra.mrb[40].mxu1 %v19366_v52  ;;  %v15615_v20 = vcombine.low %v2232_v51, %v2236_v14  ;;  %v14858_v31 = vcombine.high %v1473_v61, %v1477_v57  ;;  %v15632_v51 = vcombine.high %v2248_v44, %v2252_v48 }
 0x2af   :  { %9177 = vmatpush1.bf16.msra.mxu1 %v15599_v24  ;;  %9117 = vmatprep.mubr.bf16.mxu1 %v19368_v23  ;;  %v14849_v24 = vcombine.low %v1465_v47, %v1469_v32  ;;  %v15623_v23 = vcombine.low %v2240_v36, %v2244_v63  ;;  %v2256_v47 = vld [vmem:[#allocation5 + $0x1e48] sm:$0xff] }
 0x2b0   :  { %9334 = vmatmul.mubr.bf16.gmra.mrb[40].mxu0 %v20892_v62  ;;  %9178 = vmatprep.subr.bf16.mxu1 %v15608_v59  ;;  %v1485_v59 = vld [vmem:[#allocation5 + $0x630] sm:$0xff]  ;;  %v2260_v32 = vld [vmem:[#allocation5 + $0x1e68] sm:$0xff] }
 0x2b1   :  { %9403 = vmatpush1.bf16.msra.mxu0 %v14833_v50  ;;  %9343 = vmatprep.mubr.bf16.mxu0 %v20893_v10  ;;  %v1481_v50 = vld [vmem:[#allocation5 + $0x610] sm:$0xff]  ;;  %v15640_v36 = vcombine.high %v2256_v47, %v2260_v32 }
 0x2b2   :  { %9404 = vmatprep.subr.bf16.mxu0 %v14842_v35  ;;  %v20894_v35 = vld [vmem:[#allocation36_spill] sm:$0xff]  ;;  %v14866_v14 = vcombine.high %v1481_v50, %v1485_v59 }
 0x2b3   :  { %9179 = vmatpush1.bf16.msra.mxu1 %v15607_v40  ;;  %v14857_v40 = vcombine.low %v1473_v61, %v1477_v57  ;;  %v2264_v61 = vld [vmem:[#allocation5 + $0x1e88] sm:$0xff] }
 0x2b4   :  { %9180 = vmatprep.subr.bf16.mxu1 %v15616_v28  ;;  %v1489_v28 = vld [vmem:[#allocation5 + $0x650] sm:$0xff]  ;;  %v2268_v57 = vld [vmem:[#allocation5 + $0x1ea8] sm:$0xff] }
 0x2b5   :  { %9405 = vmatpush1.bf16.msra.mxu0 %v14841_v27  ;;  %v20895_v27 = vld [vmem:[#allocation38_spill] sm:$0xff] }
 0x2b6   :  { %9406 = vmatprep.subr.bf16.mxu0 %v14850_v18  ;;  %9118 = vmatmul.mubr.bf16.gmra.mrb[44].mxu1 %v19378_v34  ;;  %v1493_v18 = vld [vmem:[#allocation5 + $0x670] sm:$0xff]  ;;  %v15631_v34 = vcombine.low %v2248_v44, %v2252_v48  ;;  %v15648_v44 = vcombine.high %v2264_v61, %v2268_v57 }
 0x2b7   :  { %9181 = vmatpush1.bf16.msra.mxu1 %v15615_v20  ;;  %9127 = vmatprep.mubr.bf16.mxu1 %v19380_v38  ;;  %v14865_v20 = vcombine.low %v1481_v50, %v1485_v59  ;;  %v14874_v63 = vcombine.high %v1489_v28, %v1493_v18  ;;  %v15639_v38 = vcombine.low %v2256_v47, %v2260_v32  ;;  %v2272_v50 = vld [vmem:[#allocation5 + $0x1ec8] sm:$0xff] }
 0x2b8   :  { %9344 = vmatmul.mubr.bf16.gmra.mrb[44].mxu0 %v20894_v35  ;;  %9182 = vmatprep.subr.bf16.mxu1 %v15624_v26  ;;  %v1501_v26 = vld [vmem:[#allocation5 + $0x6b0] sm:$0xff]  ;;  %v2276_v59 = vld [vmem:[#allocation5 + $0x1ee8] sm:$0xff] }
 0x2b9   :  { %9407 = vmatpush1.bf16.msra.mxu0 %v14849_v24  ;;  %9353 = vmatprep.mubr.bf16.mxu0 %v20895_v27  ;;  %v1497_v24 = vld [vmem:[#allocation5 + $0x690] sm:$0xff]  ;;  %v15656_v47 = vcombine.high %v2272_v50, %v2276_v59 }
 0x2ba   :  { %9408 = vmatprep.subr.bf16.mxu0 %v14858_v31  ;;  %v20896_v31 = vld [vmem:[#allocation40_spill] sm:$0xff]  ;;  %v14882_v48 = vcombine.high %v1497_v24, %v1501_v26 }
 0x2bb   :  { %9183 = vmatpush1.bf16.msra.mxu1 %v15623_v23  ;;  %v14873_v23 = vcombine.low %v1489_v28, %v1493_v18  ;;  %v2280_v28 = vld [vmem:[#allocation5 + $0x1f08] sm:$0xff] }
 0x2bc   :  { %9184 = vmatprep.subr.bf16.mxu1 %v15632_v51  ;;  %v1505_v51 = vld [vmem:[#allocation5 + $0x6d0] sm:$0xff]  ;;  %v2284_v18 = vld [vmem:[#allocation5 + $0x1f28] sm:$0xff] }
 0x2bd   :  { %9409 = vmatpush1.bf16.msra.mxu0 %v14857_v40  ;;  %v20897_v40 = vld [vmem:[#allocation42_spill] sm:$0xff] }
 0x2be   :  { %9410 = vmatprep.subr.bf16.mxu0 %v14866_v14  ;;  %9128 = vmatmul.mubr.bf16.gmra.mrb[48].mxu1 %v19390_v11  ;;  %v1509_v14 = vld [vmem:[#allocation5 + $0x6f0] sm:$0xff]  ;;  %v15647_v11 = vcombine.low %v2264_v61, %v2268_v57  ;;  %v15664_v61 = vcombine.high %v2280_v28, %v2284_v18 }
 0x2bf   :  { %9185 = vmatpush1.bf16.msra.mxu1 %v15631_v34  ;;  %9137 = vmatprep.mubr.bf16.mxu1 %v19392_v7  ;;  %v14881_v34 = vcombine.low %v1497_v24, %v1501_v26  ;;  %v14890_v32 = vcombine.high %v1505_v51, %v1509_v14  ;;  %v15655_v7 = vcombine.low %v2272_v50, %v2276_v59  ;;  %v2288_v24 = vld [vmem:[#allocation5 + $0x1f48] sm:$0xff] }
 0x2c0   :  { %9354 = vmatmul.mubr.bf16.gmra.mrb[48].mxu0 %v20896_v31  ;;  %9186 = vmatprep.subr.bf16.mxu1 %v15640_v36  ;;  %v1517_v36 = vld [vmem:[#allocation5 + $0x730] sm:$0xff]  ;;  %v2292_v26 = vld [vmem:[#allocation5 + $0x1f68] sm:$0xff] }
 0x2c1   :  { %9411 = vmatpush1.bf16.msra.mxu0 %v14865_v20  ;;  %9363 = vmatprep.mubr.bf16.mxu0 %v20897_v40  ;;  %v1513_v20 = vld [vmem:[#allocation5 + $0x710] sm:$0xff]  ;;  %v15672_v50 = vcombine.high %v2288_v24, %v2292_v26 }
 0x2c2   :  { %9412 = vmatprep.subr.bf16.mxu0 %v14874_v63  ;;  %v20898_v63 = vld [vmem:[#allocation44_spill] sm:$0xff]  ;;  %v14898_v57 = vcombine.high %v1513_v20, %v1517_v36 }
 0x2c3   :  { %9187 = vmatpush1.bf16.msra.mxu1 %v15639_v38  ;;  %v14889_v38 = vcombine.low %v1505_v51, %v1509_v14  ;;  %v2296_v51 = vld [vmem:[#allocation5 + $0x1f88] sm:$0xff] }
 0x2c4   :  { %9188 = vmatprep.subr.bf16.mxu1 %v15648_v44  ;;  %v1521_v44 = vld [vmem:[#allocation5 + $0x750] sm:$0xff]  ;;  %v2300_v14 = vld [vmem:[#allocation5 + $0x1fa8] sm:$0xff] }
 0x2c5   :  { %9413 = vmatpush1.bf16.msra.mxu0 %v14873_v23  ;;  %v20899_v23 = vld [vmem:[#allocation46_spill] sm:$0xff] }
 0x2c6   :  { %9414 = vmatprep.subr.bf16.mxu0 %v14882_v48  ;;  %9138 = vmatmul.mubr.bf16.gmra.mrb[52].mxu1 %v19402_v25  ;;  %v1525_v48 = vld [vmem:[#allocation5 + $0x770] sm:$0xff]  ;;  %v15663_v25 = vcombine.low %v2280_v28, %v2284_v18  ;;  %v15680_v28 = vcombine.high %v2296_v51, %v2300_v14 }
 0x2c7   :  { %9189 = vmatpush1.bf16.msra.mxu1 %v15647_v11  ;;  %9147 = vmatprep.mubr.bf16.mxu1 %v19404_v53  ;;  %v14897_v11 = vcombine.low %v1513_v20, %v1517_v36  ;;  %v14906_v59 = vcombine.high %v1521_v44, %v1525_v48  ;;  %v15671_v53 = vcombine.low %v2288_v24, %v2292_v26  ;;  %v2304_v20 = vld [vmem:[#allocation5 + $0x1fc8] sm:$0xff] }
 0x2c8   :  { %9364 = vmatmul.mubr.bf16.gmra.mrb[52].mxu0 %v20898_v63  ;;  %9190 = vmatprep.subr.bf16.mxu1 %v15656_v47  ;;  %v1533_v47 = vld [vmem:[#allocation5 + $0x7b0] sm:$0xff]  ;;  %v2308_v36 = vld [vmem:[#allocation5 + $0x1fe8] sm:$0xff] }
 0x2c9   :  { %9415 = vmatpush1.bf16.msra.mxu0 %v14881_v34  ;;  %9373 = vmatprep.mubr.bf16.mxu0 %v20899_v23  ;;  %v1529_v34 = vld [vmem:[#allocation5 + $0x790] sm:$0xff]  ;;  %v15688_v24 = vcombine.high %v2304_v20, %v2308_v36 }
 0x2ca   :  { %9416 = vmatprep.subr.bf16.mxu0 %v14890_v32  ;;  %v20900_v32 = vld [vmem:[#allocation48_spill] sm:$0xff]  ;;  %v14914_v18 = vcombine.high %v1529_v34, %v1533_v47 }
 0x2cb   :  { %9191 = vmatpush1.bf16.msra.mxu1 %v15655_v7  ;;  %v14905_v7 = vcombine.low %v1521_v44, %v1525_v48  ;;  %v1290_v44 = vld [vmem:[#allocation5 + $0x18] sm:$0xff] }
 0x2cc   :  { %9192 = vmatprep.subr.bf16.mxu1 %v15664_v61  ;;  %v1537_v61 = vld [vmem:[#allocation5 + $0x7d0] sm:$0xff]  ;;  %v1294_v48 = vld [vmem:[#allocation5 + $0x38] sm:$0xff] }
 0x2cd   :  { %9417 = vmatpush1.bf16.msra.mxu0 %v14889_v38  ;;  %v20901_v38 = vld [vmem:[#allocation50_spill] sm:$0xff] }
 0x2ce   :  { %9418 = vmatprep.subr.bf16.mxu0 %v14898_v57  ;;  %9148 = vmatmul.mubr.bf16.gmra.mrb[56].mxu1 %v19414_v46  ;;  %v1541_v57 = vld [vmem:[#allocation5 + $0x7f0] sm:$0xff]  ;;  %v15679_v46 = vcombine.low %v2296_v51, %v2300_v14  ;;  %v14676_v51 = vcombine.high %v1290_v44, %v1294_v48 }
 0x2cf   :  { %9193 = vmatpush1.bf16.msra.mxu1 %v15663_v25  ;;  %9157 = vmatprep.mubr.bf16.mxu1 %v19416_v55  ;;  %v14913_v25 = vcombine.low %v1529_v34, %v1533_v47  ;;  %v14922_v26 = vcombine.high %v1537_v61, %v1541_v57  ;;  %v15687_v55 = vcombine.low %v2304_v20, %v2308_v36  ;;  %v1298_v34 = vld [vmem:[#allocation5 + $0x58] sm:$0xff] }
 0x2d0   :  { %9374 = vmatmul.mubr.bf16.gmra.mrb[56].mxu0 %v20900_v32  ;;  %9194 = vmatprep.subr.bf16.mxu1 %v15672_v50  ;;  %v1549_v50 = vld [vmem:[#allocation5 + $0x830] sm:$0xff]  ;;  %v1302_v47 = vld [vmem:[#allocation5 + $0x78] sm:$0xff] }
 0x2d1   :  { %9419 = vmatpush1.bf16.msra.mxu0 %v14897_v11  ;;  %9383 = vmatprep.mubr.bf16.mxu0 %v20901_v38  ;;  %v1545_v11 = vld [vmem:[#allocation5 + $0x810] sm:$0xff]  ;;  %v1306_v36 = vld [vmem:[#allocation5 + $0x98] sm:$0xff] }
 0x2d2   :  { %9420 = vmatprep.subr.bf16.mxu0 %v14906_v59  ;;  %v20902_v59 = vld [vmem:[#allocation52_spill] sm:$0xff]  ;;  %v14930_v14 = vcombine.high %v1545_v11, %v1549_v50  ;;  %v14929_v52 = vcombine.low %v1545_v11, %v1549_v50  ;;  %v1318_v11 = vld [vmem:[#allocation5 + $0xf8] sm:$0xff] }
 0x2d3   :  { %9195 = vmatpush1.bf16.msra.mxu1 %v15671_v53  ;;  %v14921_v53 = vcombine.low %v1537_v61, %v1541_v57  ;;  %v1310_v61 = vld [vmem:[#allocation5 + $0xb8] sm:$0xff]  ;;  %v1561_v57 = vld [vmem:[#allocation5 + $0x890] sm:$0xff] }
 0x2d4   :  { %9196 = vmatprep.subr.bf16.mxu1 %v15680_v28  ;;  %v1553_v28 = vld [vmem:[#allocation5 + $0x850] sm:$0xff]  ;;  %v20905_v50 = vld [vmem:[#allocation27_spill] sm:$0xff] }
 0x2d5   :  { %9421 = vmatpush1.bf16.msra.mxu0 %v14905_v7  ;;  %v20903_v7 = vld [vmem:[#allocation23_spill] sm:$0xff] }
 0x2d6   :  { %9422 = vmatprep.subr.bf16.mxu0 %v14914_v18  ;;  %9158 = vmatmul.mubr.bf16.gmra.mrb[60].mxu1 %v19426_v8  ;;  %v1557_v18 = vld [vmem:[#allocation5 + $0x870] sm:$0xff]  ;;  %v14675_v8 = vcombine.low %v1290_v44, %v1294_v48  ;;  %v1314_v48 = vld [vmem:[#allocation5 + $0xd8] sm:$0xff] }
 0x2d7   :  { %9197 = vmatpush1.bf16.msra.mxu1 %v15679_v46  ;;  %9200 = vmatprep.mubr.bf16.mxu1 %v19428_v43  ;;  %v14684_v46 = vcombine.high %v1298_v34, %v1302_v47  ;;  %v14938_v20 = vcombine.high %v1553_v28, %v1557_v18  ;;  %v14937_v43 = vcombine.low %v1553_v28, %v1557_v18  ;;  %v1577_v28 = vld [vmem:[#allocation5 + $0x910] sm:$0xff] }
 0x2d8   :  { %9384 = vmatmul.mubr.bf16.gmra.mrb[60].mxu0 %v20902_v59  ;;  %9198 = vmatprep.subr.bf16.mxu1 %v15688_v24  ;;  %v20904_v24 = vld [vmem:[#allocation25_spill] sm:$0xff]  ;;  %v1581_v18 = vld [vmem:[#allocation5 + $0x930] sm:$0xff] }
 0x2d9   :  { %9423 = vmatpush1.bf16.msra.mxu0 %v14913_v25  ;;  %9426 = vmatprep.mubr.bf16.mxu0 %v20903_v7  ;;  %v1565_v25 = vld [vmem:[#allocation5 + $0x8b0] sm:$0xff] }
 0x2da   :  { %9424 = vmatprep.subr.bf16.mxu0 %v14922_v26  ;;  %v14683_v26 = vcombine.low %v1298_v34, %v1302_v47  ;;  %v14946_v44 = vcombine.high %v1561_v57, %v1565_v25  ;;  %v1322_v34 = vld [vmem:[#allocation5 + $0x118] sm:$0xff] }
 0x2db   :  { %9199 = vmatpush1.bf16.msra.mxu1 %v15687_v55  ;;  %v14692_v55 = vcombine.high %v1306_v36, %v1310_v61  ;;  %v1326_v47 = vld [vmem:[#allocation5 + $0x138] sm:$0xff] }
 0x2dc   :  { %10185 = vmatprep.subr.bf16.mxu1 %v14676_v51  ;;  %v1573_v51 = vld [vmem:[#allocation5 + $0x8f0] sm:$0xff] }
 0x2dd   :  { %9425 = vmatpush1.bf16.msra.mxu0 %v14921_v53  ;;  %v1569_v53 = vld [vmem:[#allocation5 + $0x8d0] sm:$0xff] }
 0x2de   :  { %9507 = vmatprep.subr.bf16.mxu0 %v14930_v14  ;;  %9201 = vmatmul.mubr.bf16.vlgmr.msra.gmra.mrb[32].mxu1 %v19438_v5  ;;  %v14691_v14 = vcombine.low %v1306_v36, %v1310_v61  ;;  %v14945_v5 = vcombine.low %v1561_v57, %v1565_v25  ;;  %v14708_v36 = vcombine.high %v1322_v34, %v1326_v47  ;;  %v1330_v61 = vld [vmem:[#allocation5 + $0x158] sm:$0xff] }
 0x2df   :  { %10186 = vmatpush1.bf16.msra.mxu1 %v14675_v8  ;;  %9210 = vmatprep.mubr.bf16.mxu1 %v19440_v4  ;;  %v14700_v8 = vcombine.high %v1314_v48, %v1318_v11  ;;  %v14953_v4 = vcombine.low %v1569_v53, %v1573_v51  ;;  %v1334_v57 = vld [vmem:[#allocation5 + $0x178] sm:$0xff] }
 0x2e0   :  { %9427 = vmatmul.mubr.bf16.vlgmr.msra.gmra.mrb[32].mxu0 %v20904_v24  ;;  %10187 = vmatprep.subr.bf16.mxu1 %v14684_v46  ;;  %v20906_v46 = vld [vmem:[#allocation29_spill] sm:$0xff]  ;;  %v20907_v25 = vld [vmem:[#allocation31_spill] sm:$0xff] }
 0x2e1   :  { %9508 = vmatpush1.bf16.msra.mxu0 %v14929_v52  ;;  %9436 = vmatprep.mubr.bf16.mxu0 %v20905_v50  ;;  %v14954_v52 = vcombine.high %v1569_v53, %v1573_v51  ;;  %v1342_v53 = vld [vmem:[#allocation5 + $0x1b8] sm:$0xff]  ;;  %v1593_v51 = vld [vmem:[#allocation5 + $0x990] sm:$0xff] }
 0x2e2   :  { %9509 = vmatprep.subr.bf16.mxu0 %v14938_v20  ;;  %v14699_v20 = vcombine.low %v1314_v48, %v1318_v11  ;;  %v14716_v48 = vcombine.high %v1330_v61, %v1334_v57  ;;  %v1338_v11 = vld [vmem:[#allocation5 + $0x198] sm:$0xff] }
 0x2e3   :  { %10188 = vmatpush1.bf16.msra.mxu1 %v14683_v26  ;;  %v1585_v26 = vld [vmem:[#allocation5 + $0x950] sm:$0xff] }
 0x2e4   :  { %10189 = vmatprep.subr.bf16.mxu1 %v14692_v55  ;;  %v1589_v55 = vld [vmem:[#allocation5 + $0x970] sm:$0xff] }
 0x2e5   :  { %9510 = vmatpush1.bf16.msra.mxu0 %v14937_v43  ;;  %v14962_v43 = vcombine.high %v1577_v28, %v1581_v18 }
 0x2e6   :  { %9511 = vmatprep.subr.bf16.mxu0 %v14946_v44  ;;  %9211 = vmatmul.mubr.bf16.gmra.mrb[36].mxu1 %v19450_v54  ;;  %v14707_v44 = vcombine.low %v1322_v34, %v1326_v47  ;;  %v14961_v54 = vcombine.low %v1577_v28, %v1581_v18  ;;  %v14724_v34 = vcombine.high %v1338_v11, %v1342_v53  ;;  %v1346_v47 = vld [vmem:[#allocation5 + $0x1d8] sm:$0xff] }
 0x2e7   :  { %10190 = vmatpush1.bf16.msra.mxu1 %v14691_v14  ;;  %9220 = vmatprep.mubr.bf16.mxu1 %v19452_v37  ;;  %v1597_v14 = vld [vmem:[#allocation5 + $0x9b0] sm:$0xff]  ;;  %v14969_v37 = vcombine.low %v1585_v26, %v1589_v55  ;;  %v1350_v28 = vld [vmem:[#allocation5 + $0x1f8] sm:$0xff] }
 0x2e8   :  { %9437 = vmatmul.mubr.bf16.gmra.mrb[36].mxu0 %v20906_v46  ;;  %10191 = vmatprep.subr.bf16.mxu1 %v14700_v8  ;;  %v20908_v8 = vld [vmem:[#allocation33_spill] sm:$0xff]  ;;  %v20909_v18 = vld [vmem:[#allocation35_spill] sm:$0xff] }
 0x2e9   :  { %9512 = vmatpush1.bf16.msra.mxu0 %v14945_v5  ;;  %9446 = vmatprep.mubr.bf16.mxu0 %v20907_v25  ;;  %v14970_v5 = vcombine.high %v1585_v26, %v1589_v55  ;;  %v1358_v26 = vld [vmem:[#allocation5 + $0x238] sm:$0xff]  ;;  %v1609_v55 = vld [vmem:[#allocation5 + $0xa10] sm:$0xff] }
 0x2ea   :  { %9513 = vmatprep.subr.bf16.mxu0 %v14954_v52  ;;  %v14715_v52 = vcombine.low %v1330_v61, %v1334_v57  ;;  %v14732_v61 = vcombine.high %v1346_v47, %v1350_v28  ;;  %v1354_v57 = vld [vmem:[#allocation5 + $0x218] sm:$0xff] }
 0x2eb   :  { %10192 = vmatpush1.bf16.msra.mxu1 %v14699_v20  ;;  %v1601_v20 = vld [vmem:[#allocation5 + $0x9d0] sm:$0xff] }
 0x2ec   :  { %10193 = vmatprep.subr.bf16.mxu1 %v14708_v36  ;;  %v1605_v36 = vld [vmem:[#allocation5 + $0x9f0] sm:$0xff] }
 0x2ed   :  { %9514 = vmatpush1.bf16.msra.mxu0 %v14953_v4  ;;  %v14978_v4 = vcombine.high %v1593_v51, %v1597_v14 }
 0x2ee   :  { %9515 = vmatprep.subr.bf16.mxu0 %v14962_v43  ;;  %9221 = vmatmul.mubr.bf16.gmra.mrb[40].mxu1 %v19462_v41  ;;  %v14723_v43 = vcombine.low %v1338_v11, %v1342_v53  ;;  %v14977_v41 = vcombine.low %v1593_v51, %v1597_v14  ;;  %v14740_v11 = vcombine.high %v1354_v57, %v1358_v26  ;;  %v1362_v53 = vld [vmem:[#allocation5 + $0x258] sm:$0xff] }
 0x2ef   :  { %10194 = vmatpush1.bf16.msra.mxu1 %v14707_v44  ;;  %9230 = vmatprep.mubr.bf16.mxu1 %v19464_v30  ;;  %v1613_v44 = vld [vmem:[#allocation5 + $0xa30] sm:$0xff]  ;;  %v14985_v30 = vcombine.low %v1601_v20, %v1605_v36  ;;  %v1366_v51 = vld [vmem:[#allocation5 + $0x278] sm:$0xff] }
 0x2f0   :  { %9447 = vmatmul.mubr.bf16.gmra.mrb[40].mxu0 %v20908_v8  ;;  %10195 = vmatprep.subr.bf16.mxu1 %v14716_v48  ;;  %v20910_v48 = vld [vmem:[#allocation37_spill] sm:$0xff]  ;;  %v20911_v14 = vld [vmem:[#allocation39_spill] sm:$0xff] }
 0x2f1   :  { %9516 = vmatpush1.bf16.msra.mxu0 %v14961_v54  ;;  %9456 = vmatprep.mubr.bf16.mxu0 %v20909_v18  ;;  %v14986_v54 = vcombine.high %v1601_v20, %v1605_v36  ;;  %v1374_v20 = vld [vmem:[#allocation5 + $0x2b8] sm:$0xff]  ;;  %v1625_v36 = vld [vmem:[#allocation5 + $0xa90] sm:$0xff] }
 0x2f2   :  { %9517 = vmatprep.subr.bf16.mxu0 %v14970_v5  ;;  %v14731_v5 = vcombine.low %v1346_v47, %v1350_v28  ;;  %v14748_v47 = vcombine.high %v1362_v53, %v1366_v51  ;;  %v1370_v28 = vld [vmem:[#allocation5 + $0x298] sm:$0xff] }
 0x2f3   :  { %10196 = vmatpush1.bf16.msra.mxu1 %v14715_v52  ;;  %v1617_v52 = vld [vmem:[#allocation5 + $0xa50] sm:$0xff] }
 0x2f4   :  { %10197 = vmatprep.subr.bf16.mxu1 %v14724_v34  ;;  %v1621_v34 = vld [vmem:[#allocation5 + $0xa70] sm:$0xff] }
 0x2f5   :  { %9518 = vmatpush1.bf16.msra.mxu0 %v14969_v37  ;;  %v14994_v37 = vcombine.high %v1609_v55, %v1613_v44 }
 0x2f6   :  { %9519 = vmatprep.subr.bf16.mxu0 %v14978_v4  ;;  %9231 = vmatmul.mubr.bf16.gmra.mrb[44].mxu1 %v19474_v29  ;;  %v14739_v4 = vcombine.low %v1354_v57, %v1358_v26  ;;  %v14993_v29 = vcombine.low %v1609_v55, %v1613_v44  ;;  %v14756_v57 = vcombine.high %v1370_v28, %v1374_v20  ;;  %v1378_v26 = vld [vmem:[#allocation5 + $0x2d8] sm:$0xff] }
 0x2f7   :  { %10198 = vmatpush1.bf16.msra.mxu1 %v14723_v43  ;;  %9240 = vmatprep.mubr.bf16.mxu1 %v19476_v22  ;;  %v1629_v43 = vld [vmem:[#allocation5 + $0xab0] sm:$0xff]  ;;  %v15001_v22 = vcombine.low %v1617_v52, %v1621_v34  ;;  %v1382_v55 = vld [vmem:[#allocation5 + $0x2f8] sm:$0xff] }
 0x2f8   :  { %9457 = vmatmul.mubr.bf16.gmra.mrb[44].mxu0 %v20910_v48  ;;  %10199 = vmatprep.subr.bf16.mxu1 %v14732_v61  ;;  %v20912_v61 = vld [vmem:[#allocation41_spill] sm:$0xff]  ;;  %v20913_v44 = vld [vmem:[#allocation43_spill] sm:$0xff] }
 0x2f9   :  { %9520 = vmatpush1.bf16.msra.mxu0 %v14977_v41  ;;  %9466 = vmatprep.mubr.bf16.mxu0 %v20911_v14  ;;  %v15002_v41 = vcombine.high %v1617_v52, %v1621_v34  ;;  %v1390_v52 = vld [vmem:[#allocation5 + $0x338] sm:$0xff]  ;;  %v1641_v34 = vld [vmem:[#allocation5 + $0xb10] sm:$0xff] }
 0x2fa   :  { %9521 = vmatprep.subr.bf16.mxu0 %v14986_v54  ;;  %v14747_v54 = vcombine.low %v1362_v53, %v1366_v51  ;;  %v14764_v53 = vcombine.high %v1378_v26, %v1382_v55  ;;  %v1386_v51 = vld [vmem:[#allocation5 + $0x318] sm:$0xff] }
 0x2fb   :  { %10200 = vmatpush1.bf16.msra.mxu1 %v14731_v5  ;;  %v1633_v5 = vld [vmem:[#allocation5 + $0xad0] sm:$0xff] }
 0x2fc   :  { %10201 = vmatprep.subr.bf16.mxu1 %v14740_v11  ;;  %v1637_v11 = vld [vmem:[#allocation5 + $0xaf0] sm:$0xff] }
 0x2fd   :  { %9522 = vmatpush1.bf16.msra.mxu0 %v14985_v30  ;;  %v15010_v30 = vcombine.high %v1625_v36, %v1629_v43 }
 0x2fe   :  { %9523 = vmatprep.subr.bf16.mxu0 %v14994_v37  ;;  %9241 = vmatmul.mubr.bf16.gmra.mrb[48].mxu1 %v19486_v39  ;;  %v14755_v37 = vcombine.low %v1370_v28, %v1374_v20  ;;  %v15009_v39 = vcombine.low %v1625_v36, %v1629_v43  ;;  %v14772_v28 = vcombine.high %v1386_v51, %v1390_v52  ;;  %v1394_v20 = vld [vmem:[#allocation5 + $0x358] sm:$0xff] }
 0x2ff   :  { %10202 = vmatpush1.bf16.msra.mxu1 %v14739_v4  ;;  %9250 = vmatprep.mubr.bf16.mxu1 %v19488_v16  ;;  %v1645_v4 = vld [vmem:[#allocation5 + $0xb30] sm:$0xff]  ;;  %v15017_v16 = vcombine.low %v1633_v5, %v1637_v11  ;;  %v1398_v36 = vld [vmem:[#allocation5 + $0x378] sm:$0xff] }
 0x300   :  { %9467 = vmatmul.mubr.bf16.gmra.mrb[48].mxu0 %v20912_v61  ;;  %10203 = vmatprep.subr.bf16.mxu1 %v14748_v47  ;;  %v20914_v47 = vld [vmem:[#allocation45_spill] sm:$0xff]  ;;  %v20915_v43 = vld [vmem:[#allocation47_spill] sm:$0xff] }
 0x301   :  { %9524 = vmatpush1.bf16.msra.mxu0 %v14993_v29  ;;  %9476 = vmatprep.mubr.bf16.mxu0 %v20913_v44  ;;  %v15018_v29 = vcombine.high %v1633_v5, %v1637_v11  ;;  %v1406_v5 = vld [vmem:[#allocation5 + $0x3b8] sm:$0xff]  ;;  %v1657_v11 = vld [vmem:[#allocation5 + $0xb90] sm:$0xff] }
 0x302   :  { %9525 = vmatprep.subr.bf16.mxu0 %v15002_v41  ;;  %v14763_v41 = vcombine.low %v1378_v26, %v1382_v55  ;;  %v14780_v26 = vcombine.high %v1394_v20, %v1398_v36  ;;  %v1402_v55 = vld [vmem:[#allocation5 + $0x398] sm:$0xff] }
 0x303   :  { %10204 = vmatpush1.bf16.msra.mxu1 %v14747_v54  ;;  %v1649_v54 = vld [vmem:[#allocation5 + $0xb50] sm:$0xff] }
 0x304   :  { %10205 = vmatprep.subr.bf16.mxu1 %v14756_v57  ;;  %v1653_v57 = vld [vmem:[#allocation5 + $0xb70] sm:$0xff] }
 0x305   :  { %9526 = vmatpush1.bf16.msra.mxu0 %v15001_v22  ;;  %v15026_v22 = vcombine.high %v1641_v34, %v1645_v4 }
 0x306   :  { %9527 = vmatprep.subr.bf16.mxu0 %v15010_v30  ;;  %9251 = vmatmul.mubr.bf16.gmra.mrb[52].mxu1 %v19498_v49  ;;  %v14771_v30 = vcombine.low %v1386_v51, %v1390_v52  ;;  %v15025_v49 = vcombine.low %v1641_v34, %v1645_v4  ;;  %v14788_v51 = vcombine.high %v1402_v55, %v1406_v5  ;;  %v1410_v52 = vld [vmem:[#allocation5 + $0x3d8] sm:$0xff] }
 0x307   :  { %10206 = vmatpush1.bf16.msra.mxu1 %v14755_v37  ;;  %9260 = vmatprep.mubr.bf16.mxu1 %v19500_v9  ;;  %v1661_v37 = vld [vmem:[#allocation5 + $0xbb0] sm:$0xff]  ;;  %v15033_v9 = vcombine.low %v1649_v54, %v1653_v57  ;;  %v1414_v34 = vld [vmem:[#allocation5 + $0x3f8] sm:$0xff] }
 0x308   :  { %9477 = vmatmul.mubr.bf16.gmra.mrb[52].mxu0 %v20914_v47  ;;  %10207 = vmatprep.subr.bf16.mxu1 %v14764_v53  ;;  %v20916_v53 = vld [vmem:[#allocation49_spill] sm:$0xff]  ;;  %v20917_v4 = vld [vmem:[#allocation51_spill] sm:$0xff] }
 0x309   :  { %9528 = vmatpush1.bf16.msra.mxu0 %v15009_v39  ;;  %9486 = vmatprep.mubr.bf16.mxu0 %v20915_v43  ;;  %v15034_v39 = vcombine.high %v1649_v54, %v1653_v57  ;;  %v1422_v54 = vld [vmem:[#allocation5 + $0x438] sm:$0xff]  ;;  %v1673_v57 = vld [vmem:[#allocation5 + $0xc10] sm:$0xff] }
 0x30a   :  { %9529 = vmatprep.subr.bf16.mxu0 %v15018_v29  ;;  %v14779_v29 = vcombine.low %v1394_v20, %v1398_v36  ;;  %v14796_v20 = vcombine.high %v1410_v52, %v1414_v34  ;;  %v1418_v36 = vld [vmem:[#allocation5 + $0x418] sm:$0xff] }
 0x30b   :  { %10208 = vmatpush1.bf16.msra.mxu1 %v14763_v41  ;;  %v1665_v41 = vld [vmem:[#allocation5 + $0xbd0] sm:$0xff] }
 0x30c   :  { %10209 = vmatprep.subr.bf16.mxu1 %v14772_v28  ;;  %v1669_v28 = vld [vmem:[#allocation5 + $0xbf0] sm:$0xff] }
 0x30d   :  { %9530 = vmatpush1.bf16.msra.mxu0 %v15017_v16  ;;  %v15042_v16 = vcombine.high %v1657_v11, %v1661_v37 }
 0x30e   :  { %9531 = vmatprep.subr.bf16.mxu0 %v15026_v22  ;;  %9261 = vmatmul.mubr.bf16.gmra.mrb[56].mxu1 %v19507_v33  ;;  %v14787_v22 = vcombine.low %v1402_v55, %v1406_v5  ;;  %v15041_v33 = vcombine.low %v1657_v11, %v1661_v37  ;;  %v14804_v55 = vcombine.high %v1418_v36, %v1422_v54  ;;  %v1426_v11 = vld [vmem:[#allocation5 + $0x458] sm:$0xff] }
 0x30f   :  { %10210 = vmatpush1.bf16.msra.mxu1 %v14771_v30  ;;  %9270 = vmatprep.mubr.bf16.mxu1 %v19509_v17  ;;  %v1677_v30 = vld [vmem:[#allocation5 + $0xc30] sm:$0xff]  ;;  %v15049_v17 = vcombine.low %v1665_v41, %v1669_v28  ;;  %v1430_v37 = vld [vmem:[#allocation5 + $0x478] sm:$0xff] }
 0x310   :  { %9487 = vmatmul.mubr.bf16.gmra.mrb[56].mxu0 %v20916_v53  ;;  %10211 = vmatprep.subr.bf16.mxu1 %v14780_v26  ;;  %v20918_v26 = vld [vmem:[#allocation53_spill] sm:$0xff]  ;;  %v15058_v5 = vcombine.high %v1673_v57, %v1677_v30 }
 0x311   :  { %9532 = vmatpush1.bf16.msra.mxu0 %v15025_v49  ;;  %9496 = vmatprep.mubr.bf16.mxu0 %v20917_v4  ;;  %v15050_v49 = vcombine.high %v1665_v41, %v1669_v28  ;;  %v1438_v41 = vld [vmem:[#allocation5 + $0x4b8] sm:$0xff]  ;;  %v1689_v28 = vld [vmem:[#allocation5 + $0xc90] sm:$0xff] }
 0x312   :  { %9533 = vmatprep.subr.bf16.mxu0 %v15034_v39  ;;  %v14795_v39 = vcombine.low %v1410_v52, %v1414_v34  ;;  %v14812_v52 = vcombine.high %v1426_v11, %v1430_v37  ;;  %v1434_v34 = vld [vmem:[#allocation5 + $0x498] sm:$0xff] }
 0x313   :  { %10212 = vmatpush1.bf16.msra.mxu1 %v14779_v29  ;;  %v1681_v29 = vld [vmem:[#allocation5 + $0xc50] sm:$0xff] }
 0x314   :  { %10213 = vmatprep.subr.bf16.mxu1 %v14788_v51  ;;  %v1685_v51 = vld [vmem:[#allocation5 + $0xc70] sm:$0xff] }
 0x315   :  { %9534 = vmatpush1.bf16.msra.mxu0 %v15033_v9  ;;  %v20919_v9 = vld [vmem:[#allocation54_spill] sm:$0xff] }
 0x316   :  { %9535 = vmatprep.subr.bf16.mxu0 %v15042_v16  ;;  %9271 = vmatmul.mubr.bf16.gmra.mrb[60].mxu1 %v19515_v12  ;;  %v14803_v16 = vcombine.low %v1418_v36, %v1422_v54  ;;  %v15057_v12 = vcombine.low %v1673_v57, %v1677_v30  ;;  %v14820_v36 = vcombine.high %v1434_v34, %v1438_v41  ;;  %v20921_v54 = vld [vmem:[#allocation56_spill] sm:$0xff]  ;;  %v1442_v30 = vld [vmem:[#allocation5 + $0x4d8] sm:$0xff] }
 0x317   :  { %10214 = vmatpush1.bf16.msra.mxu1 %v14787_v22  ;;  %10217 = vmatprep.mubr.bf16.mxu1 %v20887_v60  ;;  %v1693_v22 = vld [vmem:[#allocation5 + $0xcb0] sm:$0xff]  ;;  %v14811_v60 = vcombine.low %v1426_v11, %v1430_v37 }
 0x318   :  { %9497 = vmatmul.mubr.bf16.gmra.mrb[60].mxu0 %v20918_v26  ;;  %10215 = vmatprep.subr.bf16.mxu1 %v14796_v20  ;;  %v20920_v20 = vld [vmem:[#allocation55_spill] sm:$0xff]  ;;  %v15074_v57 = vcombine.high %v1689_v28, %v1693_v22 }
 0x319   :  { %9536 = vmatpush1.bf16.msra.mxu0 %v15041_v33  ;;  %9539 = vmatprep.mubr.bf16.mxu0 %v20919_v9  ;;  %v15066_v33 = vcombine.high %v1681_v29, %v1685_v51 }
 0x31a   :  { %9537 = vmatprep.subr.bf16.mxu0 %v15050_v49  ;;  %v15065_v49 = vcombine.low %v1681_v29, %v1685_v51  ;;  %v1450_v29 = vld [vmem:[#allocation5 + $0x518] sm:$0xff] }
 0x31b   :  { %10216 = vmatpush1.bf16.msra.mxu1 %v14795_v39  ;;  %v1446_v39 = vld [vmem:[#allocation5 + $0x4f8] sm:$0xff] }
 0x31c   :  { %10298 = vmatprep.subr.bf16.mxu1 %v14804_v55  ;;  %v1701_v55 = vld [vmem:[#allocation5 + $0xcf0] sm:$0xff]  ;;  %v1454_v51 = vld [vmem:[#allocation5 + $0x538] sm:$0xff] }
 0x31d   :  { %9538 = vmatpush1.bf16.msra.mxu0 %v15049_v17  ;;  %v2313_v17 = vlaneseq }
 0x31e   :  { %9620 = vmatprep.subr.bf16.mxu0 %v15058_v5  ;;  %10218 = vmatmul.mubr.bf16.vlgmr.msra.gmra.mrb[64].mxu1 %v20888_v2  ;;  %v1697_v2 = vld [vmem:[#allocation5 + $0xcd0] sm:$0xff]  ;;  %v14819_v5 = vcombine.low %v1434_v34, %v1438_v41  ;;  %v14836_v41 = vcombine.high %v1450_v29, %v1454_v51 }
 0x31f   :  { %10299 = vmatpush1.bf16.msra.mxu1 %v14803_v16  ;;  %10227 = vmatprep.mubr.bf16.mxu1 %v20889_v15  ;;  %v15073_v16 = vcombine.low %v1689_v28, %v1693_v22  ;;  %v19589_v11 = vshrl.u32 %v2313_v17, 7  ;;  %v15082_v37 = vcombine.high %v1697_v2, %v1701_v55  ;;  %v14827_v15 = vcombine.low %v1442_v30, %v1446_v39  ;;  %v20925_v22 = vld [vmem:[#allocation58_spill] sm:$0xff] }
 0x320   :  { %9540 = vmatmul.mubr.bf16.vlgmr.msra.gmra.mrb[32].mxu0 %v20920_v20  ;;  %10300 = vmatprep.subr.bf16.mxu1 %v14812_v52  ;;  %v1705_v52 = vld [vmem:[#allocation5 + $0xd10] sm:$0xff]  ;;  %v15081_v34 = vcombine.low %v1697_v2, %v1701_v55 }
 0x321   :  { %9621 = vmatpush1.bf16.msra.mxu0 %v15057_v12  ;;  %9549 = vmatprep.mubr.bf16.mxu0 %v20921_v54  ;;  %v14828_v12 = vcombine.high %v1442_v30, %v1446_v39  ;;  %20922 = vst [vmem:[#allocation22_spill] sm:$0xff] %v19589_v11  ;;  %v19594_v28 = vsub.s32 0, %v19589_v11  ;;  %v19598_v17 = vsub.s32 1, %v19589_v11  ;;  %v1717_v30 = vld [vmem:[#allocation5 + $0xd70] sm:$0xff]  ;;  %v14835_v39 = vcombine.low %v1450_v29, %v1454_v51 }
 0x322   :  { %9622 = vmatprep.subr.bf16.mxu0 %v15066_v33  ;;  %v1709_v33 = vld [vmem:[#allocation5 + $0xd30] sm:$0xff] }
 0x323   :  { %10301 = vmatpush1.bf16.msra.mxu1 %v14811_v60  ;;  %20924 = vst [vmem:[#allocation24_spill] sm:$0xff] %v19594_v28  ;;  %v15090_v60 = vcombine.high %v1705_v52, %v1709_v33  ;;  %20926 = vst [vmem:[#allocation26_spill] sm:$0xff] %v19598_v17  ;;  %v15089_v2 = vcombine.low %v1705_v52, %v1709_v33  ;;  %v20928_v33 = vld [vmem:[#allocation93_spill] sm:$0xff] }
 0x324   :  { %10302 = vmatprep.subr.bf16.mxu1 %v14820_v36  ;;  %v1462_v36 = vld [vmem:[#allocation5 + $0x578] sm:$0xff] }
 0x325   :  { %9623 = vmatpush1.bf16.msra.mxu0 %v15065_v49  ;;  %v1458_v49 = vld [vmem:[#allocation5 + $0x558] sm:$0xff] }
 0x326   :  { %9624 = vmatprep.subr.bf16.mxu0 %v15074_v57  ;;  %10228 = vmatmul.mubr.bf16.gmra.mrb[68].mxu1 %v20890_v56  ;;  %v2311_v56 = vld [vmem:[#allocation7] sm:$0xff]  ;;  %v1713_v57 = vld [vmem:[#allocation5 + $0xd50] sm:$0xff]  ;;  %v14844_v55 = vcombine.high %v1458_v49, %v1462_v36  ;;  %v14843_v29 = vcombine.low %v1458_v49, %v1462_v36 }
 0x327   :  { %10303 = vmatpush1.bf16.msra.mxu1 %v14819_v5  ;;  %10237 = vmatprep.mubr.bf16.mxu1 %v20891_v6  ;;  %v19602_v5 = vrot.slane %v2311_v56, %v19594_v28  ;;  %v19605_v45 = vrot.slane %v2311_v56, %v19598_v17  ;;  %v1721_v6 = vld [vmem:[#allocation5 + $0xd90] sm:$0xff]  ;;  %v15097_v51 = vcombine.low %v1713_v57, %v1717_v30  ;;  %v1474_v56 = vld [vmem:[#allocation5 + $0x5d8] sm:$0xff] }
 0x328   :  { %9550 = vmatmul.mubr.bf16.gmra.mrb[36].mxu0 %v20923_v3  ;;  %10304 = vmatprep.subr.bf16.mxu1 %v14828_v12  ;;  %v1466_v12 = vld [vmem:[#allocation5 + $0x598] sm:$0xff]  ;;  %v1729_v49 = vld [vmem:[#allocation5 + $0xdd0] sm:$0xff]  ;;  %v15105_v19 = vcombine.low %v1721_v6, %v1725_v42 }
 0x329   :  { %9625 = vmatpush1.bf16.msra.mxu0 %v15073_v16  ;;  %9559 = vmatprep.mubr.bf16.mxu0 %v20925_v22  ;;  %v15098_v16 = vcombine.high %v1713_v57, %v1717_v30  ;;  %v1478_v17 = vld [vmem:[#allocation5 + $0x5f8] sm:$0xff]  ;;  %v1733_v36 = vld [vmem:[#allocation5 + $0xdf0] sm:$0xff] }
 0x32a   :  { %9626 = vmatprep.subr.bf16.mxu0 %v15082_v37  ;;  %v1470_v37 = vld [vmem:[#allocation5 + $0x5b8] sm:$0xff]  ;;  %v15114_v21 = vcombine.high %v1729_v49, %v1733_v36 }
 0x32b   :  { %10305 = vmatpush1.bf16.msra.mxu1 %v14827_v15  ;;  %v20927_v15 = vld [vmem:[#allocation59_spill] sm:$0xff]  ;;  %v14852_v52 = vcombine.high %v1466_v12, %v1470_v37 }
 0x32c   :  { %10306 = vmatprep.subr.bf16.mxu1 %v14836_v41  ;;  %v20929_v41 = vld [vmem:[#allocation60_spill] sm:$0xff]  ;;  %v20931_v57 = vld [vmem:[#allocation95_spill] sm:$0xff] }
 0x32d   :  { %9627 = vmatpush1.bf16.msra.mxu0 %v15081_v34  ;;  %v7508_v34 = vadd.f32 %v20928_v33, %v19602_v5  ;;  %v7512_v30 = vadd.f32 %v20931_v57, %v19602_v5  ;;  %v14851_v33 = vcombine.low %v1466_v12, %v1470_v37  ;;  %v20933_v12 = vld [vmem:[#allocation61_spill] sm:$0xff] }
 0x32e   :  { %9628 = vmatprep.subr.bf16.mxu0 %v15090_v60  ;;  %10238 = vmatmul.mubr.bf16.gmra.mrb[72].mxu1 %v20892_v62  ;;  %v15106_v60 = vcombine.high %v1721_v6, %v1725_v42  ;;  %v20930_v62 = vld [vmem:[#allocation94_spill] sm:$0xff] }
 0x32f   :  { %10307 = vmatpush1.bf16.msra.mxu1 %v14835_v39  ;;  %v7510_v28 = vadd.f32 %v20930_v62, %v19605_v45  ;;  %10247 = vmatprep.mubr.bf16.mxu1 %v20893_v10  ;;  %v20932_v39 = vld [vmem:[#allocation97_spill] sm:$0xff]  ;;  %v14860_v62 = vcombine.high %v1474_v56, %v1478_v17 }
 0x330   :  { %9560 = vmatmul.mubr.bf16.gmra.mrb[40].mxu0 %v20927_v15  ;;  %10308 = vmatprep.subr.bf16.mxu1 %v14844_v55  ;;  %v1486_v15 = vld [vmem:[#allocation5 + $0x638] sm:$0xff] }
 0x331   :  { %9629 = vmatpush1.bf16.msra.mxu0 %v15089_v2  ;;  %9569 = vmatprep.mubr.bf16.mxu0 %v20929_v41  ;;  %v7514_v2 = vadd.f32 %v20932_v39, %v19605_v45  ;;  %v1482_v41 = vld [vmem:[#allocation5 + $0x618] sm:$0xff]  ;;  %v1737_v39 = vld [vmem:[#allocation5 + $0xe10] sm:$0xff] }
 0x332   :  { %9630 = vmatprep.subr.bf16.mxu0 %v15098_v16  ;;  %v14868_v6 = vcombine.high %v1482_v41, %v1486_v15 }
 0x333   :  { %v8298_v0 = vpop.f32.mrb[0].mxu0  ;;  %10309 = vmatpush1.bf16.msra.mxu1 %v14843_v29 }
 0x334   :  { %v16015_v55 = vadd.f32 %v8298_v0, %v7508_v34  ;;  %v8300_v16 = vpop.f32.mrb[1].mxu0  ;;  %10310 = vmatprep.subr.bf16.mxu1 %v14852_v52  ;;  %v1741_v0 = vld [vmem:[#allocation5 + $0xe30] sm:$0xff] }
 0x335   :  { %v16017_v58 = vadd.f32 %v8300_v16, %v7510_v28  ;;  %v8302_v1 = vpop.f32.mrb[2].mxu0  ;;  %9631 = vmatpush1.bf16.msra.mxu0 %v15097_v51  ;;  %v14859_v28 = vcombine.low %v1474_v56, %v1478_v17  ;;  %v20934_v51 = vld [vmem:[#allocation99_spill] sm:$0xff]  ;;  %v1745_v56 = vld [vmem:[#allocation5 + $0xe50] sm:$0xff] }
 0x336   :  { %v16019_v13 = vadd.f32 %v8302_v1, %v7512_v30  ;;  %v8304_v10 = vpop.f32.mrb[3].mxu0  ;;  %9632 = vmatprep.subr.bf16.mxu0 %v15106_v60  ;;  %10248 = vmatmul.mubr.bf16.gmra.mrb[76].mxu1 %v20894_v35  ;;  %v11089_v34 = vmax.f32 %v16015_v55, 0.0  ;;  %v15113_v1 = vcombine.low %v1729_v49, %v1733_v36  ;;  %v7518_v52 = vadd.f32 %v20934_v51, %v19602_v5  ;;  %v20936_v35 = vld [vmem:[#allocation62_spill] sm:$0xff]  ;;  %v20937_v55 = vld [vmem:[#allocation100_spill] sm:$0xff]  ;;  %v20939_v36 = vld [vmem:[#allocation101_spill] sm:$0xff] }
 0x337   :  { %v16021_v57 = vadd.f32 %v8304_v10, %v7514_v2  ;;  %10311 = vmatpush1.bf16.msra.mxu1 %v14851_v33  ;;  %v11090_v42 = vmax.f32 %v16017_v58, 0.0  ;;  %v15122_v30 = vcombine.high %v1737_v39, %v1741_v0  ;;  %v1494_v2 = vld [vmem:[#allocation5 + $0x678] sm:$0xff]  ;;  %v7520_v17 = vadd.f32 %v20937_v55, %v19605_v45  ;;  %10257 = vmatprep.mubr.bf16.mxu1 %v20895_v27  ;;  %v1749_v49 = vld [vmem:[#allocation5 + $0xe70] sm:$0xff] }
 0x338   :  { %v11097_v29 = vmax.f32 %v16019_v13, 0.0  ;;  %9570 = vmatmul.mubr.bf16.gmra.mrb[44].mxu0 %v20933_v12  ;;  %10312 = vmatprep.subr.bf16.mxu1 %v14860_v62  ;;  %v1490_v13 = vld [vmem:[#allocation5 + $0x658] sm:$0xff]  ;;  %v7522_v16 = vadd.f32 %v20939_v36, %v19602_v5  ;;  %v15130_v55 = vcombine.high %v1745_v56, %v1749_v49 }
 0x339   :  { %v11098_v37 = vmax.f32 %v16021_v57, 0.0  ;;  %9633 = vmatpush1.bf16.msra.mxu0 %v15105_v19  ;;  %9579 = vmatprep.mubr.bf16.mxu0 %v20936_v35  ;;  %v14867_v57 = vcombine.low %v1482_v41, %v1486_v15  ;;  %v20941_v15 = vld [vmem:[#allocation63_spill] sm:$0xff]  ;;  %v14875_v41 = vcombine.low %v1490_v13, %v1494_v2 }
 0x33a   :  { %v19623_v60 = vpack.c.bf16 %v11097_v29, %v11089_v34  ;;  %9634 = vmatprep.subr.bf16.mxu0 %v15114_v21  ;;  %v20940_v21 = vld [vmem:[#allocation103_spill] sm:$0xff] }
 0x33b   :  { %v19628_v58 = vpack.c.bf16 %v11098_v37, %v11090_v42  ;;  %v8308_v19 = vpop.f32.mrb[4].mxu0  ;;  %v7524_v33 = vadd.f32 %v20940_v21, %v19605_v45  ;;  %10313 = vmatpush1.bf16.msra.mxu1 %v14859_v28  ;;  %v15121_v42 = vcombine.low %v1737_v39, %v1741_v0  ;;  %v14876_v37 = vcombine.high %v1490_v13, %v1494_v2  ;;  %v1753_v21 = vld [vmem:[#allocation5 + $0xe90] sm:$0xff] }
 0x33c   :  { %20935 = vst [vmem:[#allocation28_spill] sm:$0xff] %v19623_v60  ;;  %v16023_v62 = vadd.f32 %v8308_v19, %v7518_v52  ;;  %v8310_v10 = vpop.f32.mrb[5].mxu0  ;;  %10314 = vmatprep.subr.bf16.mxu1 %v14868_v6  ;;  %v1498_v60 = vld [vmem:[#allocation5 + $0x698] sm:$0xff]  ;;  %v1757_v52 = vld [vmem:[#allocation5 + $0xeb0] sm:$0xff] }
 0x33d   :  { %20938 = vst [vmem:[#allocation30_spill] sm:$0xff] %v19628_v58  ;;  %v16025_v34 = vadd.f32 %v8310_v10, %v7520_v17  ;;  %v8312_v29 = vpop.f32.mrb[6].mxu0  ;;  %9635 = vmatpush1.bf16.msra.mxu0 %v15113_v1  ;;  %v1502_v58 = vld [vmem:[#allocation5 + $0x6b8] sm:$0xff]  ;;  %v15129_v1 = vcombine.low %v1745_v56, %v1749_v49  ;;  %v1761_v56 = vld [vmem:[#allocation5 + $0xed0] sm:$0xff] }
 0x33e   :  { %v16027_v51 = vadd.f32 %v8312_v29, %v7522_v16  ;;  %v8314_v27 = vpop.f32.mrb[7].mxu0  ;;  %9636 = vmatprep.subr.bf16.mxu0 %v15122_v30  ;;  %10258 = vmatmul.mubr.bf16.gmra.mrb[80].mxu1 %v20896_v31  ;;  %v11105_v19 = vmax.f32 %v16023_v62, 0.0  ;;  %v14884_v6 = vcombine.high %v1498_v60, %v1502_v58  ;;  %v20942_v30 = vld [vmem:[#allocation105_spill] sm:$0xff]  ;;  %v20944_v31 = vld [vmem:[#allocation64_spill] sm:$0xff]  ;;  %v1506_v62 = vld [vmem:[#allocation5 + $0x6d8] sm:$0xff] }
 0x33f   :  { %v16029_v36 = vadd.f32 %v8314_v27, %v7524_v33  ;;  %10315 = vmatpush1.bf16.msra.mxu1 %v14867_v57  ;;  %v11106_v39 = vmax.f32 %v16025_v34, 0.0  ;;  %v7528_v17 = vadd.f32 %v20942_v30, %v19602_v5  ;;  %v15138_v33 = vcombine.high %v1753_v21, %v1757_v52  ;;  %v1510_v10 = vld [vmem:[#allocation5 + $0x6f8] sm:$0xff]  ;;  %v20945_v57 = vld [vmem:[#allocation106_spill] sm:$0xff]  ;;  %10267 = vmatprep.mubr.bf16.mxu1 %v20897_v40 }
 0x340   :  { %v11113_v28 = vmax.f32 %v16027_v51, 0.0  ;;  %9580 = vmatmul.mubr.bf16.gmra.mrb[48].mxu0 %v20941_v15  ;;  %10316 = vmatprep.subr.bf16.mxu1 %v14876_v37  ;;  %v7530_v13 = vadd.f32 %v20945_v57, %v19605_v45  ;;  %v1765_v49 = vld [vmem:[#allocation5 + $0xef0] sm:$0xff]  ;;  %v20947_v29 = vld [vmem:[#allocation107_spill] sm:$0xff]  ;;  %v20948_v37 = vld [vmem:[#allocation109_spill] sm:$0xff] }
 0x341   :  { %v11114_v0 = vmax.f32 %v16029_v36, 0.0  ;;  %9637 = vmatpush1.bf16.msra.mxu0 %v15121_v42  ;;  %9589 = vmatprep.mubr.bf16.mxu0 %v20944_v31  ;;  %v7532_v42 = vadd.f32 %v20947_v29, %v19602_v5  ;;  %v7534_v51 = vadd.f32 %v20948_v37, %v19605_v45  ;;  %v14883_v36 = vcombine.low %v1498_v60, %v1502_v58  ;;  %v1769_v37 = vld [vmem:[#allocation5 + $0xf10] sm:$0xff]  ;;  %v20949_v60 = vld [vmem:[#allocation65_spill] sm:$0xff] }
 0x342   :  { %v19639_v16 = vpack.c.bf16 %v11113_v28, %v11105_v19  ;;  %9638 = vmatprep.subr.bf16.mxu0 %v15130_v55  ;;  %v15146_v57 = vcombine.high %v1761_v56, %v1765_v49  ;;  %v14891_v58 = vcombine.low %v1506_v62, %v1510_v10 }
 0x343   :  { %v19644_v2 = vpack.c.bf16 %v11114_v0, %v11106_v39  ;;  %v8318_v34 = vpop.f32.mrb[8].mxu0  ;;  %10317 = vmatpush1.bf16.msra.mxu1 %v14875_v41  ;;  %v15137_v39 = vcombine.low %v1753_v21, %v1757_v52  ;;  %v14892_v0 = vcombine.high %v1506_v62, %v1510_v10 }
 0x344   :  { %20943 = vst [vmem:[#allocation32_spill] sm:$0xff] %v19639_v16  ;;  %v16031_v27 = vadd.f32 %v8318_v34, %v7528_v17  ;;  %v8320_v55 = vpop.f32.mrb[9].mxu0  ;;  %10318 = vmatprep.subr.bf16.mxu1 %v14884_v6  ;;  %v1514_v16 = vld [vmem:[#allocation5 + $0x718] sm:$0xff]  ;;  %v1773_v17 = vld [vmem:[#allocation5 + $0xf30] sm:$0xff] }
 0x345   :  { %20946 = vst [vmem:[#allocation34_spill] sm:$0xff] %v19644_v2  ;;  %v16033_v19 = vadd.f32 %v8320_v55, %v7530_v13  ;;  %v8322_v28 = vpop.f32.mrb[10].mxu0  ;;  %9639 = vmatpush1.bf16.msra.mxu0 %v15129_v1  ;;  %v1518_v2 = vld [vmem:[#allocation5 + $0x738] sm:$0xff]  ;;  %v15145_v1 = vcombine.low %v1761_v56, %v1765_v49  ;;  %v1777_v56 = vld [vmem:[#allocation5 + $0xf50] sm:$0xff] }
 0x346   :  { %v16035_v30 = vadd.f32 %v8322_v28, %v7532_v42  ;;  %v8324_v40 = vpop.f32.mrb[11].mxu0  ;;  %9640 = vmatprep.subr.bf16.mxu0 %v15138_v33  ;;  %10268 = vmatmul.mubr.bf16.gmra.mrb[84].mxu1 %v20898_v63  ;;  %v11121_v34 = vmax.f32 %v16031_v27, 0.0  ;;  %v14900_v6 = vcombine.high %v1514_v16, %v1518_v2  ;;  %v20950_v33 = vld [vmem:[#allocation111_spill] sm:$0xff]  ;;  %v20952_v63 = vld [vmem:[#allocation66_spill] sm:$0xff]  ;;  %v20955_v28 = vld [vmem:[#allocation113_spill] sm:$0xff] }
 0x347   :  { %v16037_v29 = vadd.f32 %v8324_v40, %v7534_v51  ;;  %10319 = vmatpush1.bf16.msra.mxu1 %v14883_v36  ;;  %v11122_v21 = vmax.f32 %v16033_v19, 0.0  ;;  %v7538_v13 = vadd.f32 %v20950_v33, %v19602_v5  ;;  %v15154_v51 = vcombine.high %v1769_v37, %v1773_v17  ;;  %v1522_v27 = vld [vmem:[#allocation5 + $0x758] sm:$0xff]  ;;  %v20953_v36 = vld [vmem:[#allocation112_spill] sm:$0xff]  ;;  %10277 = vmatprep.mubr.bf16.mxu1 %v20899_v23  ;;  %v1781_v49 = vld [vmem:[#allocation5 + $0xf70] sm:$0xff] }
 0x348   :  { %v11129_v41 = vmax.f32 %v16035_v30, 0.0  ;;  %9590 = vmatmul.mubr.bf16.gmra.mrb[52].mxu0 %v20949_v60  ;;  %10320 = vmatprep.subr.bf16.mxu1 %v14892_v0  ;;  %v1526_v55 = vld [vmem:[#allocation5 + $0x778] sm:$0xff]  ;;  %v7540_v62 = vadd.f32 %v20953_v36, %v19605_v45  ;;  %v15162_v36 = vcombine.high %v1777_v56, %v1781_v49 }
 0x349   :  { %v11130_v52 = vmax.f32 %v16037_v29, 0.0  ;;  %9641 = vmatpush1.bf16.msra.mxu0 %v15137_v39  ;;  %9599 = vmatprep.mubr.bf16.mxu0 %v20952_v63  ;;  %v7542_v39 = vadd.f32 %v20955_v28, %v19602_v5  ;;  %v20956_v0 = vld [vmem:[#allocation115_spill] sm:$0xff]  ;;  %v14899_v29 = vcombine.low %v1514_v16, %v1518_v2  ;;  %v14907_v2 = vcombine.low %v1522_v27, %v1526_v55 }
 0x34a   :  { %v19655_v42 = vpack.c.bf16 %v11129_v41, %v11121_v34  ;;  %9642 = vmatprep.subr.bf16.mxu0 %v15146_v57  ;;  %v7544_v30 = vadd.f32 %v20956_v0, %v19605_v45  ;;  %v1785_v0 = vld [vmem:[#allocation5 + $0xf90] sm:$0xff]  ;;  %v20957_v16 = vld [vmem:[#allocation67_spill] sm:$0xff] }
 0x34b   :  { %v19660_v10 = vpack.c.bf16 %v11130_v52, %v11122_v21  ;;  %v8328_v19 = vpop.f32.mrb[12].mxu0  ;;  %10321 = vmatpush1.bf16.msra.mxu1 %v14891_v58  ;;  %v15153_v21 = vcombine.low %v1769_v37, %v1773_v17  ;;  %v14908_v52 = vcombine.high %v1522_v27, %v1526_v55 }
 0x34c   :  { %20951 = vst [vmem:[#allocation36_spill] sm:$0xff] %v19655_v42  ;;  %v16039_v40 = vadd.f32 %v8328_v19, %v7538_v13  ;;  %v8330_v57 = vpop.f32.mrb[13].mxu0  ;;  %10322 = vmatprep.subr.bf16.mxu1 %v14900_v6  ;;  %v1530_v42 = vld [vmem:[#allocation5 + $0x798] sm:$0xff]  ;;  %v1789_v13 = vld [vmem:[#allocation5 + $0xfb0] sm:$0xff] }
 0x34d   :  { %20954 = vst [vmem:[#allocation38_spill] sm:$0xff] %v19660_v10  ;;  %v16041_v34 = vadd.f32 %v8330_v57, %v7540_v62  ;;  %v8332_v41 = vpop.f32.mrb[14].mxu0  ;;  %9643 = vmatpush1.bf16.msra.mxu0 %v15145_v1  ;;  %v1534_v10 = vld [vmem:[#allocation5 + $0x7b8] sm:$0xff]  ;;  %v15161_v1 = vcombine.low %v1777_v56, %v1781_v49  ;;  %v1793_v56 = vld [vmem:[#allocation5 + $0xfd0] sm:$0xff] }
 0x34e   :  { %v16043_v33 = vadd.f32 %v8332_v41, %v7542_v39  ;;  %v8334_v23 = vpop.f32.mrb[15].mxu0  ;;  %9644 = vmatprep.subr.bf16.mxu0 %v15154_v51  ;;  %10278 = vmatmul.mubr.bf16.gmra.mrb[88].mxu1 %v20900_v32  ;;  %v11137_v19 = vmax.f32 %v16039_v40, 0.0  ;;  %v14916_v6 = vcombine.high %v1530_v42, %v1534_v10  ;;  %v20958_v51 = vld [vmem:[#allocation117_spill] sm:$0xff]  ;;  %v20960_v32 = vld [vmem:[#allocation68_spill] sm:$0xff]  ;;  %v1538_v40 = vld [vmem:[#allocation5 + $0x7d8] sm:$0xff] }
 0x34f   :  { %v16045_v28 = vadd.f32 %v8334_v23, %v7544_v30  ;;  %10323 = vmatpush1.bf16.msra.mxu1 %v14899_v29  ;;  %v11138_v37 = vmax.f32 %v16041_v34, 0.0  ;;  %v7548_v62 = vadd.f32 %v20958_v51, %v19602_v5  ;;  %v15170_v30 = vcombine.high %v1785_v0, %v1789_v13  ;;  %v1542_v57 = vld [vmem:[#allocation5 + $0x7f8] sm:$0xff]  ;;  %v20961_v29 = vld [vmem:[#allocation118_spill] sm:$0xff]  ;;  %10287 = vmatprep.mubr.bf16.mxu1 %v20901_v38 }
 0x350   :  { %v11145_v58 = vmax.f32 %v16043_v33, 0.0  ;;  %9600 = vmatmul.mubr.bf16.gmra.mrb[56].mxu0 %v20957_v16  ;;  %10324 = vmatprep.subr.bf16.mxu1 %v14908_v52  ;;  %v7550_v27 = vadd.f32 %v20961_v29, %v19605_v45  ;;  %v1797_v49 = vld [vmem:[#allocation5 + $0xff0] sm:$0xff]  ;;  %v20963_v41 = vld [vmem:[#allocation119_spill] sm:$0xff]  ;;  %v20964_v52 = vld [vmem:[#allocation121_spill] sm:$0xff] }
 0x351   :  { %v11146_v17 = vmax.f32 %v16045_v28, 0.0  ;;  %9645 = vmatpush1.bf16.msra.mxu0 %v15153_v21  ;;  %9609 = vmatprep.mubr.bf16.mxu0 %v20960_v32  ;;  %v7552_v21 = vadd.f32 %v20963_v41, %v19602_v5  ;;  %v7554_v33 = vadd.f32 %v20964_v52, %v19605_v45  ;;  %v14915_v28 = vcombine.low %v1530_v42, %v1534_v10  ;;  %v1801_v52 = vld [vmem:[#allocation5 + $0x1010] sm:$0xff]  ;;  %v20965_v42 = vld [vmem:[#allocation69_spill] sm:$0xff] }
 0x352   :  { %v19671_v39 = vpack.c.bf16 %v11145_v58, %v11137_v19  ;;  %9646 = vmatprep.subr.bf16.mxu0 %v15162_v36  ;;  %v15178_v29 = vcombine.high %v1793_v56, %v1797_v49  ;;  %v14923_v10 = vcombine.low %v1538_v40, %v1542_v57 }
 0x353   :  { %v19676_v55 = vpack.c.bf16 %v11146_v17, %v11138_v37  ;;  %v8338_v34 = vpop.f32.mrb[16].mxu0  ;;  %10325 = vmatpush1.bf16.msra.mxu1 %v14907_v2  ;;  %v15169_v37 = vcombine.low %v1785_v0, %v1789_v13  ;;  %v14924_v17 = vcombine.high %v1538_v40, %v1542_v57 }
 0x354   :  { %20959 = vst [vmem:[#allocation40_spill] sm:$0xff] %v19671_v39  ;;  %v16047_v23 = vadd.f32 %v8338_v34, %v7548_v62  ;;  %v8340_v36 = vpop.f32.mrb[17].mxu0  ;;  %10326 = vmatprep.subr.bf16.mxu1 %v14916_v6  ;;  %v1546_v39 = vld [vmem:[#allocation5 + $0x818] sm:$0xff]  ;;  %v1805_v62 = vld [vmem:[#allocation5 + $0x1030] sm:$0xff] }
 0x355   :  { %20962 = vst [vmem:[#allocation42_spill] sm:$0xff] %v19676_v55  ;;  %v16049_v19 = vadd.f32 %v8340_v36, %v7550_v27  ;;  %v8342_v58 = vpop.f32.mrb[18].mxu0  ;;  %9647 = vmatpush1.bf16.msra.mxu0 %v15161_v1  ;;  %v1550_v55 = vld [vmem:[#allocation5 + $0x838] sm:$0xff]  ;;  %v15177_v1 = vcombine.low %v1793_v56, %v1797_v49  ;;  %v1809_v56 = vld [vmem:[#allocation5 + $0x1050] sm:$0xff] }
 0x356   :  { %v16051_v51 = vadd.f32 %v8342_v58, %v7552_v21  ;;  %v8344_v38 = vpop.f32.mrb[19].mxu0  ;;  %9648 = vmatprep.subr.bf16.mxu0 %v15170_v30  ;;  %10288 = vmatmul.mubr.bf16.gmra.mrb[92].mxu1 %v20902_v59  ;;  %v11153_v34 = vmax.f32 %v16047_v23, 0.0  ;;  %v14932_v6 = vcombine.high %v1546_v39, %v1550_v55  ;;  %v20966_v30 = vld [vmem:[#allocation123_spill] sm:$0xff]  ;;  %v20968_v59 = vld [vmem:[#allocation70_spill] sm:$0xff]  ;;  %v20971_v58 = vld [vmem:[#allocation125_spill] sm:$0xff] }
 0x357   :  { %v16053_v41 = vadd.f32 %v8344_v38, %v7554_v33  ;;  %10327 = vmatpush1.bf16.msra.mxu1 %v14915_v28  ;;  %v11154_v0 = vmax.f32 %v16049_v19, 0.0  ;;  %v7558_v27 = vadd.f32 %v20966_v30, %v19602_v5  ;;  %v15186_v33 = vcombine.high %v1801_v52, %v1805_v62  ;;  %v1554_v23 = vld [vmem:[#allocation5 + $0x858] sm:$0xff]  ;;  %v20969_v28 = vld [vmem:[#allocation124_spill] sm:$0xff]  ;;  %10330 = vmatprep.mubr.bf16.mxu1 %v20903_v7  ;;  %v1813_v49 = vld [vmem:[#allocation5 + $0x1070] sm:$0xff] }
 0x358   :  { %v11161_v2 = vmax.f32 %v16051_v51, 0.0  ;;  %9610 = vmatmul.mubr.bf16.gmra.mrb[60].mxu0 %v20965_v42  ;;  %10328 = vmatprep.subr.bf16.mxu1 %v14924_v17  ;;  %v1558_v36 = vld [vmem:[#allocation5 + $0x878] sm:$0xff]  ;;  %v7560_v40 = vadd.f32 %v20969_v28, %v19605_v45  ;;  %v15194_v28 = vcombine.high %v1809_v56, %v1813_v49 }
 0x359   :  { %v11162_v13 = vmax.f32 %v16053_v41, 0.0  ;;  %9649 = vmatpush1.bf16.msra.mxu0 %v15169_v37  ;;  %9652 = vmatprep.mubr.bf16.mxu0 %v20968_v59  ;;  %v7562_v37 = vadd.f32 %v20971_v58, %v19602_v5  ;;  %v20972_v17 = vld [vmem:[#allocation127_spill] sm:$0xff]  ;;  %v14931_v41 = vcombine.low %v1546_v39, %v1550_v55  ;;  %v14939_v55 = vcombine.low %v1554_v23, %v1558_v36 }
 0x35a   :  { %v19687_v21 = vpack.c.bf16 %v11161_v2, %v11153_v34  ;;  %9650 = vmatprep.subr.bf16.mxu0 %v15178_v29  ;;  %v7564_v51 = vadd.f32 %v20972_v17, %v19605_v45  ;;  %v1817_v17 = vld [vmem:[#allocation5 + $0x1090] sm:$0xff]  ;;  %v20973_v39 = vld [vmem:[#allocation71_spill] sm:$0xff] }
 0x35b   :  { %v19692_v57 = vpack.c.bf16 %v11162_v13, %v11154_v0  ;;  %v8348_v19 = vpop.f32.mrb[20].mxu0  ;;  %10329 = vmatpush1.bf16.msra.mxu1 %v14923_v10  ;;  %v15185_v0 = vcombine.low %v1801_v52, %v1805_v62  ;;  %v14940_v13 = vcombine.high %v1554_v23, %v1558_v36 }
 0x35c   :  { %20967 = vst [vmem:[#allocation44_spill] sm:$0xff] %v19687_v21  ;;  %v16055_v38 = vadd.f32 %v8348_v19, %v7558_v27  ;;  %v8350_v29 = vpop.f32.mrb[21].mxu0  ;;  %10411 = vmatprep.subr.bf16.mxu1 %v14932_v6  ;;  %v1562_v21 = vld [vmem:[#allocation5 + $0x898] sm:$0xff]  ;;  %v1821_v27 = vld [vmem:[#allocation5 + $0x10b0] sm:$0xff] }
 0x35d   :  { %20970 = vst [vmem:[#allocation46_spill] sm:$0xff] %v19692_v57  ;;  %v16057_v34 = vadd.f32 %v8350_v29, %v7560_v40  ;;  %v8352_v2 = vpop.f32.mrb[22].mxu0  ;;  %9651 = vmatpush1.bf16.msra.mxu0 %v15177_v1  ;;  %v1566_v57 = vld [vmem:[#allocation5 + $0x8b8] sm:$0xff]  ;;  %v15193_v1 = vcombine.low %v1809_v56, %v1813_v49  ;;  %v1825_v56 = vld [vmem:[#allocation5 + $0x10d0] sm:$0xff] }
 0x35e   :  { %v16059_v30 = vadd.f32 %v8352_v2, %v7562_v37  ;;  %v8354_v7 = vpop.f32.mrb[23].mxu0  ;;  %9733 = vmatprep.subr.bf16.mxu0 %v15186_v33  ;;  %10331 = vmatmul.mubr.bf16.vlgmr.msra.gmra.mrb[64].mxu1 %v20904_v24  ;;  %v11169_v19 = vmax.f32 %v16055_v38, 0.0  ;;  %v14948_v6 = vcombine.high %v1562_v21, %v1566_v57  ;;  %v20974_v33 = vld [vmem:[#allocation129_spill] sm:$0xff]  ;;  %v20976_v24 = vld [vmem:[#allocation72_spill] sm:$0xff]  ;;  %v1570_v38 = vld [vmem:[#allocation5 + $0x8d8] sm:$0xff] }
 0x35f   :  { %v16061_v58 = vadd.f32 %v8354_v7, %v7564_v51  ;;  %10412 = vmatpush1.bf16.msra.mxu1 %v14931_v41  ;;  %v11170_v52 = vmax.f32 %v16057_v34, 0.0  ;;  %v7568_v40 = vadd.f32 %v20974_v33, %v19602_v5  ;;  %v15202_v51 = vcombine.high %v1817_v17, %v1821_v27  ;;  %v1574_v29 = vld [vmem:[#allocation5 + $0x8f8] sm:$0xff]  ;;  %v20977_v41 = vld [vmem:[#allocation130_spill] sm:$0xff]  ;;  %10340 = vmatprep.mubr.bf16.mxu1 %v20905_v50 }
 0x360   :  { %v11177_v10 = vmax.f32 %v16059_v30, 0.0  ;;  %9653 = vmatmul.mubr.bf16.vlgmr.msra.gmra.mrb[32].mxu0 %v20973_v39  ;;  %10413 = vmatprep.subr.bf16.mxu1 %v14940_v13  ;;  %v7570_v23 = vadd.f32 %v20977_v41, %v19605_v45  ;;  %v1829_v49 = vld [vmem:[#allocation5 + $0x10f0] sm:$0xff]  ;;  %v20979_v2 = vld [vmem:[#allocation131_spill] sm:$0xff]  ;;  %v20980_v13 = vld [vmem:[#allocation133_spill] sm:$0xff] }
 0x361   :  { %v11178_v62 = vmax.f32 %v16061_v58, 0.0  ;;  %9734 = vmatpush1.bf16.msra.mxu0 %v15185_v0  ;;  %9662 = vmatprep.mubr.bf16.mxu0 %v20976_v24  ;;  %v7572_v0 = vadd.f32 %v20979_v2, %v19602_v5  ;;  %v7574_v30 = vadd.f32 %v20980_v13, %v19605_v45  ;;  %v14947_v58 = vcombine.low %v1562_v21, %v1566_v57  ;;  %v1833_v13 = vld [vmem:[#allocation5 + $0x1110] sm:$0xff]  ;;  %v20981_v21 = vld [vmem:[#allocation73_spill] sm:$0xff] }
 0x362   :  { %v19703_v37 = vpack.c.bf16 %v11177_v10, %v11169_v19  ;;  %9735 = vmatprep.subr.bf16.mxu0 %v15194_v28  ;;  %v15210_v41 = vcombine.high %v1825_v56, %v1829_v49  ;;  %v14955_v57 = vcombine.low %v1570_v38, %v1574_v29 }
 0x363   :  { %v19708_v36 = vpack.c.bf16 %v11178_v62, %v11170_v52  ;;  %v8358_v34 = vpop.f32.mrb[24].mxu0  ;;  %10414 = vmatpush1.bf16.msra.mxu1 %v14939_v55  ;;  %v15201_v52 = vcombine.low %v1817_v17, %v1821_v27  ;;  %v14956_v62 = vcombine.high %v1570_v38, %v1574_v29 }
 0x364   :  { %20975 = vst [vmem:[#allocation48_spill] sm:$0xff] %v19703_v37  ;;  %v16063_v7 = vadd.f32 %v8358_v34, %v7568_v40  ;;  %v8360_v28 = vpop.f32.mrb[25].mxu0  ;;  %10415 = vmatprep.subr.bf16.mxu1 %v14948_v6  ;;  %v1578_v37 = vld [vmem:[#allocation5 + $0x918] sm:$0xff]  ;;  %v1837_v40 = vld [vmem:[#allocation5 + $0x1130] sm:$0xff] }
 0x365   :  { %20978 = vst [vmem:[#allocation50_spill] sm:$0xff] %v19708_v36  ;;  %v16065_v19 = vadd.f32 %v8360_v28, %v7570_v23  ;;  %v8362_v10 = vpop.f32.mrb[26].mxu0  ;;  %9736 = vmatpush1.bf16.msra.mxu0 %v15193_v1  ;;  %v1582_v36 = vld [vmem:[#allocation5 + $0x938] sm:$0xff]  ;;  %v15209_v1 = vcombine.low %v1825_v56, %v1829_v49  ;;  %v1841_v56 = vld [vmem:[#allocation5 + $0x1150] sm:$0xff] }
 0x366   :  { %v16067_v33 = vadd.f32 %v8362_v10, %v7572_v0  ;;  %v8364_v50 = vpop.f32.mrb[27].mxu0  ;;  %9737 = vmatprep.subr.bf16.mxu0 %v15202_v51  ;;  %10341 = vmatmul.mubr.bf16.gmra.mrb[68].mxu1 %v20906_v46  ;;  %v11185_v34 = vmax.f32 %v16063_v7, 0.0  ;;  %v14964_v6 = vcombine.high %v1578_v37, %v1582_v36  ;;  %v20982_v51 = vld [vmem:[#allocation135_spill] sm:$0xff]  ;;  %v20984_v46 = vld [vmem:[#allocation74_spill] sm:$0xff]  ;;  %v20987_v10 = vld [vmem:[#allocation137_spill] sm:$0xff] }
 0x367   :  { %v16069_v2 = vadd.f32 %v8364_v50, %v7574_v30  ;;  %10416 = vmatpush1.bf16.msra.mxu1 %v14947_v58  ;;  %v11186_v17 = vmax.f32 %v16065_v19, 0.0  ;;  %v7578_v23 = vadd.f32 %v20982_v51, %v19602_v5  ;;  %v15218_v30 = vcombine.high %v1833_v13, %v1837_v40  ;;  %v1586_v7 = vld [vmem:[#allocation5 + $0x958] sm:$0xff]  ;;  %v20985_v58 = vld [vmem:[#allocation136_spill] sm:$0xff]  ;;  %10350 = vmatprep.mubr.bf16.mxu1 %v20907_v25  ;;  %v1845_v49 = vld [vmem:[#allocation5 + $0x1170] sm:$0xff] }
 0x368   :  { %v11193_v55 = vmax.f32 %v16067_v33, 0.0  ;;  %9663 = vmatmul.mubr.bf16.gmra.mrb[36].mxu0 %v20981_v21  ;;  %10417 = vmatprep.subr.bf16.mxu1 %v14956_v62  ;;  %v1590_v28 = vld [vmem:[#allocation5 + $0x978] sm:$0xff]  ;;  %v7580_v38 = vadd.f32 %v20985_v58, %v19605_v45  ;;  %v15226_v58 = vcombine.high %v1841_v56, %v1845_v49 }
 0x369   :  { %v11194_v27 = vmax.f32 %v16069_v2, 0.0  ;;  %9738 = vmatpush1.bf16.msra.mxu0 %v15201_v52  ;;  %9672 = vmatprep.mubr.bf16.mxu0 %v20984_v46  ;;  %v7582_v52 = vadd.f32 %v20987_v10, %v19602_v5  ;;  %v20988_v62 = vld [vmem:[#allocation139_spill] sm:$0xff]  ;;  %v14963_v2 = vcombine.low %v1578_v37, %v1582_v36  ;;  %v14971_v36 = vcombine.low %v1586_v7, %v1590_v28 }
 0x36a   :  { %v19719_v0 = vpack.c.bf16 %v11193_v55, %v11185_v34  ;;  %9739 = vmatprep.subr.bf16.mxu0 %v15210_v41  ;;  %v7584_v33 = vadd.f32 %v20988_v62, %v19605_v45  ;;  %v1849_v45 = vld [vmem:[#allocation5 + $0x1190] sm:$0xff]  ;;  %v20989_v37 = vld [vmem:[#allocation75_spill] sm:$0xff] }
 0x36b   :  { %v19724_v29 = vpack.c.bf16 %v11194_v27, %v11186_v17  ;;  %v8368_v19 = vpop.f32.mrb[28].mxu0  ;;  %10418 = vmatpush1.bf16.msra.mxu1 %v14955_v57  ;;  %v15217_v17 = vcombine.low %v1833_v13, %v1837_v40  ;;  %v14972_v27 = vcombine.high %v1586_v7, %v1590_v28  ;;  %v1602_v10 = vld [vmem:[#allocation5 + $0x9d8] sm:$0xff]  ;;  %v1861_v7 = vld [vmem:[#allocation5 + $0x11f0] sm:$0xff] }
 0x36c   :  { %20983 = vst [vmem:[#allocation52_spill] sm:$0xff] %v19719_v0  ;;  %v16071_v50 = vadd.f32 %v8368_v19, %v7578_v23  ;;  %v8370_v41 = vpop.f32.mrb[29].mxu0  ;;  %10419 = vmatprep.subr.bf16.mxu1 %v14964_v6  ;;  %v1594_v0 = vld [vmem:[#allocation5 + $0x998] sm:$0xff]  ;;  %v1853_v23 = vld [vmem:[#allocation5 + $0x11b0] sm:$0xff] }
 0x36d   :  { %20986 = vst [vmem:[#allocation23_spill] sm:$0xff] %v19724_v29  ;;  %v16073_v34 = vadd.f32 %v8370_v41, %v7580_v38  ;;  %v8372_v55 = vpop.f32.mrb[30].mxu0  ;;  %9740 = vmatpush1.bf16.msra.mxu0 %v15209_v1  ;;  %v1598_v29 = vld [vmem:[#allocation5 + $0x9b8] sm:$0xff]  ;;  %v15225_v1 = vcombine.low %v1841_v56, %v1845_v49  ;;  %v20990_v38 = vld [vmem:[#allocation76_spill] sm:$0xff]  ;;  %v15233_v56 = vcombine.low %v1849_v45, %v1853_v23 }
 0x36e   :  { %v16075_v51 = vadd.f32 %v8372_v55, %v7582_v52  ;;  %v8374_v25 = vpop.f32.mrb[31].mxu0  ;;  %9741 = vmatprep.subr.bf16.mxu0 %v15218_v30  ;;  %10351 = vmatmul.mubr.bf16.gmra.mrb[72].mxu1 %v20908_v8  ;;  %v11201_v19 = vmax.f32 %v16071_v50, 0.0  ;;  %v14980_v6 = vcombine.high %v1594_v0, %v1598_v29  ;;  %v15234_v8 = vcombine.high %v1849_v45, %v1853_v23  ;;  %v1606_v52 = vld [vmem:[#allocation5 + $0x9f8] sm:$0xff]  ;;  %v1869_v55 = vld [vmem:[#allocation5 + $0x1230] sm:$0xff] }
 0x36f   :  { %v16077_v5 = vadd.f32 %v8374_v25, %v7584_v33  ;;  %10420 = vmatpush1.bf16.msra.mxu1 %v14963_v2  ;;  %v11202_v13 = vmax.f32 %v16073_v34, 0.0  ;;  %10360 = vmatprep.mubr.bf16.mxu1 %v20909_v18  ;;  %v1857_v33 = vld [vmem:[#allocation5 + $0x11d0] sm:$0xff]  ;;  %v14979_v28 = vcombine.low %v1594_v0, %v1598_v29  ;;  %v14988_v49 = vcombine.high %v1602_v10, %v1606_v52  ;;  %v1610_v41 = vld [vmem:[#allocation5 + $0xa18] sm:$0xff] }
 0x370   :  { %v11209_v57 = vmax.f32 %v16075_v51, 0.0  ;;  %9673 = vmatmul.mubr.bf16.gmra.mrb[40].mxu0 %v20989_v37  ;;  %10421 = vmatprep.subr.bf16.mxu1 %v14972_v27  ;;  %v15242_v50 = vcombine.high %v1857_v33, %v1861_v7  ;;  %v1614_v2 = vld [vmem:[#allocation5 + $0xa38] sm:$0xff]  ;;  %v1865_v34 = vld [vmem:[#allocation5 + $0x1210] sm:$0xff]  ;;  %v14987_v18 = vcombine.low %v1602_v10, %v1606_v52  ;;  %v15241_v27 = vcombine.low %v1857_v33, %v1861_v7  ;;  %v20994_v52 = vld [vmem:[#allocation80_spill] sm:$0xff] }
 0x371   :  { %v11210_v40 = vmax.f32 %v16077_v5, 0.0  ;;  %9742 = vmatpush1.bf16.msra.mxu0 %v15217_v17  ;;  %9682 = vmatprep.mubr.bf16.mxu0 %v20990_v38  ;;  %v20991_v17 = vld [vmem:[#allocation77_spill] sm:$0xff]  ;;  %v14996_v0 = vcombine.high %v1610_v41, %v1614_v2  ;;  %v20992_v29 = vld [vmem:[#allocation78_spill] sm:$0xff]  ;;  %v15250_v51 = vcombine.high %v1865_v34, %v1869_v55  ;;  %v1618_v25 = vld [vmem:[#allocation5 + $0xa58] sm:$0xff]  ;;  %v14995_v45 = vcombine.low %v1610_v41, %v1614_v2 }
 0x372   :  { %v19733_v30 = vpack.c.bf16 %v11209_v57, %v11201_v19  ;;  %9743 = vmatprep.subr.bf16.mxu0 %v15226_v58  ;;  %v1622_v58 = vld [vmem:[#allocation5 + $0xa78] sm:$0xff]  ;;  %v1873_v5 = vld [vmem:[#allocation5 + $0x1250] sm:$0xff]  ;;  %v15249_v23 = vcombine.low %v1865_v34, %v1869_v55 }
 0x373   :  { %v19736_v62 = vpack.c.bf16 %v11210_v40, %v11202_v13  ;;  %10422 = vmatpush1.bf16.msra.mxu1 %v14971_v36  ;;  %v15004_v19 = vcombine.high %v1618_v25, %v1622_v58  ;;  %v1626_v36 = vld [vmem:[#allocation5 + $0xa98] sm:$0xff]  ;;  %v1881_v40 = vld [vmem:[#allocation5 + $0x1290] sm:$0xff] }
 0x374   :  { %10423 = vmatprep.subr.bf16.mxu1 %v14980_v6  ;;  %v1630_v13 = vld [vmem:[#allocation5 + $0xab8] sm:$0xff] }
 0x375   :  { %9744 = vmatpush1.bf16.msra.mxu0 %v15225_v1  ;;  %v1885_v1 = vld [vmem:[#allocation5 + $0x12b0] sm:$0xff]  ;;  %v20993_v6 = vld [vmem:[#allocation79_spill] sm:$0xff]  ;;  %v15012_v10 = vcombine.high %v1626_v36, %v1630_v13 }
 0x376   :  { %9745 = vmatprep.subr.bf16.mxu0 %v15234_v8  ;;  %10361 = vmatmul.mubr.bf16.gmra.mrb[76].mxu1 %v20910_v48  ;;  %v1877_v48 = vld [vmem:[#allocation5 + $0x1270] sm:$0xff]  ;;  %v15266_v33 = vcombine.high %v1881_v40, %v1885_v1  ;;  %v1634_v7 = vld [vmem:[#allocation5 + $0xad8] sm:$0xff] }
 0x377   :  { %10424 = vmatpush1.bf16.msra.mxu1 %v14979_v28  ;;  %10370 = vmatprep.mubr.bf16.mxu1 %v20911_v14  ;;  %v15258_v57 = vcombine.high %v1873_v5, %v1877_v48  ;;  %v15003_v14 = vcombine.low %v1618_v25, %v1622_v58  ;;  %v15257_v8 = vcombine.low %v1873_v5, %v1877_v48  ;;  %v1638_v28 = vld [vmem:[#allocation5 + $0xaf8] sm:$0xff]  ;;  %v20996_v58 = vld [vmem:[#allocation82_spill] sm:$0xff] }
 0x378   :  { %9683 = vmatmul.mubr.bf16.gmra.mrb[44].mxu0 %v20991_v17  ;;  %10425 = vmatprep.subr.bf16.mxu1 %v14988_v49  ;;  %v15011_v49 = vcombine.low %v1626_v36, %v1630_v13  ;;  %v15020_v41 = vcombine.high %v1634_v7, %v1638_v28  ;;  %v1642_v34 = vld [vmem:[#allocation5 + $0xb18] sm:$0xff] }
 0x379   :  { %9746 = vmatpush1.bf16.msra.mxu0 %v15233_v56  ;;  %9692 = vmatprep.mubr.bf16.mxu0 %v20992_v29  ;;  %v1889_v56 = vld [vmem:[#allocation5 + $0x12d0] sm:$0xff]  ;;  %v1646_v55 = vld [vmem:[#allocation5 + $0xb38] sm:$0xff] }
 0x37a   :  { %9747 = vmatprep.subr.bf16.mxu0 %v15242_v50  ;;  %v15265_v50 = vcombine.low %v1881_v40, %v1885_v1  ;;  %v15028_v25 = vcombine.high %v1642_v34, %v1646_v55  ;;  %v1650_v48 = vld [vmem:[#allocation5 + $0xb58] sm:$0xff] }
 0x37b   :  { %10426 = vmatpush1.bf16.msra.mxu1 %v14987_v18  ;;  %v1897_v18 = vld [vmem:[#allocation5 + $0x1310] sm:$0xff]  ;;  %v1658_v40 = vld [vmem:[#allocation5 + $0xb98] sm:$0xff] }
 0x37c   :  { %10427 = vmatprep.subr.bf16.mxu1 %v14996_v0  ;;  %v20995_v0 = vld [vmem:[#allocation81_spill] sm:$0xff]  ;;  %v1662_v1 = vld [vmem:[#allocation5 + $0xbb8] sm:$0xff] }
 0x37d   :  { %9748 = vmatpush1.bf16.msra.mxu0 %v15241_v27  ;;  %v1901_v27 = vld [vmem:[#allocation5 + $0x1330] sm:$0xff] }
 0x37e   :  { %9749 = vmatprep.subr.bf16.mxu0 %v15250_v51  ;;  %10371 = vmatmul.mubr.bf16.gmra.mrb[80].mxu1 %v20912_v61  ;;  %v1893_v61 = vld [vmem:[#allocation5 + $0x12f0] sm:$0xff]  ;;  %v15282_v5 = vcombine.high %v1897_v18, %v1901_v27 }
 0x37f   :  { %10428 = vmatpush1.bf16.msra.mxu1 %v14995_v45  ;;  %10380 = vmatprep.mubr.bf16.mxu1 %v20913_v44  ;;  %v15274_v2 = vcombine.high %v1889_v56, %v1893_v61  ;;  %v15019_v44 = vcombine.low %v1634_v7, %v1638_v28  ;;  %v15273_v51 = vcombine.low %v1889_v56, %v1893_v61  ;;  %v1654_v45 = vld [vmem:[#allocation5 + $0xb78] sm:$0xff]  ;;  %v20998_v28 = vld [vmem:[#allocation84_spill] sm:$0xff] }
 0x380   :  { %9693 = vmatmul.mubr.bf16.gmra.mrb[48].mxu0 %v20993_v6  ;;  %10429 = vmatprep.subr.bf16.mxu1 %v15004_v19  ;;  %v15027_v19 = vcombine.low %v1642_v34, %v1646_v55  ;;  %v15036_v36 = vcombine.high %v1650_v48, %v1654_v45  ;;  %v15044_v7 = vcombine.high %v1658_v40, %v1662_v1  ;;  %v1666_v61 = vld [vmem:[#allocation5 + $0xbd8] sm:$0xff] }
 0x381   :  { %9750 = vmatpush1.bf16.msra.mxu0 %v15249_v23  ;;  %9702 = vmatprep.mubr.bf16.mxu0 %v20994_v52  ;;  %v1905_v23 = vld [vmem:[#allocation5 + $0x1350] sm:$0xff] }
 0x382   :  { %9751 = vmatprep.subr.bf16.mxu0 %v15258_v57  ;;  %v15281_v57 = vcombine.low %v1897_v18, %v1901_v27  ;;  %v1674_v18 = vld [vmem:[#allocation5 + $0xc18] sm:$0xff] }
 0x383   :  { %10430 = vmatpush1.bf16.msra.mxu1 %v15003_v14  ;;  %v1913_v14 = vld [vmem:[#allocation5 + $0x1390] sm:$0xff]  ;;  %v1678_v27 = vld [vmem:[#allocation5 + $0xc38] sm:$0xff] }
 0x384   :  { %10431 = vmatprep.subr.bf16.mxu1 %v15012_v10  ;;  %v20997_v10 = vld [vmem:[#allocation83_spill] sm:$0xff] }
 0x385   :  { %9752 = vmatpush1.bf16.msra.mxu0 %v15257_v8  ;;  %v1917_v8 = vld [vmem:[#allocation5 + $0x13b0] sm:$0xff] }
 0x386   :  { %9753 = vmatprep.subr.bf16.mxu0 %v15266_v33  ;;  %10381 = vmatmul.mubr.bf16.gmra.mrb[84].mxu1 %v20914_v47  ;;  %v1909_v47 = vld [vmem:[#allocation5 + $0x1370] sm:$0xff]  ;;  %v15298_v56 = vcombine.high %v1913_v14, %v1917_v8 }
 0x387   :  { %10432 = vmatpush1.bf16.msra.mxu1 %v15011_v49  ;;  %10390 = vmatprep.mubr.bf16.mxu1 %v20915_v43  ;;  %v15290_v13 = vcombine.high %v1905_v23, %v1909_v47  ;;  %v15035_v43 = vcombine.low %v1650_v48, %v1654_v45  ;;  %v15289_v33 = vcombine.low %v1905_v23, %v1909_v47  ;;  %v1670_v49 = vld [vmem:[#allocation5 + $0xbf8] sm:$0xff]  ;;  %v21000_v45 = vld [vmem:[#allocation86_spill] sm:$0xff] }
 0x388   :  { %9703 = vmatmul.mubr.bf16.gmra.mrb[52].mxu0 %v20995_v0  ;;  %10433 = vmatprep.subr.bf16.mxu1 %v15020_v41  ;;  %v15043_v41 = vcombine.low %v1658_v40, %v1662_v1  ;;  %v15052_v34 = vcombine.high %v1666_v61, %v1670_v49  ;;  %v15060_v48 = vcombine.high %v1674_v18, %v1678_v27  ;;  %v1682_v47 = vld [vmem:[#allocation5 + $0xc58] sm:$0xff] }
 0x389   :  { %9754 = vmatpush1.bf16.msra.mxu0 %v15265_v50  ;;  %9712 = vmatprep.mubr.bf16.mxu0 %v20996_v58  ;;  %v1921_v50 = vld [vmem:[#allocation5 + $0x13d0] sm:$0xff] }
 0x38a   :  { %9755 = vmatprep.subr.bf16.mxu0 %v15274_v2  ;;  %v15297_v2 = vcombine.low %v1913_v14, %v1917_v8  ;;  %v1690_v14 = vld [vmem:[#allocation5 + $0xc98] sm:$0xff] }
 0x38b   :  { %10434 = vmatpush1.bf16.msra.mxu1 %v15019_v44  ;;  %v1929_v44 = vld [vmem:[#allocation5 + $0x1410] sm:$0xff]  ;;  %v1694_v8 = vld [vmem:[#allocation5 + $0xcb8] sm:$0xff] }
 0x38c   :  { %10435 = vmatprep.subr.bf16.mxu1 %v15028_v25  ;;  %v20999_v25 = vld [vmem:[#allocation85_spill] sm:$0xff] }
 0x38d   :  { %9756 = vmatpush1.bf16.msra.mxu0 %v15273_v51  ;;  %v1933_v51 = vld [vmem:[#allocation5 + $0x1430] sm:$0xff] }
 0x38e   :  { %9757 = vmatprep.subr.bf16.mxu0 %v15282_v5  ;;  %10391 = vmatmul.mubr.bf16.gmra.mrb[88].mxu1 %v20916_v53  ;;  %v1925_v53 = vld [vmem:[#allocation5 + $0x13f0] sm:$0xff]  ;;  %v15314_v23 = vcombine.high %v1929_v44, %v1933_v51 }
 0x38f   :  { %10436 = vmatpush1.bf16.msra.mxu1 %v15027_v19  ;;  %10400 = vmatprep.mubr.bf16.mxu1 %v20917_v4  ;;  %v15306_v55 = vcombine.high %v1921_v50, %v1925_v53  ;;  %v15051_v4 = vcombine.low %v1666_v61, %v1670_v49  ;;  %v15305_v5 = vcombine.low %v1921_v50, %v1925_v53  ;;  %v1686_v19 = vld [vmem:[#allocation5 + $0xc78] sm:$0xff]  ;;  %v21002_v49 = vld [vmem:[#allocation88_spill] sm:$0xff] }
 0x390   :  { %9713 = vmatmul.mubr.bf16.gmra.mrb[56].mxu0 %v20997_v10  ;;  %10437 = vmatprep.subr.bf16.mxu1 %v15036_v36  ;;  %v15059_v36 = vcombine.low %v1674_v18, %v1678_v27  ;;  %v15068_v40 = vcombine.high %v1682_v47, %v1686_v19  ;;  %v15076_v61 = vcombine.high %v1690_v14, %v1694_v8  ;;  %v1698_v53 = vld [vmem:[#allocation5 + $0xcd8] sm:$0xff] }
 0x391   :  { %9758 = vmatpush1.bf16.msra.mxu0 %v15281_v57  ;;  %9722 = vmatprep.mubr.bf16.mxu0 %v20998_v28  ;;  %v1937_v57 = vld [vmem:[#allocation5 + $0x1450] sm:$0xff] }
 0x392   :  { %9759 = vmatprep.subr.bf16.mxu0 %v15290_v13  ;;  %v15313_v13 = vcombine.low %v1929_v44, %v1933_v51  ;;  %v1706_v44 = vld [vmem:[#allocation5 + $0xd18] sm:$0xff] }
 0x393   :  { %10438 = vmatpush1.bf16.msra.mxu1 %v15035_v43  ;;  %v1945_v43 = vld [vmem:[#allocation5 + $0x1490] sm:$0xff]  ;;  %v1710_v51 = vld [vmem:[#allocation5 + $0xd38] sm:$0xff] }
 0x394   :  { %10439 = vmatprep.subr.bf16.mxu1 %v15044_v7  ;;  %v21001_v7 = vld [vmem:[#allocation87_spill] sm:$0xff] }
 0x395   :  { %9760 = vmatpush1.bf16.msra.mxu0 %v15289_v33  ;;  %v1949_v33 = vld [vmem:[#allocation5 + $0x14b0] sm:$0xff] }
 0x396   :  { %9761 = vmatprep.subr.bf16.mxu0 %v15298_v56  ;;  %10401 = vmatmul.mubr.bf16.gmra.mrb[92].mxu1 %v20918_v26  ;;  %v1941_v26 = vld [vmem:[#allocation5 + $0x1470] sm:$0xff]  ;;  %v15330_v50 = vcombine.high %v1945_v43, %v1949_v33 }
 0x397   :  { %10440 = vmatpush1.bf16.msra.mxu1 %v15043_v41  ;;  %10443 = vmatprep.mubr.bf16.mxu1 %v20919_v9  ;;  %v15322_v1 = vcombine.high %v1937_v57, %v1941_v26  ;;  %v15067_v9 = vcombine.low %v1682_v47, %v1686_v19  ;;  %v15321_v56 = vcombine.low %v1937_v57, %v1941_v26  ;;  %v1702_v41 = vld [vmem:[#allocation5 + $0xcf8] sm:$0xff]  ;;  %v21004_v19 = vld [vmem:[#allocation90_spill] sm:$0xff] }
 0x398   :  { %9723 = vmatmul.mubr.bf16.gmra.mrb[60].mxu0 %v20999_v25  ;;  %10441 = vmatprep.subr.bf16.mxu1 %v15052_v34  ;;  %v15075_v34 = vcombine.low %v1690_v14, %v1694_v8  ;;  %v15084_v18 = vcombine.high %v1698_v53, %v1702_v41  ;;  %v15092_v47 = vcombine.high %v1706_v44, %v1710_v51  ;;  %v1714_v26 = vld [vmem:[#allocation5 + $0xd58] sm:$0xff]  ;;  %v20709_v14 = vsub.s32 3, %v19589_v11 }
 0x399   :  { %9762 = vmatpush1.bf16.msra.mxu0 %v15297_v2  ;;  %9765 = vmatprep.mubr.bf16.mxu0 %v21000_v45  ;;  %v1953_v2 = vld [vmem:[#allocation5 + $0x14d0] sm:$0xff] }
 0x39a   :  { %9763 = vmatprep.subr.bf16.mxu0 %v15306_v55  ;;  %v15329_v55 = vcombine.low %v1945_v43, %v1949_v33 }
 0x39b   :  { %10442 = vmatpush1.bf16.msra.mxu1 %v15051_v4  ;;  %v1961_v4 = vld [vmem:[#allocation5 + $0x1510] sm:$0xff] }
 0x39c   :  { %10524 = vmatprep.subr.bf16.mxu1 %v15060_v48  ;;  %v21003_v48 = vld [vmem:[#allocation89_spill] sm:$0xff] }
 0x39d   :  { %9764 = vmatpush1.bf16.msra.mxu0 %v15305_v5  ;;  %v1965_v5 = vld [vmem:[#allocation5 + $0x1530] sm:$0xff] }
 0x39e   :  { %9846 = vmatprep.subr.bf16.mxu0 %v15314_v23  ;;  %10444 = vmatmul.mubr.bf16.vlgmr.msra.gmra.mrb[64].mxu1 %v20920_v20  ;;  %v1957_v20 = vld [vmem:[#allocation5 + $0x14f0] sm:$0xff]  ;;  %v15346_v57 = vcombine.high %v1961_v4, %v1965_v5  ;;  %v15345_v8 = vcombine.low %v1961_v4, %v1965_v5  ;;  %v1730_v4 = vld [vmem:[#allocation5 + $0xdd8] sm:$0xff] }
 0x39f   :  { %10525 = vmatpush1.bf16.msra.mxu1 %v15059_v36  ;;  %10453 = vmatprep.mubr.bf16.mxu1 %v20921_v54  ;;  %v15338_v27 = vcombine.high %v1953_v2, %v1957_v20  ;;  %v15083_v54 = vcombine.low %v1698_v53, %v1702_v41  ;;  %v15337_v23 = vcombine.low %v1953_v2, %v1957_v20  ;;  %v1718_v36 = vld [vmem:[#allocation5 + $0xd78] sm:$0xff]  ;;  %v1977_v53 = vld [vmem:[#allocation5 + $0x1590] sm:$0xff] }
 0x3a0   :  { %9766 = vmatmul.mubr.bf16.vlgmr.msra.gmra.mrb[32].mxu0 %v21001_v7  ;;  %10526 = vmatprep.subr.bf16.mxu1 %v15068_v40  ;;  %v1973_v40 = vld [vmem:[#allocation5 + $0x1570] sm:$0xff]  ;;  %v15100_v43 = vcombine.high %v1714_v26, %v1718_v36  ;;  %v21006_v2 = vld [vmem:[#allocation91_spill] sm:$0xff] }
 0x3a1   :  { %9847 = vmatpush1.bf16.msra.mxu0 %v15313_v13  ;;  %9775 = vmatprep.mubr.bf16.mxu0 %v21002_v49  ;;  %v1969_v13 = vld [vmem:[#allocation5 + $0x1550] sm:$0xff]  ;;  %v1734_v5 = vld [vmem:[#allocation5 + $0xdf8] sm:$0xff] }
 0x3a2   :  { %9848 = vmatprep.subr.bf16.mxu0 %v15322_v1  ;;  %v15091_v1 = vcombine.low %v1706_v44, %v1710_v51  ;;  %v15354_v33 = vcombine.high %v1969_v13, %v1973_v40  ;;  %v1981_v41 = vld [vmem:[#allocation5 + $0x15b0] sm:$0xff]  ;;  %v21007_v44 = vld [vmem:[#allocation92_spill] sm:$0xff] }
 0x3a3   :  { %10527 = vmatpush1.bf16.msra.mxu1 %v15067_v9  ;;  %v1722_v9 = vld [vmem:[#allocation5 + $0xd98] sm:$0xff]  ;;  %v15362_v51 = vcombine.high %v1977_v53, %v1981_v41 }
 0x3a4   :  { %10528 = vmatprep.subr.bf16.mxu1 %v15076_v61  ;;  %v21005_v61 = vld [vmem:[#allocation59_spill] sm:$0xff] }
 0x3a5   :  { %9849 = vmatpush1.bf16.msra.mxu0 %v15321_v56  ;;  %v1726_v56 = vld [vmem:[#allocation5 + $0xdb8] sm:$0xff] }
 0x3a6   :  { %9850 = vmatprep.subr.bf16.mxu0 %v15330_v50  ;;  %10454 = vmatmul.mubr.bf16.gmra.mrb[68].mxu1 %v20923_v3  ;;  %v20710_v3 = vsub.s32 2, %v19589_v11  ;;  %v17854_v50 = vld [vmem:[#allocation7] sm:$0xff] }
 0x3a7   :  { %10529 = vmatpush1.bf16.msra.mxu1 %v15075_v34  ;;  %10463 = vmatprep.mubr.bf16.mxu1 %v20925_v22  ;;  %v19777_v20 = vrot.slane %v17854_v50, %v20709_v14  ;;  %v15099_v34 = vcombine.low %v1714_v26, %v1718_v36 }
 0x3a8   :  { %9776 = vmatmul.mubr.bf16.gmra.mrb[36].mxu0 %v21003_v48  ;;  %10530 = vmatprep.subr.bf16.mxu1 %v15084_v18  ;;  %v19772_v22 = vrot.slane %v17854_v50, %v20710_v3  ;;  %v15108_v18 = vcombine.high %v1722_v9, %v1726_v56 }
 0x3a9   :  { %9851 = vmatpush1.bf16.msra.mxu0 %v15329_v55  ;;  %9785 = vmatprep.mubr.bf16.mxu0 %v21004_v19  ;;  %v15353_v55 = vcombine.low %v1969_v13, %v1973_v40  ;;  %v15107_v13 = vcombine.low %v1722_v9, %v1726_v56 }
 0x3aa   :  { %9852 = vmatprep.subr.bf16.mxu0 %v15338_v27 }
 0x3ab   :  { %10531 = vmatpush1.bf16.msra.mxu1 %v15083_v54 }
 0x3ac   :  { %10532 = vmatprep.subr.bf16.mxu1 %v15092_v47  ;;  %v21008_v47 = vld [vmem:[#allocation60_spill] sm:$0xff] }
 0x3ad   :  { %9853 = vmatpush1.bf16.msra.mxu0 %v15337_v23 }
 0x3ae   :  { %9854 = vmatprep.subr.bf16.mxu0 %v15346_v57  ;;  %10464 = vmatmul.mubr.bf16.gmra.mrb[72].mxu1 %v21005_v61  ;;  %v1985_v57 = vld [vmem:[#allocation5 + $0x15d0] sm:$0xff] }
 0x3af   :  { %10533 = vmatpush1.bf16.msra.mxu1 %v15091_v1  ;;  %10473 = vmatprep.mubr.bf16.mxu1 %v21008_v47  ;;  %v1989_v1 = vld [vmem:[#allocation5 + $0x15f0] sm:$0xff]  ;;  %v1742_v47 = vld [vmem:[#allocation5 + $0xe38] sm:$0xff] }
 0x3b0   :  { %9786 = vmatmul.mubr.bf16.gmra.mrb[40].mxu0 %v21006_v2  ;;  %10534 = vmatprep.subr.bf16.mxu1 %v15100_v43  ;;  %v15361_v43 = vcombine.low %v1977_v53, %v1981_v41  ;;  %v15370_v50 = vcombine.high %v1985_v57, %v1989_v1  ;;  %v15115_v53 = vcombine.low %v1730_v4, %v1734_v5 }
 0x3b1   :  { %9855 = vmatpush1.bf16.msra.mxu0 %v15345_v8  ;;  %v9202_v27 = vpop.f32.mrb[32].mxu1  ;;  %9795 = vmatprep.mubr.bf16.mxu0 %v21007_v44 }
 0x3b2   :  { %9856 = vmatprep.subr.bf16.mxu0 %v15354_v33  ;;  %v16078_v54 = vadd.f32 %v9202_v27, %v19772_v22  ;;  %v9204_v23 = vpop.f32.mrb[33].mxu1  ;;  %v15116_v33 = vcombine.high %v1730_v4, %v1734_v5  ;;  %v1738_v27 = vld [vmem:[#allocation5 + $0xe18] sm:$0xff] }
 0x3b3   :  { %v16079_v26 = vadd.f32 %v9204_v23, %v19777_v20  ;;  %v9206_v36 = vpop.f32.mrb[34].mxu1  ;;  %10535 = vmatpush1.bf16.msra.mxu1 %v15099_v34  ;;  %v1993_v23 = vld [vmem:[#allocation5 + $0x1610] sm:$0xff] }
 0x3b4   :  { %v16080_v40 = vadd.f32 %v9206_v36, %v19772_v22  ;;  %v9208_v8 = vpop.f32.mrb[35].mxu1  ;;  %10536 = vmatprep.subr.bf16.mxu1 %v15108_v18  ;;  %v11091_v14 = vmax.f32 %v16078_v54, 0.0  ;;  %v1997_v34 = vld [vmem:[#allocation5 + $0x1630] sm:$0xff]  ;;  %v21009_v36 = vld [vmem:[#allocation96_spill] sm:$0xff]  ;;  %v15124_v18 = vcombine.high %v1738_v27, %v1742_v47 }
 0x3b5   :  { %9857 = vmatpush1.bf16.msra.mxu0 %v15353_v55  ;;  %v16081_v61 = vadd.f32 %v9208_v8, %v19777_v20  ;;  %v11092_v9 = vmax.f32 %v16079_v26, 0.0  ;;  %v15369_v55 = vcombine.low %v1985_v57, %v1989_v1  ;;  %v1746_v8 = vld [vmem:[#allocation5 + $0xe58] sm:$0xff]  ;;  %v15123_v57 = vcombine.low %v1738_v27, %v1742_v47 }
 0x3b6   :  { %9858 = vmatprep.subr.bf16.mxu0 %v15362_v51  ;;  %v11099_v3 = vmax.f32 %v16080_v40, 0.0  ;;  %10474 = vmatmul.mubr.bf16.gmra.mrb[76].mxu1 %v20933_v12  ;;  %v21012_v40 = vld [vmem:[#allocation98_spill] sm:$0xff]  ;;  %v15378_v12 = vcombine.high %v1993_v23, %v1997_v34  ;;  %v1750_v26 = vld [vmem:[#allocation5 + $0xe78] sm:$0xff] }
 0x3b7   :  { %v11100_v56 = vmax.f32 %v16081_v61, 0.0  ;;  %10537 = vmatpush1.bf16.msra.mxu1 %v15107_v13  ;;  %10483 = vmatprep.mubr.bf16.mxu1 %v20936_v35  ;;  %v1758_v35 = vld [vmem:[#allocation5 + $0xeb8] sm:$0xff] }
 0x3b8   :  { %9796 = vmatmul.mubr.bf16.gmra.mrb[44].mxu0 %v21009_v36  ;;  %v19787_v41 = vpack.c.bf16 %v11099_v3, %v11091_v14  ;;  %10538 = vmatprep.subr.bf16.mxu1 %v15116_v33  ;;  %v2001_v3 = vld [vmem:[#allocation5 + $0x1650] sm:$0xff]  ;;  %v15132_v33 = vcombine.high %v1746_v8, %v1750_v26 }
 0x3b9   :  { %9859 = vmatpush1.bf16.msra.mxu0 %v15361_v43  ;;  %v19789_v51 = vpack.c.bf16 %v11100_v56, %v11092_v9  ;;  %v9212_v54 = vpop.f32.mrb[36].mxu1  ;;  %9805 = vmatprep.mubr.bf16.mxu0 %v21012_v40  ;;  %v2005_v14 = vld [vmem:[#allocation5 + $0x1670] sm:$0xff]  ;;  %v15377_v43 = vcombine.low %v1993_v23, %v1997_v34  ;;  %v1754_v56 = vld [vmem:[#allocation5 + $0xe98] sm:$0xff]  ;;  %v15131_v23 = vcombine.low %v1746_v8, %v1750_v26 }
 0x3ba   :  { %21010 = vst [vmem:[#allocation25_spill] sm:$0xff] %v19787_v41  ;;  %9860 = vmatprep.subr.bf16.mxu0 %v15370_v50  ;;  %v16082_v61 = vadd.f32 %v9212_v54, %v19772_v22  ;;  %v9214_v11 = vpop.f32.mrb[37].mxu1  ;;  %v15386_v9 = vcombine.high %v2001_v3, %v2005_v14  ;;  %v2021_v8 = vld [vmem:[#allocation5 + $0x16f0] sm:$0xff] }
 0x3bb   :  { %21011 = vst [vmem:[#allocation27_spill] sm:$0xff] %v19789_v51  ;;  %v16083_v4 = vadd.f32 %v9214_v11, %v19777_v20  ;;  %v9216_v5 = vpop.f32.mrb[38].mxu1  ;;  %10539 = vmatpush1.bf16.msra.mxu1 %v15115_v53  ;;  %v2009_v11 = vld [vmem:[#allocation5 + $0x1690] sm:$0xff] }
 0x3bc   :  { %v16084_v1 = vadd.f32 %v9216_v5, %v19772_v22  ;;  %v9218_v13 = vpop.f32.mrb[39].mxu1  ;;  %10540 = vmatprep.subr.bf16.mxu1 %v15124_v18  ;;  %v11107_v54 = vmax.f32 %v16082_v61, 0.0  ;;  %v2013_v53 = vld [vmem:[#allocation5 + $0x16b0] sm:$0xff]  ;;  %v15140_v18 = vcombine.high %v1754_v56, %v1758_v35 }
 0x3bd   :  { %9861 = vmatpush1.bf16.msra.mxu0 %v15369_v55  ;;  %v16085_v50 = vadd.f32 %v9218_v13, %v19777_v20  ;;  %v11108_v27 = vmax.f32 %v16083_v4, 0.0  ;;  %v21013_v5 = vld [vmem:[#allocation102_spill] sm:$0xff]  ;;  %v15385_v55 = vcombine.low %v2001_v3, %v2005_v14  ;;  %v1762_v13 = vld [vmem:[#allocation5 + $0xed8] sm:$0xff]  ;;  %v15139_v14 = vcombine.low %v1754_v56, %v1758_v35 }
 0x3be   :  { %9862 = vmatprep.subr.bf16.mxu0 %v15378_v12  ;;  %v11115_v41 = vmax.f32 %v16084_v1, 0.0  ;;  %10484 = vmatmul.mubr.bf16.gmra.mrb[80].mxu1 %v20941_v15  ;;  %v21016_v1 = vld [vmem:[#allocation104_spill] sm:$0xff]  ;;  %v15394_v15 = vcombine.high %v2009_v11, %v2013_v53  ;;  %v1766_v4 = vld [vmem:[#allocation5 + $0xef8] sm:$0xff] }
 0x3bf   :  { %v11116_v47 = vmax.f32 %v16085_v50, 0.0  ;;  %10541 = vmatpush1.bf16.msra.mxu1 %v15123_v57  ;;  %10493 = vmatprep.mubr.bf16.mxu1 %v20944_v31  ;;  %v1774_v31 = vld [vmem:[#allocation5 + $0xf38] sm:$0xff] }
 0x3c0   :  { %9806 = vmatmul.mubr.bf16.gmra.mrb[48].mxu0 %v21013_v5  ;;  %v19799_v34 = vpack.c.bf16 %v11115_v41, %v11107_v54  ;;  %10542 = vmatprep.subr.bf16.mxu1 %v15132_v33  ;;  %v2017_v41 = vld [vmem:[#allocation5 + $0x16d0] sm:$0xff]  ;;  %v15393_v33 = vcombine.low %v2009_v11, %v2013_v53  ;;  %v15147_v11 = vcombine.low %v1762_v13, %v1766_v4 }
 0x3c1   :  { %9863 = vmatpush1.bf16.msra.mxu0 %v15377_v43  ;;  %v19801_v12 = vpack.c.bf16 %v11116_v47, %v11108_v27  ;;  %v9222_v61 = vpop.f32.mrb[40].mxu1  ;;  %9815 = vmatprep.mubr.bf16.mxu0 %v21016_v1  ;;  %v15402_v27 = vcombine.high %v2017_v41, %v2021_v8  ;;  %v1770_v47 = vld [vmem:[#allocation5 + $0xf18] sm:$0xff] }
 0x3c2   :  { %21014 = vst [vmem:[#allocation29_spill] sm:$0xff] %v19799_v34  ;;  %9864 = vmatprep.subr.bf16.mxu0 %v15386_v9  ;;  %v16086_v50 = vadd.f32 %v9222_v61, %v19772_v22  ;;  %v9224_v51 = vpop.f32.mrb[41].mxu1  ;;  %v15148_v9 = vcombine.high %v1762_v13, %v1766_v4  ;;  %v2037_v13 = vld [vmem:[#allocation5 + $0x1770] sm:$0xff] }
 0x3c3   :  { %21015 = vst [vmem:[#allocation31_spill] sm:$0xff] %v19801_v12  ;;  %v16087_v26 = vadd.f32 %v9224_v51, %v19777_v20  ;;  %v9226_v3 = vpop.f32.mrb[42].mxu1  ;;  %10543 = vmatpush1.bf16.msra.mxu1 %v15131_v23  ;;  %v2025_v51 = vld [vmem:[#allocation5 + $0x1710] sm:$0xff] }
 0x3c4   :  { %v16088_v57 = vadd.f32 %v9226_v3, %v19772_v22  ;;  %v9228_v43 = vpop.f32.mrb[43].mxu1  ;;  %10544 = vmatprep.subr.bf16.mxu1 %v15140_v18  ;;  %v11123_v61 = vmax.f32 %v16086_v50, 0.0  ;;  %v2029_v23 = vld [vmem:[#allocation5 + $0x1730] sm:$0xff]  ;;  %v21017_v3 = vld [vmem:[#allocation108_spill] sm:$0xff]  ;;  %v15156_v18 = vcombine.high %v1770_v47, %v1774_v31 }
 0x3c5   :  { %9865 = vmatpush1.bf16.msra.mxu0 %v15385_v55  ;;  %v16089_v54 = vadd.f32 %v9228_v43, %v19777_v20  ;;  %v11124_v56 = vmax.f32 %v16087_v26, 0.0  ;;  %v15401_v55 = vcombine.low %v2017_v41, %v2021_v8  ;;  %v1778_v43 = vld [vmem:[#allocation5 + $0xf58] sm:$0xff]  ;;  %v15155_v8 = vcombine.low %v1770_v47, %v1774_v31 }
 0x3c6   :  { %9866 = vmatprep.subr.bf16.mxu0 %v15394_v15  ;;  %v11131_v34 = vmax.f32 %v16088_v57, 0.0  ;;  %10494 = vmatmul.mubr.bf16.gmra.mrb[84].mxu1 %v20949_v60  ;;  %v21020_v57 = vld [vmem:[#allocation110_spill] sm:$0xff]  ;;  %v15410_v60 = vcombine.high %v2025_v51, %v2029_v23  ;;  %v1782_v26 = vld [vmem:[#allocation5 + $0xf78] sm:$0xff] }
 0x3c7   :  { %v11132_v35 = vmax.f32 %v16089_v54, 0.0  ;;  %10545 = vmatpush1.bf16.msra.mxu1 %v15139_v14  ;;  %10503 = vmatprep.mubr.bf16.mxu1 %v20952_v63  ;;  %v1790_v63 = vld [vmem:[#allocation5 + $0xfb8] sm:$0xff] }
 0x3c8   :  { %9816 = vmatmul.mubr.bf16.gmra.mrb[52].mxu0 %v21017_v3  ;;  %v19811_v53 = vpack.c.bf16 %v11131_v34, %v11123_v61  ;;  %10546 = vmatprep.subr.bf16.mxu1 %v15148_v9  ;;  %v2033_v34 = vld [vmem:[#allocation5 + $0x1750] sm:$0xff]  ;;  %v15409_v9 = vcombine.low %v2025_v51, %v2029_v23  ;;  %v15163_v51 = vcombine.low %v1778_v43, %v1782_v26 }
 0x3c9   :  { %9867 = vmatpush1.bf16.msra.mxu0 %v15393_v33  ;;  %v19813_v15 = vpack.c.bf16 %v11132_v35, %v11124_v56  ;;  %v9232_v50 = vpop.f32.mrb[44].mxu1  ;;  %9825 = vmatprep.mubr.bf16.mxu0 %v21020_v57  ;;  %v15418_v56 = vcombine.high %v2033_v34, %v2037_v13  ;;  %v1786_v35 = vld [vmem:[#allocation5 + $0xf98] sm:$0xff] }
 0x3ca   :  { %21018 = vst [vmem:[#allocation33_spill] sm:$0xff] %v19811_v53  ;;  %9868 = vmatprep.subr.bf16.mxu0 %v15402_v27  ;;  %v16090_v54 = vadd.f32 %v9232_v50, %v19772_v22  ;;  %v9234_v12 = vpop.f32.mrb[45].mxu1  ;;  %v15164_v27 = vcombine.high %v1778_v43, %v1782_v26  ;;  %v2053_v43 = vld [vmem:[#allocation5 + $0x17f0] sm:$0xff] }
 0x3cb   :  { %21019 = vst [vmem:[#allocation35_spill] sm:$0xff] %v19813_v15  ;;  %v16091_v4 = vadd.f32 %v9234_v12, %v19777_v20  ;;  %v9236_v41 = vpop.f32.mrb[46].mxu1  ;;  %10547 = vmatpush1.bf16.msra.mxu1 %v15147_v11  ;;  %v2041_v12 = vld [vmem:[#allocation5 + $0x1790] sm:$0xff] }
 0x3cc   :  { %v16092_v14 = vadd.f32 %v9236_v41, %v19772_v22  ;;  %v9238_v33 = vpop.f32.mrb[47].mxu1  ;;  %10548 = vmatprep.subr.bf16.mxu1 %v15156_v18  ;;  %v11139_v50 = vmax.f32 %v16090_v54, 0.0  ;;  %v2045_v11 = vld [vmem:[#allocation5 + $0x17b0] sm:$0xff]  ;;  %v15172_v18 = vcombine.high %v1786_v35, %v1790_v63 }
 0x3cd   :  { %9869 = vmatpush1.bf16.msra.mxu0 %v15401_v55  ;;  %v16093_v61 = vadd.f32 %v9238_v33, %v19777_v20  ;;  %v11140_v47 = vmax.f32 %v16091_v4, 0.0  ;;  %v21021_v41 = vld [vmem:[#allocation114_spill] sm:$0xff]  ;;  %v15417_v55 = vcombine.low %v2033_v34, %v2037_v13  ;;  %v1794_v33 = vld [vmem:[#allocation5 + $0xfd8] sm:$0xff]  ;;  %v15171_v13 = vcombine.low %v1786_v35, %v1790_v63 }
 0x3ce   :  { %9870 = vmatprep.subr.bf16.mxu0 %v15410_v60  ;;  %v11147_v53 = vmax.f32 %v16092_v14, 0.0  ;;  %10504 = vmatmul.mubr.bf16.gmra.mrb[88].mxu1 %v20957_v16  ;;  %v21024_v14 = vld [vmem:[#allocation116_spill] sm:$0xff]  ;;  %v15426_v16 = vcombine.high %v2041_v12, %v2045_v11  ;;  %v1798_v4 = vld [vmem:[#allocation5 + $0xff8] sm:$0xff] }
 0x3cf   :  { %v11148_v31 = vmax.f32 %v16093_v61, 0.0  ;;  %10549 = vmatpush1.bf16.msra.mxu1 %v15155_v8  ;;  %10513 = vmatprep.mubr.bf16.mxu1 %v20960_v32  ;;  %v1806_v32 = vld [vmem:[#allocation5 + $0x1038] sm:$0xff] }
 0x3d0   :  { %9826 = vmatmul.mubr.bf16.gmra.mrb[56].mxu0 %v21021_v41  ;;  %v19823_v23 = vpack.c.bf16 %v11147_v53, %v11139_v50  ;;  %10550 = vmatprep.subr.bf16.mxu1 %v15164_v27  ;;  %v2049_v53 = vld [vmem:[#allocation5 + $0x17d0] sm:$0xff]  ;;  %v15425_v27 = vcombine.low %v2041_v12, %v2045_v11  ;;  %v15179_v12 = vcombine.low %v1794_v33, %v1798_v4 }
 0x3d1   :  { %9871 = vmatpush1.bf16.msra.mxu0 %v15409_v9  ;;  %v19825_v60 = vpack.c.bf16 %v11148_v31, %v11140_v47  ;;  %v9242_v54 = vpop.f32.mrb[48].mxu1  ;;  %9835 = vmatprep.mubr.bf16.mxu0 %v21024_v14  ;;  %v15434_v47 = vcombine.high %v2049_v53, %v2053_v43  ;;  %v1802_v31 = vld [vmem:[#allocation5 + $0x1018] sm:$0xff] }
 0x3d2   :  { %21022 = vst [vmem:[#allocation37_spill] sm:$0xff] %v19823_v23  ;;  %9872 = vmatprep.subr.bf16.mxu0 %v15418_v56  ;;  %v16094_v61 = vadd.f32 %v9242_v54, %v19772_v22  ;;  %v9244_v15 = vpop.f32.mrb[49].mxu1  ;;  %v15180_v56 = vcombine.high %v1794_v33, %v1798_v4  ;;  %v2069_v33 = vld [vmem:[#allocation5 + $0x1870] sm:$0xff] }
 0x3d3   :  { %21023 = vst [vmem:[#allocation39_spill] sm:$0xff] %v19825_v60  ;;  %v16095_v26 = vadd.f32 %v9244_v15, %v19777_v20  ;;  %v9246_v34 = vpop.f32.mrb[50].mxu1  ;;  %10551 = vmatpush1.bf16.msra.mxu1 %v15163_v51  ;;  %v2057_v15 = vld [vmem:[#allocation5 + $0x1810] sm:$0xff] }
 0x3d4   :  { %v16096_v8 = vadd.f32 %v9246_v34, %v19772_v22  ;;  %v9248_v9 = vpop.f32.mrb[51].mxu1  ;;  %10552 = vmatprep.subr.bf16.mxu1 %v15172_v18  ;;  %v11155_v54 = vmax.f32 %v16094_v61, 0.0  ;;  %v2061_v51 = vld [vmem:[#allocation5 + $0x1830] sm:$0xff]  ;;  %v21025_v34 = vld [vmem:[#allocation120_spill] sm:$0xff]  ;;  %v15188_v18 = vcombine.high %v1802_v31, %v1806_v32 }
 0x3d5   :  { %9873 = vmatpush1.bf16.msra.mxu0 %v15417_v55  ;;  %v16097_v50 = vadd.f32 %v9248_v9, %v19777_v20  ;;  %v11156_v35 = vmax.f32 %v16095_v26, 0.0  ;;  %v15433_v55 = vcombine.low %v2049_v53, %v2053_v43  ;;  %v1810_v9 = vld [vmem:[#allocation5 + $0x1058] sm:$0xff]  ;;  %v15187_v43 = vcombine.low %v1802_v31, %v1806_v32 }
 0x3d6   :  { %9874 = vmatprep.subr.bf16.mxu0 %v15426_v16  ;;  %v11163_v23 = vmax.f32 %v16096_v8, 0.0  ;;  %10514 = vmatmul.mubr.bf16.gmra.mrb[92].mxu1 %v20965_v42  ;;  %v21028_v8 = vld [vmem:[#allocation122_spill] sm:$0xff]  ;;  %v15442_v42 = vcombine.high %v2057_v15, %v2061_v51  ;;  %v1814_v26 = vld [vmem:[#allocation5 + $0x1078] sm:$0xff] }
 0x3d7   :  { %v11164_v63 = vmax.f32 %v16097_v50, 0.0  ;;  %10553 = vmatpush1.bf16.msra.mxu1 %v15171_v13  ;;  %10556 = vmatprep.mubr.bf16.mxu1 %v20968_v59  ;;  %v1822_v59 = vld [vmem:[#allocation5 + $0x10b8] sm:$0xff] }
 0x3d8   :  { %9836 = vmatmul.mubr.bf16.gmra.mrb[60].mxu0 %v21025_v34  ;;  %v19835_v11 = vpack.c.bf16 %v11163_v23, %v11155_v54  ;;  %10554 = vmatprep.subr.bf16.mxu1 %v15180_v56  ;;  %v2065_v23 = vld [vmem:[#allocation5 + $0x1850] sm:$0xff]  ;;  %v15441_v56 = vcombine.low %v2057_v15, %v2061_v51  ;;  %v15195_v15 = vcombine.low %v1810_v9, %v1814_v26 }
 0x3d9   :  { %9875 = vmatpush1.bf16.msra.mxu0 %v15425_v27  ;;  %v19837_v16 = vpack.c.bf16 %v11164_v63, %v11156_v35  ;;  %v9252_v61 = vpop.f32.mrb[52].mxu1  ;;  %9878 = vmatprep.mubr.bf16.mxu0 %v21028_v8  ;;  %v15450_v35 = vcombine.high %v2065_v23, %v2069_v33  ;;  %v1818_v63 = vld [vmem:[#allocation5 + $0x1098] sm:$0xff] }
 0x3da   :  { %21026 = vst [vmem:[#allocation41_spill] sm:$0xff] %v19835_v11  ;;  %9876 = vmatprep.subr.bf16.mxu0 %v15434_v47  ;;  %v16098_v50 = vadd.f32 %v9252_v61, %v19772_v22  ;;  %v9254_v60 = vpop.f32.mrb[53].mxu1  ;;  %v15196_v47 = vcombine.high %v1810_v9, %v1814_v26  ;;  %v2085_v9 = vld [vmem:[#allocation5 + $0x18f0] sm:$0xff] }
 0x3db   :  { %21027 = vst [vmem:[#allocation43_spill] sm:$0xff] %v19837_v16  ;;  %v16099_v4 = vadd.f32 %v9254_v60, %v19777_v20  ;;  %v9256_v53 = vpop.f32.mrb[54].mxu1  ;;  %10555 = vmatpush1.bf16.msra.mxu1 %v15179_v12  ;;  %v2073_v60 = vld [vmem:[#allocation5 + $0x1890] sm:$0xff] }
 0x3dc   :  { %v16100_v13 = vadd.f32 %v9256_v53, %v19772_v22  ;;  %v9258_v27 = vpop.f32.mrb[55].mxu1  ;;  %10637 = vmatprep.subr.bf16.mxu1 %v15188_v18  ;;  %v11171_v61 = vmax.f32 %v16098_v50, 0.0  ;;  %v2077_v12 = vld [vmem:[#allocation5 + $0x18b0] sm:$0xff]  ;;  %v15204_v18 = vcombine.high %v1818_v63, %v1822_v59 }
 0x3dd   :  { %9877 = vmatpush1.bf16.msra.mxu0 %v15433_v55  ;;  %v16101_v54 = vadd.f32 %v9258_v27, %v19777_v20  ;;  %v11172_v31 = vmax.f32 %v16099_v4, 0.0  ;;  %v21029_v53 = vld [vmem:[#allocation126_spill] sm:$0xff]  ;;  %v15449_v55 = vcombine.low %v2065_v23, %v2069_v33  ;;  %v1826_v27 = vld [vmem:[#allocation5 + $0x10d8] sm:$0xff]  ;;  %v15203_v33 = vcombine.low %v1818_v63, %v1822_v59 }
 0x3de   :  { %9959 = vmatprep.subr.bf16.mxu0 %v15442_v42  ;;  %v11179_v11 = vmax.f32 %v16100_v13, 0.0  ;;  %10557 = vmatmul.mubr.bf16.vlgmr.msra.gmra.mrb[64].mxu1 %v20973_v39  ;;  %v21032_v13 = vld [vmem:[#allocation128_spill] sm:$0xff]  ;;  %v15458_v39 = vcombine.high %v2073_v60, %v2077_v12  ;;  %v1830_v4 = vld [vmem:[#allocation5 + $0x10f8] sm:$0xff] }
 0x3df   :  { %v11180_v32 = vmax.f32 %v16101_v54, 0.0  ;;  %10638 = vmatpush1.bf16.msra.mxu1 %v15187_v43  ;;  %10566 = vmatprep.mubr.bf16.mxu1 %v20976_v24  ;;  %v1838_v24 = vld [vmem:[#allocation5 + $0x1138] sm:$0xff] }
 0x3e0   :  { %9879 = vmatmul.mubr.bf16.vlgmr.msra.gmra.mrb[32].mxu0 %v21029_v53  ;;  %v19847_v51 = vpack.c.bf16 %v11179_v11, %v11171_v61  ;;  %10639 = vmatprep.subr.bf16.mxu1 %v15196_v47  ;;  %v2081_v11 = vld [vmem:[#allocation5 + $0x18d0] sm:$0xff]  ;;  %v15457_v47 = vcombine.low %v2073_v60, %v2077_v12  ;;  %v15211_v60 = vcombine.low %v1826_v27, %v1830_v4 }
 0x3e1   :  { %9960 = vmatpush1.bf16.msra.mxu0 %v15441_v56  ;;  %v19849_v42 = vpack.c.bf16 %v11180_v32, %v11172_v31  ;;  %v9262_v50 = vpop.f32.mrb[56].mxu1  ;;  %9888 = vmatprep.mubr.bf16.mxu0 %v21032_v13  ;;  %v15466_v31 = vcombine.high %v2081_v11, %v2085_v9  ;;  %v1834_v32 = vld [vmem:[#allocation5 + $0x1118] sm:$0xff] }
 0x3e2   :  { %21030 = vst [vmem:[#allocation45_spill] sm:$0xff] %v19847_v51  ;;  %9961 = vmatprep.subr.bf16.mxu0 %v15450_v35  ;;  %v16102_v54 = vadd.f32 %v9262_v50, %v19772_v22  ;;  %v9264_v16 = vpop.f32.mrb[57].mxu1  ;;  %v15212_v35 = vcombine.high %v1826_v27, %v1830_v4  ;;  %v2101_v27 = vld [vmem:[#allocation5 + $0x1970] sm:$0xff] }
 0x3e3   :  { %21031 = vst [vmem:[#allocation47_spill] sm:$0xff] %v19849_v42  ;;  %v16103_v26 = vadd.f32 %v9264_v16, %v19777_v20  ;;  %v9266_v23 = vpop.f32.mrb[58].mxu1  ;;  %10640 = vmatpush1.bf16.msra.mxu1 %v15195_v15  ;;  %v2089_v16 = vld [vmem:[#allocation5 + $0x1910] sm:$0xff] }
 0x3e4   :  { %v16104_v43 = vadd.f32 %v9266_v23, %v19772_v22  ;;  %v9268_v56 = vpop.f32.mrb[59].mxu1  ;;  %10641 = vmatprep.subr.bf16.mxu1 %v15204_v18  ;;  %v11187_v50 = vmax.f32 %v16102_v54, 0.0  ;;  %v2093_v15 = vld [vmem:[#allocation5 + $0x1930] sm:$0xff]  ;;  %v21033_v23 = vld [vmem:[#allocation132_spill] sm:$0xff]  ;;  %v15220_v18 = vcombine.high %v1834_v32, %v1838_v24 }
 0x3e5   :  { %9962 = vmatpush1.bf16.msra.mxu0 %v15449_v55  ;;  %v16105_v61 = vadd.f32 %v9268_v56, %v19777_v20  ;;  %v11188_v63 = vmax.f32 %v16103_v26, 0.0  ;;  %v15465_v55 = vcombine.low %v2081_v11, %v2085_v9  ;;  %v1842_v56 = vld [vmem:[#allocation5 + $0x1158] sm:$0xff]  ;;  %v15219_v9 = vcombine.low %v1834_v32, %v1838_v24 }
 0x3e6   :  { %9963 = vmatprep.subr.bf16.mxu0 %v15458_v39  ;;  %v11195_v51 = vmax.f32 %v16104_v43, 0.0  ;;  %10567 = vmatmul.mubr.bf16.gmra.mrb[68].mxu1 %v20981_v21  ;;  %v21035_v43 = vld [vmem:[#allocation134_spill] sm:$0xff]  ;;  %v15474_v21 = vcombine.high %v2089_v16, %v2093_v15  ;;  %v1846_v26 = vld [vmem:[#allocation5 + $0x1178] sm:$0xff] }
 0x3e7   :  { %v11196_v59 = vmax.f32 %v16105_v61, 0.0  ;;  %10642 = vmatpush1.bf16.msra.mxu1 %v15203_v33  ;;  %10576 = vmatprep.mubr.bf16.mxu1 %v20984_v46  ;;  %v1854_v46 = vld [vmem:[#allocation5 + $0x11b8] sm:$0xff] }
 0x3e8   :  { %9889 = vmatmul.mubr.bf16.gmra.mrb[36].mxu0 %v21033_v23  ;;  %v19859_v12 = vpack.c.bf16 %v11195_v51, %v11187_v50  ;;  %10643 = vmatprep.subr.bf16.mxu1 %v15212_v35  ;;  %v2097_v51 = vld [vmem:[#allocation5 + $0x1950] sm:$0xff]  ;;  %v15473_v35 = vcombine.low %v2089_v16, %v2093_v15  ;;  %v15227_v16 = vcombine.low %v1842_v56, %v1846_v26 }
 0x3e9   :  { %9964 = vmatpush1.bf16.msra.mxu0 %v15457_v47  ;;  %v19861_v39 = vpack.c.bf16 %v11196_v59, %v11188_v63  ;;  %v9272_v54 = vpop.f32.mrb[60].mxu1  ;;  %9898 = vmatprep.mubr.bf16.mxu0 %v21035_v43  ;;  %v15482_v63 = vcombine.high %v2097_v51, %v2101_v27  ;;  %v1850_v59 = vld [vmem:[#allocation5 + $0x1198] sm:$0xff] }
 0x3ea   :  { %21034 = vst [vmem:[#allocation49_spill] sm:$0xff] %v19859_v12  ;;  %9965 = vmatprep.subr.bf16.mxu0 %v15466_v31  ;;  %v16106_v61 = vadd.f32 %v9272_v54, %v19772_v22  ;;  %v9274_v42 = vpop.f32.mrb[61].mxu1  ;;  %v15228_v31 = vcombine.high %v1842_v56, %v1846_v26  ;;  %v15235_v56 = vcombine.low %v1850_v59, %v1854_v46 }
 0x3eb   :  { %v16107_v4 = vadd.f32 %v9274_v42, %v19777_v20  ;;  %v9276_v11 = vpop.f32.mrb[62].mxu1  ;;  %10644 = vmatpush1.bf16.msra.mxu1 %v15211_v60  ;;  %v2105_v42 = vld [vmem:[#allocation5 + $0x1990] sm:$0xff] }
 0x3ec   :  { %v16108_v33 = vadd.f32 %v9276_v11, %v19772_v22  ;;  %v9278_v47 = vpop.f32.mrb[63].mxu1  ;;  %10645 = vmatprep.subr.bf16.mxu1 %v15220_v18  ;;  %v11203_v54 = vmax.f32 %v16106_v61, 0.0  ;;  %v2109_v60 = vld [vmem:[#allocation5 + $0x19b0] sm:$0xff]  ;;  %v1858_v61 = vld [vmem:[#allocation5 + $0x11d8] sm:$0xff] }
 0x3ed   :  { %9966 = vmatpush1.bf16.msra.mxu0 %v15465_v55  ;;  %v16109_v50 = vadd.f32 %v9278_v47, %v19777_v20  ;;  %v11204_v32 = vmax.f32 %v16107_v4, 0.0  ;;  %v21036_v22 = vld [vmem:[#allocation138_spill] sm:$0xff]  ;;  %v15481_v20 = vcombine.low %v2097_v51, %v2101_v27  ;;  %v15236_v55 = vcombine.high %v1850_v59, %v1854_v46  ;;  %v1862_v11 = vld [vmem:[#allocation5 + $0x11f8] sm:$0xff] }
 0x3ee   :  { %9967 = vmatprep.subr.bf16.mxu0 %v15474_v21  ;;  %v11211_v12 = vmax.f32 %v16108_v33, 0.0  ;;  %10577 = vmatmul.mubr.bf16.gmra.mrb[72].mxu1 %v20989_v37  ;;  %v21037_v21 = vld [vmem:[#allocation140_spill] sm:$0xff]  ;;  %v15490_v37 = vcombine.high %v2105_v42, %v2109_v60  ;;  %v2113_v4 = vld [vmem:[#allocation5 + $0x19d0] sm:$0xff]  ;;  %v15244_v26 = vcombine.high %v1858_v61, %v1862_v11  ;;  %v1866_v27 = vld [vmem:[#allocation5 + $0x1218] sm:$0xff] }
 0x3ef   :  { %v11212_v24 = vmax.f32 %v16109_v50, 0.0  ;;  %10646 = vmatpush1.bf16.msra.mxu1 %v15219_v9  ;;  %10586 = vmatprep.mubr.bf16.mxu1 %v20990_v38  ;;  %v2117_v33 = vld [vmem:[#allocation5 + $0x19f0] sm:$0xff]  ;;  %v1870_v9 = vld [vmem:[#allocation5 + $0x1238] sm:$0xff]  ;;  %v15243_v38 = vcombine.low %v1858_v61, %v1862_v11 }
 0x3f0   :  { %9899 = vmatmul.mubr.bf16.gmra.mrb[40].mxu0 %v21036_v22  ;;  %v19871_v15 = vpack.c.bf16 %v11211_v12, %v11203_v54  ;;  %10647 = vmatprep.subr.bf16.mxu1 %v15228_v31  ;;  %v15489_v12 = vcombine.low %v2105_v42, %v2109_v60  ;;  %v15498_v51 = vcombine.high %v2113_v4, %v2117_v33  ;;  %v2121_v47 = vld [vmem:[#allocation5 + $0x1a10] sm:$0xff]  ;;  %v21038_v31 = vld [vmem:[#allocation141_spill] sm:$0xff]  ;;  %v1874_v54 = vld [vmem:[#allocation5 + $0x1258] sm:$0xff] }
 0x3f1   :  { %9968 = vmatpush1.bf16.msra.mxu0 %v15473_v35  ;;  %v19873_v18 = vpack.c.bf16 %v11212_v24, %v11204_v32  ;;  %9908 = vmatprep.mubr.bf16.mxu0 %v21037_v21  ;;  %v2125_v35 = vld [vmem:[#allocation5 + $0x1a30] sm:$0xff]  ;;  %v15497_v50 = vcombine.low %v2113_v4, %v2117_v33  ;;  %v1878_v42 = vld [vmem:[#allocation5 + $0x1278] sm:$0xff]  ;;  %v15251_v32 = vcombine.low %v1866_v27, %v1870_v9 }
 0x3f2   :  { %9969 = vmatprep.subr.bf16.mxu0 %v15482_v63  ;;  %v15252_v63 = vcombine.high %v1866_v27, %v1870_v9  ;;  %v21039_v59 = vld [vmem:[#allocation142_spill] sm:$0xff]  ;;  %v15506_v46 = vcombine.high %v2121_v47, %v2125_v35  ;;  %v15505_v24 = vcombine.low %v2121_v47, %v2125_v35  ;;  %v21040_v4 = vld [vmem:[#allocation143_spill] sm:$0xff] }
 0x3f3   :  { %10648 = vmatpush1.bf16.msra.mxu1 %v15227_v16  ;;  %v2129_v60 = vld [vmem:[#allocation5 + $0x1a50] sm:$0xff]  ;;  %v15260_v16 = vcombine.high %v1874_v54, %v1878_v42  ;;  %v1894_v27 = vld [vmem:[#allocation5 + $0x12f8] sm:$0xff] }
 0x3f4   :  { %10649 = vmatprep.subr.bf16.mxu1 %v15236_v55  ;;  %v1882_v55 = vld [vmem:[#allocation5 + $0x1298] sm:$0xff]  ;;  %v2137_v61 = vld [vmem:[#allocation5 + $0x1a90] sm:$0xff] }
 0x3f5   :  { %9970 = vmatpush1.bf16.msra.mxu0 %v15481_v20  ;;  %v2141_v11 = vld [vmem:[#allocation5 + $0x1ab0] sm:$0xff] }
 0x3f6   :  { %9971 = vmatprep.subr.bf16.mxu0 %v15490_v37  ;;  %10587 = vmatmul.mubr.bf16.gmra.mrb[76].mxu1 %v20991_v17  ;;  %v2133_v17 = vld [vmem:[#allocation5 + $0x1a70] sm:$0xff]  ;;  %v1886_v37 = vld [vmem:[#allocation5 + $0x12b8] sm:$0xff]  ;;  %v15521_v35 = vcombine.low %v2137_v61, %v2141_v11 }
 0x3f7   :  { %10650 = vmatpush1.bf16.msra.mxu1 %v15235_v56  ;;  %10596 = vmatprep.mubr.bf16.mxu1 %v20992_v29  ;;  %v15514_v20 = vcombine.high %v2129_v60, %v2133_v17  ;;  %v15259_v29 = vcombine.low %v1874_v54, %v1878_v42  ;;  %v15513_v33 = vcombine.low %v2129_v60, %v2133_v17  ;;  %v2145_v9 = vld [vmem:[#allocation5 + $0x1ad0] sm:$0xff]  ;;  %v21042_v60 = vld [vmem:[#allocation145_spill] sm:$0xff] }
 0x3f8   :  { %9909 = vmatmul.mubr.bf16.gmra.mrb[44].mxu0 %v21038_v31  ;;  %10651 = vmatprep.subr.bf16.mxu1 %v15244_v26  ;;  %v15268_v56 = vcombine.high %v1882_v55, %v1886_v37  ;;  %v15522_v26 = vcombine.high %v2137_v61, %v2141_v11  ;;  %v15267_v47 = vcombine.low %v1882_v55, %v1886_v37  ;;  %v2153_v54 = vld [vmem:[#allocation5 + $0x1b10] sm:$0xff]  ;;  %v1910_v55 = vld [vmem:[#allocation5 + $0x1378] sm:$0xff] }
 0x3f9   :  { %9972 = vmatpush1.bf16.msra.mxu0 %v15489_v12  ;;  %9918 = vmatprep.mubr.bf16.mxu0 %v21039_v59  ;;  %v21041_v12 = vld [vmem:[#allocation144_spill] sm:$0xff]  ;;  %v2157_v42 = vld [vmem:[#allocation5 + $0x1b30] sm:$0xff] }
 0x3fa   :  { %9973 = vmatprep.subr.bf16.mxu0 %v15498_v51  ;;  %v1890_v51 = vld [vmem:[#allocation5 + $0x12d8] sm:$0xff]  ;;  %v2161_v37 = vld [vmem:[#allocation5 + $0x1b50] sm:$0xff]  ;;  %v15537_v11 = vcombine.low %v2153_v54, %v2157_v42 }
 0x3fb   :  { %10652 = vmatpush1.bf16.msra.mxu1 %v15243_v38  ;;  %v15276_v38 = vcombine.high %v1890_v51, %v1894_v27 }
 0x3fc   :  { %10653 = vmatprep.subr.bf16.mxu1 %v15252_v63  ;;  %v1898_v63 = vld [vmem:[#allocation5 + $0x1318] sm:$0xff] }
 0x3fd   :  { %9974 = vmatpush1.bf16.msra.mxu0 %v15497_v50 }
 0x3fe   :  { %9975 = vmatprep.subr.bf16.mxu0 %v15506_v46  ;;  %10597 = vmatmul.mubr.bf16.gmra.mrb[80].mxu1 %v20993_v6  ;;  %v2149_v6 = vld [vmem:[#allocation5 + $0x1af0] sm:$0xff]  ;;  %v1902_v46 = vld [vmem:[#allocation5 + $0x1338] sm:$0xff] }
 0x3ff   :  { %10654 = vmatpush1.bf16.msra.mxu1 %v15251_v32  ;;  %10606 = vmatprep.mubr.bf16.mxu1 %v20994_v52  ;;  %v15530_v50 = vcombine.high %v2145_v9, %v2149_v6  ;;  %v15275_v52 = vcombine.low %v1890_v51, %v1894_v27  ;;  %v15529_v17 = vcombine.low %v2145_v9, %v2149_v6  ;;  %v2169_v51 = vld [vmem:[#allocation5 + $0x1b90] sm:$0xff]  ;;  %v21044_v9 = vld [vmem:[#allocation147_spill] sm:$0xff] }
 0x400   :  { %9919 = vmatmul.mubr.bf16.gmra.mrb[48].mxu0 %v21040_v4  ;;  %10655 = vmatprep.subr.bf16.mxu1 %v15260_v16  ;;  %v15284_v32 = vcombine.high %v1898_v63, %v1902_v46  ;;  %v15538_v16 = vcombine.high %v2153_v54, %v2157_v42  ;;  %v15283_v61 = vcombine.low %v1898_v63, %v1902_v46  ;;  %v2173_v27 = vld [vmem:[#allocation5 + $0x1bb0] sm:$0xff]  ;;  %v1926_v63 = vld [vmem:[#allocation5 + $0x13f8] sm:$0xff] }
 0x401   :  { %9976 = vmatpush1.bf16.msra.mxu0 %v15505_v24  ;;  %9928 = vmatprep.mubr.bf16.mxu0 %v21041_v12  ;;  %v21043_v24 = vld [vmem:[#allocation146_spill] sm:$0xff]  ;;  %v15553_v42 = vcombine.low %v2169_v51, %v2173_v27 }
 0x402   :  { %9977 = vmatprep.subr.bf16.mxu0 %v15514_v20  ;;  %v1906_v20 = vld [vmem:[#allocation5 + $0x1358] sm:$0xff]  ;;  %v2177_v46 = vld [vmem:[#allocation5 + $0x1bd0] sm:$0xff] }
 0x403   :  { %10656 = vmatpush1.bf16.msra.mxu1 %v15259_v29  ;;  %v15292_v29 = vcombine.high %v1906_v20, %v1910_v55 }
 0x404   :  { %10657 = vmatprep.subr.bf16.mxu1 %v15268_v56  ;;  %v1914_v56 = vld [vmem:[#allocation5 + $0x1398] sm:$0xff] }
 0x405   :  { %9978 = vmatpush1.bf16.msra.mxu0 %v15513_v33 }
 0x406   :  { %9979 = vmatprep.subr.bf16.mxu0 %v15522_v26  ;;  %10607 = vmatmul.mubr.bf16.gmra.mrb[84].mxu1 %v20995_v0  ;;  %v2165_v0 = vld [vmem:[#allocation5 + $0x1b70] sm:$0xff]  ;;  %v1918_v26 = vld [vmem:[#allocation5 + $0x13b8] sm:$0xff] }
 0x407   :  { %10658 = vmatpush1.bf16.msra.mxu1 %v15267_v47  ;;  %10616 = vmatprep.mubr.bf16.mxu1 %v20996_v58  ;;  %v15546_v33 = vcombine.high %v2161_v37, %v2165_v0  ;;  %v15291_v58 = vcombine.low %v1906_v20, %v1910_v55  ;;  %v15545_v6 = vcombine.low %v2161_v37, %v2165_v0  ;;  %v2185_v20 = vld [vmem:[#allocation5 + $0x1c10] sm:$0xff]  ;;  %v21046_v37 = vld [vmem:[#allocation149_spill] sm:$0xff] }
 0x408   :  { %9929 = vmatmul.mubr.bf16.gmra.mrb[52].mxu0 %v21042_v60  ;;  %10659 = vmatprep.subr.bf16.mxu1 %v15276_v38  ;;  %v15300_v47 = vcombine.high %v1914_v56, %v1918_v26  ;;  %v15554_v38 = vcombine.high %v2169_v51, %v2173_v27  ;;  %v15299_v54 = vcombine.low %v1914_v56, %v1918_v26  ;;  %v2189_v55 = vld [vmem:[#allocation5 + $0x1c30] sm:$0xff]  ;;  %v1942_v56 = vld [vmem:[#allocation5 + $0x1478] sm:$0xff] }
 0x409   :  { %9980 = vmatpush1.bf16.msra.mxu0 %v15521_v35  ;;  %9938 = vmatprep.mubr.bf16.mxu0 %v21043_v24  ;;  %v21045_v35 = vld [vmem:[#allocation148_spill] sm:$0xff]  ;;  %v2193_v26 = vld [vmem:[#allocation5 + $0x1c50] sm:$0xff]  ;;  %v15569_v27 = vcombine.low %v2185_v20, %v2189_v55 }
 0x40a   :  { %9981 = vmatprep.subr.bf16.mxu0 %v15530_v50  ;;  %v1922_v50 = vld [vmem:[#allocation5 + $0x13d8] sm:$0xff] }
 0x40b   :  { %10660 = vmatpush1.bf16.msra.mxu1 %v15275_v52  ;;  %v15308_v52 = vcombine.high %v1922_v50, %v1926_v63 }
 0x40c   :  { %10661 = vmatprep.subr.bf16.mxu1 %v15284_v32  ;;  %v1930_v32 = vld [vmem:[#allocation5 + $0x1418] sm:$0xff] }
 0x40d   :  { %9982 = vmatpush1.bf16.msra.mxu0 %v15529_v17 }
 0x40e   :  { %9983 = vmatprep.subr.bf16.mxu0 %v15538_v16  ;;  %10617 = vmatmul.mubr.bf16.gmra.mrb[88].mxu1 %v20997_v10  ;;  %v2181_v10 = vld [vmem:[#allocation5 + $0x1bf0] sm:$0xff]  ;;  %v1934_v16 = vld [vmem:[#allocation5 + $0x1438] sm:$0xff] }
 0x40f   :  { %10662 = vmatpush1.bf16.msra.mxu1 %v15283_v61  ;;  %10626 = vmatprep.mubr.bf16.mxu1 %v20998_v28  ;;  %v15562_v17 = vcombine.high %v2177_v46, %v2181_v10  ;;  %v15307_v28 = vcombine.low %v1922_v50, %v1926_v63  ;;  %v15561_v0 = vcombine.low %v2177_v46, %v2181_v10  ;;  %v2201_v50 = vld [vmem:[#allocation5 + $0x1c90] sm:$0xff]  ;;  %v21048_v46 = vld [vmem:[#allocation151_spill] sm:$0xff] }
 0x410   :  { %9939 = vmatmul.mubr.bf16.gmra.mrb[56].mxu0 %v21044_v9  ;;  %10663 = vmatprep.subr.bf16.mxu1 %v15292_v29  ;;  %v15316_v61 = vcombine.high %v1930_v32, %v1934_v16  ;;  %v15570_v29 = vcombine.high %v2185_v20, %v2189_v55  ;;  %v15315_v51 = vcombine.low %v1930_v32, %v1934_v16  ;;  %v2205_v63 = vld [vmem:[#allocation5 + $0x1cb0] sm:$0xff]  ;;  %v1958_v32 = vld [vmem:[#allocation5 + $0x14f8] sm:$0xff] }
 0x411   :  { %9984 = vmatpush1.bf16.msra.mxu0 %v15537_v11  ;;  %9948 = vmatprep.mubr.bf16.mxu0 %v21045_v35  ;;  %v21047_v11 = vld [vmem:[#allocation150_spill] sm:$0xff]  ;;  %v15585_v55 = vcombine.low %v2201_v50, %v2205_v63 }
 0x412   :  { %9985 = vmatprep.subr.bf16.mxu0 %v15546_v33  ;;  %v1938_v33 = vld [vmem:[#allocation5 + $0x1458] sm:$0xff]  ;;  %v2209_v16 = vld [vmem:[#allocation5 + $0x1cd0] sm:$0xff] }
 0x413   :  { %10664 = vmatpush1.bf16.msra.mxu1 %v15291_v58  ;;  %v15324_v58 = vcombine.high %v1938_v33, %v1942_v56 }
 0x414   :  { %10665 = vmatprep.subr.bf16.mxu1 %v15300_v47  ;;  %v1946_v47 = vld [vmem:[#allocation5 + $0x1498] sm:$0xff] }
 0x415   :  { %9986 = vmatpush1.bf16.msra.mxu0 %v15545_v6 }
 0x416   :  { %9987 = vmatprep.subr.bf16.mxu0 %v15554_v38  ;;  %10627 = vmatmul.mubr.bf16.gmra.mrb[92].mxu1 %v20999_v25  ;;  %v2197_v25 = vld [vmem:[#allocation5 + $0x1c70] sm:$0xff]  ;;  %v1950_v38 = vld [vmem:[#allocation5 + $0x14b8] sm:$0xff] }
 0x417   :  { %10666 = vmatpush1.bf16.msra.mxu1 %v15299_v54  ;;  %10669 = vmatprep.mubr.bf16.mxu1 %v21000_v45  ;;  %v15578_v6 = vcombine.high %v2193_v26, %v2197_v25  ;;  %v15323_v45 = vcombine.low %v1938_v33, %v1942_v56  ;;  %v15577_v10 = vcombine.low %v2193_v26, %v2197_v25  ;;  %v2217_v33 = vld [vmem:[#allocation5 + $0x1d10] sm:$0xff]  ;;  %v21050_v26 = vld [vmem:[#allocation153_spill] sm:$0xff] }
 0x418   :  { %9949 = vmatmul.mubr.bf16.gmra.mrb[60].mxu0 %v21046_v37  ;;  %10667 = vmatprep.subr.bf16.mxu1 %v15308_v52  ;;  %v15332_v54 = vcombine.high %v1946_v47, %v1950_v38  ;;  %v15586_v52 = vcombine.high %v2201_v50, %v2205_v63  ;;  %v15331_v20 = vcombine.low %v1946_v47, %v1950_v38  ;;  %v2221_v56 = vld [vmem:[#allocation5 + $0x1d30] sm:$0xff]  ;;  %v1974_v47 = vld [vmem:[#allocation5 + $0x1578] sm:$0xff] }
 0x419   :  { %9988 = vmatpush1.bf16.msra.mxu0 %v15553_v42  ;;  %9991 = vmatprep.mubr.bf16.mxu0 %v21047_v11  ;;  %v21049_v42 = vld [vmem:[#allocation152_spill] sm:$0xff]  ;;  %v2225_v38 = vld [vmem:[#allocation5 + $0x1d50] sm:$0xff]  ;;  %v15601_v63 = vcombine.low %v2217_v33, %v2221_v56 }
 0x41a   :  { %9989 = vmatprep.subr.bf16.mxu0 %v15562_v17  ;;  %v1954_v17 = vld [vmem:[#allocation5 + $0x14d8] sm:$0xff] }
 0x41b   :  { %10668 = vmatpush1.bf16.msra.mxu1 %v15307_v28  ;;  %v15340_v28 = vcombine.high %v1954_v17, %v1958_v32 }
 0x41c   :  { %10750 = vmatprep.subr.bf16.mxu1 %v15316_v61  ;;  %v1962_v61 = vld [vmem:[#allocation5 + $0x1518] sm:$0xff] }
 0x41d   :  { %9990 = vmatpush1.bf16.msra.mxu0 %v15561_v0 }
 0x41e   :  { %10072 = vmatprep.subr.bf16.mxu0 %v15570_v29  ;;  %10670 = vmatmul.mubr.bf16.vlgmr.msra.gmra.mrb[64].mxu1 %v21001_v7  ;;  %v2213_v7 = vld [vmem:[#allocation5 + $0x1cf0] sm:$0xff]  ;;  %v1966_v29 = vld [vmem:[#allocation5 + $0x1538] sm:$0xff] }
 0x41f   :  { %10751 = vmatpush1.bf16.msra.mxu1 %v15315_v51  ;;  %10679 = vmatprep.mubr.bf16.mxu1 %v21002_v49  ;;  %v15594_v0 = vcombine.high %v2209_v16, %v2213_v7  ;;  %v15339_v49 = vcombine.low %v1954_v17, %v1958_v32  ;;  %v15593_v25 = vcombine.low %v2209_v16, %v2213_v7  ;;  %v2233_v17 = vld [vmem:[#allocation5 + $0x1d90] sm:$0xff]  ;;  %v21052_v16 = vld [vmem:[#allocation155_spill] sm:$0xff] }
 0x420   :  { %9992 = vmatmul.mubr.bf16.vlgmr.msra.gmra.mrb[32].mxu0 %v21048_v46  ;;  %10752 = vmatprep.subr.bf16.mxu1 %v15324_v58  ;;  %v15348_v51 = vcombine.high %v1962_v61, %v1966_v29  ;;  %v15602_v58 = vcombine.high %v2217_v33, %v2221_v56  ;;  %v15347_v50 = vcombine.low %v1962_v61, %v1966_v29  ;;  %v2237_v32 = vld [vmem:[#allocation5 + $0x1db0] sm:$0xff]  ;;  %v1990_v61 = vld [vmem:[#allocation5 + $0x15f8] sm:$0xff] }
 0x421   :  { %10073 = vmatpush1.bf16.msra.mxu0 %v15569_v27  ;;  %10001 = vmatprep.mubr.bf16.mxu0 %v21049_v42  ;;  %v21051_v27 = vld [vmem:[#allocation154_spill] sm:$0xff]  ;;  %v15617_v56 = vcombine.low %v2233_v17, %v2237_v32 }
 0x422   :  { %10074 = vmatprep.subr.bf16.mxu0 %v15578_v6  ;;  %v1970_v6 = vld [vmem:[#allocation5 + $0x1558] sm:$0xff]  ;;  %v2241_v29 = vld [vmem:[#allocation5 + $0x1dd0] sm:$0xff] }
 0x423   :  { %10753 = vmatpush1.bf16.msra.mxu1 %v15323_v45  ;;  %v15356_v45 = vcombine.high %v1970_v6, %v1974_v47 }
 0x424   :  { %10754 = vmatprep.subr.bf16.mxu1 %v15332_v54  ;;  %v1978_v54 = vld [vmem:[#allocation5 + $0x1598] sm:$0xff] }
 0x425   :  { %10075 = vmatpush1.bf16.msra.mxu0 %v15577_v10 }
 0x426   :  { %10076 = vmatprep.subr.bf16.mxu0 %v15586_v52  ;;  %10680 = vmatmul.mubr.bf16.gmra.mrb[68].mxu1 %v21003_v48  ;;  %v2229_v48 = vld [vmem:[#allocation5 + $0x1d70] sm:$0xff]  ;;  %v1982_v52 = vld [vmem:[#allocation5 + $0x15b8] sm:$0xff] }
 0x427   :  { %10755 = vmatpush1.bf16.msra.mxu1 %v15331_v20  ;;  %10689 = vmatprep.mubr.bf16.mxu1 %v21004_v19  ;;  %v15610_v10 = vcombine.high %v2225_v38, %v2229_v48  ;;  %v15355_v19 = vcombine.low %v1970_v6, %v1974_v47  ;;  %v15609_v7 = vcombine.low %v2225_v38, %v2229_v48  ;;  %v2249_v6 = vld [vmem:[#allocation5 + $0x1e10] sm:$0xff]  ;;  %v21054_v38 = vld [vmem:[#allocation157_spill] sm:$0xff] }
 0x428   :  { %10002 = vmatmul.mubr.bf16.gmra.mrb[36].mxu0 %v21050_v26  ;;  %10756 = vmatprep.subr.bf16.mxu1 %v15340_v28  ;;  %v15364_v20 = vcombine.high %v1978_v54, %v1982_v52  ;;  %v15618_v28 = vcombine.high %v2233_v17, %v2237_v32  ;;  %v15363_v33 = vcombine.low %v1978_v54, %v1982_v52  ;;  %v2253_v47 = vld [vmem:[#allocation5 + $0x1e30] sm:$0xff]  ;;  %v2006_v54 = vld [vmem:[#allocation5 + $0x1678] sm:$0xff] }
 0x429   :  { %10077 = vmatpush1.bf16.msra.mxu0 %v15585_v55  ;;  %10011 = vmatprep.mubr.bf16.mxu0 %v21051_v27  ;;  %v21053_v55 = vld [vmem:[#allocation156_spill] sm:$0xff]  ;;  %v2257_v52 = vld [vmem:[#allocation5 + $0x1e50] sm:$0xff]  ;;  %v15633_v32 = vcombine.low %v2249_v6, %v2253_v47 }
 0x42a   :  { %10078 = vmatprep.subr.bf16.mxu0 %v15594_v0  ;;  %v1986_v0 = vld [vmem:[#allocation5 + $0x15d8] sm:$0xff] }
 0x42b   :  { %10757 = vmatpush1.bf16.msra.mxu1 %v15339_v49  ;;  %v15372_v49 = vcombine.high %v1986_v0, %v1990_v61 }
 0x42c   :  { %10758 = vmatprep.subr.bf16.mxu1 %v15348_v51  ;;  %v1994_v51 = vld [vmem:[#allocation5 + $0x1618] sm:$0xff] }
 0x42d   :  { %10079 = vmatpush1.bf16.msra.mxu0 %v15593_v25 }
 0x42e   :  { %10080 = vmatprep.subr.bf16.mxu0 %v15602_v58  ;;  %10690 = vmatmul.mubr.bf16.gmra.mrb[72].mxu1 %v21006_v2  ;;  %v2245_v2 = vld [vmem:[#allocation5 + $0x1df0] sm:$0xff]  ;;  %v1998_v58 = vld [vmem:[#allocation5 + $0x1638] sm:$0xff] }
 0x42f   :  { %10759 = vmatpush1.bf16.msra.mxu1 %v15347_v50  ;;  %10699 = vmatprep.mubr.bf16.mxu1 %v21007_v44  ;;  %v15626_v25 = vcombine.high %v2241_v29, %v2245_v2  ;;  %v15371_v44 = vcombine.low %v1986_v0, %v1990_v61  ;;  %v15625_v48 = vcombine.low %v2241_v29, %v2245_v2  ;;  %v2265_v0 = vld [vmem:[#allocation5 + $0x1e90] sm:$0xff]  ;;  %v21056_v29 = vld [vmem:[#allocation159_spill] sm:$0xff] }
 0x430   :  { %10012 = vmatmul.mubr.bf16.gmra.mrb[40].mxu0 %v21052_v16  ;;  %10760 = vmatprep.subr.bf16.mxu1 %v15356_v45  ;;  %v15380_v50 = vcombine.high %v1994_v51, %v1998_v58  ;;  %v15634_v45 = vcombine.high %v2249_v6, %v2253_v47  ;;  %v15379_v17 = vcombine.low %v1994_v51, %v1998_v58  ;;  %v2269_v61 = vld [vmem:[#allocation5 + $0x1eb0] sm:$0xff]  ;;  %v2022_v51 = vld [vmem:[#allocation5 + $0x16f8] sm:$0xff] }
 0x431   :  { %10081 = vmatpush1.bf16.msra.mxu0 %v15601_v63  ;;  %10021 = vmatprep.mubr.bf16.mxu0 %v21053_v55  ;;  %v21055_v63 = vld [vmem:[#allocation158_spill] sm:$0xff]  ;;  %v15649_v47 = vcombine.low %v2265_v0, %v2269_v61 }
 0x432   :  { %10082 = vmatprep.subr.bf16.mxu0 %v15610_v10  ;;  %v2002_v10 = vld [vmem:[#allocation5 + $0x1658] sm:$0xff]  ;;  %v2273_v58 = vld [vmem:[#allocation5 + $0x1ed0] sm:$0xff] }
 0x433   :  { %10761 = vmatpush1.bf16.msra.mxu1 %v15355_v19  ;;  %v15388_v19 = vcombine.high %v2002_v10, %v2006_v54 }
 0x434   :  { %10762 = vmatprep.subr.bf16.mxu1 %v15364_v20  ;;  %v2010_v20 = vld [vmem:[#allocation5 + $0x1698] sm:$0xff] }
 0x435   :  { %10083 = vmatpush1.bf16.msra.mxu0 %v15609_v7 }
 0x436   :  { %10084 = vmatprep.subr.bf16.mxu0 %v15618_v28  ;;  %10700 = vmatmul.mubr.bf16.gmra.mrb[76].mxu1 %v21009_v36  ;;  %v2261_v36 = vld [vmem:[#allocation5 + $0x1e70] sm:$0xff]  ;;  %v2014_v28 = vld [vmem:[#allocation5 + $0x16b8] sm:$0xff] }
 0x437   :  { %10763 = vmatpush1.bf16.msra.mxu1 %v15363_v33  ;;  %10709 = vmatprep.mubr.bf16.mxu1 %v21012_v40  ;;  %v15642_v7 = vcombine.high %v2257_v52, %v2261_v36  ;;  %v15387_v40 = vcombine.low %v2002_v10, %v2006_v54  ;;  %v15641_v2 = vcombine.low %v2257_v52, %v2261_v36  ;;  %v2281_v10 = vld [vmem:[#allocation5 + $0x1f10] sm:$0xff]  ;;  %v21058_v52 = vld [vmem:[#allocation161_spill] sm:$0xff] }
 0x438   :  { %10022 = vmatmul.mubr.bf16.gmra.mrb[44].mxu0 %v21054_v38  ;;  %10764 = vmatprep.subr.bf16.mxu1 %v15372_v49  ;;  %v15396_v33 = vcombine.high %v2010_v20, %v2014_v28  ;;  %v15650_v49 = vcombine.high %v2265_v0, %v2269_v61  ;;  %v15395_v6 = vcombine.low %v2010_v20, %v2014_v28  ;;  %v2285_v54 = vld [vmem:[#allocation5 + $0x1f30] sm:$0xff]  ;;  %v2038_v20 = vld [vmem:[#allocation5 + $0x1778] sm:$0xff] }
 0x439   :  { %10085 = vmatpush1.bf16.msra.mxu0 %v15617_v56  ;;  %10031 = vmatprep.mubr.bf16.mxu0 %v21055_v63  ;;  %v21057_v56 = vld [vmem:[#allocation160_spill] sm:$0xff]  ;;  %v2289_v28 = vld [vmem:[#allocation5 + $0x1f50] sm:$0xff]  ;;  %v15665_v61 = vcombine.low %v2281_v10, %v2285_v54 }
 0x43a   :  { %10086 = vmatprep.subr.bf16.mxu0 %v15626_v25  ;;  %v2018_v25 = vld [vmem:[#allocation5 + $0x16d8] sm:$0xff] }
 0x43b   :  { %10765 = vmatpush1.bf16.msra.mxu1 %v15371_v44  ;;  %v15404_v44 = vcombine.high %v2018_v25, %v2022_v51 }
 0x43c   :  { %10766 = vmatprep.subr.bf16.mxu1 %v15380_v50  ;;  %v2026_v50 = vld [vmem:[#allocation5 + $0x1718] sm:$0xff] }
 0x43d   :  { %10087 = vmatpush1.bf16.msra.mxu0 %v15625_v48 }
 0x43e   :  { %10088 = vmatprep.subr.bf16.mxu0 %v15634_v45  ;;  %10710 = vmatmul.mubr.bf16.gmra.mrb[80].mxu1 %v21013_v5  ;;  %v2277_v5 = vld [vmem:[#allocation5 + $0x1ef0] sm:$0xff]  ;;  %v2030_v45 = vld [vmem:[#allocation5 + $0x1738] sm:$0xff] }
 0x43f   :  { %10767 = vmatpush1.bf16.msra.mxu1 %v15379_v17  ;;  %10719 = vmatprep.mubr.bf16.mxu1 %v21016_v1  ;;  %v15658_v48 = vcombine.high %v2273_v58, %v2277_v5  ;;  %v15403_v1 = vcombine.low %v2018_v25, %v2022_v51  ;;  %v15657_v36 = vcombine.low %v2273_v58, %v2277_v5  ;;  %v2297_v25 = vld [vmem:[#allocation5 + $0x1f90] sm:$0xff]  ;;  %v21060_v58 = vld [vmem:[#allocation163_spill] sm:$0xff] }
 0x440   :  { %10032 = vmatmul.mubr.bf16.gmra.mrb[48].mxu0 %v21056_v29  ;;  %10768 = vmatprep.subr.bf16.mxu1 %v15388_v19  ;;  %v15412_v17 = vcombine.high %v2026_v50, %v2030_v45  ;;  %v15666_v19 = vcombine.high %v2281_v10, %v2285_v54  ;;  %v15411_v0 = vcombine.low %v2026_v50, %v2030_v45  ;;  %v2301_v51 = vld [vmem:[#allocation5 + $0x1fb0] sm:$0xff]  ;;  %v2054_v50 = vld [vmem:[#allocation5 + $0x17f8] sm:$0xff] }
 0x441   :  { %10089 = vmatpush1.bf16.msra.mxu0 %v15633_v32  ;;  %10041 = vmatprep.mubr.bf16.mxu0 %v21057_v56  ;;  %v21059_v32 = vld [vmem:[#allocation162_spill] sm:$0xff]  ;;  %v15681_v54 = vcombine.low %v2297_v25, %v2301_v51 }
 0x442   :  { %10090 = vmatprep.subr.bf16.mxu0 %v15642_v7  ;;  %v2034_v7 = vld [vmem:[#allocation5 + $0x1758] sm:$0xff]  ;;  %v2305_v45 = vld [vmem:[#allocation5 + $0x1fd0] sm:$0xff] }
 0x443   :  { %10769 = vmatpush1.bf16.msra.mxu1 %v15387_v40  ;;  %v15420_v40 = vcombine.high %v2034_v7, %v2038_v20 }
 0x444   :  { %10770 = vmatprep.subr.bf16.mxu1 %v15396_v33  ;;  %v2042_v33 = vld [vmem:[#allocation5 + $0x1798] sm:$0xff] }
 0x445   :  { %10091 = vmatpush1.bf16.msra.mxu0 %v15641_v2 }
 0x446   :  { %10092 = vmatprep.subr.bf16.mxu0 %v15650_v49  ;;  %10720 = vmatmul.mubr.bf16.gmra.mrb[84].mxu1 %v21017_v3  ;;  %v2293_v3 = vld [vmem:[#allocation5 + $0x1f70] sm:$0xff]  ;;  %v2046_v49 = vld [vmem:[#allocation5 + $0x17b8] sm:$0xff] }
 0x447   :  { %10771 = vmatpush1.bf16.msra.mxu1 %v15395_v6  ;;  %10729 = vmatprep.mubr.bf16.mxu1 %v21020_v57  ;;  %v15674_v2 = vcombine.high %v2289_v28, %v2293_v3  ;;  %v15419_v57 = vcombine.low %v2034_v7, %v2038_v20  ;;  %v15673_v5 = vcombine.low %v2289_v28, %v2293_v3  ;;  %v21062_v7 = vld [vmem:[#allocation165_spill] sm:$0xff]  ;;  %v21063_v3 = vld [vmem:[#allocation166_spill] sm:$0xff] }
 0x448   :  { %10042 = vmatmul.mubr.bf16.gmra.mrb[52].mxu0 %v21058_v52  ;;  %10772 = vmatprep.subr.bf16.mxu1 %v15404_v44  ;;  %v15428_v6 = vcombine.high %v2042_v33, %v2046_v49  ;;  %v15682_v44 = vcombine.high %v2297_v25, %v2301_v51  ;;  %v15427_v10 = vcombine.low %v2042_v33, %v2046_v49  ;;  %v17379_v49 = vld [vmem:[#allocation8 + $0x24] ss:$16 sps:$4 sm:$0xff]  }
 0x449   :  { %10093 = vmatpush1.bf16.msra.mxu0 %v15649_v47  ;;  %10051 = vmatprep.mubr.bf16.mxu0 %v21059_v32  ;;  %v21061_v47 = vld [vmem:[#allocation164_spill] sm:$0xff]  ;;  %v2074_v25 = vld [vmem:[#allocation5 + $0x1898] sm:$0xff] }
 0x44a   :  { %10094 = vmatprep.subr.bf16.mxu0 %v15658_v48  ;;  %v2050_v48 = vld [vmem:[#allocation5 + $0x17d8] sm:$0xff] }
 0x44b   :  { %10773 = vmatpush1.bf16.msra.mxu1 %v15403_v1  ;;  %v15436_v1 = vcombine.high %v2050_v48, %v2054_v50  ;;  %v15435_v20 = vcombine.low %v2050_v48, %v2054_v50  ;;  %v2078_v51 = vld [vmem:[#allocation5 + $0x18b8] sm:$0xff] }
 0x44c   :  { %10774 = vmatprep.subr.bf16.mxu1 %v15412_v17  ;;  %v2058_v17 = vld [vmem:[#allocation5 + $0x1818] sm:$0xff] }
 0x44d   :  { %10095 = vmatpush1.bf16.msra.mxu0 %v15657_v36  ;;  %v17382_v48 = vld [vmem:[#allocation8 + $0x44] ss:$16 sps:$4 sm:$0xff]  }
 0x44e   :  { %10096 = vmatprep.subr.bf16.mxu0 %v15666_v19  ;;  %10730 = vmatmul.mubr.bf16.gmra.mrb[88].mxu1 %v21021_v41  ;;  %v2309_v41 = vld [vmem:[#allocation5 + $0x1ff0] sm:$0xff]  ;;  %v2062_v19 = vld [vmem:[#allocation5 + $0x1838] sm:$0xff] }
 0x44f   :  { %10775 = vmatpush1.bf16.msra.mxu1 %v15411_v0  ;;  %10739 = vmatprep.mubr.bf16.mxu1 %v21024_v14  ;;  %v15690_v36 = vcombine.high %v2305_v45, %v2309_v41  ;;  %v15689_v14 = vcombine.low %v2305_v45, %v2309_v41  ;;  %v15444_v28 = vcombine.high %v2058_v17, %v2062_v19  ;;  %v17376_v0 = vld [vmem:[#allocation8 + $0x4] ss:$16 sps:$4 sm:$0xff]  }
 0x450   :  { %10052 = vmatmul.mubr.bf16.gmra.mrb[56].mxu0 %v21060_v58  ;;  %10776 = vmatprep.subr.bf16.mxu1 %v15420_v40  ;;  %v2070_v40 = vld [vmem:[#allocation5 + $0x1878] sm:$0xff]  ;;  %v15459_v41 = vcombine.low %v2074_v25, %v2078_v51 }
 0x451   :  { %10097 = vmatpush1.bf16.msra.mxu0 %v15665_v61  ;;  %10061 = vmatprep.mubr.bf16.mxu0 %v21061_v47  ;;  %v2066_v61 = vld [vmem:[#allocation5 + $0x1858] sm:$0xff] }
 0x452   :  { %10098 = vmatprep.subr.bf16.mxu0 %v15674_v2  ;;  %v15443_v2 = vcombine.low %v2058_v17, %v2062_v19  ;;  %v15452_v33 = vcombine.high %v2066_v61, %v2070_v40  ;;  %v2082_v50 = vld [vmem:[#allocation5 + $0x18d8] sm:$0xff]  ;;  %v21066_v17 = vld [vmem:[#allocation169_spill] sm:$0xff] }
 0x453   :  { %10777 = vmatpush1.bf16.msra.mxu1 %v15419_v57  ;;  %v21064_v57 = vld [vmem:[#allocation167_spill] sm:$0xff] }
 0x454   :  { %10778 = vmatprep.subr.bf16.mxu1 %v15428_v6  ;;  %v17377_v6 = vld [vmem:[#allocation8 + $0x20] ss:$16 sps:$4 sm:$0xff]  }
 0x455   :  { %10099 = vmatpush1.bf16.msra.mxu0 %v15673_v5  ;;  %v15451_v5 = vcombine.low %v2066_v61, %v2070_v40  ;;  %v2086_v45 = vld [vmem:[#allocation5 + $0x18f8] sm:$0xff] }
 0x456   :  { %10100 = vmatprep.subr.bf16.mxu0 %v15682_v44  ;;  %10740 = vmatmul.mubr.bf16.gmra.mrb[92].mxu1 %v21025_v34  ;;  %v17374_v34 = vld [vmem:[#allocation8] ss:$16 sps:$4 sm:$0xff]   ;;  %v21065_v44 = vld [vmem:[#allocation168_spill] sm:$0xff]  ;;  %v15467_v19 = vcombine.low %v2082_v50, %v2086_v45 }
 0x457   :  { %10779 = vmatpush1.bf16.msra.mxu1 %v15427_v10  ;;  %10782 = vmatprep.mubr.bf16.mxu1 %v21028_v8  ;;  %v15460_v8 = vcombine.high %v2074_v25, %v2078_v51  ;;  %v15468_v10 = vcombine.high %v2082_v50, %v2086_v45  ;;  %v2102_v61 = vld [vmem:[#allocation5 + $0x1978] sm:$0xff] }
 0x458   :  { %10062 = vmatmul.mubr.bf16.gmra.mrb[60].mxu0 %v21062_v7  ;;  %10780 = vmatprep.subr.bf16.mxu1 %v15436_v1  ;;  %v2090_v1 = vld [vmem:[#allocation5 + $0x1918] sm:$0xff] }
 0x459   :  { %10101 = vmatpush1.bf16.msra.mxu0 %v15681_v54  ;;  %10104 = vmatprep.mubr.bf16.mxu0 %v21063_v3  ;;  %v17385_v54 = vld [vmem:[#allocation8 + $0x64] ss:$16 sps:$4 sm:$0xff]  }
 0x45a   :  { %10102 = vmatprep.subr.bf16.mxu0 %v15690_v36  ;;  %v2094_v36 = vld [vmem:[#allocation5 + $0x1938] sm:$0xff] }
 0x45b   :  { %10781 = vmatpush1.bf16.msra.mxu1 %v15435_v20  ;;  %v17383_v20 = vld [vmem:[#allocation8 + $0x60] ss:$16 sps:$4 sm:$0xff]   ;;  %v15475_v40 = vcombine.low %v2090_v1, %v2094_v36 }
 0x45c   :  { %10863 = vmatprep.subr.bf16.mxu1 %v15444_v28  ;;  %v17388_v28 = vld [vmem:[#allocation8 + $0x84] ss:$16 sps:$4 sm:$0xff]  }
 0x45d   :  { %10103 = vmatpush1.bf16.msra.mxu0 %v15689_v14  ;;  %v21067_v14 = vld [vmem:[#allocation170_spill] sm:$0xff]  ;;  %v21068_v25 = vld [vmem:[#allocation171_spill] sm:$0xff] }
 0x45e   :  { %12839 = vmatprep.subr.bf16.mxu0 %v17376_v0  ;;  %10783 = vmatmul.mubr.bf16.vlgmr.msra.gmra.mrb[64].mxu1 %v21029_v53  ;;  %v17380_v53 = vld [vmem:[#allocation8 + $0x40] ss:$16 sps:$4 sm:$0xff]  }
 0x45f   :  { %10864 = vmatpush1.bf16.msra.mxu1 %v15443_v2  ;;  %10792 = vmatprep.mubr.bf16.mxu1 %v21032_v13  ;;  %v15476_v13 = vcombine.high %v2090_v1, %v2094_v36  ;;  %v2098_v0 = vld [vmem:[#allocation5 + $0x1958] sm:$0xff]  ;;  %v21070_v1 = vld [vmem:[#allocation173_spill] sm:$0xff] }
 0x460   :  { %10105 = vmatmul.mubr.bf16.vlgmr.msra.gmra.mrb[32].mxu0 %v21064_v57  ;;  %10865 = vmatprep.subr.bf16.mxu1 %v15452_v33  ;;  %v15484_v2 = vcombine.high %v2098_v0, %v2102_v61  ;;  %v2106_v33 = vld [vmem:[#allocation5 + $0x1998] sm:$0xff]  ;;  %v15483_v51 = vcombine.low %v2098_v0, %v2102_v61 }
 0x461   :  { %12840 = vmatpush1.bf16.msra.mxu0 %v17374_v34  ;;  %10114 = vmatprep.mubr.bf16.mxu0 %v21065_v44  ;;  %v17391_v34 = vld [vmem:[#allocation8 + $0xa4] ss:$16 sps:$4 sm:$0xff]  }
 0x462   :  { %12841 = vmatprep.subr.bf16.mxu0 %v17379_v49  ;;  %v2110_v49 = vld [vmem:[#allocation5 + $0x19b8] sm:$0xff] }
 0x463   :  { %10866 = vmatpush1.bf16.msra.mxu1 %v15451_v5  ;;  %v17389_v5 = vld [vmem:[#allocation8 + $0xa0] ss:$16 sps:$4 sm:$0xff]   ;;  %v15491_v45 = vcombine.low %v2106_v33, %v2110_v49 }
 0x464   :  { %10867 = vmatprep.subr.bf16.mxu1 %v15460_v8  ;;  %v17394_v8 = vld [vmem:[#allocation8 + $0xc4] ss:$16 sps:$4 sm:$0xff]  }
 0x465   :  { %12842 = vmatpush1.bf16.msra.mxu0 %v17377_v6  ;;  %v21069_v6 = vld [vmem:[#allocation172_spill] sm:$0xff]  ;;  %v2118_v50 = vld [vmem:[#allocation5 + $0x19f8] sm:$0xff] }
 0x466   :  { %12843 = vmatprep.subr.bf16.mxu0 %v17382_v48  ;;  %10793 = vmatmul.mubr.bf16.gmra.mrb[68].mxu1 %v21033_v23  ;;  %v17386_v23 = vld [vmem:[#allocation8 + $0x80] ss:$16 sps:$4 sm:$0xff]  }
 0x467   :  { %10868 = vmatpush1.bf16.msra.mxu1 %v15459_v41  ;;  %10802 = vmatprep.mubr.bf16.mxu1 %v21035_v43  ;;  %v15492_v43 = vcombine.high %v2106_v33, %v2110_v49  ;;  %v2114_v48 = vld [vmem:[#allocation5 + $0x19d8] sm:$0xff] }
 0x468   :  { %10115 = vmatmul.mubr.bf16.gmra.mrb[36].mxu0 %v21066_v17  ;;  %10869 = vmatprep.subr.bf16.mxu1 %v15468_v10  ;;  %v15500_v41 = vcombine.high %v2114_v48, %v2118_v50  ;;  %v2122_v10 = vld [vmem:[#allocation5 + $0x1a18] sm:$0xff]  ;;  %v15499_v36 = vcombine.low %v2114_v48, %v2118_v50 }
 0x469   :  { %12844 = vmatpush1.bf16.msra.mxu0 %v17380_v53  ;;  %10124 = vmatprep.mubr.bf16.mxu0 %v21067_v14  ;;  %v17397_v53 = vld [vmem:[#allocation8 + $0xe4] ss:$16 sps:$4 sm:$0xff]  }
 0x46a   :  { %12845 = vmatprep.subr.bf16.mxu0 %v17385_v54  ;;  %v2126_v54 = vld [vmem:[#allocation5 + $0x1a38] sm:$0xff] }
 0x46b   :  { %10870 = vmatpush1.bf16.msra.mxu1 %v15467_v19  ;;  %v17395_v19 = vld [vmem:[#allocation8 + $0xe0] ss:$16 sps:$4 sm:$0xff]   ;;  %v15507_v61 = vcombine.low %v2122_v10, %v2126_v54 }
 0x46c   :  { %10871 = vmatprep.subr.bf16.mxu1 %v15476_v13  ;;  %v17400_v13 = vld [vmem:[#allocation8 + $0x104] ss:$16 sps:$4 sm:$0xff]  }
 0x46d   :  { %12846 = vmatpush1.bf16.msra.mxu0 %v17383_v20  ;;  %v21071_v20 = vld [vmem:[#allocation174_spill] sm:$0xff]  ;;  %v2134_v0 = vld [vmem:[#allocation5 + $0x1a78] sm:$0xff] }
 0x46e   :  { %12847 = vmatprep.subr.bf16.mxu0 %v17388_v28  ;;  %10803 = vmatmul.mubr.bf16.gmra.mrb[72].mxu1 %v21036_v22  ;;  %v17392_v22 = vld [vmem:[#allocation8 + $0xc0] ss:$16 sps:$4 sm:$0xff]  }
 0x46f   :  { %10872 = vmatpush1.bf16.msra.mxu1 %v15475_v40  ;;  %10812 = vmatprep.mubr.bf16.mxu1 %v21037_v21  ;;  %v15508_v21 = vcombine.high %v2122_v10, %v2126_v54  ;;  %v2130_v28 = vld [vmem:[#allocation5 + $0x1a58] sm:$0xff]  ;;  %v21074_v10 = vld [vmem:[#allocation177_spill] sm:$0xff] }
 0x470   :  { %10125 = vmatmul.mubr.bf16.gmra.mrb[40].mxu0 %v21068_v25  ;;  %10873 = vmatprep.subr.bf16.mxu1 %v15484_v2  ;;  %v15516_v40 = vcombine.high %v2130_v28, %v2134_v0  ;;  %v2138_v2 = vld [vmem:[#allocation5 + $0x1a98] sm:$0xff]  ;;  %v15515_v49 = vcombine.low %v2130_v28, %v2134_v0 }
 0x471   :  { %12848 = vmatpush1.bf16.msra.mxu0 %v17386_v23  ;;  %10134 = vmatprep.mubr.bf16.mxu0 %v21069_v6  ;;  %v17403_v23 = vld [vmem:[#allocation8 + $0x124] ss:$16 sps:$4 sm:$0xff]  }
 0x472   :  { %12849 = vmatprep.subr.bf16.mxu0 %v17391_v34  ;;  %v2142_v34 = vld [vmem:[#allocation5 + $0x1ab8] sm:$0xff] }
 0x473   :  { %10874 = vmatpush1.bf16.msra.mxu1 %v15483_v51  ;;  %v21072_v33 = vld [vmem:[#allocation175_spill] sm:$0xff]  ;;  %v15523_v50 = vcombine.low %v2138_v2, %v2142_v34 }
 0x474   :  { %10875 = vmatprep.subr.bf16.mxu1 %v15492_v43  ;;  %v17401_v51 = vld [vmem:[#allocation8 + $0x120] ss:$16 sps:$4 sm:$0xff]   ;;  %v17406_v43 = vld [vmem:[#allocation8 + $0x144] ss:$16 sps:$4 sm:$0xff]  }
 0x475   :  { %12850 = vmatpush1.bf16.msra.mxu0 %v17389_v5  ;;  %v21073_v5 = vld [vmem:[#allocation176_spill] sm:$0xff]  ;;  %v2150_v48 = vld [vmem:[#allocation5 + $0x1af8] sm:$0xff] }
 0x476   :  { %12851 = vmatprep.subr.bf16.mxu0 %v17394_v8  ;;  %10813 = vmatmul.mubr.bf16.gmra.mrb[76].mxu1 %v21038_v31  ;;  %v17398_v31 = vld [vmem:[#allocation8 + $0x100] ss:$16 sps:$4 sm:$0xff]  }
 0x477   :  { %10876 = vmatpush1.bf16.msra.mxu1 %v15491_v45  ;;  %10822 = vmatprep.mubr.bf16.mxu1 %v21039_v59  ;;  %v15524_v59 = vcombine.high %v2138_v2, %v2142_v34  ;;  %v2146_v8 = vld [vmem:[#allocation5 + $0x1ad8] sm:$0xff] }
 0x478   :  { %10135 = vmatmul.mubr.bf16.gmra.mrb[44].mxu0 %v21070_v1  ;;  %10877 = vmatprep.subr.bf16.mxu1 %v15500_v41  ;;  %v15532_v45 = vcombine.high %v2146_v8, %v2150_v48  ;;  %v2154_v41 = vld [vmem:[#allocation5 + $0x1b18] sm:$0xff]  ;;  %v15531_v54 = vcombine.low %v2146_v8, %v2150_v48 }
 0x479   :  { %12852 = vmatpush1.bf16.msra.mxu0 %v17392_v22  ;;  %10144 = vmatprep.mubr.bf16.mxu0 %v21071_v20  ;;  %v17409_v22 = vld [vmem:[#allocation8 + $0x164] ss:$16 sps:$4 sm:$0xff]  }
 0x47a   :  { %12853 = vmatprep.subr.bf16.mxu0 %v17397_v53  ;;  %v2158_v53 = vld [vmem:[#allocation5 + $0x1b38] sm:$0xff] }
 0x47b   :  { %10878 = vmatpush1.bf16.msra.mxu1 %v15499_v36  ;;  %v17407_v36 = vld [vmem:[#allocation8 + $0x160] ss:$16 sps:$4 sm:$0xff]   ;;  %v15539_v0 = vcombine.low %v2154_v41, %v2158_v53 }
 0x47c   :  { %10879 = vmatprep.subr.bf16.mxu1 %v15508_v21  ;;  %v17412_v21 = vld [vmem:[#allocation8 + $0x184] ss:$16 sps:$4 sm:$0xff]  }
 0x47d   :  { %12854 = vmatpush1.bf16.msra.mxu0 %v17395_v19  ;;  %v21075_v19 = vld [vmem:[#allocation178_spill] sm:$0xff]  ;;  %v2166_v28 = vld [vmem:[#allocation5 + $0x1b78] sm:$0xff] }
 0x47e   :  { %12855 = vmatprep.subr.bf16.mxu0 %v17400_v13  ;;  %10823 = vmatmul.mubr.bf16.gmra.mrb[80].mxu1 %v21040_v4  ;;  %v17404_v4 = vld [vmem:[#allocation8 + $0x140] ss:$16 sps:$4 sm:$0xff]  }
 0x47f   :  { %10880 = vmatpush1.bf16.msra.mxu1 %v15507_v61  ;;  %10832 = vmatprep.mubr.bf16.mxu1 %v21041_v12  ;;  %v15540_v12 = vcombine.high %v2154_v41, %v2158_v53  ;;  %v2162_v13 = vld [vmem:[#allocation5 + $0x1b58] sm:$0xff]  ;;  %v21078_v41 = vld [vmem:[#allocation181_spill] sm:$0xff] }
 0x480   :  { %10145 = vmatmul.mubr.bf16.gmra.mrb[48].mxu0 %v21072_v33  ;;  %10881 = vmatprep.subr.bf16.mxu1 %v15516_v40  ;;  %v15548_v61 = vcombine.high %v2162_v13, %v2166_v28  ;;  %v2170_v40 = vld [vmem:[#allocation5 + $0x1b98] sm:$0xff]  ;;  %v15547_v34 = vcombine.low %v2162_v13, %v2166_v28 }
 0x481   :  { %12856 = vmatpush1.bf16.msra.mxu0 %v17398_v31  ;;  %10154 = vmatprep.mubr.bf16.mxu0 %v21073_v5  ;;  %v17415_v31 = vld [vmem:[#allocation8 + $0x1a4] ss:$16 sps:$4 sm:$0xff]  }
 0x482   :  { %12857 = vmatprep.subr.bf16.mxu0 %v17403_v23  ;;  %v2174_v23 = vld [vmem:[#allocation5 + $0x1bb8] sm:$0xff] }
 0x483   :  { %10882 = vmatpush1.bf16.msra.mxu1 %v15515_v49  ;;  %v21076_v2 = vld [vmem:[#allocation179_spill] sm:$0xff]  ;;  %v15555_v48 = vcombine.low %v2170_v40, %v2174_v23 }
 0x484   :  { %10883 = vmatprep.subr.bf16.mxu1 %v15524_v59  ;;  %v17413_v49 = vld [vmem:[#allocation8 + $0x1a0] ss:$16 sps:$4 sm:$0xff]   ;;  %v17418_v59 = vld [vmem:[#allocation8 + $0x1c4] ss:$16 sps:$4 sm:$0xff]  }
 0x485   :  { %12858 = vmatpush1.bf16.msra.mxu0 %v17401_v51  ;;  %v21077_v51 = vld [vmem:[#allocation180_spill] sm:$0xff]  ;;  %v2182_v8 = vld [vmem:[#allocation5 + $0x1bf8] sm:$0xff] }
 0x486   :  { %12859 = vmatprep.subr.bf16.mxu0 %v17406_v43  ;;  %10833 = vmatmul.mubr.bf16.gmra.mrb[84].mxu1 %v21042_v60  ;;  %v17410_v60 = vld [vmem:[#allocation8 + $0x180] ss:$16 sps:$4 sm:$0xff]  }
 0x487   :  { %10884 = vmatpush1.bf16.msra.mxu1 %v15523_v50  ;;  %10842 = vmatprep.mubr.bf16.mxu1 %v21043_v24  ;;  %v15556_v24 = vcombine.high %v2170_v40, %v2174_v23  ;;  %v2178_v43 = vld [vmem:[#allocation5 + $0x1bd8] sm:$0xff]  ;;  %v21080_v40 = vld [vmem:[#allocation28_spill] sm:$0xff] }
 0x488   :  { %10155 = vmatmul.mubr.bf16.gmra.mrb[52].mxu0 %v21074_v10  ;;  %10885 = vmatprep.subr.bf16.mxu1 %v15532_v45  ;;  %v15564_v50 = vcombine.high %v2178_v43, %v2182_v8  ;;  %v2186_v45 = vld [vmem:[#allocation5 + $0x1c18] sm:$0xff]  ;;  %v15563_v53 = vcombine.low %v2178_v43, %v2182_v8 }
 0x489   :  { %12860 = vmatpush1.bf16.msra.mxu0 %v17404_v4  ;;  %10164 = vmatprep.mubr.bf16.mxu0 %v21075_v19  ;;  %v17421_v4 = vld [vmem:[#allocation8 + $0x1e4] ss:$16 sps:$4 sm:$0xff]  }
 0x48a   :  { %12861 = vmatprep.subr.bf16.mxu0 %v17409_v22  ;;  %v2190_v22 = vld [vmem:[#allocation5 + $0x1c38] sm:$0xff] }
 0x48b   :  { %10886 = vmatpush1.bf16.msra.mxu1 %v15531_v54  ;;  %v17419_v54 = vld [vmem:[#allocation8 + $0x1e0] ss:$16 sps:$4 sm:$0xff]   ;;  %v15571_v28 = vcombine.low %v2186_v45, %v2190_v22 }
 0x48c   :  { %10887 = vmatprep.subr.bf16.mxu1 %v15540_v12  ;;  %v17424_v12 = vld [vmem:[#allocation8 + $0x204] ss:$16 sps:$4 sm:$0xff]  }
 0x48d   :  { %12862 = vmatpush1.bf16.msra.mxu0 %v17407_v36  ;;  %v15572_v36 = vcombine.high %v2186_v45, %v2190_v22  ;;  %v2198_v13 = vld [vmem:[#allocation5 + $0x1c78] sm:$0xff]  ;;  %v21082_v45 = vld [vmem:[#allocation32_spill] sm:$0xff] }
 0x48e   :  { %12863 = vmatprep.subr.bf16.mxu0 %v17412_v21  ;;  %10843 = vmatmul.mubr.bf16.gmra.mrb[88].mxu1 %v21044_v9  ;;  %v17416_v9 = vld [vmem:[#allocation8 + $0x1c0] ss:$16 sps:$4 sm:$0xff]  }
 0x48f   :  { %10888 = vmatpush1.bf16.msra.mxu1 %v15539_v0  ;;  %10852 = vmatprep.mubr.bf16.mxu1 %v21045_v35  ;;  %v21079_v35 = vld [vmem:[#allocation30_spill] sm:$0xff]  ;;  %v2194_v21 = vld [vmem:[#allocation5 + $0x1c58] sm:$0xff] }
 0x490   :  { %10165 = vmatmul.mubr.bf16.gmra.mrb[56].mxu0 %v21076_v2  ;;  %10889 = vmatprep.subr.bf16.mxu1 %v15548_v61  ;;  %v15580_v0 = vcombine.high %v2194_v21, %v2198_v13  ;;  %v2202_v61 = vld [vmem:[#allocation5 + $0x1c98] sm:$0xff]  ;;  %v15579_v23 = vcombine.low %v2194_v21, %v2198_v13 }
 0x491   :  { %12864 = vmatpush1.bf16.msra.mxu0 %v17410_v60  ;;  %10174 = vmatprep.mubr.bf16.mxu0 %v21077_v51  ;;  %v17427_v60 = vld [vmem:[#allocation8 + $0x224] ss:$16 sps:$4 sm:$0xff]  }
 0x492   :  { %12865 = vmatprep.subr.bf16.mxu0 %v17415_v31  ;;  %v2206_v31 = vld [vmem:[#allocation5 + $0x1cb8] sm:$0xff] }
 0x493   :  { %10890 = vmatpush1.bf16.msra.mxu1 %v15547_v34  ;;  %v21081_v34 = vld [vmem:[#allocation34_spill] sm:$0xff]  ;;  %v2214_v43 = vld [vmem:[#allocation5 + $0x1cf8] sm:$0xff]  ;;  %v15587_v8 = vcombine.low %v2202_v61, %v2206_v31 }
 0x494   :  { %10891 = vmatprep.subr.bf16.mxu1 %v15556_v24  ;;  %v17430_v24 = vld [vmem:[#allocation8 + $0x244] ss:$16 sps:$4 sm:$0xff]  }
 0x495   :  { %12866 = vmatpush1.bf16.msra.mxu0 %v17413_v49  ;;  %v15588_v49 = vcombine.high %v2202_v61, %v2206_v31  ;;  %v2230_v21 = vld [vmem:[#allocation5 + $0x1d78] sm:$0xff]  ;;  %v21084_v61 = vld [vmem:[#allocation36_spill] sm:$0xff] }
 0x496   :  { %12867 = vmatprep.subr.bf16.mxu0 %v17418_v59  ;;  %10853 = vmatmul.mubr.bf16.gmra.mrb[92].mxu1 %v21046_v37  ;;  %v17422_v37 = vld [vmem:[#allocation8 + $0x200] ss:$16 sps:$4 sm:$0xff]  }
 0x497   :  { %10892 = vmatpush1.bf16.msra.mxu1 %v15555_v48  ;;  %10895 = vmatprep.mubr.bf16.mxu1 %v21047_v11  ;;  %v17425_v11 = vld [vmem:[#allocation8 + $0x220] ss:$16 sps:$4 sm:$0xff]  }
 0x498   :  { %10175 = vmatmul.mubr.bf16.gmra.mrb[60].mxu0 %v21078_v41  ;;  %10893 = vmatprep.subr.bf16.mxu1 %v15564_v50  ;;  %v2210_v59 = vld [vmem:[#allocation5 + $0x1cd8] sm:$0xff] }
 0x499   :  { %12868 = vmatpush1.bf16.msra.mxu0 %v17416_v9  ;;  %12871 = vmatprep.mubr.bf16.mxu0 %v21079_v35  ;;  %v15596_v48 = vcombine.high %v2210_v59, %v2214_v43  ;;  %v17433_v9 = vld [vmem:[#allocation8 + $0x264] ss:$16 sps:$4 sm:$0xff]   ;;  %v15595_v22 = vcombine.low %v2210_v59, %v2214_v43 }
 0x49a   :  { %12869 = vmatprep.subr.bf16.mxu0 %v17421_v4  ;;  %v2218_v50 = vld [vmem:[#allocation5 + $0x1d18] sm:$0xff] }
 0x49b   :  { %10894 = vmatpush1.bf16.msra.mxu1 %v15563_v53  ;;  %v2222_v4 = vld [vmem:[#allocation5 + $0x1d38] sm:$0xff]  ;;  %v21083_v53 = vld [vmem:[#allocation38_spill] sm:$0xff] }
 0x49c   :  { %10976 = vmatprep.subr.bf16.mxu1 %v15572_v36  ;;  %v17436_v36 = vld [vmem:[#allocation8 + $0x284] ss:$16 sps:$4 sm:$0xff]   ;;  %v15603_v13 = vcombine.low %v2218_v50, %v2222_v4 }
 0x49d   :  { %12870 = vmatpush1.bf16.msra.mxu0 %v17419_v54  ;;  %v15604_v54 = vcombine.high %v2218_v50, %v2222_v4  ;;  %v2246_v59 = vld [vmem:[#allocation5 + $0x1df8] sm:$0xff]  ;;  %v21086_v50 = vld [vmem:[#allocation40_spill] sm:$0xff] }
 0x49e   :  { %12952 = vmatprep.subr.bf16.mxu0 %v17424_v12  ;;  %10896 = vmatmul.mubr.bf16.vlgmr.msra.gmra.mrb[64].mxu1 %v21048_v46  ;;  %v17428_v46 = vld [vmem:[#allocation8 + $0x240] ss:$16 sps:$4 sm:$0xff]  }
 0x49f   :  { %10977 = vmatpush1.bf16.msra.mxu1 %v15571_v28  ;;  %10905 = vmatprep.mubr.bf16.mxu1 %v21049_v42  ;;  %v17431_v42 = vld [vmem:[#allocation8 + $0x260] ss:$16 sps:$4 sm:$0xff]  }
 0x4a0   :  { %12872 = vmatmul.mubr.bf16.vlgmr.msra.gmra.mrb[64].mxu0 %v21080_v40  ;;  %10978 = vmatprep.subr.bf16.mxu1 %v15580_v0  ;;  %v2226_v12 = vld [vmem:[#allocation5 + $0x1d58] sm:$0xff] }
 0x4a1   :  { %12881 = vmatprep.mubr.bf16.mxu0 %v21081_v34  ;;  %12953 = vmatpush1.bf16.msra.mxu0 %v17422_v37  ;;  %v15612_v28 = vcombine.high %v2226_v12, %v2230_v21  ;;  %v17439_v37 = vld [vmem:[#allocation8 + $0x2a4] ss:$16 sps:$4 sm:$0xff]   ;;  %v15611_v31 = vcombine.low %v2226_v12, %v2230_v21 }
 0x4a2   :  { %12954 = vmatprep.subr.bf16.mxu0 %v17427_v60  ;;  %v2234_v0 = vld [vmem:[#allocation5 + $0x1d98] sm:$0xff] }
 0x4a3   :  { %10979 = vmatpush1.bf16.msra.mxu1 %v15579_v23  ;;  %v2238_v60 = vld [vmem:[#allocation5 + $0x1db8] sm:$0xff]  ;;  %v21085_v23 = vld [vmem:[#allocation42_spill] sm:$0xff] }
 0x4a4   :  { %10980 = vmatprep.subr.bf16.mxu1 %v15588_v49  ;;  %v17442_v49 = vld [vmem:[#allocation8 + $0x2c4] ss:$16 sps:$4 sm:$0xff]   ;;  %v15619_v43 = vcombine.low %v2234_v0, %v2238_v60 }
 0x4a5   :  { %12955 = vmatpush1.bf16.msra.mxu0 %v17425_v11  ;;  %v15620_v11 = vcombine.high %v2234_v0, %v2238_v60  ;;  %v2262_v12 = vld [vmem:[#allocation5 + $0x1e78] sm:$0xff]  ;;  %v21088_v0 = vld [vmem:[#allocation44_spill] sm:$0xff] }
 0x4a6   :  { %12956 = vmatprep.subr.bf16.mxu0 %v17430_v24  ;;  %10906 = vmatmul.mubr.bf16.gmra.mrb[68].mxu1 %v21050_v26  ;;  %v17434_v26 = vld [vmem:[#allocation8 + $0x280] ss:$16 sps:$4 sm:$0xff]  }
 0x4a7   :  { %10981 = vmatpush1.bf16.msra.mxu1 %v15587_v8  ;;  %10915 = vmatprep.mubr.bf16.mxu1 %v21051_v27  ;;  %v17437_v27 = vld [vmem:[#allocation8 + $0x2a0] ss:$16 sps:$4 sm:$0xff]  }
 0x4a8   :  { %12882 = vmatmul.mubr.bf16.gmra.mrb[68].mxu0 %v21082_v45  ;;  %10982 = vmatprep.subr.bf16.mxu1 %v15596_v48  ;;  %v2242_v24 = vld [vmem:[#allocation5 + $0x1dd8] sm:$0xff] }
 0x4a9   :  { %12891 = vmatprep.mubr.bf16.mxu0 %v21083_v53  ;;  %12957 = vmatpush1.bf16.msra.mxu0 %v17428_v46  ;;  %v15628_v8 = vcombine.high %v2242_v24, %v2246_v59  ;;  %v17445_v46 = vld [vmem:[#allocation8 + $0x2e4] ss:$16 sps:$4 sm:$0xff]   ;;  %v15627_v4 = vcombine.low %v2242_v24, %v2246_v59 }
 0x4aa   :  { %12958 = vmatprep.subr.bf16.mxu0 %v17433_v9  ;;  %v2250_v48 = vld [vmem:[#allocation5 + $0x1e18] sm:$0xff] }
 0x4ab   :  { %10983 = vmatpush1.bf16.msra.mxu1 %v15595_v22  ;;  %v2254_v9 = vld [vmem:[#allocation5 + $0x1e38] sm:$0xff]  ;;  %v21087_v22 = vld [vmem:[#allocation46_spill] sm:$0xff] }
 0x4ac   :  { %10984 = vmatprep.subr.bf16.mxu1 %v15604_v54  ;;  %v17448_v54 = vld [vmem:[#allocation8 + $0x304] ss:$16 sps:$4 sm:$0xff]   ;;  %v15635_v21 = vcombine.low %v2250_v48, %v2254_v9 }
 0x4ad   :  { %12959 = vmatpush1.bf16.msra.mxu0 %v17431_v42  ;;  %v15636_v42 = vcombine.high %v2250_v48, %v2254_v9  ;;  %v2278_v24 = vld [vmem:[#allocation5 + $0x1ef8] sm:$0xff]  ;;  %v21090_v48 = vld [vmem:[#allocation48_spill] sm:$0xff] }
 0x4ae   :  { %12960 = vmatprep.subr.bf16.mxu0 %v17436_v36  ;;  %10916 = vmatmul.mubr.bf16.gmra.mrb[72].mxu1 %v21052_v16  ;;  %v17440_v16 = vld [vmem:[#allocation8 + $0x2c0] ss:$16 sps:$4 sm:$0xff]  }
 0x4af   :  { %10985 = vmatpush1.bf16.msra.mxu1 %v15603_v13  ;;  %10925 = vmatprep.mubr.bf16.mxu1 %v21053_v55  ;;  %v17443_v55 = vld [vmem:[#allocation8 + $0x2e0] ss:$16 sps:$4 sm:$0xff]  }
 0x4b0   :  { %12892 = vmatmul.mubr.bf16.gmra.mrb[72].mxu0 %v21084_v61  ;;  %10986 = vmatprep.subr.bf16.mxu1 %v15612_v28  ;;  %v2258_v36 = vld [vmem:[#allocation5 + $0x1e58] sm:$0xff] }
 0x4b1   :  { %12901 = vmatprep.mubr.bf16.mxu0 %v21085_v23  ;;  %12961 = vmatpush1.bf16.msra.mxu0 %v17434_v26  ;;  %v15644_v13 = vcombine.high %v2258_v36, %v2262_v12  ;;  %v17451_v26 = vld [vmem:[#allocation8 + $0x324] ss:$16 sps:$4 sm:$0xff]   ;;  %v15643_v60 = vcombine.low %v2258_v36, %v2262_v12 }
 0x4b2   :  { %12962 = vmatprep.subr.bf16.mxu0 %v17439_v37  ;;  %v2266_v28 = vld [vmem:[#allocation5 + $0x1e98] sm:$0xff] }
 0x4b3   :  { %10987 = vmatpush1.bf16.msra.mxu1 %v15611_v31  ;;  %v2270_v37 = vld [vmem:[#allocation5 + $0x1eb8] sm:$0xff]  ;;  %v21089_v31 = vld [vmem:[#allocation50_spill] sm:$0xff] }
 0x4b4   :  { %10988 = vmatprep.subr.bf16.mxu1 %v15620_v11  ;;  %v17454_v11 = vld [vmem:[#allocation8 + $0x344] ss:$16 sps:$4 sm:$0xff]   ;;  %v15651_v59 = vcombine.low %v2266_v28, %v2270_v37 }
 0x4b5   :  { %12963 = vmatpush1.bf16.msra.mxu0 %v17437_v27  ;;  %v15652_v27 = vcombine.high %v2266_v28, %v2270_v37  ;;  %v2294_v36 = vld [vmem:[#allocation5 + $0x1f78] sm:$0xff]  ;;  %v21092_v28 = vld [vmem:[#allocation52_spill] sm:$0xff] }
 0x4b6   :  { %12964 = vmatprep.subr.bf16.mxu0 %v17442_v49  ;;  %10926 = vmatmul.mubr.bf16.gmra.mrb[76].mxu1 %v21054_v38  ;;  %v17446_v38 = vld [vmem:[#allocation8 + $0x300] ss:$16 sps:$4 sm:$0xff]  }
 0x4b7   :  { %10989 = vmatpush1.bf16.msra.mxu1 %v15619_v43  ;;  %10935 = vmatprep.mubr.bf16.mxu1 %v21055_v63  ;;  %v17449_v63 = vld [vmem:[#allocation8 + $0x320] ss:$16 sps:$4 sm:$0xff]  }
 0x4b8   :  { %12902 = vmatmul.mubr.bf16.gmra.mrb[76].mxu0 %v21086_v50  ;;  %10990 = vmatprep.subr.bf16.mxu1 %v15628_v8  ;;  %v2274_v49 = vld [vmem:[#allocation5 + $0x1ed8] sm:$0xff] }
 0x4b9   :  { %12911 = vmatprep.mubr.bf16.mxu0 %v21087_v22  ;;  %12965 = vmatpush1.bf16.msra.mxu0 %v17440_v16  ;;  %v15660_v43 = vcombine.high %v2274_v49, %v2278_v24  ;;  %v17457_v16 = vld [vmem:[#allocation8 + $0x364] ss:$16 sps:$4 sm:$0xff]   ;;  %v15659_v9 = vcombine.low %v2274_v49, %v2278_v24 }
 0x4ba   :  { %12966 = vmatprep.subr.bf16.mxu0 %v17445_v46  ;;  %v2282_v8 = vld [vmem:[#allocation5 + $0x1f18] sm:$0xff] }
 0x4bb   :  { %10991 = vmatpush1.bf16.msra.mxu1 %v15627_v4  ;;  %v2286_v46 = vld [vmem:[#allocation5 + $0x1f38] sm:$0xff] }
 0x4bc   :  { %10992 = vmatprep.subr.bf16.mxu1 %v15636_v42  ;;  %v21091_v4 = vld [vmem:[#allocation23_spill] sm:$0xff]  ;;  %v15667_v12 = vcombine.low %v2282_v8, %v2286_v46 }
 0x4bd   :  { %12967 = vmatpush1.bf16.msra.mxu0 %v17443_v55  ;;  %v15668_v55 = vcombine.high %v2282_v8, %v2286_v46  ;;  %v17460_v42 = vld [vmem:[#allocation8 + $0x384] ss:$16 sps:$4 sm:$0xff]   ;;  %v17470_v46 = vld [vmem:[#allocation8 + $0x8] ss:$16 sps:$4 sm:$0xff]  }
 0x4be   :  { %12968 = vmatprep.subr.bf16.mxu0 %v17448_v54  ;;  %10936 = vmatmul.mubr.bf16.gmra.mrb[80].mxu1 %v21056_v29  ;;  %v17452_v29 = vld [vmem:[#allocation8 + $0x340] ss:$16 sps:$4 sm:$0xff]   ;;  %v17496_v8 = vld [vmem:[#allocation8 + $0x404] ss:$16 sps:$4 sm:$0xff]  }
 0x4bf   :  { %10993 = vmatpush1.bf16.msra.mxu1 %v15635_v21  ;;  %10945 = vmatprep.mubr.bf16.mxu1 %v21057_v56  ;;  %v17455_v56 = vld [vmem:[#allocation8 + $0x360] ss:$16 sps:$4 sm:$0xff]  }
 0x4c0   :  { %12912 = vmatmul.mubr.bf16.gmra.mrb[80].mxu0 %v21088_v0  ;;  %10994 = vmatprep.subr.bf16.mxu1 %v15644_v13  ;;  %v2290_v54 = vld [vmem:[#allocation5 + $0x1f58] sm:$0xff] }
 0x4c1   :  { %12921 = vmatprep.mubr.bf16.mxu0 %v21089_v31  ;;  %12969 = vmatpush1.bf16.msra.mxu0 %v17446_v38  ;;  %v15676_v21 = vcombine.high %v2290_v54, %v2294_v36  ;;  %v17463_v38 = vld [vmem:[#allocation8 + $0x3a4] ss:$16 sps:$4 sm:$0xff]   ;;  %v15675_v37 = vcombine.low %v2290_v54, %v2294_v36  ;;  %v17478_v36 = vld [vmem:[#allocation8 + $0x4c] ss:$16 sps:$4 sm:$0xff]  }
 0x4c2   :  { %12970 = vmatprep.subr.bf16.mxu0 %v17451_v26  ;;  %v2298_v13 = vld [vmem:[#allocation5 + $0x1f98] sm:$0xff] }
 0x4c3   :  { %10995 = vmatpush1.bf16.msra.mxu1 %v15643_v60  ;;  %v2302_v26 = vld [vmem:[#allocation5 + $0x1fb8] sm:$0xff] }
 0x4c4   :  { %10996 = vmatprep.subr.bf16.mxu1 %v15652_v27  ;;  %v15684_v60 = vcombine.high %v2298_v13, %v2302_v26  ;;  %v2306_v27 = vld [vmem:[#allocation5 + $0x1fd8] sm:$0xff]  ;;  %v15683_v49 = vcombine.low %v2298_v13, %v2302_v26  ;;  %v21096_v13 = vld [vmem:[#allocation29_spill] sm:$0xff]  ;;  %v17479_v26 = vld [vmem:[#allocation8 + $0x68] ss:$16 sps:$4 sm:$0xff]  }
 0x4c5   :  { %12971 = vmatpush1.bf16.msra.mxu0 %v17449_v63  ;;  %v17466_v63 = vld [vmem:[#allocation8 + $0x3c4] ss:$16 sps:$4 sm:$0xff]  }
 0x4c6   :  { %12972 = vmatprep.subr.bf16.mxu0 %v17454_v11  ;;  %10946 = vmatmul.mubr.bf16.gmra.mrb[84].mxu1 %v21058_v52  ;;  %v17458_v52 = vld [vmem:[#allocation8 + $0x380] ss:$16 sps:$4 sm:$0xff]  }
 0x4c7   :  { %10997 = vmatpush1.bf16.msra.mxu1 %v15651_v59  ;;  %10955 = vmatprep.mubr.bf16.mxu1 %v21059_v32  ;;  %v17461_v32 = vld [vmem:[#allocation8 + $0x3a0] ss:$16 sps:$4 sm:$0xff]   ;;  %v17469_v59 = vld [vmem:[#allocation8 + $0x3e4] ss:$16 sps:$4 sm:$0xff]  }
 0x4c8   :  { %12922 = vmatmul.mubr.bf16.gmra.mrb[84].mxu0 %v21090_v48  ;;  %10998 = vmatprep.subr.bf16.mxu1 %v15660_v43  ;;  %v2310_v11 = vld [vmem:[#allocation5 + $0x1ff8] sm:$0xff] }
 0x4c9   :  { %12931 = vmatprep.mubr.bf16.mxu0 %v21091_v4  ;;  %12973 = vmatpush1.bf16.msra.mxu0 %v17452_v29  ;;  %v15692_v24 = vcombine.high %v2306_v27, %v2310_v11  ;;  %v15691_v29 = vcombine.low %v2306_v27, %v2310_v11  ;;  %v21093_v43 = vld [vmem:[#allocation27_spill] sm:$0xff] }
 0x4ca   :  { %12974 = vmatprep.subr.bf16.mxu0 %v17457_v16  ;;  %v17472_v16 = vld [vmem:[#allocation8 + $0xc] ss:$16 sps:$4 sm:$0xff]   ;;  %v21095_v54 = vld [vmem:[#allocation31_spill] sm:$0xff] }
 0x4cb   :  { %10999 = vmatpush1.bf16.msra.mxu1 %v15659_v9  ;;  %v17475_v9 = vld [vmem:[#allocation8 + $0x2c] ss:$16 sps:$4 sm:$0xff]   ;;  %v17518_v27 = vld [vmem:[#allocation8 + $0x480] ss:$16 sps:$4 sm:$0xff]   ;;  %v17526_v11 = vld [vmem:[#allocation8 + $0x4a4] ss:$16 sps:$4 sm:$0xff]  }
 0x4cc   :  { %11000 = vmatprep.subr.bf16.mxu1 %v15668_v55  ;;  %v21094_v55 = vld [vmem:[#allocation25_spill] sm:$0xff] }
 0x4cd   :  { %12975 = vmatpush1.bf16.msra.mxu0 %v17455_v56  ;;  %v17502_v56 = vld [vmem:[#allocation8 + $0x424] ss:$16 sps:$4 sm:$0xff]  }
 0x4ce   :  { %12976 = vmatprep.subr.bf16.mxu0 %v17460_v42  ;;  %10956 = vmatmul.mubr.bf16.gmra.mrb[88].mxu1 %v21060_v58  ;;  %v17464_v58 = vld [vmem:[#allocation8 + $0x3c0] ss:$16 sps:$4 sm:$0xff]   ;;  %v17473_v42 = vld [vmem:[#allocation8 + $0x28] ss:$16 sps:$4 sm:$0xff]  }
 0x4cf   :  { %11001 = vmatpush1.bf16.msra.mxu1 %v15667_v12  ;;  %10965 = vmatprep.mubr.bf16.mxu1 %v21061_v47  ;;  %v17467_v47 = vld [vmem:[#allocation8 + $0x3e0] ss:$16 sps:$4 sm:$0xff]   ;;  %v17508_v12 = vld [vmem:[#allocation8 + $0x444] ss:$16 sps:$4 sm:$0xff]  }
 0x4d0   :  { %12932 = vmatmul.mubr.bf16.gmra.mrb[88].mxu0 %v21092_v28  ;;  %11002 = vmatprep.subr.bf16.mxu1 %v15676_v21  ;;  %v17481_v21 = vld [vmem:[#allocation8 + $0x6c] ss:$16 sps:$4 sm:$0xff]  }
 0x4d1   :  { %12941 = vmatprep.mubr.bf16.mxu0 %v19736_v62  ;;  %12977 = vmatpush1.bf16.msra.mxu0 %v17458_v52  ;;  %v17476_v52 = vld [vmem:[#allocation8 + $0x48] ss:$16 sps:$4 sm:$0xff]  }
 0x4d2   :  { %12978 = vmatprep.subr.bf16.mxu0 %v17463_v38  ;;  %v17514_v38 = vld [vmem:[#allocation8 + $0x464] ss:$16 sps:$4 sm:$0xff]  }
 0x4d3   :  { %11003 = vmatpush1.bf16.msra.mxu1 %v15675_v37  ;;  %v21097_v37 = vld [vmem:[#allocation35_spill] sm:$0xff] }
 0x4d4   :  { %11004 = vmatprep.subr.bf16.mxu1 %v15684_v60  ;;  %v17520_v60 = vld [vmem:[#allocation8 + $0x484] ss:$16 sps:$4 sm:$0xff]  }
 0x4d5   :  { %12979 = vmatpush1.bf16.msra.mxu0 %v17461_v32  ;;  %v17512_v32 = vld [vmem:[#allocation8 + $0x460] ss:$16 sps:$4 sm:$0xff]  }
 0x4d6   :  { %12980 = vmatprep.subr.bf16.mxu0 %v17466_v63  ;;  %10966 = vmatmul.mubr.bf16.gmra.mrb[92].mxu1 %v21062_v7  ;;  %v17494_v7 = vld [vmem:[#allocation8 + $0x400] ss:$16 sps:$4 sm:$0xff]   ;;  %v17482_v63 = vld [vmem:[#allocation8 + $0x88] ss:$16 sps:$4 sm:$0xff]  }
 0x4d7   :  { %11005 = vmatpush1.bf16.msra.mxu1 %v15683_v49  ;;  %11008 = vmatprep.mubr.bf16.mxu1 %v21063_v3  ;;  %v17500_v3 = vld [vmem:[#allocation8 + $0x420] ss:$16 sps:$4 sm:$0xff]  }
 0x4d8   :  { %12942 = vmatmul.mubr.bf16.gmra.mrb[92].mxu0 %v19733_v30  ;;  %11006 = vmatprep.subr.bf16.mxu1 %v15692_v24  ;;  %v21098_v49 = vld [vmem:[#allocation33_spill] sm:$0xff]  ;;  %v21099_v24 = vld [vmem:[#allocation39_spill] sm:$0xff] }
 0x4d9   :  { %12981 = vmatpush1.bf16.msra.mxu0 %v17464_v58  ;;  %12984 = vmatprep.mubr.bf16.mxu0 %v21093_v43  ;;  %v17485_v58 = vld [vmem:[#allocation8 + $0xa8] ss:$16 sps:$4 sm:$0xff]  }
 0x4da   :  { %12982 = vmatprep.subr.bf16.mxu0 %v17469_v59  ;;  %v17524_v59 = vld [vmem:[#allocation8 + $0x4a0] ss:$16 sps:$4 sm:$0xff]  }
 0x4db   :  { %11007 = vmatpush1.bf16.msra.mxu1 %v15691_v29  ;;  %v17532_v29 = vld [vmem:[#allocation8 + $0x4c4] ss:$16 sps:$4 sm:$0xff]  }
 0x4dc   :  { %13291 = vmatprep.subr.bf16.mxu1 %v17472_v16  ;;  %v17530_v16 = vld [vmem:[#allocation8 + $0x4c0] ss:$16 sps:$4 sm:$0xff]  }
 0x4dd   :  { %12983 = vmatpush1.bf16.msra.mxu0 %v17467_v47  ;;  %v17488_v47 = vld [vmem:[#allocation8 + $0xc8] ss:$16 sps:$4 sm:$0xff]  }
 0x4de   :  { %13065 = vmatprep.subr.bf16.mxu0 %v17496_v8  ;;  %11009 = vmatmul.mubr.bf16.vlgmr.msra.gmra.mrb[64].mxu1 %v21064_v57  ;;  %v17506_v57 = vld [vmem:[#allocation8 + $0x440] ss:$16 sps:$4 sm:$0xff]   ;;  %v17538_v8 = vld [vmem:[#allocation8 + $0x4e4] ss:$16 sps:$4 sm:$0xff]  }
 0x4df   :  { %13292 = vmatpush1.bf16.msra.mxu1 %v17470_v46  ;;  %11018 = vmatprep.mubr.bf16.mxu1 %v21065_v44  ;;  %v17484_v44 = vld [vmem:[#allocation8 + $0x8c] ss:$16 sps:$4 sm:$0xff]   ;;  %v21100_v46 = vld [vmem:[#allocation37_spill] sm:$0xff] }
 0x4e0   :  { %12985 = vmatmul.mubr.bf16.vlgmr.msra.gmra.mrb[64].mxu0 %v21094_v55  ;;  %13293 = vmatprep.subr.bf16.mxu1 %v17475_v9  ;;  %v17491_v9 = vld [vmem:[#allocation8 + $0xe8] ss:$16 sps:$4 sm:$0xff]  }
 0x4e1   :  { %12994 = vmatprep.mubr.bf16.mxu0 %v21095_v54  ;;  %13066 = vmatpush1.bf16.msra.mxu0 %v17494_v7  ;;  %v21101_v7 = vld [vmem:[#allocation43_spill] sm:$0xff] }
 0x4e2   :  { %13067 = vmatprep.subr.bf16.mxu0 %v17502_v56  ;;  %v17536_v56 = vld [vmem:[#allocation8 + $0x4e0] ss:$16 sps:$4 sm:$0xff]  }
 0x4e3   :  { %13294 = vmatpush1.bf16.msra.mxu1 %v17473_v42  ;;  %v17544_v42 = vld [vmem:[#allocation8 + $0x504] ss:$16 sps:$4 sm:$0xff]  }
 0x4e4   :  { %13295 = vmatprep.subr.bf16.mxu1 %v17478_v36  ;;  %v17497_v36 = vld [vmem:[#allocation8 + $0x108] ss:$16 sps:$4 sm:$0xff]  }
 0x4e5   :  { %13068 = vmatpush1.bf16.msra.mxu0 %v17500_v3  ;;  %v17542_v3 = vld [vmem:[#allocation8 + $0x500] ss:$16 sps:$4 sm:$0xff]  }
 0x4e6   :  { %11019 = vmatmul.mubr.bf16.gmra.mrb[68].mxu1 %v21066_v17  ;;  %13069 = vmatprep.subr.bf16.mxu0 %v17508_v12  ;;  %v17487_v17 = vld [vmem:[#allocation8 + $0xac] ss:$16 sps:$4 sm:$0xff]   ;;  %v17550_v12 = vld [vmem:[#allocation8 + $0x524] ss:$16 sps:$4 sm:$0xff]  }
 0x4e7   :  { %13296 = vmatpush1.bf16.msra.mxu1 %v17476_v52  ;;  %11028 = vmatprep.mubr.bf16.mxu1 %v21067_v14  ;;  %v17490_v14 = vld [vmem:[#allocation8 + $0xcc] ss:$16 sps:$4 sm:$0xff]   ;;  %v21102_v52 = vld [vmem:[#allocation41_spill] sm:$0xff] }
 0x4e8   :  { %12995 = vmatmul.mubr.bf16.gmra.mrb[68].mxu0 %v21096_v13  ;;  %13297 = vmatprep.subr.bf16.mxu1 %v17481_v21  ;;  %v17503_v21 = vld [vmem:[#allocation8 + $0x128] ss:$16 sps:$4 sm:$0xff]  }
 0x4e9   :  { %13004 = vmatprep.mubr.bf16.mxu0 %v21097_v37  ;;  %13070 = vmatpush1.bf16.msra.mxu0 %v17506_v57  ;;  %v21103_v57 = vld [vmem:[#allocation47_spill] sm:$0xff] }
 0x4ea   :  { %13071 = vmatprep.subr.bf16.mxu0 %v17514_v38  ;;  %v17548_v38 = vld [vmem:[#allocation8 + $0x520] ss:$16 sps:$4 sm:$0xff]  }
 0x4eb   :  { %13298 = vmatpush1.bf16.msra.mxu1 %v17479_v26  ;;  %v17556_v26 = vld [vmem:[#allocation8 + $0x544] ss:$16 sps:$4 sm:$0xff]  }
 0x4ec   :  { %13299 = vmatprep.subr.bf16.mxu1 %v17484_v44  ;;  %v17509_v44 = vld [vmem:[#allocation8 + $0x148] ss:$16 sps:$4 sm:$0xff]  }
 0x4ed   :  { %13072 = vmatpush1.bf16.msra.mxu0 %v17512_v32  ;;  %v17554_v32 = vld [vmem:[#allocation8 + $0x540] ss:$16 sps:$4 sm:$0xff]  }
 0x4ee   :  { %11029 = vmatmul.mubr.bf16.gmra.mrb[72].mxu1 %v21068_v25  ;;  %13073 = vmatprep.subr.bf16.mxu0 %v17520_v60  ;;  %v17493_v25 = vld [vmem:[#allocation8 + $0xec] ss:$16 sps:$4 sm:$0xff]   ;;  %v17562_v60 = vld [vmem:[#allocation8 + $0x564] ss:$16 sps:$4 sm:$0xff]  }
 0x4ef   :  { %13300 = vmatpush1.bf16.msra.mxu1 %v17482_v63  ;;  %11038 = vmatprep.mubr.bf16.mxu1 %v21069_v6  ;;  %v17499_v6 = vld [vmem:[#allocation8 + $0x10c] ss:$16 sps:$4 sm:$0xff]   ;;  %v21104_v63 = vld [vmem:[#allocation45_spill] sm:$0xff] }
 0x4f0   :  { %13005 = vmatmul.mubr.bf16.gmra.mrb[72].mxu0 %v21098_v49  ;;  %13301 = vmatprep.subr.bf16.mxu1 %v17487_v17  ;;  %v17515_v17 = vld [vmem:[#allocation8 + $0x168] ss:$16 sps:$4 sm:$0xff]  }
 0x4f1   :  { %13014 = vmatprep.mubr.bf16.mxu0 %v21099_v24  ;;  %13074 = vmatpush1.bf16.msra.mxu0 %v17518_v27  ;;  %v17560_v27 = vld [vmem:[#allocation8 + $0x560] ss:$16 sps:$4 sm:$0xff]  }
 0x4f2   :  { %13075 = vmatprep.subr.bf16.mxu0 %v17526_v11  ;;  %v17568_v11 = vld [vmem:[#allocation8 + $0x584] ss:$16 sps:$4 sm:$0xff]  }
 0x4f3   :  { %13302 = vmatpush1.bf16.msra.mxu1 %v17485_v58  ;;  %v17521_v58 = vld [vmem:[#allocation8 + $0x188] ss:$16 sps:$4 sm:$0xff]  }
 0x4f4   :  { %13303 = vmatprep.subr.bf16.mxu1 %v17490_v14  ;;  %v17566_v14 = vld [vmem:[#allocation8 + $0x580] ss:$16 sps:$4 sm:$0xff]  }
 0x4f5   :  { %13076 = vmatpush1.bf16.msra.mxu0 %v17524_v59  ;;  %v17574_v59 = vld [vmem:[#allocation8 + $0x5a4] ss:$16 sps:$4 sm:$0xff]  }
 0x4f6   :  { %11039 = vmatmul.mubr.bf16.gmra.mrb[76].mxu1 %v21070_v1  ;;  %13077 = vmatprep.subr.bf16.mxu0 %v17532_v29  ;;  %v17505_v1 = vld [vmem:[#allocation8 + $0x12c] ss:$16 sps:$4 sm:$0xff]   ;;  %v21105_v29 = vld [vmem:[#allocation49_spill] sm:$0xff] }
 0x4f7   :  { %13304 = vmatpush1.bf16.msra.mxu1 %v17488_v47  ;;  %11048 = vmatprep.mubr.bf16.mxu1 %v21071_v20  ;;  %v17511_v20 = vld [vmem:[#allocation8 + $0x14c] ss:$16 sps:$4 sm:$0xff]   ;;  %v17527_v47 = vld [vmem:[#allocation8 + $0x1a8] ss:$16 sps:$4 sm:$0xff]  }
 0x4f8   :  { %13015 = vmatmul.mubr.bf16.gmra.mrb[76].mxu0 %v21100_v46  ;;  %13305 = vmatprep.subr.bf16.mxu1 %v17493_v25  ;;  %v17572_v25 = vld [vmem:[#allocation8 + $0x5a0] ss:$16 sps:$4 sm:$0xff]  }
 0x4f9   :  { %13024 = vmatprep.mubr.bf16.mxu0 %v21101_v7  ;;  %13078 = vmatpush1.bf16.msra.mxu0 %v17530_v16  ;;  %v17580_v16 = vld [vmem:[#allocation8 + $0x5c4] ss:$16 sps:$4 sm:$0xff]  }
 0x4fa   :  { %13079 = vmatprep.subr.bf16.mxu0 %v17538_v8  ;;  %v17533_v8 = vld [vmem:[#allocation8 + $0x1c8] ss:$16 sps:$4 sm:$0xff]  }
 0x4fb   :  { %13306 = vmatpush1.bf16.msra.mxu1 %v17491_v9  ;;  %v17578_v9 = vld [vmem:[#allocation8 + $0x5c0] ss:$16 sps:$4 sm:$0xff]  }
 0x4fc   :  { %13307 = vmatprep.subr.bf16.mxu1 %v17499_v6  ;;  %v17586_v6 = vld [vmem:[#allocation8 + $0x5e4] ss:$16 sps:$4 sm:$0xff]  }
 0x4fd   :  { %13080 = vmatpush1.bf16.msra.mxu0 %v17536_v56  ;;  %v17539_v56 = vld [vmem:[#allocation8 + $0x1e8] ss:$16 sps:$4 sm:$0xff]  }
 0x4fe   :  { %11049 = vmatmul.mubr.bf16.gmra.mrb[80].mxu1 %v21072_v33  ;;  %13081 = vmatprep.subr.bf16.mxu0 %v17544_v42  ;;  %v17517_v33 = vld [vmem:[#allocation8 + $0x16c] ss:$16 sps:$4 sm:$0xff]   ;;  %v17584_v42 = vld [vmem:[#allocation8 + $0x5e0] ss:$16 sps:$4 sm:$0xff]  }
 0x4ff   :  { %13308 = vmatpush1.bf16.msra.mxu1 %v17497_v36  ;;  %11058 = vmatprep.mubr.bf16.mxu1 %v21073_v5  ;;  %v17523_v5 = vld [vmem:[#allocation8 + $0x18c] ss:$16 sps:$4 sm:$0xff]   ;;  %v17640_v36 = vld [vmem:[#allocation8 + $0x604] ss:$16 sps:$4 sm:$0xff]  }
 0x500   :  { %13025 = vmatmul.mubr.bf16.gmra.mrb[80].mxu0 %v21102_v52  ;;  %13309 = vmatprep.subr.bf16.mxu1 %v17505_v1  ;;  %v17545_v1 = vld [vmem:[#allocation8 + $0x208] ss:$16 sps:$4 sm:$0xff]  }
 0x501   :  { %13034 = vmatprep.mubr.bf16.mxu0 %v21103_v57  ;;  %13082 = vmatpush1.bf16.msra.mxu0 %v17542_v3  ;;  %v17553_v3 = vld [vmem:[#allocation8 + $0x22c] ss:$16 sps:$4 sm:$0xff]  }
 0x502   :  { %13083 = vmatprep.subr.bf16.mxu0 %v17550_v12  ;;  %v17557_v12 = vld [vmem:[#allocation8 + $0x248] ss:$16 sps:$4 sm:$0xff]  }
 0x503   :  { %13310 = vmatpush1.bf16.msra.mxu1 %v17503_v21  ;;  %v17565_v21 = vld [vmem:[#allocation8 + $0x26c] ss:$16 sps:$4 sm:$0xff]  }
 0x504   :  { %13311 = vmatprep.subr.bf16.mxu1 %v17511_v20  ;;  %v17563_v20 = vld [vmem:[#allocation8 + $0x268] ss:$16 sps:$4 sm:$0xff]  }
 0x505   :  { %13084 = vmatpush1.bf16.msra.mxu0 %v17548_v38  ;;  %v17571_v38 = vld [vmem:[#allocation8 + $0x28c] ss:$16 sps:$4 sm:$0xff]  }
 0x506   :  { %11059 = vmatmul.mubr.bf16.gmra.mrb[84].mxu1 %v21074_v10  ;;  %13085 = vmatprep.subr.bf16.mxu0 %v17556_v26  ;;  %v17529_v10 = vld [vmem:[#allocation8 + $0x1ac] ss:$16 sps:$4 sm:$0xff]  }
 0x507   :  { %13312 = vmatpush1.bf16.msra.mxu1 %v17509_v44  ;;  %11068 = vmatprep.mubr.bf16.mxu1 %v21075_v19  ;;  %v17535_v19 = vld [vmem:[#allocation8 + $0x1cc] ss:$16 sps:$4 sm:$0xff]  }
 0x508   :  { %13035 = vmatmul.mubr.bf16.gmra.mrb[84].mxu0 %v21104_v63  ;;  %13313 = vmatprep.subr.bf16.mxu1 %v17517_v33  ;;  %v21106_v26 = vld [vmem:[#allocation22_spill] sm:$0xff] }
 0x509   :  { %13044 = vmatprep.mubr.bf16.mxu0 %v19861_v39  ;;  %13086 = vmatpush1.bf16.msra.mxu0 %v17554_v32  ;;  %v2335_v44 = vsub.s32 5, %v21106_v26  ;;  %v17577_v33 = vld [vmem:[#allocation8 + $0x2ac] ss:$16 sps:$4 sm:$0xff]   ;;  %v17575_v32 = vld [vmem:[#allocation8 + $0x2a8] ss:$16 sps:$4 sm:$0xff]  }
 0x50a   :  { %13087 = vmatprep.subr.bf16.mxu0 %v17562_v60 }
 0x50b   :  { %13314 = vmatpush1.bf16.msra.mxu1 %v17515_v17  ;;  %v17583_v17 = vld [vmem:[#allocation8 + $0x2cc] ss:$16 sps:$4 sm:$0xff]  }
 0x50c   :  { %13315 = vmatprep.subr.bf16.mxu1 %v17523_v5 }
 0x50d   :  { %13088 = vmatpush1.bf16.msra.mxu0 %v17560_v27 }
 0x50e   :  { %11069 = vmatmul.mubr.bf16.gmra.mrb[88].mxu1 %v21076_v2  ;;  %13089 = vmatprep.subr.bf16.mxu0 %v17568_v11  ;;  %v17541_v2 = vld [vmem:[#allocation8 + $0x1ec] ss:$16 sps:$4 sm:$0xff]  }
 0x50f   :  { %13316 = vmatpush1.bf16.msra.mxu1 %v17521_v58  ;;  %11078 = vmatprep.mubr.bf16.mxu1 %v21077_v51  ;;  %v17547_v51 = vld [vmem:[#allocation8 + $0x20c] ss:$16 sps:$4 sm:$0xff]  }
 0x510   :  { %13045 = vmatmul.mubr.bf16.gmra.mrb[88].mxu0 %v21105_v29  ;;  %13317 = vmatprep.subr.bf16.mxu1 %v17529_v10  ;;  %v17589_v10 = vld [vmem:[#allocation8 + $0x2ec] ss:$16 sps:$4 sm:$0xff]  }
 0x511   :  { %13054 = vmatprep.mubr.bf16.mxu0 %v19873_v18  ;;  %13090 = vmatpush1.bf16.msra.mxu0 %v17566_v14 }
 0x512   :  { %13091 = vmatprep.subr.bf16.mxu0 %v17574_v59 }
 0x513   :  { %13318 = vmatpush1.bf16.msra.mxu1 %v17527_v47 }
 0x514   :  { %13319 = vmatprep.subr.bf16.mxu1 %v17535_v19 }
 0x515   :  { %13092 = vmatpush1.bf16.msra.mxu0 %v17572_v25 }
 0x516   :  { %11079 = vmatmul.mubr.bf16.gmra.mrb[92].mxu1 %v21078_v41  ;;  %13093 = vmatprep.subr.bf16.mxu0 %v17580_v16  ;;  %v17551_v41 = vld [vmem:[#allocation8 + $0x228] ss:$16 sps:$4 sm:$0xff]  }
 0x517   :  { %13320 = vmatpush1.bf16.msra.mxu1 %v17533_v8  ;;  %13323 = vmatprep.mubr.bf16.mxu1 %v21079_v35  ;;  %v17559_v35 = vld [vmem:[#allocation8 + $0x24c] ss:$16 sps:$4 sm:$0xff]   ;;  %v17587_v16 = vld [vmem:[#allocation8 + $0x2e8] ss:$16 sps:$4 sm:$0xff]  }
 0x518   :  { %13055 = vmatmul.mubr.bf16.gmra.mrb[92].mxu0 %v19871_v15  ;;  %13321 = vmatprep.subr.bf16.mxu1 %v17541_v2 }
 0x519   :  { %13094 = vmatpush1.bf16.msra.mxu0 %v17578_v9  ;;  %v17592_v9 = vld [vmem:[#allocation8 + $0x30c] ss:$16 sps:$4 sm:$0xff]  }
 0x51a   :  { %13095 = vmatprep.subr.bf16.mxu0 %v17586_v6 }
 0x51b   :  { %13322 = vmatpush1.bf16.msra.mxu1 %v17539_v56 }
 0x51c   :  { %13404 = vmatprep.subr.bf16.mxu1 %v17547_v51 }
 0x51d   :  { %13096 = vmatpush1.bf16.msra.mxu0 %v17584_v42  ;;  %v17638_v42 = vld [vmem:[#allocation8 + $0x600] ss:$16 sps:$4 sm:$0xff]  }
 0x51e   :  { %13324 = vmatmul.mubr.bf16.vlgmr.msra.gmra.mrb[96].mxu1 %v21080_v40  ;;  %13178 = vmatprep.subr.bf16.mxu0 %v17640_v36  ;;  %v17569_v40 = vld [vmem:[#allocation8 + $0x288] ss:$16 sps:$4 sm:$0xff]  }
 0x51f   :  { %13333 = vmatprep.mubr.bf16.mxu1 %v21081_v34  ;;  %13405 = vmatpush1.bf16.msra.mxu1 %v17545_v1  ;;  %v2331_v34 = vsub.s32 4, %v21106_v26 }
 0x520   :  { %13406 = vmatprep.subr.bf16.mxu1 %v17553_v3 }
 0x523   :  { %13407 = vmatpush1.bf16.msra.mxu1 %v17551_v41  ;;  %v17595_v41 = vld [vmem:[#allocation8 + $0x32c] ss:$16 sps:$4 sm:$0xff]  }
 0x524   :  { %13408 = vmatprep.subr.bf16.mxu1 %v17559_v35  ;;  %v17646_v35 = vld [vmem:[#allocation8 + $0x624] ss:$16 sps:$4 sm:$0xff]  }
 0x526   :  { %13334 = vmatmul.mubr.bf16.gmra.mrb[100].mxu1 %v21082_v45  ;;  %v20032_v45 = vld [vmem:[#allocation7] sm:$0xff] }
 0x527   :  { %13343 = vmatprep.mubr.bf16.mxu1 %v21083_v53  ;;  %13409 = vmatpush1.bf16.msra.mxu1 %v17557_v12  ;;  %v20035_v53 = vrot.slane %v20032_v45, %v2331_v34  ;;  %v20038_v60 = vrot.slane %v20032_v45, %v2335_v44  ;;  %v17593_v44 = vld [vmem:[#allocation8 + $0x328] ss:$16 sps:$4 sm:$0xff]  }
 0x528   :  { %13410 = vmatprep.subr.bf16.mxu1 %v17565_v21 }
 0x52b   :  { %13411 = vmatpush1.bf16.msra.mxu1 %v17563_v20 }
 0x52c   :  { %13412 = vmatprep.subr.bf16.mxu1 %v17571_v38  ;;  %v17644_v38 = vld [vmem:[#allocation8 + $0x620] ss:$16 sps:$4 sm:$0xff]  }
 0x52e   :  { %13344 = vmatmul.mubr.bf16.gmra.mrb[104].mxu1 %v21084_v61  ;;  %v17581_v61 = vld [vmem:[#allocation8 + $0x2c8] ss:$16 sps:$4 sm:$0xff]  }
 0x52f   :  { %13353 = vmatprep.mubr.bf16.mxu1 %v21085_v23  ;;  %13413 = vmatpush1.bf16.msra.mxu1 %v17569_v40 }
 0x530   :  { %13414 = vmatprep.subr.bf16.mxu1 %v17577_v33  ;;  %v17652_v33 = vld [vmem:[#allocation8 + $0x644] ss:$16 sps:$4 sm:$0xff]  }
 0x533   :  { %v10106_v5 = vpop.f32.mrb[32].mxu0  ;;  %13415 = vmatpush1.bf16.msra.mxu1 %v17575_v32 }
 0x534   :  { %v16110_v27 = vadd.f32 %v10106_v5, %v20035_v53  ;;  %v10108_v11 = vpop.f32.mrb[33].mxu0  ;;  %13416 = vmatprep.subr.bf16.mxu1 %v17583_v17  ;;  %v17598_v5 = vld [vmem:[#allocation8 + $0x34c] ss:$16 sps:$4 sm:$0xff]  }
 0x535   :  { %v16111_v23 = vadd.f32 %v10108_v11, %v20038_v60  ;;  %v10110_v58 = vpop.f32.mrb[34].mxu0 }
 0x536   :  { %v16112_v14 = vadd.f32 %v10110_v58, %v20035_v53  ;;  %v10112_v59 = vpop.f32.mrb[35].mxu0  ;;  %13354 = vmatmul.mubr.bf16.gmra.mrb[108].mxu1 %v21086_v50  ;;  %v11093_v19 = vmax.f32 %v16110_v27, 0.0  ;;  %v17590_v50 = vld [vmem:[#allocation8 + $0x308] ss:$16 sps:$4 sm:$0xff]  }
 0x537   :  { %v16113_v47 = vadd.f32 %v10112_v59, %v20038_v60  ;;  %13363 = vmatprep.mubr.bf16.mxu1 %v21087_v22  ;;  %13417 = vmatpush1.bf16.msra.mxu1 %v17581_v61  ;;  %v11094_v8 = vmax.f32 %v16111_v23, 0.0  ;;  %v17601_v59 = vld [vmem:[#allocation8 + $0x36c] ss:$16 sps:$4 sm:$0xff]  }
 0x538   :  { %v11101_v25 = vmax.f32 %v16112_v14, 0.0  ;;  %13418 = vmatprep.subr.bf16.mxu1 %v17589_v10 }
 0x539   :  { %v11102_v2 = vmax.f32 %v16113_v47, 0.0  ;;  %v17658_v47 = vld [vmem:[#allocation8 + $0x664] ss:$16 sps:$4 sm:$0xff]  }
 0x53a   :  { %v20046_v6 = vpack.c.bf16 %v11101_v25, %v11093_v19 }
 0x53b   :  { %v20048_v56 = vpack.c.bf16 %v11102_v2, %v11094_v8  ;;  %v10116_v51 = vpop.f32.mrb[36].mxu0  ;;  %13419 = vmatpush1.bf16.msra.mxu1 %v17587_v16  ;;  %v17656_v8 = vld [vmem:[#allocation8 + $0x660] ss:$16 sps:$4 sm:$0xff]  }
 0x53c   :  { %v16114_v36 = vadd.f32 %v10116_v51, %v20035_v53  ;;  %v10118_v1 = vpop.f32.mrb[37].mxu0  ;;  %13420 = vmatprep.subr.bf16.mxu1 %v17592_v9  ;;  %v17599_v51 = vld [vmem:[#allocation8 + $0x368] ss:$16 sps:$4 sm:$0xff]  }
 0x53d   :  { %v16115_v3 = vadd.f32 %v10118_v1, %v20038_v60  ;;  %v10120_v22 = vpop.f32.mrb[38].mxu0  ;;  %13097 = vmatprep.mubr.bf16.mxu0 %v20048_v56 }
 0x53e   :  { %v16116_v12 = vadd.f32 %v10120_v22, %v20035_v53  ;;  %v10122_v21 = vpop.f32.mrb[39].mxu0  ;;  %13098 = vmatmul.mubr.bf16.vlgmr.msra.gmra.mrb[64].mxu0 %v20046_v6  ;;  %13364 = vmatmul.mubr.bf16.gmra.mrb[112].mxu1 %v21088_v0  ;;  %v11109_v40 = vmax.f32 %v16114_v36, 0.0  ;;  %v17650_v0 = vld [vmem:[#allocation8 + $0x640] ss:$16 sps:$4 sm:$0xff]  }
 0x53f   :  { %v16117_v20 = vadd.f32 %v10122_v21, %v20038_v60  ;;  %13179 = vmatpush1.bf16.msra.mxu0 %v17638_v42  ;;  %13373 = vmatprep.mubr.bf16.mxu1 %v21089_v31  ;;  %v11110_v32 = vmax.f32 %v16115_v3, 0.0  ;;  %v17596_v31 = vld [vmem:[#allocation8 + $0x348] ss:$16 sps:$4 sm:$0xff]   ;;  %v17664_v42 = vld [vmem:[#allocation8 + $0x684] ss:$16 sps:$4 sm:$0xff]  }
 0x540   :  { %v11117_v34 = vmax.f32 %v16116_v12, 0.0  ;;  %13421 = vmatpush1.bf16.msra.mxu1 %v17590_v50  ;;  %13180 = vmatprep.subr.bf16.mxu0 %v17646_v35  ;;  %v17604_v50 = vld [vmem:[#allocation8 + $0x38c] ss:$16 sps:$4 sm:$0xff]  }
 0x541   :  { %v11118_v17 = vmax.f32 %v16117_v20, 0.0  ;;  %13422 = vmatprep.subr.bf16.mxu1 %v17595_v41 }
 0x542   :  { %v20058_v27 = vpack.c.bf16 %v11117_v34, %v11109_v40  ;;  %v17670_v40 = vld [vmem:[#allocation8 + $0x6a4] ss:$16 sps:$4 sm:$0xff]  }
 0x543   :  { %v20060_v11 = vpack.c.bf16 %v11118_v17, %v11110_v32  ;;  %v10126_v61 = vpop.f32.mrb[40].mxu0  ;;  %13181 = vmatpush1.bf16.msra.mxu0 %v17644_v38  ;;  %v17607_v38 = vld [vmem:[#allocation8 + $0x3ac] ss:$16 sps:$4 sm:$0xff]   ;;  %v17668_v32 = vld [vmem:[#allocation8 + $0x6a0] ss:$16 sps:$4 sm:$0xff]  }
 0x544   :  { %v16118_v23 = vadd.f32 %v10126_v61, %v20035_v53  ;;  %v10128_v58 = vpop.f32.mrb[41].mxu0  ;;  %13423 = vmatpush1.bf16.msra.mxu1 %v17593_v44  ;;  %13182 = vmatprep.subr.bf16.mxu0 %v17652_v33  ;;  %v17605_v61 = vld [vmem:[#allocation8 + $0x3a8] ss:$16 sps:$4 sm:$0xff]  }
 0x545   :  { %v16119_v10 = vadd.f32 %v10128_v58, %v20038_v60  ;;  %v10130_v14 = vpop.f32.mrb[42].mxu0  ;;  %13107 = vmatprep.mubr.bf16.mxu0 %v20060_v11  ;;  %13424 = vmatprep.subr.bf16.mxu1 %v17598_v5 }
 0x546   :  { %v16120_v19 = vadd.f32 %v10130_v14, %v20035_v53  ;;  %v10132_v25 = vpop.f32.mrb[43].mxu0  ;;  %13108 = vmatmul.mubr.bf16.gmra.mrb[68].mxu0 %v20058_v27  ;;  %13374 = vmatmul.mubr.bf16.gmra.mrb[116].mxu1 %v21090_v48  ;;  %v11125_v2 = vmax.f32 %v16118_v23, 0.0  ;;  %v17662_v48 = vld [vmem:[#allocation8 + $0x680] ss:$16 sps:$4 sm:$0xff]  }
 0x547   :  { %v16121_v16 = vadd.f32 %v10132_v25, %v20038_v60  ;;  %13183 = vmatpush1.bf16.msra.mxu0 %v17650_v0  ;;  %13383 = vmatprep.mubr.bf16.mxu1 %v21091_v4  ;;  %v11126_v36 = vmax.f32 %v16119_v10, 0.0  ;;  %v17602_v4 = vld [vmem:[#allocation8 + $0x388] ss:$16 sps:$4 sm:$0xff]   ;;  %v17676_v0 = vld [vmem:[#allocation8 + $0x6c4] ss:$16 sps:$4 sm:$0xff]  }
 0x548   :  { %v11133_v9 = vmax.f32 %v16120_v19, 0.0  ;;  %13425 = vmatpush1.bf16.msra.mxu1 %v17596_v31  ;;  %13184 = vmatprep.subr.bf16.mxu0 %v17658_v47  ;;  %v17610_v31 = vld [vmem:[#allocation8 + $0x3cc] ss:$16 sps:$4 sm:$0xff]  }
 0x549   :  { %v11134_v1 = vmax.f32 %v16121_v16, 0.0  ;;  %13426 = vmatprep.subr.bf16.mxu1 %v17601_v59 }
 0x54a   :  { %v20070_v3 = vpack.c.bf16 %v11133_v9, %v11125_v2  ;;  %v17682_v2 = vld [vmem:[#allocation8 + $0x6e4] ss:$16 sps:$4 sm:$0xff]  }
 0x54b   :  { %v20072_v22 = vpack.c.bf16 %v11134_v1, %v11126_v36  ;;  %v10136_v41 = vpop.f32.mrb[44].mxu0  ;;  %13185 = vmatpush1.bf16.msra.mxu0 %v17656_v8  ;;  %v17613_v8 = vld [vmem:[#allocation8 + $0x3ec] ss:$16 sps:$4 sm:$0xff]   ;;  %v17680_v36 = vld [vmem:[#allocation8 + $0x6e0] ss:$16 sps:$4 sm:$0xff]  }
 0x54c   :  { %v16122_v35 = vadd.f32 %v10136_v41, %v20035_v53  ;;  %v10138_v12 = vpop.f32.mrb[45].mxu0  ;;  %13427 = vmatpush1.bf16.msra.mxu1 %v17599_v51  ;;  %13186 = vmatprep.subr.bf16.mxu0 %v17664_v42  ;;  %v17611_v41 = vld [vmem:[#allocation8 + $0x3e8] ss:$16 sps:$4 sm:$0xff]  }
 0x54d   :  { %v16123_v21 = vadd.f32 %v10138_v12, %v20038_v60  ;;  %v10140_v20 = vpop.f32.mrb[46].mxu0  ;;  %13117 = vmatprep.mubr.bf16.mxu0 %v20072_v22  ;;  %13428 = vmatprep.subr.bf16.mxu1 %v17604_v50 }
 0x54e   :  { %v16124_v34 = vadd.f32 %v10140_v20, %v20035_v53  ;;  %v10142_v44 = vpop.f32.mrb[47].mxu0  ;;  %13118 = vmatmul.mubr.bf16.gmra.mrb[72].mxu0 %v20070_v3  ;;  %13384 = vmatmul.mubr.bf16.gmra.mrb[120].mxu1 %v21092_v28  ;;  %v11141_v17 = vmax.f32 %v16122_v35, 0.0  ;;  %v17674_v28 = vld [vmem:[#allocation8 + $0x6c0] ss:$16 sps:$4 sm:$0xff]  }
 0x54f   :  { %v16125_v33 = vadd.f32 %v10142_v44, %v20038_v60  ;;  %13187 = vmatpush1.bf16.msra.mxu0 %v17662_v48  ;;  %13393 = vmatprep.mubr.bf16.mxu1 %v19736_v62  ;;  %v11142_v23 = vmax.f32 %v16123_v21, 0.0  ;;  %v17608_v62 = vld [vmem:[#allocation8 + $0x3c8] ss:$16 sps:$4 sm:$0xff]   ;;  %v17688_v48 = vld [vmem:[#allocation8 + $0x704] ss:$16 sps:$4 sm:$0xff]  }
 0x550   :  { %v11149_v5 = vmax.f32 %v16124_v34, 0.0  ;;  %13429 = vmatpush1.bf16.msra.mxu1 %v17602_v4  ;;  %13188 = vmatprep.subr.bf16.mxu0 %v17670_v40  ;;  %v17616_v4 = vld [vmem:[#allocation8 + $0x40c] ss:$16 sps:$4 sm:$0xff]   ;;  %v17614_v44 = vld [vmem:[#allocation8 + $0x408] ss:$16 sps:$4 sm:$0xff]  }
 0x551   :  { %v11150_v58 = vmax.f32 %v16125_v33, 0.0  ;;  %13430 = vmatprep.subr.bf16.mxu1 %v17607_v38 }
 0x552   :  { %v20082_v10 = vpack.c.bf16 %v11149_v5, %v11141_v17  ;;  %v17694_v17 = vld [vmem:[#allocation8 + $0x724] ss:$16 sps:$4 sm:$0xff]  }
 0x553   :  { %v20084_v14 = vpack.c.bf16 %v11150_v58, %v11142_v23  ;;  %v10146_v59 = vpop.f32.mrb[48].mxu0  ;;  %13189 = vmatpush1.bf16.msra.mxu0 %v17668_v32  ;;  %v17619_v32 = vld [vmem:[#allocation8 + $0x42c] ss:$16 sps:$4 sm:$0xff]   ;;  %v17692_v23 = vld [vmem:[#allocation8 + $0x720] ss:$16 sps:$4 sm:$0xff]  }
 0x554   :  { %v16126_v47 = vadd.f32 %v10146_v59, %v20035_v53  ;;  %v10148_v19 = vpop.f32.mrb[49].mxu0  ;;  %13431 = vmatpush1.bf16.msra.mxu1 %v17605_v61  ;;  %13190 = vmatprep.subr.bf16.mxu0 %v17676_v0  ;;  %v17617_v59 = vld [vmem:[#allocation8 + $0x428] ss:$16 sps:$4 sm:$0xff]  }
 0x555   :  { %v16127_v25 = vadd.f32 %v10148_v19, %v20038_v60  ;;  %v10150_v16 = vpop.f32.mrb[50].mxu0  ;;  %13127 = vmatprep.mubr.bf16.mxu0 %v20084_v14  ;;  %13432 = vmatprep.subr.bf16.mxu1 %v17610_v31 }
 0x556   :  { %v16128_v9 = vadd.f32 %v10150_v16, %v20035_v53  ;;  %v10152_v51 = vpop.f32.mrb[51].mxu0  ;;  %13128 = vmatmul.mubr.bf16.gmra.mrb[76].mxu0 %v20082_v10  ;;  %13394 = vmatmul.mubr.bf16.gmra.mrb[124].mxu1 %v19733_v30  ;;  %v11157_v1 = vmax.f32 %v16126_v47, 0.0  ;;  %v17686_v30 = vld [vmem:[#allocation8 + $0x700] ss:$16 sps:$4 sm:$0xff]  }
 0x557   :  { %v16129_v42 = vadd.f32 %v10152_v51, %v20038_v60  ;;  %13191 = vmatpush1.bf16.msra.mxu0 %v17674_v28  ;;  %13436 = vmatprep.mubr.bf16.mxu1 %v21093_v43  ;;  %v11158_v35 = vmax.f32 %v16127_v25, 0.0  ;;  %v17700_v28 = vld [vmem:[#allocation8 + $0x744] ss:$16 sps:$4 sm:$0xff]  }
 0x558   :  { %v11165_v50 = vmax.f32 %v16128_v9, 0.0  ;;  %13433 = vmatpush1.bf16.msra.mxu1 %v17608_v62  ;;  %13192 = vmatprep.subr.bf16.mxu0 %v17682_v2  ;;  %v17622_v62 = vld [vmem:[#allocation8 + $0x44c] ss:$16 sps:$4 sm:$0xff]  }
 0x559   :  { %v11166_v12 = vmax.f32 %v16129_v42, 0.0  ;;  %13434 = vmatprep.subr.bf16.mxu1 %v17613_v8 }
 0x55a   :  { %v20094_v21 = vpack.c.bf16 %v11165_v50, %v11157_v1  ;;  %v17706_v1 = vld [vmem:[#allocation8 + $0x764] ss:$16 sps:$4 sm:$0xff]  }
 0x55b   :  { %v20096_v20 = vpack.c.bf16 %v11166_v12, %v11158_v35  ;;  %v10156_v38 = vpop.f32.mrb[52].mxu0  ;;  %13193 = vmatpush1.bf16.msra.mxu0 %v17680_v36  ;;  %v17625_v36 = vld [vmem:[#allocation8 + $0x46c] ss:$16 sps:$4 sm:$0xff]   ;;  %v17704_v35 = vld [vmem:[#allocation8 + $0x760] ss:$16 sps:$4 sm:$0xff]  }
 0x55c   :  { %v16130_v40 = vadd.f32 %v10156_v38, %v20035_v53  ;;  %v10158_v34 = vpop.f32.mrb[53].mxu0  ;;  %13435 = vmatpush1.bf16.msra.mxu1 %v17611_v41  ;;  %13194 = vmatprep.subr.bf16.mxu0 %v17688_v48  ;;  %v17623_v38 = vld [vmem:[#allocation8 + $0x468] ss:$16 sps:$4 sm:$0xff]  }
 0x55d   :  { %v16131_v43 = vadd.f32 %v10158_v34, %v20038_v60  ;;  %v10160_v33 = vpop.f32.mrb[54].mxu0  ;;  %13137 = vmatprep.mubr.bf16.mxu0 %v20096_v20  ;;  %13517 = vmatprep.subr.bf16.mxu1 %v17616_v4 }
 0x55e   :  { %v16132_v5 = vadd.f32 %v10160_v33, %v20035_v53  ;;  %v10162_v61 = vpop.f32.mrb[55].mxu0  ;;  %13138 = vmatmul.mubr.bf16.gmra.mrb[80].mxu0 %v20094_v21  ;;  %v11173_v58 = vmax.f32 %v16130_v40, 0.0 }
 0x55f   :  { %v16133_v0 = vadd.f32 %v10162_v61, %v20038_v60  ;;  %13437 = vmatmul.mubr.bf16.vlgmr.msra.gmra.mrb[96].mxu1 %v21094_v55  ;;  %13195 = vmatpush1.bf16.msra.mxu0 %v17686_v30  ;;  %v11174_v47 = vmax.f32 %v16131_v43, 0.0  ;;  %v17698_v55 = vld [vmem:[#allocation8 + $0x740] ss:$16 sps:$4 sm:$0xff]   ;;  %v17712_v30 = vld [vmem:[#allocation8 + $0x784] ss:$16 sps:$4 sm:$0xff]  }
 0x560   :  { %v11181_v31 = vmax.f32 %v16132_v5, 0.0  ;;  %13446 = vmatprep.mubr.bf16.mxu1 %v21095_v54  ;;  %13518 = vmatpush1.bf16.msra.mxu1 %v17614_v44  ;;  %v17620_v54 = vld [vmem:[#allocation8 + $0x448] ss:$16 sps:$4 sm:$0xff]   ;;  %v17628_v44 = vld [vmem:[#allocation8 + $0x48c] ss:$16 sps:$4 sm:$0xff]  }
 0x561   :  { %v11182_v19 = vmax.f32 %v16133_v0, 0.0  ;;  %13519 = vmatprep.subr.bf16.mxu1 %v17619_v32  ;;  %13196 = vmatprep.subr.bf16.mxu0 %v17694_v17 }
 0x562   :  { %v20106_v25 = vpack.c.bf16 %v11181_v31, %v11173_v58  ;;  %v17718_v58 = vld [vmem:[#allocation8 + $0x7a4] ss:$16 sps:$4 sm:$0xff]  }
 0x563   :  { %v20108_v16 = vpack.c.bf16 %v11182_v19, %v11174_v47  ;;  %v10166_v8 = vpop.f32.mrb[56].mxu0  ;;  %13197 = vmatpush1.bf16.msra.mxu0 %v17692_v23  ;;  %v17631_v23 = vld [vmem:[#allocation8 + $0x4ac] ss:$16 sps:$4 sm:$0xff]   ;;  %v17716_v47 = vld [vmem:[#allocation8 + $0x7a0] ss:$16 sps:$4 sm:$0xff]  }
 0x564   :  { %v16134_v2 = vadd.f32 %v10166_v8, %v20035_v53  ;;  %v10168_v9 = vpop.f32.mrb[57].mxu0  ;;  %13520 = vmatpush1.bf16.msra.mxu1 %v17617_v59  ;;  %13198 = vmatprep.subr.bf16.mxu0 %v17700_v28  ;;  %v17629_v8 = vld [vmem:[#allocation8 + $0x4a8] ss:$16 sps:$4 sm:$0xff]  }
 0x565   :  { %v16135_v51 = vadd.f32 %v10168_v9, %v20038_v60  ;;  %v10170_v42 = vpop.f32.mrb[58].mxu0  ;;  %13147 = vmatprep.mubr.bf16.mxu0 %v20108_v16  ;;  %13521 = vmatprep.subr.bf16.mxu1 %v17622_v62 }
 0x566   :  { %v16136_v50 = vadd.f32 %v10170_v42, %v20035_v53  ;;  %v10172_v41 = vpop.f32.mrb[59].mxu0  ;;  %13148 = vmatmul.mubr.bf16.gmra.mrb[84].mxu0 %v20106_v25  ;;  %v11189_v12 = vmax.f32 %v16134_v2, 0.0  ;;  %v17730_v42 = vld [vmem:[#allocation8 + $0x7e4] ss:$16 sps:$4 sm:$0xff]  }
 0x567   :  { %v16137_v48 = vadd.f32 %v10172_v41, %v20038_v60  ;;  %13447 = vmatmul.mubr.bf16.gmra.mrb[100].mxu1 %v21096_v13  ;;  %13199 = vmatpush1.bf16.msra.mxu0 %v17698_v55  ;;  %v11190_v40 = vmax.f32 %v16135_v51, 0.0  ;;  %v17710_v13 = vld [vmem:[#allocation8 + $0x780] ss:$16 sps:$4 sm:$0xff]   ;;  %v17724_v55 = vld [vmem:[#allocation8 + $0x7c4] ss:$16 sps:$4 sm:$0xff]  }
 0x568   :  { %v11197_v4 = vmax.f32 %v16136_v50, 0.0  ;;  %13456 = vmatprep.mubr.bf16.mxu1 %v21097_v37  ;;  %13522 = vmatpush1.bf16.msra.mxu1 %v17620_v54  ;;  %v17626_v37 = vld [vmem:[#allocation8 + $0x488] ss:$16 sps:$4 sm:$0xff]   ;;  %v17643_v50 = vld [vmem:[#allocation8 + $0x50c] ss:$16 sps:$4 sm:$0xff]  }
 0x569   :  { %v11198_v34 = vmax.f32 %v16137_v48, 0.0  ;;  %13523 = vmatprep.subr.bf16.mxu1 %v17625_v36  ;;  %13200 = vmatprep.subr.bf16.mxu0 %v17706_v1  ;;  %v17728_v36 = vld [vmem:[#allocation8 + $0x7e0] ss:$16 sps:$4 sm:$0xff]   ;;  %v17635_v1 = vld [vmem:[#allocation8 + $0x4e8] ss:$16 sps:$4 sm:$0xff]  }
 0x56a   :  { %v20118_v43 = vpack.c.bf16 %v11197_v4, %v11189_v12  ;;  %v17641_v41 = vld [vmem:[#allocation8 + $0x508] ss:$16 sps:$4 sm:$0xff]   ;;  %v17649_v48 = vld [vmem:[#allocation8 + $0x52c] ss:$16 sps:$4 sm:$0xff]  }
 0x56b   :  { %v20120_v33 = vpack.c.bf16 %v11198_v34, %v11190_v40  ;;  %v10176_v32 = vpop.f32.mrb[60].mxu0  ;;  %13201 = vmatpush1.bf16.msra.mxu0 %v17704_v35  ;;  %v17655_v35 = vld [vmem:[#allocation8 + $0x54c] ss:$16 sps:$4 sm:$0xff]   ;;  %v17659_v4 = vld [vmem:[#allocation8 + $0x568] ss:$16 sps:$4 sm:$0xff]  }
 0x56c   :  { %v16138_v17 = vadd.f32 %v10176_v32, %v20035_v53  ;;  %v10178_v5 = vpop.f32.mrb[61].mxu0  ;;  %13524 = vmatpush1.bf16.msra.mxu1 %v17623_v38  ;;  %13202 = vmatprep.subr.bf16.mxu0 %v17712_v30  ;;  %v17661_v12 = vld [vmem:[#allocation8 + $0x56c] ss:$16 sps:$4 sm:$0xff]   ;;  %v17671_v30 = vld [vmem:[#allocation8 + $0x5a8] ss:$16 sps:$4 sm:$0xff]  }
 0x56d   :  { %v16139_v61 = vadd.f32 %v10178_v5, %v20038_v60  ;;  %v10180_v0 = vpop.f32.mrb[62].mxu0  ;;  %13157 = vmatprep.mubr.bf16.mxu0 %v20120_v33  ;;  %13525 = vmatprep.subr.bf16.mxu1 %v17628_v44  ;;  %v17667_v38 = vld [vmem:[#allocation8 + $0x58c] ss:$16 sps:$4 sm:$0xff]   ;;  %v17760_v34 = vld [vmem:[#allocation11 + $0x4] ss:$8 sps:$4 sm:$0xff]  }
 0x56e   :  { %v16140_v31 = vadd.f32 %v10180_v0, %v20035_v53  ;;  %v10182_v59 = vpop.f32.mrb[63].mxu0  ;;  %13158 = vmatmul.mubr.bf16.gmra.mrb[88].mxu0 %v20118_v43  ;;  %v11205_v19 = vmax.f32 %v16138_v17, 0.0  ;;  %v17634_v53 = vld [vmem:[#allocation8 + $0x4cc] ss:$16 sps:$4 sm:$0xff]   ;;  %v17683_v44 = vld [vmem:[#allocation8 + $0x5e8] ss:$16 sps:$4 sm:$0xff]  }
 0x56f   :  { %v16141_v28 = vadd.f32 %v10182_v59, %v20038_v60  ;;  %13457 = vmatmul.mubr.bf16.gmra.mrb[104].mxu1 %v21098_v49  ;;  %13203 = vmatpush1.bf16.msra.mxu0 %v17710_v13  ;;  %v11206_v2 = vmax.f32 %v16139_v61, 0.0  ;;  %v17722_v49 = vld [vmem:[#allocation8 + $0x7c0] ss:$16 sps:$4 sm:$0xff]   ;;  %v17632_v60 = vld [vmem:[#allocation8 + $0x4c8] ss:$16 sps:$4 sm:$0xff]   ;;  %v2343_v61 = vsub.s32 7, %v21106_v26 }
 0x570   :  { %v11213_v62 = vmax.f32 %v16140_v31, 0.0  ;;  %13466 = vmatprep.mubr.bf16.mxu1 %v21099_v24  ;;  %13526 = vmatpush1.bf16.msra.mxu1 %v17626_v37  ;;  %v17637_v24 = vld [vmem:[#allocation8 + $0x4ec] ss:$16 sps:$4 sm:$0xff]   ;;  %v17695_v13 = vld [vmem:[#allocation8 + $0x628] ss:$16 sps:$4 sm:$0xff]  }
 0x571   :  { %v11214_v9 = vmax.f32 %v16141_v28, 0.0  ;;  %13527 = vmatprep.subr.bf16.mxu1 %v17631_v23  ;;  %13204 = vmatprep.subr.bf16.mxu0 %v17718_v58  ;;  %v17679_v40 = vld [vmem:[#allocation8 + $0x5cc] ss:$16 sps:$4 sm:$0xff]   ;;  %v17701_v17 = vld [vmem:[#allocation8 + $0x648] ss:$16 sps:$4 sm:$0xff]  }
 0x572   :  { %v20130_v54 = vpack.c.bf16 %v11213_v62, %v11205_v19  ;;  %v17691_v32 = vld [vmem:[#allocation8 + $0x60c] ss:$16 sps:$4 sm:$0xff]   ;;  %v17707_v5 = vld [vmem:[#allocation8 + $0x668] ss:$16 sps:$4 sm:$0xff]  }
 0x573   :  { %v20132_v51 = vpack.c.bf16 %v11214_v9, %v11206_v2  ;;  %13205 = vmatpush1.bf16.msra.mxu0 %v17716_v47  ;;  %v17715_v37 = vld [vmem:[#allocation8 + $0x68c] ss:$16 sps:$4 sm:$0xff]  }
 0x574   :  { %13528 = vmatpush1.bf16.msra.mxu1 %v17629_v8  ;;  %13206 = vmatprep.subr.bf16.mxu0 %v17724_v55  ;;  %v17721_v0 = vld [vmem:[#allocation8 + $0x6ac] ss:$16 sps:$4 sm:$0xff]  }
 0x575   :  { %13167 = vmatprep.mubr.bf16.mxu0 %v20132_v51  ;;  %13529 = vmatprep.subr.bf16.mxu1 %v17634_v53  ;;  %v17727_v58 = vld [vmem:[#allocation8 + $0x6cc] ss:$16 sps:$4 sm:$0xff]  }
 0x576   :  { %13168 = vmatmul.mubr.bf16.gmra.mrb[92].mxu0 %v20130_v54 }
 0x577   :  { %13467 = vmatmul.mubr.bf16.gmra.mrb[108].mxu1 %v21100_v46  ;;  %13207 = vmatpush1.bf16.msra.mxu0 %v17722_v49  ;;  %v17647_v46 = vld [vmem:[#allocation8 + $0x528] ss:$16 sps:$4 sm:$0xff]  }
 0x578   :  { %13476 = vmatprep.mubr.bf16.mxu1 %v21101_v7  ;;  %13530 = vmatpush1.bf16.msra.mxu1 %v17632_v60  ;;  %v17653_v7 = vld [vmem:[#allocation8 + $0x548] ss:$16 sps:$4 sm:$0xff]  }
 0x579   :  { %13531 = vmatprep.subr.bf16.mxu1 %v17637_v24  ;;  %13208 = vmatprep.subr.bf16.mxu0 %v17730_v42  ;;  %v17731_v49 = vld [vmem:[#allocation8 + $0x6e8] ss:$16 sps:$4 sm:$0xff]   ;;  %v17736_v24 = vld [vmem:[#allocation8 + $0x70c] ss:$16 sps:$4 sm:$0xff]  }
 0x57b   :  { %13209 = vmatpush1.bf16.msra.mxu0 %v17728_v36 }
 0x57c   :  { %13532 = vmatpush1.bf16.msra.mxu1 %v17635_v1  ;;  %14235 = vmatprep.subr.bf16.mxu0 %v17760_v34  ;;  %v17758_v1 = vld [vmem:[#allocation11] ss:$8 sps:$4 sm:$0xff]  }
 0x57d   :  { %13533 = vmatprep.subr.bf16.mxu1 %v17643_v50 }
 0x57f   :  { %13477 = vmatmul.mubr.bf16.gmra.mrb[112].mxu1 %v21102_v52  ;;  %v17665_v52 = vld [vmem:[#allocation8 + $0x588] ss:$16 sps:$4 sm:$0xff]  }
 0x580   :  { %13486 = vmatprep.mubr.bf16.mxu1 %v21103_v57  ;;  %13534 = vmatpush1.bf16.msra.mxu1 %v17641_v41  ;;  %v17673_v57 = vld [vmem:[#allocation8 + $0x5ac] ss:$16 sps:$4 sm:$0xff]  }
 0x581   :  { %13535 = vmatprep.subr.bf16.mxu1 %v17649_v48  ;;  %v17763_v48 = vld [vmem:[#allocation11 + $0x14] ss:$8 sps:$4 sm:$0xff]  }
 0x584   :  { %13536 = vmatpush1.bf16.msra.mxu1 %v17647_v46 }
 0x585   :  { %13537 = vmatprep.subr.bf16.mxu1 %v17655_v35 }
 0x587   :  { %13487 = vmatmul.mubr.bf16.gmra.mrb[116].mxu1 %v21104_v63  ;;  %v17677_v63 = vld [vmem:[#allocation8 + $0x5c8] ss:$16 sps:$4 sm:$0xff]  }
 0x588   :  { %13496 = vmatprep.mubr.bf16.mxu1 %v19861_v39  ;;  %13538 = vmatpush1.bf16.msra.mxu1 %v17653_v7  ;;  %v17685_v39 = vld [vmem:[#allocation8 + $0x5ec] ss:$16 sps:$4 sm:$0xff]  }
 0x589   :  { %13539 = vmatprep.subr.bf16.mxu1 %v17661_v12  ;;  %v17739_v12 = vld [vmem:[#allocation8 + $0x72c] ss:$16 sps:$4 sm:$0xff]  }
 0x58c   :  { %13540 = vmatpush1.bf16.msra.mxu1 %v17659_v4 }
 0x58d   :  { %13541 = vmatprep.subr.bf16.mxu1 %v17667_v38  ;;  %v17761_v38 = vld [vmem:[#allocation11 + $0x10] ss:$8 sps:$4 sm:$0xff]  }
 0x58f   :  { %13497 = vmatmul.mubr.bf16.gmra.mrb[120].mxu1 %v21105_v29  ;;  %v17697_v29 = vld [vmem:[#allocation8 + $0x62c] ss:$16 sps:$4 sm:$0xff]  }
 0x590   :  { %13506 = vmatprep.mubr.bf16.mxu1 %v19873_v18  ;;  %13542 = vmatpush1.bf16.msra.mxu1 %v17665_v52  ;;  %v17689_v18 = vld [vmem:[#allocation8 + $0x608] ss:$16 sps:$4 sm:$0xff]  }
 0x591   :  { %13543 = vmatprep.subr.bf16.mxu1 %v17673_v57 }
 0x594   :  { %13544 = vmatpush1.bf16.msra.mxu1 %v17671_v30  ;;  %v17766_v30 = vld [vmem:[#allocation11 + $0x24] ss:$8 sps:$4 sm:$0xff]  }
 0x595   :  { %13545 = vmatprep.subr.bf16.mxu1 %v17679_v40 }
 0x597   :  { %13507 = vmatmul.mubr.bf16.gmra.mrb[124].mxu1 %v19871_v15  ;;  %v17703_v15 = vld [vmem:[#allocation8 + $0x64c] ss:$16 sps:$4 sm:$0xff]  }
 0x598   :  { %13546 = vmatpush1.bf16.msra.mxu1 %v17677_v63  ;;  %13549 = vmatprep.mubr.bf16.mxu1 %v20048_v56  ;;  %v17709_v56 = vld [vmem:[#allocation8 + $0x66c] ss:$16 sps:$4 sm:$0xff]  }
 0x599   :  { %13547 = vmatprep.subr.bf16.mxu1 %v17685_v39  ;;  %v17737_v39 = vld [vmem:[#allocation8 + $0x728] ss:$16 sps:$4 sm:$0xff]  }
 0x59c   :  { %13548 = vmatpush1.bf16.msra.mxu1 %v17683_v44  ;;  %v17742_v44 = vld [vmem:[#allocation8 + $0x74c] ss:$16 sps:$4 sm:$0xff]  }
 0x59d   :  { %13630 = vmatprep.subr.bf16.mxu1 %v17691_v32 }
 0x59f   :  { %13550 = vmatmul.mubr.bf16.vlgmr.msra.gmra.mrb[96].mxu1 %v20046_v6  ;;  %v2339_v6 = vsub.s32 6, %v21106_v26 }
 0x5a0   :  { %13559 = vmatprep.mubr.bf16.mxu1 %v20060_v11  ;;  %13631 = vmatpush1.bf16.msra.mxu1 %v17689_v18  ;;  %v17713_v11 = vld [vmem:[#allocation8 + $0x688] ss:$16 sps:$4 sm:$0xff]  }
 0x5a1   :  { %13632 = vmatprep.subr.bf16.mxu1 %v17697_v29  ;;  %v20154_v23 = vrot.slane %v20032_v45, %v2339_v6  ;;  %v17764_v29 = vld [vmem:[#allocation11 + $0x20] ss:$8 sps:$4 sm:$0xff]  }
 0x5a2   :  { %v17745_v6 = vld [vmem:[#allocation8 + $0x76c] ss:$16 sps:$4 sm:$0xff]  }
 0x5a4   :  { %13633 = vmatpush1.bf16.msra.mxu1 %v17695_v13 }
 0x5a5   :  { %13634 = vmatprep.subr.bf16.mxu1 %v17703_v15  ;;  %v17769_v15 = vld [vmem:[#allocation11 + $0x34] ss:$8 sps:$4 sm:$0xff]  }
 0x5a7   :  { %13560 = vmatmul.mubr.bf16.gmra.mrb[100].mxu1 %v20058_v27  ;;  %v20158_v27 = vrot.slane %v20032_v45, %v2343_v61  ;;  %v17767_v61 = vld [vmem:[#allocation11 + $0x30] ss:$8 sps:$4 sm:$0xff]  }
 0x5a8   :  { %13569 = vmatprep.mubr.bf16.mxu1 %v20072_v22  ;;  %13635 = vmatpush1.bf16.msra.mxu1 %v17701_v17  ;;  %v17719_v22 = vld [vmem:[#allocation8 + $0x6a8] ss:$16 sps:$4 sm:$0xff]  }
 0x5a9   :  { %13636 = vmatprep.subr.bf16.mxu1 %v17709_v56 }
 0x5ac   :  { %13637 = vmatpush1.bf16.msra.mxu1 %v17707_v5 }
 0x5ad   :  { %13638 = vmatprep.subr.bf16.mxu1 %v17715_v37 }
 0x5af   :  { %13570 = vmatmul.mubr.bf16.gmra.mrb[104].mxu1 %v20070_v3  ;;  %v17725_v3 = vld [vmem:[#allocation8 + $0x6c8] ss:$16 sps:$4 sm:$0xff]  }
 0x5b0   :  { %13579 = vmatprep.mubr.bf16.mxu1 %v20084_v14  ;;  %13639 = vmatpush1.bf16.msra.mxu1 %v17713_v11  ;;  %v17733_v14 = vld [vmem:[#allocation8 + $0x6ec] ss:$16 sps:$4 sm:$0xff]  }
 0x5b1   :  { %13640 = vmatprep.subr.bf16.mxu1 %v17721_v0  ;;  %v11010_v31 = vpop.f32.mrb[64].mxu1 }
 0x5b2   :  { %v16142_v59 = vadd.f32 %v11010_v31, %v20154_v23  ;;  %v11012_v28 = vpop.f32.mrb[65].mxu1 }
 0x5b3   :  { %v16143_v47 = vadd.f32 %v11012_v28, %v20158_v27  ;;  %v11014_v19 = vpop.f32.mrb[66].mxu1  ;;  %v17743_v28 = vld [vmem:[#allocation8 + $0x768] ss:$16 sps:$4 sm:$0xff]  }
 0x5b4   :  { %13641 = vmatpush1.bf16.msra.mxu1 %v17719_v22  ;;  %v16144_v62 = vadd.f32 %v11014_v19, %v20154_v23  ;;  %v11016_v8 = vpop.f32.mrb[67].mxu1  ;;  %v11095_v55 = vmax.f32 %v16142_v59, 0.0  ;;  %v17748_v19 = vld [vmem:[#allocation8 + $0x78c] ss:$16 sps:$4 sm:$0xff]  }
 0x5b5   :  { %13642 = vmatprep.subr.bf16.mxu1 %v17727_v58  ;;  %v16145_v45 = vadd.f32 %v11016_v8, %v20158_v27  ;;  %v11096_v9 = vmax.f32 %v16143_v47, 0.0  ;;  %v17772_v58 = vld [vmem:[#allocation11 + $0x44] ss:$8 sps:$4 sm:$0xff]   ;;  %v17770_v8 = vld [vmem:[#allocation11 + $0x40] ss:$8 sps:$4 sm:$0xff]  }
 0x5b6   :  { %v11103_v2 = vmax.f32 %v16144_v62, 0.0 }
 0x5b7   :  { %13580 = vmatmul.mubr.bf16.gmra.mrb[108].mxu1 %v20082_v10  ;;  %v11104_v53 = vmax.f32 %v16145_v45, 0.0  ;;  %v17775_v45 = vld [vmem:[#allocation11 + $0x54] ss:$8 sps:$4 sm:$0xff]  }
 0x5b8   :  { %13589 = vmatprep.mubr.bf16.mxu1 %v20096_v20  ;;  %13643 = vmatpush1.bf16.msra.mxu1 %v17725_v3  ;;  %v20166_v60 = vpack.c.bf16 %v11103_v2, %v11095_v55  ;;  %v17734_v20 = vld [vmem:[#allocation8 + $0x708] ss:$16 sps:$4 sm:$0xff]  }
 0x5b9   :  { %13644 = vmatprep.subr.bf16.mxu1 %v17733_v14  ;;  %v20168_v42 = vpack.c.bf16 %v11104_v53, %v11096_v9  ;;  %v11020_v36 = vpop.f32.mrb[68].mxu1 }
 0x5ba   :  { %v16146_v50 = vadd.f32 %v11020_v36, %v20154_v23  ;;  %v11022_v41 = vpop.f32.mrb[69].mxu1  ;;  %v17773_v36 = vld [vmem:[#allocation11 + $0x50] ss:$8 sps:$4 sm:$0xff]  }
 0x5bb   :  { %v16147_v10 = vadd.f32 %v11022_v41, %v20158_v27  ;;  %v11024_v46 = vpop.f32.mrb[70].mxu1  ;;  %13210 = vmatprep.mubr.bf16.mxu0 %v20168_v42  ;;  %v17778_v41 = vld [vmem:[#allocation11 + $0x64] ss:$8 sps:$4 sm:$0xff]  }
 0x5bc   :  { %13645 = vmatpush1.bf16.msra.mxu1 %v17731_v49  ;;  %v16148_v35 = vadd.f32 %v11024_v46, %v20154_v23  ;;  %v11026_v7 = vpop.f32.mrb[71].mxu1  ;;  %13211 = vmatmul.mubr.bf16.vlgmr.msra.gmra.mrb[64].mxu0 %v20166_v60  ;;  %v11111_v52 = vmax.f32 %v16146_v50, 0.0  ;;  %v17751_v49 = vld [vmem:[#allocation8 + $0x7ac] ss:$16 sps:$4 sm:$0xff]   ;;  %v17749_v46 = vld [vmem:[#allocation8 + $0x7a8] ss:$16 sps:$4 sm:$0xff]  }
 0x5bd   :  { %13646 = vmatprep.subr.bf16.mxu1 %v17736_v24  ;;  %v16149_v4 = vadd.f32 %v11026_v7, %v20158_v27  ;;  %14236 = vmatpush1.bf16.msra.mxu0 %v17758_v1  ;;  %v11112_v40 = vmax.f32 %v16147_v10, 0.0 }
 0x5be   :  { %v11119_v57 = vmax.f32 %v16148_v35, 0.0  ;;  %14237 = vmatprep.subr.bf16.mxu0 %v17763_v48  ;;  %v17754_v35 = vld [vmem:[#allocation8 + $0x7cc] ss:$16 sps:$4 sm:$0xff]  }
 0x5bf   :  { %13590 = vmatmul.mubr.bf16.gmra.mrb[112].mxu1 %v20094_v21  ;;  %v11120_v63 = vmax.f32 %v16149_v4, 0.0  ;;  %v17776_v4 = vld [vmem:[#allocation11 + $0x60] ss:$8 sps:$4 sm:$0xff]  }
 0x5c0   :  { %13599 = vmatprep.mubr.bf16.mxu1 %v20108_v16  ;;  %13647 = vmatpush1.bf16.msra.mxu1 %v17734_v20  ;;  %v20178_v34 = vpack.c.bf16 %v11119_v57, %v11111_v52  ;;  %v17740_v16 = vld [vmem:[#allocation8 + $0x748] ss:$16 sps:$4 sm:$0xff]  }
 0x5c1   :  { %13648 = vmatprep.subr.bf16.mxu1 %v17739_v12  ;;  %v20180_v32 = vpack.c.bf16 %v11120_v63, %v11112_v40  ;;  %v11030_v18 = vpop.f32.mrb[72].mxu1  ;;  %14238 = vmatpush1.bf16.msra.mxu0 %v17761_v38  ;;  %v17781_v52 = vld [vmem:[#allocation11 + $0x74] ss:$8 sps:$4 sm:$0xff]  }
 0x5c2   :  { %v16150_v13 = vadd.f32 %v11030_v18, %v20154_v23  ;;  %v11032_v21 = vpop.f32.mrb[73].mxu1  ;;  %14239 = vmatprep.subr.bf16.mxu0 %v17766_v30  ;;  %v17779_v18 = vld [vmem:[#allocation11 + $0x70] ss:$8 sps:$4 sm:$0xff]  }
 0x5c3   :  { %v16151_v17 = vadd.f32 %v11032_v21, %v20158_v27  ;;  %v11034_v56 = vpop.f32.mrb[74].mxu1  ;;  %13220 = vmatprep.mubr.bf16.mxu0 %v20180_v32  ;;  %v17784_v21 = vld [vmem:[#allocation11 + $0x84] ss:$8 sps:$4 sm:$0xff]  }
 0x5c4   :  { %13649 = vmatpush1.bf16.msra.mxu1 %v17737_v39  ;;  %v16152_v5 = vadd.f32 %v11034_v56, %v20154_v23  ;;  %v11036_v37 = vpop.f32.mrb[75].mxu1  ;;  %13221 = vmatmul.mubr.bf16.gmra.mrb[68].mxu0 %v20178_v34  ;;  %v11127_v0 = vmax.f32 %v16150_v13, 0.0  ;;  %v17757_v39 = vld [vmem:[#allocation8 + $0x7ec] ss:$16 sps:$4 sm:$0xff]   ;;  %v17755_v56 = vld [vmem:[#allocation8 + $0x7e8] ss:$16 sps:$4 sm:$0xff]  }
 0x5c5   :  { %13650 = vmatprep.subr.bf16.mxu1 %v17742_v44  ;;  %v16153_v11 = vadd.f32 %v11036_v37, %v20158_v27  ;;  %14240 = vmatpush1.bf16.msra.mxu0 %v17764_v29  ;;  %v11128_v31 = vmax.f32 %v16151_v17, 0.0 }
 0x5c6   :  { %v11135_v22 = vmax.f32 %v16152_v5, 0.0  ;;  %14241 = vmatprep.subr.bf16.mxu0 %v17769_v15 }
 0x5c7   :  { %13600 = vmatmul.mubr.bf16.gmra.mrb[116].mxu1 %v20106_v25  ;;  %v11136_v59 = vmax.f32 %v16153_v11, 0.0 }
 0x5c8   :  { %13609 = vmatprep.mubr.bf16.mxu1 %v20120_v33  ;;  %13651 = vmatpush1.bf16.msra.mxu1 %v17740_v16  ;;  %v20190_v47 = vpack.c.bf16 %v11135_v22, %v11127_v0  ;;  %v17746_v33 = vld [vmem:[#allocation8 + $0x788] ss:$16 sps:$4 sm:$0xff]  }
 0x5c9   :  { %13652 = vmatprep.subr.bf16.mxu1 %v17745_v6  ;;  %v20192_v3 = vpack.c.bf16 %v11136_v59, %v11128_v31  ;;  %v11040_v62 = vpop.f32.mrb[76].mxu1  ;;  %14242 = vmatpush1.bf16.msra.mxu0 %v17767_v61  ;;  %v17782_v6 = vld [vmem:[#allocation11 + $0x80] ss:$8 sps:$4 sm:$0xff]   ;;  %v17785_v59 = vld [vmem:[#allocation11 + $0x90] ss:$8 sps:$4 sm:$0xff]  }
 0x5ca   :  { %v16154_v14 = vadd.f32 %v11040_v62, %v20154_v23  ;;  %v11042_v25 = vpop.f32.mrb[77].mxu1  ;;  %14243 = vmatprep.subr.bf16.mxu0 %v17772_v58  ;;  %v17790_v62 = vld [vmem:[#allocation11 + $0xa4] ss:$8 sps:$4 sm:$0xff]  }
 0x5cb   :  { %v16155_v55 = vadd.f32 %v11042_v25, %v20158_v27  ;;  %v11044_v2 = vpop.f32.mrb[78].mxu1  ;;  %13230 = vmatprep.mubr.bf16.mxu0 %v20192_v3 }
 0x5cc   :  { %13653 = vmatpush1.bf16.msra.mxu1 %v17743_v28  ;;  %v16156_v9 = vadd.f32 %v11044_v2, %v20154_v23  ;;  %v11046_v53 = vpop.f32.mrb[79].mxu1  ;;  %13231 = vmatmul.mubr.bf16.gmra.mrb[72].mxu0 %v20190_v47  ;;  %v11143_v1 = vmax.f32 %v16154_v14, 0.0  ;;  %v17788_v2 = vld [vmem:[#allocation11 + $0xa0] ss:$8 sps:$4 sm:$0xff]  }
 0x5cd   :  { %13654 = vmatprep.subr.bf16.mxu1 %v17748_v19  ;;  %v16157_v24 = vadd.f32 %v11046_v53, %v20158_v27  ;;  %14244 = vmatpush1.bf16.msra.mxu0 %v17770_v8  ;;  %v11144_v48 = vmax.f32 %v16155_v55, 0.0  ;;  %v17793_v53 = vld [vmem:[#allocation11 + $0xb4] ss:$8 sps:$4 sm:$0xff]  }
 0x5ce   :  { %v11151_v50 = vmax.f32 %v16156_v9, 0.0  ;;  %14245 = vmatprep.subr.bf16.mxu0 %v17775_v45 }
 0x5cf   :  { %13610 = vmatmul.mubr.bf16.gmra.mrb[120].mxu1 %v20118_v43  ;;  %v11152_v10 = vmax.f32 %v16157_v24, 0.0 }
 0x5d0   :  { %13619 = vmatprep.mubr.bf16.mxu1 %v20132_v51  ;;  %13655 = vmatpush1.bf16.msra.mxu1 %v17746_v33  ;;  %v20202_v20 = vpack.c.bf16 %v11151_v50, %v11143_v1  ;;  %v17752_v51 = vld [vmem:[#allocation8 + $0x7c8] ss:$16 sps:$4 sm:$0xff]   ;;  %v17791_v1 = vld [vmem:[#allocation11 + $0xb0] ss:$8 sps:$4 sm:$0xff]  }
 0x5d1   :  { %13656 = vmatprep.subr.bf16.mxu1 %v17751_v49  ;;  %v20204_v7 = vpack.c.bf16 %v11152_v10, %v11144_v48  ;;  %v11050_v12 = vpop.f32.mrb[80].mxu1  ;;  %14246 = vmatpush1.bf16.msra.mxu0 %v17773_v36  ;;  %v17796_v48 = vld [vmem:[#allocation11 + $0xc4] ss:$8 sps:$4 sm:$0xff]  }
 0x5d2   :  { %v16158_v38 = vadd.f32 %v11050_v12, %v20154_v23  ;;  %v11052_v43 = vpop.f32.mrb[81].mxu1  ;;  %14247 = vmatprep.subr.bf16.mxu0 %v17778_v41 }
 0x5d3   :  { %v16159_v57 = vadd.f32 %v11052_v43, %v20158_v27  ;;  %v11054_v30 = vpop.f32.mrb[82].mxu1  ;;  %13240 = vmatprep.mubr.bf16.mxu0 %v20204_v7 }
 0x5d4   :  { %13657 = vmatpush1.bf16.msra.mxu1 %v17749_v46  ;;  %v16160_v40 = vadd.f32 %v11054_v30, %v20154_v23  ;;  %v11056_v63 = vpop.f32.mrb[83].mxu1  ;;  %13241 = vmatmul.mubr.bf16.gmra.mrb[76].mxu0 %v20202_v20  ;;  %v11159_v29 = vmax.f32 %v16158_v38, 0.0  ;;  %v17794_v38 = vld [vmem:[#allocation11 + $0xc0] ss:$8 sps:$4 sm:$0xff]  }
 0x5d5   :  { %13658 = vmatprep.subr.bf16.mxu1 %v17754_v35  ;;  %v16161_v44 = vadd.f32 %v11056_v63, %v20158_v27  ;;  %14248 = vmatpush1.bf16.msra.mxu0 %v17776_v4  ;;  %v11160_v15 = vmax.f32 %v16159_v57, 0.0  ;;  %v17799_v57 = vld [vmem:[#allocation11 + $0xd4] ss:$8 sps:$4 sm:$0xff]   ;;  %v17797_v63 = vld [vmem:[#allocation11 + $0xd0] ss:$8 sps:$4 sm:$0xff]  }
 0x5d6   :  { %v11167_v13 = vmax.f32 %v16160_v40, 0.0  ;;  %14249 = vmatprep.subr.bf16.mxu0 %v17781_v52 }
 0x5d7   :  { %13620 = vmatmul.mubr.bf16.gmra.mrb[124].mxu1 %v20130_v54  ;;  %v11168_v17 = vmax.f32 %v16161_v44, 0.0  ;;  %v17787_v54 = vld [vmem:[#allocation11 + $0x94] ss:$8 sps:$4 sm:$0xff]  }
 0x5d8   :  { %13659 = vmatpush1.bf16.msra.mxu1 %v17752_v51  ;;  %13662 = vmatprep.mubr.bf16.mxu1 %v20168_v42  ;;  %v20214_v16 = vpack.c.bf16 %v11167_v13, %v11159_v29 }
 0x5d9   :  { %13660 = vmatprep.subr.bf16.mxu1 %v17757_v39  ;;  %v20216_v5 = vpack.c.bf16 %v11168_v17, %v11160_v15  ;;  %v11060_v37 = vpop.f32.mrb[84].mxu1  ;;  %14250 = vmatpush1.bf16.msra.mxu0 %v17779_v18  ;;  %v17808_v15 = vld [vmem:[#allocation11 + $0x104] ss:$8 sps:$4 sm:$0xff]   ;;  %v21107_v17 = vld [vmem:[#allocation24_spill] sm:$0xff] }
 0x5da   :  { %v16162_v11 = vadd.f32 %v11060_v37, %v20154_v23  ;;  %v11062_v61 = vpop.f32.mrb[85].mxu1  ;;  %14251 = vmatprep.subr.bf16.mxu0 %v17784_v21 }
 0x5db   :  { %v16163_v0 = vadd.f32 %v11062_v61, %v20158_v27  ;;  %v11064_v22 = vpop.f32.mrb[86].mxu1  ;;  %13250 = vmatprep.mubr.bf16.mxu0 %v20216_v5 }
 0x5dc   :  { %13661 = vmatpush1.bf16.msra.mxu1 %v17755_v56  ;;  %v16164_v42 = vadd.f32 %v11064_v22, %v20154_v23  ;;  %v11066_v58 = vpop.f32.mrb[87].mxu1  ;;  %13251 = vmatmul.mubr.bf16.gmra.mrb[80].mxu0 %v20214_v16  ;;  %v11175_v28 = vmax.f32 %v16162_v11, 0.0 }
 0x5dd   :  { %v16165_v31 = vadd.f32 %v11066_v58, %v20158_v27  ;;  %14252 = vmatpush1.bf16.msra.mxu0 %v17782_v6  ;;  %v11176_v8 = vmax.f32 %v16163_v0, 0.0 }
 0x5de   :  { %v11183_v19 = vmax.f32 %v16164_v42, 0.0  ;;  %14253 = vmatprep.subr.bf16.mxu0 %v17787_v54 }
 0x5df   :  { %13663 = vmatmul.mubr.bf16.vlgmr.msra.gmra.mrb[96].mxu1 %v20166_v60  ;;  %v11184_v14 = vmax.f32 %v16165_v31, 0.0 }
 0x5e0   :  { %13672 = vmatprep.mubr.bf16.mxu1 %v20180_v32  ;;  %v11263_v25 = vpack.c.bf16 %v11183_v19, %v11175_v28 }
 0x5e1   :  { %v11264_v45 = vpack.c.bf16 %v11184_v14, %v11176_v8  ;;  %v11070_v55 = vpop.f32.mrb[88].mxu1  ;;  %14254 = vmatpush1.bf16.msra.mxu0 %v17785_v59  ;;  %v17806_v14 = vld [vmem:[#allocation11 + $0x100] ss:$8 sps:$4 sm:$0xff]  }
 0x5e2   :  { %v16166_v33 = vadd.f32 %v11070_v55, %v20154_v23  ;;  %v11072_v9 = vpop.f32.mrb[89].mxu1  ;;  %14255 = vmatprep.subr.bf16.mxu0 %v17790_v62  ;;  %v17811_v55 = vld [vmem:[#allocation11 + $0x114] ss:$8 sps:$4 sm:$0xff]  }
 0x5e3   :  { %v16167_v49 = vadd.f32 %v11072_v9, %v20158_v27  ;;  %v11074_v24 = vpop.f32.mrb[90].mxu1  ;;  %13260 = vmatprep.mubr.bf16.mxu0 %v11264_v45 }
 0x5e4   :  { %v16168_v60 = vadd.f32 %v11074_v24, %v20154_v23  ;;  %v11076_v36 = vpop.f32.mrb[91].mxu1  ;;  %13261 = vmatmul.mubr.bf16.gmra.mrb[84].mxu0 %v11263_v25  ;;  %v11191_v50 = vmax.f32 %v16166_v33, 0.0  ;;  %v17809_v24 = vld [vmem:[#allocation11 + $0x110] ss:$8 sps:$4 sm:$0xff]  }
 0x5e5   :  { %v16169_v32 = vadd.f32 %v11076_v36, %v20158_v27  ;;  %14256 = vmatpush1.bf16.msra.mxu0 %v17788_v2  ;;  %v11192_v10 = vmax.f32 %v16167_v49, 0.0 }
 0x5e6   :  { %v11199_v41 = vmax.f32 %v16168_v60, 0.0  ;;  %14257 = vmatprep.subr.bf16.mxu0 %v17793_v53 }
 0x5e7   :  { %13673 = vmatmul.mubr.bf16.gmra.mrb[100].mxu1 %v20178_v34  ;;  %v11200_v46 = vmax.f32 %v16169_v32, 0.0  ;;  %v17814_v32 = vld [vmem:[#allocation11 + $0x124] ss:$8 sps:$4 sm:$0xff]  }
 0x5e8   :  { %13682 = vmatprep.mubr.bf16.mxu1 %v20192_v3  ;;  %v11271_v35 = vpack.c.bf16 %v11199_v41, %v11191_v50 }
 0x5e9   :  { %v11272_v12 = vpack.c.bf16 %v11200_v46, %v11192_v10  ;;  %v11080_v4 = vpop.f32.mrb[92].mxu1  ;;  %14258 = vmatpush1.bf16.msra.mxu0 %v17791_v1  ;;  %v17812_v46 = vld [vmem:[#allocation11 + $0x120] ss:$8 sps:$4 sm:$0xff]  }
 0x5ea   :  { %v16170_v43 = vadd.f32 %v11080_v4, %v20154_v23  ;;  %v11082_v52 = vpop.f32.mrb[93].mxu1  ;;  %14259 = vmatprep.subr.bf16.mxu0 %v17796_v48  ;;  %v17817_v4 = vld [vmem:[#allocation11 + $0x134] ss:$8 sps:$4 sm:$0xff]  }
 0x5eb   :  { %v16171_v30 = vadd.f32 %v11082_v52, %v20158_v27  ;;  %v11084_v51 = vpop.f32.mrb[94].mxu1  ;;  %13270 = vmatprep.mubr.bf16.mxu0 %v11272_v12 }
 0x5ec   :  { %v16172_v34 = vadd.f32 %v11084_v51, %v20154_v23  ;;  %v11086_v40 = vpop.f32.mrb[95].mxu1  ;;  %13271 = vmatmul.mubr.bf16.gmra.mrb[88].mxu0 %v11271_v35  ;;  %v11207_v39 = vmax.f32 %v16170_v43, 0.0  ;;  %v17802_v23 = vld [vmem:[#allocation11 + $0xe4] ss:$8 sps:$4 sm:$0xff]   ;;  %v17815_v51 = vld [vmem:[#allocation11 + $0x130] ss:$8 sps:$4 sm:$0xff]  }
 0x5ed   :  { %v16173_v3 = vadd.f32 %v11086_v40, %v20158_v27  ;;  %14260 = vmatpush1.bf16.msra.mxu0 %v17794_v38  ;;  %v11208_v18 = vmax.f32 %v16171_v30, 0.0  ;;  %v17800_v27 = vld [vmem:[#allocation11 + $0xe0] ss:$8 sps:$4 sm:$0xff]  }
 0x5ee   :  { %v11215_v44 = vmax.f32 %v16172_v34, 0.0  ;;  %14261 = vmatprep.subr.bf16.mxu0 %v17799_v57 }
 0x5ef   :  { %13683 = vmatmul.mubr.bf16.gmra.mrb[104].mxu1 %v20190_v47  ;;  %v11216_v29 = vmax.f32 %v16173_v3, 0.0  ;;  %v17805_v47 = vld [vmem:[#allocation11 + $0xf4] ss:$8 sps:$4 sm:$0xff]   ;;  %v17820_v3 = vld [vmem:[#allocation11 + $0x144] ss:$8 sps:$4 sm:$0xff]  }
 0x5f0   :  { %13692 = vmatprep.mubr.bf16.mxu1 %v20204_v7  ;;  %v11279_v13 = vpack.c.bf16 %v11215_v44, %v11207_v39  ;;  %v17803_v7 = vld [vmem:[#allocation11 + $0xf0] ss:$8 sps:$4 sm:$0xff]  }
 0x5f1   :  { %v11280_v21 = vpack.c.bf16 %v11216_v29, %v11208_v18  ;;  %14262 = vmatpush1.bf16.msra.mxu0 %v17797_v63 }
 0x5f2   :  { %14263 = vmatprep.subr.bf16.mxu0 %v17802_v23 }
 0x5f3   :  { %13280 = vmatprep.mubr.bf16.mxu0 %v11280_v21 }
 0x5f4   :  { %13281 = vmatmul.mubr.bf16.gmra.mrb[92].mxu0 %v11279_v13 }
 0x5f5   :  { %14264 = vmatpush1.bf16.msra.mxu0 %v17800_v27  ;;  %v17823_v27 = vld [vmem:[#allocation11 + $0x154] ss:$8 sps:$4 sm:$0xff]  }
 0x5f6   :  { %14265 = vmatprep.subr.bf16.mxu0 %v17805_v47 }
 0x5f7   :  { %13693 = vmatmul.mubr.bf16.gmra.mrb[108].mxu1 %v20202_v20  ;;  %v20241_v20 = vld [vmem:[#allocation10] sm:$0xf] }
 0x5f8   :  { %13702 = vmatprep.mubr.bf16.mxu1 %v20216_v5  ;;  %v20245_v56 = vrot.slane %v20241_v20, %v21107_v17 }
 0x5f9   :  { %14266 = vmatpush1.bf16.msra.mxu0 %v17803_v7 }
 0x5fa   :  { %14348 = vmatprep.subr.bf16.mxu0 %v17808_v15 }
 0x5ff   :  { %13703 = vmatmul.mubr.bf16.gmra.mrb[112].mxu1 %v20214_v16  ;;  %v21108_v16 = vld [vmem:[#allocation26_spill] sm:$0xff] }
 0x600   :  { %13712 = vmatprep.mubr.bf16.mxu1 %v11264_v45  ;;  %v20249_v5 = vrot.slane %v20241_v20, %v21108_v16 }
 0x607   :  { %13713 = vmatmul.mubr.bf16.gmra.mrb[116].mxu1 %v11263_v25 }
 0x608   :  { %13722 = vmatprep.mubr.bf16.mxu1 %v11272_v12 }
 0x60f   :  { %13723 = vmatmul.mubr.bf16.gmra.mrb[120].mxu1 %v11271_v35 }
 0x610   :  { %13732 = vmatprep.mubr.bf16.mxu1 %v11280_v21 }
 0x617   :  { %13733 = vmatmul.mubr.bf16.gmra.mrb[124].mxu1 %v11279_v13  ;;  %v17818_v13 = vld [vmem:[#allocation11 + $0x140] ss:$8 sps:$4 sm:$0xff]  }
 0x68f   :  { %v13212_v37 = vpop.f32.mrb[64].mxu0 }
 0x690   :  { %v16174_v6 = vadd.f32 %v13212_v37, %v20245_v56  ;;  %v13214_v11 = vpop.f32.mrb[65].mxu0 }
 0x691   :  { %v16175_v61 = vadd.f32 %v13214_v11, %v20249_v5  ;;  %v13216_v54 = vpop.f32.mrb[66].mxu0  ;;  %v17821_v11 = vld [vmem:[#allocation11 + $0x150] ss:$8 sps:$4 sm:$0xff]  }
 0x692   :  { %v16176_v0 = vadd.f32 %v13216_v54, %v20245_v56  ;;  %v13218_v22 = vpop.f32.mrb[67].mxu0  ;;  %v13743_v58 = vmax.f32 %v16174_v6, 0.0 }
 0x693   :  { %v16177_v42 = vadd.f32 %v13218_v22, %v20249_v5  ;;  %v13744_v59 = vmax.f32 %v16175_v61, 0.0 }
 0x694   :  { %v13747_v31 = vmax.f32 %v16176_v0, 0.0  ;;  %v17826_v0 = vld [vmem:[#allocation11 + $0x164] ss:$8 sps:$4 sm:$0xff]  }
 0x695   :  { %v13748_v28 = vmax.f32 %v16177_v42, 0.0 }
 0x696   :  { %v13807_v19 = vpack.c.bf16 %v13747_v31, %v13743_v58  ;;  %v21109_v31 = vsub.s32 2, %v21106_v26 }
 0x697   :  { %v13808_v62 = vpack.c.bf16 %v13748_v28, %v13744_v59  ;;  %v13222_v8 = vpop.f32.mrb[68].mxu0 }
 0x698   :  { %v16178_v25 = vadd.f32 %v13222_v8, %v20245_v56  ;;  %v13224_v45 = vpop.f32.mrb[69].mxu0  ;;  %v20270_v59 = vrot.slane %v20241_v20, %v21109_v31 }
 0x699   :  { %v16179_v2 = vadd.f32 %v13224_v45, %v20249_v5  ;;  %v13226_v33 = vpop.f32.mrb[70].mxu0  ;;  %14267 = vmatprep.mubr.bf16.mxu0 %v13808_v62  ;;  %v21110_v62 = vsub.s32 3, %v21106_v26 }
 0x69a   :  { %v16180_v9 = vadd.f32 %v13226_v33, %v20245_v56  ;;  %v13228_v53 = vpop.f32.mrb[71].mxu0  ;;  %14268 = vmatmul.mubr.bf16.vlgmr.msra.gmra.mrb[96].mxu0 %v13807_v19  ;;  %v13751_v60 = vmax.f32 %v16178_v25, 0.0 }
 0x69b   :  { %v16181_v49 = vadd.f32 %v13228_v53, %v20249_v5  ;;  %14349 = vmatpush1.bf16.msra.mxu0 %v17806_v14  ;;  %v13752_v1 = vmax.f32 %v16179_v2, 0.0  ;;  %v20275_v8 = vrot.slane %v20241_v20, %v21110_v62  ;;  %v17824_v14 = vld [vmem:[#allocation11 + $0x160] ss:$8 sps:$4 sm:$0xff]  }
 0x69c   :  { %v13755_v36 = vmax.f32 %v16180_v9, 0.0  ;;  %14350 = vmatprep.subr.bf16.mxu0 %v17811_v55  ;;  %v17829_v55 = vld [vmem:[#allocation11 + $0x174] ss:$8 sps:$4 sm:$0xff]  }
 0x69d   :  { %v13756_v50 = vmax.f32 %v16181_v49, 0.0 }
 0x69e   :  { %v13811_v41 = vpack.c.bf16 %v13755_v36, %v13751_v60 }
 0x69f   :  { %v13812_v48 = vpack.c.bf16 %v13756_v50, %v13752_v1  ;;  %v13232_v10 = vpop.f32.mrb[72].mxu0  ;;  %14351 = vmatpush1.bf16.msra.mxu0 %v17809_v24 }
 0x6a0   :  { %v16182_v35 = vadd.f32 %v13232_v10, %v20245_v56  ;;  %v13234_v12 = vpop.f32.mrb[73].mxu0  ;;  %14352 = vmatprep.subr.bf16.mxu0 %v17814_v32  ;;  %v17827_v32 = vld [vmem:[#allocation11 + $0x170] ss:$8 sps:$4 sm:$0xff]   ;;  %v17832_v10 = vld [vmem:[#allocation11 + $0x184] ss:$8 sps:$4 sm:$0xff]  }
 0x6a1   :  { %v16183_v38 = vadd.f32 %v13234_v12, %v20249_v5  ;;  %v13236_v43 = vpop.f32.mrb[74].mxu0  ;;  %14277 = vmatprep.mubr.bf16.mxu0 %v13812_v48 }
 0x6a2   :  { %v16184_v52 = vadd.f32 %v13236_v43, %v20245_v56  ;;  %v13238_v57 = vpop.f32.mrb[75].mxu0  ;;  %14278 = vmatmul.mubr.bf16.gmra.mrb[100].mxu0 %v13811_v41  ;;  %v13759_v34 = vmax.f32 %v16182_v35, 0.0 }
 0x6a3   :  { %v16185_v30 = vadd.f32 %v13238_v57, %v20249_v5  ;;  %14353 = vmatpush1.bf16.msra.mxu0 %v17812_v46  ;;  %v13760_v63 = vmax.f32 %v16183_v38, 0.0 }
 0x6a4   :  { %v13763_v40 = vmax.f32 %v16184_v52, 0.0  ;;  %14354 = vmatprep.subr.bf16.mxu0 %v17817_v4 }
 0x6a5   :  { %v13764_v39 = vmax.f32 %v16185_v30, 0.0 }
 0x6a6   :  { %v13815_v44 = vpack.c.bf16 %v13763_v40, %v13759_v34  ;;  %v17830_v34 = vld [vmem:[#allocation11 + $0x180] ss:$8 sps:$4 sm:$0xff]  }
 0x6a7   :  { %v13816_v18 = vpack.c.bf16 %v13764_v39, %v13760_v63  ;;  %v13242_v29 = vpop.f32.mrb[76].mxu0  ;;  %14355 = vmatpush1.bf16.msra.mxu0 %v17815_v51  ;;  %v17835_v39 = vld [vmem:[#allocation11 + $0x194] ss:$8 sps:$4 sm:$0xff]  }
 0x6a8   :  { %v16186_v21 = vadd.f32 %v13242_v29, %v20245_v56  ;;  %v13244_v23 = vpop.f32.mrb[77].mxu0  ;;  %14356 = vmatprep.subr.bf16.mxu0 %v17820_v3 }
 0x6a9   :  { %v16187_v47 = vadd.f32 %v13244_v23, %v20249_v5  ;;  %v13246_v7 = vpop.f32.mrb[78].mxu0  ;;  %14287 = vmatprep.mubr.bf16.mxu0 %v13816_v18 }
 0x6aa   :  { %v16188_v15 = vadd.f32 %v13246_v7, %v20245_v56  ;;  %v13248_v37 = vpop.f32.mrb[79].mxu0  ;;  %14288 = vmatmul.mubr.bf16.gmra.mrb[104].mxu0 %v13815_v44  ;;  %v13767_v61 = vmax.f32 %v16186_v21, 0.0 }
 0x6ab   :  { %v16189_v6 = vadd.f32 %v13248_v37, %v20249_v5  ;;  %14357 = vmatpush1.bf16.msra.mxu0 %v17818_v13  ;;  %v13768_v22 = vmax.f32 %v16187_v47, 0.0 }
 0x6ac   :  { %v13771_v54 = vmax.f32 %v16188_v15, 0.0  ;;  %14358 = vmatprep.subr.bf16.mxu0 %v17823_v27 }
 0x6ad   :  { %v13772_v42 = vmax.f32 %v16189_v6, 0.0  ;;  %v17833_v6 = vld [vmem:[#allocation11 + $0x190] ss:$8 sps:$4 sm:$0xff]  }
 0x6ae   :  { %v13819_v58 = vpack.c.bf16 %v13771_v54, %v13767_v61 }
 0x6af   :  { %v13820_v28 = vpack.c.bf16 %v13772_v42, %v13768_v22  ;;  %v13252_v19 = vpop.f32.mrb[80].mxu0  ;;  %14359 = vmatpush1.bf16.msra.mxu0 %v17821_v11  ;;  %v17838_v22 = vld [vmem:[#allocation11 + $0x1a4] ss:$8 sps:$4 sm:$0xff]  }
 0x6b0   :  { %v16190_v25 = vadd.f32 %v13252_v19, %v20245_v56  ;;  %v13254_v45 = vpop.f32.mrb[81].mxu0  ;;  %14360 = vmatprep.subr.bf16.mxu0 %v17826_v0 }
 0x6b1   :  { %v16191_v2 = vadd.f32 %v13254_v45, %v20249_v5  ;;  %v13256_v33 = vpop.f32.mrb[82].mxu0  ;;  %14297 = vmatprep.mubr.bf16.mxu0 %v13820_v28 }
 0x6b2   :  { %v13664_v9 = vpop.f32.mrb[96].mxu1  ;;  %v16192_v53 = vadd.f32 %v13256_v33, %v20245_v56  ;;  %v13258_v24 = vpop.f32.mrb[83].mxu0  ;;  %14298 = vmatmul.mubr.bf16.gmra.mrb[108].mxu0 %v13819_v58  ;;  %v13775_v1 = vmax.f32 %v16190_v25, 0.0 }
 0x6b3   :  { %v16206_v49 = vadd.f32 %v13664_v9, %v20270_v59  ;;  %v13666_v26 = vpop.f32.mrb[97].mxu1  ;;  %v16193_v20 = vadd.f32 %v13258_v24, %v20249_v5  ;;  %14361 = vmatpush1.bf16.msra.mxu0 %v17824_v14  ;;  %v13776_v46 = vmax.f32 %v16191_v2, 0.0  ;;  %v17836_v2 = vld [vmem:[#allocation11 + $0x1a0] ss:$8 sps:$4 sm:$0xff]  }
 0x6b4   :  { %v16207_v60 = vadd.f32 %v13666_v26, %v20275_v8  ;;  %v13668_v36 = vpop.f32.mrb[98].mxu1  ;;  %v13779_v50 = vmax.f32 %v16192_v53, 0.0  ;;  %14362 = vmatprep.subr.bf16.mxu0 %v17829_v55 }
 0x6b5   :  { %v16208_v41 = vadd.f32 %v13668_v36, %v20270_v59  ;;  %v13670_v48 = vpop.f32.mrb[99].mxu1  ;;  %v13780_v35 = vmax.f32 %v16193_v20, 0.0  ;;  %v13745_v38 = vmax.f32 %v16206_v49, 0.0  ;;  %v17841_v49 = vld [vmem:[#allocation11 + $0x1b4] ss:$8 sps:$4 sm:$0xff]  }
 0x6b6   :  { %v16209_v12 = vadd.f32 %v13670_v48, %v20275_v8  ;;  %v13823_v4 = vpack.c.bf16 %v13779_v50, %v13775_v1  ;;  %v13746_v57 = vmax.f32 %v16207_v60, 0.0 }
 0x6b7   :  { %v13749_v43 = vmax.f32 %v16208_v41, 0.0  ;;  %v13824_v52 = vpack.c.bf16 %v13780_v35, %v13776_v46  ;;  %v13262_v51 = vpop.f32.mrb[84].mxu0  ;;  %14363 = vmatpush1.bf16.msra.mxu0 %v17827_v32  ;;  %v17839_v46 = vld [vmem:[#allocation11 + $0x1b0] ss:$8 sps:$4 sm:$0xff]  }
 0x6b8   :  { %v13750_v30 = vmax.f32 %v16209_v12, 0.0  ;;  %v16194_v3 = vadd.f32 %v13262_v51, %v20245_v56  ;;  %v13264_v63 = vpop.f32.mrb[85].mxu0  ;;  %14364 = vmatprep.subr.bf16.mxu0 %v17832_v10 }
 0x6b9   :  { %v20285_v40 = vpack.c.bf16 %v13749_v43, %v13745_v38  ;;  %v16195_v18 = vadd.f32 %v13264_v63, %v20249_v5  ;;  %v13266_v29 = vpop.f32.mrb[86].mxu0  ;;  %14307 = vmatprep.mubr.bf16.mxu0 %v13824_v52  ;;  %v17844_v43 = vld [vmem:[#allocation11 + $0x1c4] ss:$8 sps:$4 sm:$0xff]  }
 0x6ba   :  { %v20288_v44 = vpack.c.bf16 %v13750_v30, %v13746_v57  ;;  %v13674_v13 = vpop.f32.mrb[100].mxu1  ;;  %v16196_v21 = vadd.f32 %v13266_v29, %v20245_v56  ;;  %v13268_v27 = vpop.f32.mrb[87].mxu0  ;;  %14308 = vmatmul.mubr.bf16.gmra.mrb[112].mxu0 %v13823_v4  ;;  %v13783_v11 = vmax.f32 %v16194_v3, 0.0 }
 0x6bb   :  { %v16210_v23 = vadd.f32 %v13674_v13, %v20270_v59  ;;  %v13676_v47 = vpop.f32.mrb[101].mxu1  ;;  %v16197_v7 = vadd.f32 %v13268_v27, %v20249_v5  ;;  %14365 = vmatpush1.bf16.msra.mxu0 %v17830_v34  ;;  %v13784_v42 = vmax.f32 %v16195_v18, 0.0  ;;  %v17842_v13 = vld [vmem:[#allocation11 + $0x1c0] ss:$8 sps:$4 sm:$0xff]  }
 0x6bc   :  { %v16211_v15 = vadd.f32 %v13676_v47, %v20275_v8  ;;  %v13678_v37 = vpop.f32.mrb[102].mxu1  ;;  %v13787_v61 = vmax.f32 %v16196_v21, 0.0  ;;  %14366 = vmatprep.subr.bf16.mxu0 %v17835_v39  ;;  %v17847_v47 = vld [vmem:[#allocation11 + $0x1d4] ss:$8 sps:$4 sm:$0xff]  }
 0x6bd   :  { %v16212_v54 = vadd.f32 %v13678_v37, %v20270_v59  ;;  %v13680_v0 = vpop.f32.mrb[103].mxu1  ;;  %v13788_v58 = vmax.f32 %v16197_v7, 0.0  ;;  %v13753_v19 = vmax.f32 %v16210_v23, 0.0 }
 0x6be   :  { %v16213_v31 = vadd.f32 %v13680_v0, %v20275_v8  ;;  %v13827_v28 = vpack.c.bf16 %v13787_v61, %v13783_v11  ;;  %v13754_v25 = vmax.f32 %v16211_v15, 0.0 }
 0x6bf   :  { %v13757_v62 = vmax.f32 %v16212_v54, 0.0  ;;  %v13828_v14 = vpack.c.bf16 %v13788_v58, %v13784_v42  ;;  %v13272_v55 = vpop.f32.mrb[88].mxu0  ;;  %14367 = vmatpush1.bf16.msra.mxu0 %v17833_v6 }
 0x6c0   :  { %v13758_v45 = vmax.f32 %v16213_v31, 0.0  ;;  %v16198_v9 = vadd.f32 %v13272_v55, %v20245_v56  ;;  %v13274_v53 = vpop.f32.mrb[89].mxu0  ;;  %14368 = vmatprep.subr.bf16.mxu0 %v17838_v22  ;;  %v17845_v31 = vld [vmem:[#allocation11 + $0x1d0] ss:$8 sps:$4 sm:$0xff]  }
 0x6c1   :  { %v20297_v33 = vpack.c.bf16 %v13757_v62, %v13753_v19  ;;  %v16199_v26 = vadd.f32 %v13274_v53, %v20249_v5  ;;  %v13276_v20 = vpop.f32.mrb[90].mxu0  ;;  %14317 = vmatprep.mubr.bf16.mxu0 %v13828_v14 }
 0x6c2   :  { %v20300_v24 = vpack.c.bf16 %v13758_v45, %v13754_v25  ;;  %v13684_v60 = vpop.f32.mrb[104].mxu1  ;;  %v16200_v36 = vadd.f32 %v13276_v20, %v20245_v56  ;;  %v13278_v1 = vpop.f32.mrb[91].mxu0  ;;  %14318 = vmatmul.mubr.bf16.gmra.mrb[116].mxu0 %v13827_v28  ;;  %v13791_v35 = vmax.f32 %v16198_v9, 0.0  ;;  %v17850_v25 = vld [vmem:[#allocation11 + $0x1e4] ss:$8 sps:$4 sm:$0xff]  }
 0x6c3   :  { %v16214_v32 = vadd.f32 %v13684_v60, %v20270_v59  ;;  %v13686_v50 = vpop.f32.mrb[105].mxu1  ;;  %v16201_v41 = vadd.f32 %v13278_v1, %v20249_v5  ;;  %14369 = vmatpush1.bf16.msra.mxu0 %v17836_v2  ;;  %v13792_v52 = vmax.f32 %v16199_v26, 0.0  ;;  %v17848_v20 = vld [vmem:[#allocation11 + $0x1e0] ss:$8 sps:$4 sm:$0xff]  }
 0x6c4   :  { %v16215_v48 = vadd.f32 %v13686_v50, %v20275_v8  ;;  %v13688_v10 = vpop.f32.mrb[106].mxu1  ;;  %v13795_v12 = vmax.f32 %v16200_v36, 0.0  ;;  %14370 = vmatprep.subr.bf16.mxu0 %v17841_v49  ;;  %v17853_v36 = vld [vmem:[#allocation11 + $0x1f4] ss:$8 sps:$4 sm:$0xff]  }
 0x6c5   :  { %v16216_v4 = vadd.f32 %v13688_v10, %v20270_v59  ;;  %v13690_v38 = vpop.f32.mrb[107].mxu1  ;;  %v13796_v57 = vmax.f32 %v16201_v41, 0.0  ;;  %v13761_v34 = vmax.f32 %v16214_v32, 0.0 }
 0x6c6   :  { %v16217_v30 = vadd.f32 %v13690_v38, %v20275_v8  ;;  %v13831_v51 = vpack.c.bf16 %v13795_v12, %v13791_v35  ;;  %v13762_v39 = vmax.f32 %v16215_v48, 0.0 }
 0x6c7   :  { %v13765_v3 = vmax.f32 %v16216_v4, 0.0  ;;  %v13832_v63 = vpack.c.bf16 %v13796_v57, %v13792_v52  ;;  %v13282_v29 = vpop.f32.mrb[92].mxu0  ;;  %14371 = vmatpush1.bf16.msra.mxu0 %v17839_v46  ;;  %v17851_v46 = vld [vmem:[#allocation11 + $0x1f0] ss:$8 sps:$4 sm:$0xff]  }
 0x6c8   :  { %v13766_v18 = vmax.f32 %v16217_v30, 0.0  ;;  %v16202_v23 = vadd.f32 %v13282_v29, %v20245_v56  ;;  %v13284_v27 = vpop.f32.mrb[93].mxu0  ;;  %14372 = vmatprep.subr.bf16.mxu0 %v17844_v43 }
 0x6c9   :  { %v20309_v21 = vpack.c.bf16 %v13765_v3, %v13761_v34  ;;  %v16203_v15 = vadd.f32 %v13284_v27, %v20249_v5  ;;  %v13286_v37 = vpop.f32.mrb[94].mxu0  ;;  %14327 = vmatprep.mubr.bf16.mxu0 %v13832_v63 }
 0x6ca   :  { %v20312_v7 = vpack.c.bf16 %v13766_v18, %v13762_v39  ;;  %v13694_v6 = vpop.f32.mrb[108].mxu1  ;;  %v16204_v11 = vadd.f32 %v13286_v37, %v20245_v56  ;;  %v13288_v54 = vpop.f32.mrb[95].mxu0  ;;  %14328 = vmatmul.mubr.bf16.gmra.mrb[120].mxu0 %v13831_v51  ;;  %v13799_v28 = vmax.f32 %v16202_v23, 0.0 }
 0x6cb   :  { %v16218_v61 = vadd.f32 %v13694_v6, %v20270_v59  ;;  %v13696_v0 = vpop.f32.mrb[109].mxu1  ;;  %v16205_v22 = vadd.f32 %v13288_v54, %v20249_v5  ;;  %14373 = vmatpush1.bf16.msra.mxu0 %v17842_v13  ;;  %v13800_v56 = vmax.f32 %v16203_v15, 0.0 }
 0x6cc   :  { %v16219_v42 = vadd.f32 %v13696_v0, %v20275_v8  ;;  %v13698_v58 = vpop.f32.mrb[110].mxu1  ;;  %v13803_v19 = vmax.f32 %v16204_v11, 0.0  ;;  %14374 = vmatprep.subr.bf16.mxu0 %v17847_v47 }
 0x6cd   :  { %v16220_v62 = vadd.f32 %v13698_v58, %v20270_v59  ;;  %v13700_v14 = vpop.f32.mrb[111].mxu1  ;;  %v13804_v45 = vmax.f32 %v16205_v22, 0.0  ;;  %v13769_v9 = vmax.f32 %v16218_v61, 0.0 }
 0x6ce   :  { %v16221_v55 = vadd.f32 %v13700_v14, %v20275_v8  ;;  %v13835_v2 = vpack.c.bf16 %v13803_v19, %v13799_v28  ;;  %v13770_v49 = vmax.f32 %v16219_v42, 0.0 }
 0x6cf   :  { %v13773_v53 = vmax.f32 %v16220_v62, 0.0  ;;  %v13836_v5 = vpack.c.bf16 %v13804_v45, %v13800_v56  ;;  %14375 = vmatpush1.bf16.msra.mxu0 %v17845_v31 }
 0x6d0   :  { %v13774_v26 = vmax.f32 %v16221_v55, 0.0  ;;  %14376 = vmatprep.subr.bf16.mxu0 %v17850_v25 }
 0x6d1   :  { %v20321_v60 = vpack.c.bf16 %v13773_v53, %v13769_v9  ;;  %14337 = vmatprep.mubr.bf16.mxu0 %v13836_v5 }
 0x6d2   :  { %v13822_v32 = vpack.c.bf16 %v13774_v26, %v13770_v49  ;;  %v13704_v1 = vpop.f32.mrb[112].mxu1  ;;  %14338 = vmatmul.mubr.bf16.gmra.mrb[124].mxu0 %v13835_v2 }
 0x6d3   :  { %v16222_v50 = vadd.f32 %v13704_v1, %v20270_v59  ;;  %v13706_v41 = vpop.f32.mrb[113].mxu1  ;;  %14377 = vmatpush1.bf16.msra.mxu0 %v17848_v20  ;;  %14380 = vmatprep.mubr.bf16.mxu0 %v20288_v44 }
 0x6d4   :  { %v16223_v48 = vadd.f32 %v13706_v41, %v20275_v8  ;;  %v13708_v10 = vpop.f32.mrb[114].mxu1  ;;  %14378 = vmatprep.subr.bf16.mxu0 %v17853_v36 }
 0x6d5   :  { %v16224_v35 = vadd.f32 %v13708_v10, %v20270_v59  ;;  %v13710_v12 = vpop.f32.mrb[115].mxu1  ;;  %v13777_v38 = vmax.f32 %v16222_v50, 0.0 }
 0x6d6   :  { %v16225_v4 = vadd.f32 %v13710_v12, %v20275_v8  ;;  %v13778_v52 = vmax.f32 %v16223_v48, 0.0 }
 0x6d7   :  { %v13781_v43 = vmax.f32 %v16224_v35, 0.0  ;;  %14379 = vmatpush1.bf16.msra.mxu0 %v17851_v46 }
 0x6d8   :  { %v13782_v57 = vmax.f32 %v16225_v4, 0.0 }
 0x6d9   :  { %v13825_v30 = vpack.c.bf16 %v13781_v43, %v13777_v38 }
 0x6da   :  { %v13826_v51 = vpack.c.bf16 %v13782_v57, %v13778_v52  ;;  %v13714_v34 = vpop.f32.mrb[116].mxu1  ;;  %14381 = vmatmul.mubr.bf16.vlgmr.msra.gmra.mrb[96].mxu0 %v20285_v40 }
 0x6db   :  { %v16226_v3 = vadd.f32 %v13714_v34, %v20270_v59  ;;  %v13716_v63 = vpop.f32.mrb[117].mxu1  ;;  %14390 = vmatprep.mubr.bf16.mxu0 %v20300_v24 }
 0x6dc   :  { %v16227_v44 = vadd.f32 %v13716_v63, %v20275_v8  ;;  %v13718_v39 = vpop.f32.mrb[118].mxu1 }
 0x6dd   :  { %v16228_v18 = vadd.f32 %v13718_v39, %v20270_v59  ;;  %v13720_v29 = vpop.f32.mrb[119].mxu1  ;;  %v13785_v23 = vmax.f32 %v16226_v3, 0.0 }
 0x6de   :  { %v16229_v13 = vadd.f32 %v13720_v29, %v20275_v8  ;;  %v13786_v47 = vmax.f32 %v16227_v44, 0.0 }
 0x6df   :  { %v13789_v27 = vmax.f32 %v16228_v18, 0.0 }
 0x6e0   :  { %v13790_v15 = vmax.f32 %v16229_v13, 0.0 }
 0x6e1   :  { %v13829_v37 = vpack.c.bf16 %v13789_v27, %v13785_v23 }
 0x6e2   :  { %v13830_v6 = vpack.c.bf16 %v13790_v15, %v13786_v47  ;;  %v13724_v11 = vpop.f32.mrb[120].mxu1  ;;  %14391 = vmatmul.mubr.bf16.gmra.mrb[100].mxu0 %v20297_v33 }
 0x6e3   :  { %v16230_v61 = vadd.f32 %v13724_v11, %v20270_v59  ;;  %v13726_v40 = vpop.f32.mrb[121].mxu1  ;;  %14400 = vmatprep.mubr.bf16.mxu0 %v20312_v7 }
 0x6e4   :  { %v16231_v54 = vadd.f32 %v13726_v40, %v20275_v8  ;;  %v13728_v24 = vpop.f32.mrb[122].mxu1 }
 0x6e5   :  { %v16232_v0 = vadd.f32 %v13728_v24, %v20270_v59  ;;  %v13730_v22 = vpop.f32.mrb[123].mxu1  ;;  %v13793_v58 = vmax.f32 %v16230_v61, 0.0 }
 0x6e6   :  { %v16233_v42 = vadd.f32 %v13730_v22, %v20275_v8  ;;  %v13794_v28 = vmax.f32 %v16231_v54, 0.0 }
 0x6e7   :  { %v13797_v31 = vmax.f32 %v16232_v0, 0.0 }
 0x6e8   :  { %v13798_v19 = vmax.f32 %v16233_v42, 0.0 }
 0x6e9   :  { %v13833_v62 = vpack.c.bf16 %v13797_v31, %v13793_v58 }
 0x6ea   :  { %v13834_v14 = vpack.c.bf16 %v13798_v19, %v13794_v28  ;;  %v13734_v25 = vpop.f32.mrb[124].mxu1  ;;  %14401 = vmatmul.mubr.bf16.gmra.mrb[104].mxu0 %v20309_v21 }
 0x6eb   :  { %v16234_v56 = vadd.f32 %v13734_v25, %v20270_v59  ;;  %v13736_v33 = vpop.f32.mrb[125].mxu1  ;;  %14410 = vmatprep.mubr.bf16.mxu0 %v13822_v32  ;;  %v14493_v32 = vld [vmem:[#allocation14] sm:$0x3] }
 0x6ec   :  { %v16235_v45 = vadd.f32 %v13736_v33, %v20275_v8  ;;  %v13738_v7 = vpop.f32.mrb[126].mxu1  ;;  %v20354_v41 = vrot.slane %v14493_v32, %v21107_v17  ;;  %v20358_v46 = vrot.slane %v14493_v32, %v21108_v16 }
 0x6ed   :  { %v16236_v55 = vadd.f32 %v13738_v7, %v20270_v59  ;;  %v13740_v2 = vpop.f32.mrb[127].mxu1  ;;  %v13801_v53 = vmax.f32 %v16234_v56, 0.0  ;;  %v13903_v59 = vld [vmem:[#allocation13] sm:$0x3] }
 0x6ee   :  { %v16237_v9 = vadd.f32 %v13740_v2, %v20275_v8  ;;  %v13802_v49 = vmax.f32 %v16235_v45, 0.0  ;;  %v20347_v21 = vrot.slane %v13903_v59, %v21107_v17  ;;  %v20350_v8 = vrot.slane %v13903_v59, %v21108_v16 }
 0x6ef   :  { %v13805_v5 = vmax.f32 %v16236_v55, 0.0 }
 0x6f0   :  { %v13806_v26 = vmax.f32 %v16237_v9, 0.0 }
 0x6f1   :  { %v13837_v20 = vpack.c.bf16 %v13805_v5, %v13801_v53 }
 0x6f2   :  { %v13838_v36 = vpack.c.bf16 %v13806_v26, %v13802_v49  ;;  %14411 = vmatmul.mubr.bf16.gmra.mrb[108].mxu0 %v20321_v60 }
 0x6f3   :  { %14420 = vmatprep.mubr.bf16.mxu0 %v13826_v51 }
 0x6fa   :  { %14421 = vmatmul.mubr.bf16.gmra.mrb[112].mxu0 %v13825_v30 }
 0x6fb   :  { %14430 = vmatprep.mubr.bf16.mxu0 %v13830_v6 }
 0x702   :  { %14431 = vmatmul.mubr.bf16.gmra.mrb[116].mxu0 %v13829_v37 }
 0x703   :  { %14440 = vmatprep.mubr.bf16.mxu0 %v13834_v14 }
 0x70a   :  { %14441 = vmatmul.mubr.bf16.gmra.mrb[120].mxu0 %v13833_v62 }
 0x70b   :  { %14450 = vmatprep.mubr.bf16.mxu0 %v13838_v36 }
 0x712   :  { %14451 = vmatmul.mubr.bf16.gmra.mrb[124].mxu0 %v13837_v20 }
 0x7ad   :  { %v14382_v1 = vpop.f32.mrb[96].mxu0 }
 0x7ae   :  { %v16238_v50 = vadd.f32 %v14382_v1, %v20347_v21  ;;  %v14384_v60 = vpop.f32.mrb[97].mxu0 }
 0x7af   :  { %v16239_v48 = vadd.f32 %v14384_v60, %v20350_v8  ;;  %v14386_v10 = vpop.f32.mrb[98].mxu0 }
 0x7b0   :  { %v14461_v35 = vmax.f32 %v16238_v50, 0.0  ;;  %v16240_v12 = vadd.f32 %v14386_v10, %v20347_v21  ;;  %v14388_v4 = vpop.f32.mrb[99].mxu0 }
 0x7b1   :  { %v14462_v38 = vmax.f32 %v16239_v48, 0.0  ;;  %v16241_v43 = vadd.f32 %v14388_v4, %v20350_v8 }
 0x7b2   :  { %v14463_v52 = vmax.f32 %v16240_v12, 0.0  ;;  %v14505_v57 = vmul.f32 %v20354_v41, %v14461_v35 }
 0x7b3   :  { %v14464_v30 = vmax.f32 %v16241_v43, 0.0  ;;  %v14506_v17 = vmul.f32 %v20358_v46, %v14462_v38 }
 0x7b4   :  { %v14507_v51 = vmul.f32 %v20354_v41, %v14463_v52 }
 0x7b5   :  { %v14508_v34 = vmul.f32 %v20358_v46, %v14464_v30  ;;  %v14392_v3 = vpop.f32.mrb[100].mxu0  ;;  %v14537_v16 = vadd.f32 %v14506_v17, %v14505_v57 }
 0x7b6   :  { %v16242_v63 = vadd.f32 %v14392_v3, %v20347_v21  ;;  %v14394_v44 = vpop.f32.mrb[101].mxu0 }
 0x7b7   :  { %v16243_v39 = vadd.f32 %v14394_v44, %v20350_v8  ;;  %v14396_v18 = vpop.f32.mrb[102].mxu0  ;;  %14538 = vadd.xlane.f32.xlu0 %v14537_v16  ;;  %v14540_v29 = vadd.f32 %v14508_v34, %v14507_v51 }
 0x7b8   :  { %v14465_v13 = vmax.f32 %v16242_v63, 0.0  ;;  %v16244_v23 = vadd.f32 %v14396_v18, %v20347_v21  ;;  %v14398_v27 = vpop.f32.mrb[103].mxu0 }
 0x7b9   :  { %v14466_v47 = vmax.f32 %v16243_v39, 0.0  ;;  %v16245_v15 = vadd.f32 %v14398_v27, %v20350_v8 }
 0x7ba   :  { %v14467_v37 = vmax.f32 %v16244_v23, 0.0  ;;  %v14509_v6 = vmul.f32 %v20354_v41, %v14465_v13 }
 0x7bb   :  { %v14468_v11 = vmax.f32 %v16245_v15, 0.0  ;;  %14541 = vadd.xlane.f32.xlu0 %v14540_v29  ;;  %v14510_v61 = vmul.f32 %v20358_v46, %v14466_v47 }
 0x7bc   :  { %v14511_v40 = vmul.f32 %v20354_v41, %v14467_v37 }
 0x7bd   :  { %v14512_v54 = vmul.f32 %v20358_v46, %v14468_v11  ;;  %v14402_v24 = vpop.f32.mrb[104].mxu0  ;;  %v14543_v0 = vadd.f32 %v14510_v61, %v14509_v6 }
 0x7be   :  { %v16246_v22 = vadd.f32 %v14402_v24, %v20347_v21  ;;  %v14404_v42 = vpop.f32.mrb[105].mxu0 }
 0x7bf   :  { %v16247_v58 = vadd.f32 %v14404_v42, %v20350_v8  ;;  %v14406_v31 = vpop.f32.mrb[106].mxu0  ;;  %14544 = vadd.xlane.f32.xlu1 %v14543_v0  ;;  %v14546_v28 = vadd.f32 %v14512_v54, %v14511_v40 }
 0x7c0   :  { %v14469_v19 = vmax.f32 %v16246_v22, 0.0  ;;  %v16248_v62 = vadd.f32 %v14406_v31, %v20347_v21  ;;  %v14408_v14 = vpop.f32.mrb[107].mxu0 }
 0x7c1   :  { %v14470_v25 = vmax.f32 %v16247_v58, 0.0  ;;  %v16249_v56 = vadd.f32 %v14408_v14, %v20350_v8 }
 0x7c2   :  { %v14513_v33 = vmul.f32 %v20354_v41, %v14469_v19  ;;  %v14471_v45 = vmax.f32 %v16248_v62, 0.0 }
 0x7c3   :  { %v14514_v7 = vmul.f32 %v20358_v46, %v14470_v25  ;;  %v14472_v55 = vmax.f32 %v16249_v56, 0.0  ;;  %14547 = vadd.xlane.f32.xlu1 %v14546_v28 }
 0x7c4   :  { %v14515_v2 = vmul.f32 %v20354_v41, %v14471_v45 }
 0x7c5   :  { %v14516_v9 = vmul.f32 %v20358_v46, %v14472_v55  ;;  %v14412_v53 = vpop.f32.mrb[108].mxu0  ;;  %v14549_v5 = vadd.f32 %v14514_v7, %v14513_v33 }
 0x7c6   :  { %v16250_v49 = vadd.f32 %v14412_v53, %v20347_v21  ;;  %v14414_v26 = vpop.f32.mrb[109].mxu0 }
 0x7c7   :  { %v16251_v20 = vadd.f32 %v14414_v26, %v20350_v8  ;;  %v14416_v36 = vpop.f32.mrb[110].mxu0  ;;  %14550 = vadd.xlane.f32.xlu0 %v14549_v5  ;;  %v14552_v59 = vadd.f32 %v14516_v9, %v14515_v2 }
 0x7c8   :  { %v14473_v32 = vmax.f32 %v16250_v49, 0.0  ;;  %v16252_v1 = vadd.f32 %v14416_v36, %v20347_v21  ;;  %v14418_v50 = vpop.f32.mrb[111].mxu0 }
 0x7c9   :  { %v14474_v60 = vmax.f32 %v16251_v20, 0.0  ;;  %v16253_v48 = vadd.f32 %v14418_v50, %v20350_v8  ;;  %14553 = vadd.xlane.f32.xlu1 %v14552_v59 }
 0x7ca   :  { %v14517_v10 = vmul.f32 %v20354_v41, %v14473_v32  ;;  %v14475_v35 = vmax.f32 %v16252_v1, 0.0 }
 0x7cb   :  { %v14518_v12 = vmul.f32 %v20358_v46, %v14474_v60  ;;  %v14476_v4 = vmax.f32 %v16253_v48, 0.0 }
 0x7cc   :  { %v14519_v38 = vmul.f32 %v20354_v41, %v14475_v35 }
 0x7cd   :  { %v14520_v43 = vmul.f32 %v20358_v46, %v14476_v4  ;;  %v14422_v52 = vpop.f32.mrb[112].mxu0  ;;  %v14555_v57 = vadd.f32 %v14518_v12, %v14517_v10 }
 0x7ce   :  { %v16254_v30 = vadd.f32 %v14422_v52, %v20347_v21  ;;  %v14424_v17 = vpop.f32.mrb[113].mxu0 }
 0x7cf   :  { %v16255_v51 = vadd.f32 %v14424_v17, %v20350_v8  ;;  %v14426_v34 = vpop.f32.mrb[114].mxu0  ;;  %14556 = vadd.xlane.f32.xlu0 %v14555_v57  ;;  %v14558_v3 = vadd.f32 %v14520_v43, %v14519_v38 }
 0x7d0   :  { %v14477_v16 = vmax.f32 %v16254_v30, 0.0  ;;  %v16256_v63 = vadd.f32 %v14426_v34, %v20347_v21  ;;  %v14428_v44 = vpop.f32.mrb[115].mxu0 }
 0x7d1   :  { %v14478_v39 = vmax.f32 %v16255_v51, 0.0  ;;  %v16257_v18 = vadd.f32 %v14428_v44, %v20350_v8  ;;  %14559 = vadd.xlane.f32.xlu1 %v14558_v3 }
 0x7d2   :  { %v14521_v29 = vmul.f32 %v20354_v41, %v14477_v16  ;;  %v14479_v13 = vmax.f32 %v16256_v63, 0.0 }
 0x7d3   :  { %v14522_v23 = vmul.f32 %v20358_v46, %v14478_v39  ;;  %v14480_v27 = vmax.f32 %v16257_v18, 0.0 }
 0x7d4   :  { %v14523_v47 = vmul.f32 %v20354_v41, %v14479_v13 }
 0x7d5   :  { %v14524_v15 = vmul.f32 %v20358_v46, %v14480_v27  ;;  %v14432_v37 = vpop.f32.mrb[116].mxu0  ;;  %v14561_v6 = vadd.f32 %v14522_v23, %v14521_v29 }
 0x7d6   :  { %v16258_v11 = vadd.f32 %v14432_v37, %v20347_v21  ;;  %v14434_v61 = vpop.f32.mrb[117].mxu0 }
 0x7d7   :  { %v16259_v40 = vadd.f32 %v14434_v61, %v20350_v8  ;;  %v14436_v54 = vpop.f32.mrb[118].mxu0  ;;  %14562 = vadd.xlane.f32.xlu0 %v14561_v6  ;;  %v14564_v24 = vadd.f32 %v14524_v15, %v14523_v47 }
 0x7d8   :  { %v14481_v0 = vmax.f32 %v16258_v11, 0.0  ;;  %v16260_v22 = vadd.f32 %v14436_v54, %v20347_v21  ;;  %v14438_v42 = vpop.f32.mrb[119].mxu0 }
 0x7d9   :  { %v14482_v58 = vmax.f32 %v16259_v40, 0.0  ;;  %v16261_v31 = vadd.f32 %v14438_v42, %v20350_v8  ;;  %14565 = vadd.xlane.f32.xlu1 %v14564_v24 }
 0x7da   :  { %v14525_v28 = vmul.f32 %v20354_v41, %v14481_v0  ;;  %v14483_v19 = vmax.f32 %v16260_v22, 0.0 }
 0x7db   :  { %v14526_v62 = vmul.f32 %v20358_v46, %v14482_v58  ;;  %v14484_v14 = vmax.f32 %v16261_v31, 0.0 }
 0x7dc   :  { %v14527_v25 = vmul.f32 %v20354_v41, %v14483_v19 }
 0x7dd   :  { %v14528_v56 = vmul.f32 %v20358_v46, %v14484_v14  ;;  %v14442_v33 = vpop.f32.mrb[120].mxu0  ;;  %v14567_v45 = vadd.f32 %v14526_v62, %v14525_v28 }
 0x7de   :  { %v16262_v7 = vadd.f32 %v14442_v33, %v20347_v21  ;;  %v14444_v55 = vpop.f32.mrb[121].mxu0 }
 0x7df   :  { %v16263_v2 = vadd.f32 %v14444_v55, %v20350_v8  ;;  %v14446_v9 = vpop.f32.mrb[122].mxu0  ;;  %14568 = vadd.xlane.f32.xlu0 %v14567_v45  ;;  %v14570_v53 = vadd.f32 %v14528_v56, %v14527_v25 }
 0x7e0   :  { %v14485_v5 = vmax.f32 %v16262_v7, 0.0  ;;  %v16264_v49 = vadd.f32 %v14446_v9, %v20347_v21  ;;  %v14448_v26 = vpop.f32.mrb[123].mxu0 }
 0x7e1   :  { %v14486_v20 = vmax.f32 %v16263_v2, 0.0  ;;  %v16265_v36 = vadd.f32 %v14448_v26, %v20350_v8  ;;  %14571 = vadd.xlane.f32.xlu1 %v14570_v53 }
 0x7e2   :  { %v14529_v59 = vmul.f32 %v20354_v41, %v14485_v5  ;;  %v14487_v32 = vmax.f32 %v16264_v49, 0.0 }
 0x7e3   :  { %v14530_v1 = vmul.f32 %v20358_v46, %v14486_v20  ;;  %v14488_v50 = vmax.f32 %v16265_v36, 0.0 }
 0x7e4   :  { %v14531_v60 = vmul.f32 %v20354_v41, %v14487_v32 }
 0x7e5   :  { %v14532_v48 = vmul.f32 %v20358_v46, %v14488_v50  ;;  %v14452_v10 = vpop.f32.mrb[124].mxu0  ;;  %v14573_v35 = vadd.f32 %v14530_v1, %v14529_v59 }
 0x7e6   :  { %v16266_v12 = vadd.f32 %v14452_v10, %v20347_v21  ;;  %v14454_v4 = vpop.f32.mrb[125].mxu0 }
 0x7e7   :  { %v16267_v38 = vadd.f32 %v14454_v4, %v20350_v8  ;;  %v14456_v43 = vpop.f32.mrb[126].mxu0  ;;  %14574 = vadd.xlane.f32.xlu0 %v14573_v35  ;;  %v14576_v52 = vadd.f32 %v14532_v48, %v14531_v60 }
 0x7e8   :  { %v14489_v57 = vmax.f32 %v16266_v12, 0.0  ;;  %v16268_v30 = vadd.f32 %v14456_v43, %v20347_v21  ;;  %v14458_v17 = vpop.f32.mrb[127].mxu0  ;;  %v16013_v21 = vld [vmem:[#allocation2] ss:$0 sm:$0xff] }
 0x7e9   :  { %v14490_v51 = vmax.f32 %v16267_v38, 0.0  ;;  %v16269_v34 = vadd.f32 %v14458_v17, %v20350_v8  ;;  %14577 = vadd.xlane.f32.xlu1 %v14576_v52 }
 0x7ea   :  { %v14533_v3 = vmul.f32 %v20354_v41, %v14489_v57  ;;  %v14491_v16 = vmax.f32 %v16268_v30, 0.0 }
 0x7eb   :  { %v14534_v63 = vmul.f32 %v20358_v46, %v14490_v51  ;;  %v14492_v44 = vmax.f32 %v16269_v34, 0.0 }
 0x7ec   :  { %v14535_v39 = vmul.f32 %v20354_v41, %v14491_v16 }
 0x7ed   :  { %v14536_v18 = vmul.f32 %v20358_v46, %v14492_v44  ;;  %v14579_v29 = vadd.f32 %v14534_v63, %v14533_v3 }
 0x7ef   :  { %14580 = vadd.xlane.f32.xlu0 %v14579_v29  ;;  %v14582_v13 = vadd.f32 %v14536_v18, %v14535_v39 }
 0x7f1   :  { %14583 = vadd.xlane.f32.xlu1 %v14582_v13 }
 0x844   :  { %v14539_v23 = vpop.xlane.xlu0 %14538 }
 0x845   :  { %v14592_v27 = vadd.f32 %v16013_v21, %v14539_v23 }
 0x847   :  { %14609 = vst.msk [vmem:[#allocation16] sm:$0xff] %vm14608_vm0, %v14592_v27 }
 0x848   :  { %v14542_v8 = vpop.xlane.xlu0 %14541 }
 0x84c   :  { %v14545_v47 = vpop.xlane.xlu1 %14544 }
 0x84e   :  { %v14642_v15 = vld [vmem:[#allocation16] sm:$0xf] }
 0x84f   :  { %14643 = vst [vmem:[%s20434_s9] sm:$0xf] %v14642_v15 }
 0x850   :  { %v14548_v37 = vpop.xlane.xlu1 %14547 }
 0x854   :  { %v14551_v41 = vpop.xlane.xlu0 %14550 }
 0x856   :  { %v14554_v6 = vpop.xlane.xlu1 %14553 }
 0x85c   :  { %v14557_v46 = vpop.xlane.xlu0 %14556 }
 0x85e   :  { %v14560_v11 = vpop.xlane.xlu1 %14559 }
 0x864   :  { %v14563_v61 = vpop.xlane.xlu0 %14562 }
 0x866   :  { %v14566_v40 = vpop.xlane.xlu1 %14565 }
 0x86c   :  { %v14569_v54 = vpop.xlane.xlu0 %14568 }
 0x86e   :  { %v14572_v24 = vpop.xlane.xlu1 %14571 }
 0x874   :  { %v14575_v0 = vpop.xlane.xlu0 %14574 }
 0x876   :  { %v14578_v22 = vpop.xlane.xlu1 %14577 }
 0x87c   :  { %v14581_v42 = vpop.xlane.xlu0 %14580 }
 0x87e   :  { %v14584_v58 = vpop.xlane.xlu1 %14583 }
 0x87f   :  { %14660 = vsyncpa [#allocation4], 1 }
 0x880   :  { %14661 = vsyncpa [#allocation6], 1 }
 0x881   :  { %14662 = vsyncpa [#allocation9], 1 }
 0x882   :  { %14663 = vsyncpa [#allocation12], 1 }
 0x883   :  { %14664 = vsyncpa [#allocation15], 1 }

</bundles_post_ra>
